<compile_context>
chip_gen: v5e
topology: v5e:2x2
jax: 0.10.0
libtpu: 0.0.40
codegen_flags: <defaults>
</compile_context>

<pallas_src>
import functools

import jax
import jax.numpy as jnp
from jax.experimental import pallas as pl
from jax.experimental.pallas import tpu as pltpu

MAX_LV = 3  # cmd_args.max_lv


def _graph_ebd_kernel(nf_ref, adj_ref, mask_ref,
                      w_n2l_ref, b_n2l_ref,
                      w_conv_ref, b_conv_ref,
                      w_out_ref, b_out_ref,
                      embed_ref):
    """One grid step == GB graphs (P padded node rows each), fully VMEM resident."""
    cdt = w_conv_ref.dtype                      # MXU input dtype (bf16 or f32)
    GB, P, F = nf_ref.shape
    D = w_conv_ref.shape[0]
    O = w_out_ref.shape[1]

    # int8 0/1 adjacency -> compute dtype (exact; VPU cast hidden under MXU work)
    adj = adj_ref[...].astype(jnp.float32).astype(cdt)      # (GB, P, P)
    mask = mask_ref[...]                                    # (GB, P, 1) f32

    # hoist only what is reused across the level loop (JAX does not CSE re-reads)
    w_conv = w_conv_ref[...]                                # (D, D)

    # input node linear: flatten GB*P rows into a single MXU matmul
    nf2 = nf_ref[...].reshape(GB * P, F)
    msg = jnp.dot(nf2, w_n2l_ref[...],
                  preferred_element_type=jnp.float32) + b_n2l_ref[...]   # (GB*P, D) f32
    msg_plus_bias = msg + b_conv_ref[...]                   # (GB*P, D) f32 (kept f32)
    cur = jnp.maximum(msg, 0.0).astype(cdt)                 # (GB*P, D) cdt (vreg relief)

    # mean-field message-passing levels (MAX_LV is tiny -> static unroll)
    for _ in range(MAX_LV):
        pooled = jnp.einsum('gpq,gqd->gpd', adj, cur.reshape(GB, P, D),
                            preferred_element_type=jnp.float32)          # (GB, P, D)
        pooled = pooled.reshape(GB * P, D).astype(cdt)
        lin = jnp.dot(pooled, w_conv, preferred_element_type=jnp.float32)
        cur = jnp.maximum(lin + msg_plus_bias, 0.0).astype(cdt)

    # output projection — again one (GB*P, D) @ (D, O) matmul; w_out read at its use
    out = jnp.dot(cur, w_out_ref[...],
                  preferred_element_type=jnp.float32) + b_out_ref[...]
    out = jnp.maximum(out, 0.0)                             # (GB*P, O) f32

    # graph pooling: block-diagonal subg == masked row-sum of each graph's own block
    y = jnp.sum(out.reshape(GB, P, O) * mask, axis=1)       # (GB, O)
    embed_ref[...] = jnp.maximum(y, 0.0).reshape(embed_ref.shape)


def _default_vmem_limit_bytes():
    """Safe scoped-VMEM budget derived from the actual chip (v7x only has 64 MiB)."""
    try:
        cap = pltpu.get_tpu_info().vmem_capacity_bytes
        return int(min(cap * 3 // 4, 96 << 20))
    except Exception:
        return 32 << 20


_VMEM_LIMIT_BYTES = _default_vmem_limit_bytes()


@functools.partial(jax.jit, static_argnames=("compute_dtype", "graphs_per_step"))
def graph_ebd_forward(node_feat, adj, mask,
                      w_n2l, b_n2l, w_conv, b_conv, w_out, b_out,
                      compute_dtype=jnp.bfloat16, graphs_per_step=8):
    """node_feat (G,P,F), adj (G,P,P) 0/1 (stored int8), mask (G,P,1) -> embed (G,O)."""
    G, P, F = node_feat.shape
    D = w_n2l.shape[1]
    O = w_out.shape[1]

    # choose GB: divides G; prefer a multiple of 8 (sublane-dense output block)
    GB = max(1, min(graphs_per_step, G))
    while GB > 1 and G % GB:
        GB -= 1

    # bf16 MXU inputs (0/1 adjacency is exact); int8 adjacency halves the dominant DMA.
    nf = node_feat.astype(compute_dtype)
    a = adj.astype(jnp.int8)
    m = mask.astype(jnp.float32)
    w1, w2, w3 = (w.astype(compute_dtype) for w in (w_n2l, w_conv, w_out))
    b1, b2, b3 = (b.astype(jnp.float32) for b in (b_n2l, b_conv, b_out))

    flops = G * (2 * P * F * D                                # input linear
                 + MAX_LV * (2 * P * P * D + 2 * P * D * D)   # message passing
                 + 2 * P * D * O                              # output linear
                 + 2 * P * O)                                 # pooling
    ins = (nf, a, m, w1, b1, w2, b2, w3, b3)
    bytes_accessed = sum(int(x.size) * x.dtype.itemsize for x in ins) + G * O * 4

    # Lane/sublane-dense output path when GB is a multiple of 8 (or the full batch);
    # otherwise fall back to a (GB,1,O) block (always layout-legal).
    if GB % 8 == 0 or GB == G:
        out_shape = jax.ShapeDtypeStruct((G, O), jnp.float32)
        out_spec = pl.BlockSpec((GB, O), lambda g: (g, 0))
        post = lambda o: o
    else:
        out_shape = jax.ShapeDtypeStruct((G, 1, O), jnp.float32)
        out_spec = pl.BlockSpec((GB, 1, O), lambda g: (g, 0, 0))
        post = lambda o: o.reshape(G, O)

    rep2 = lambda g: (0, 0)         # weights/biases: same block every grid step
    out = pl.pallas_call(
        _graph_ebd_kernel,
        out_shape=out_shape,
        grid=(G // GB,),
        in_specs=[
            pl.BlockSpec((GB, P, F), lambda g: (g, 0, 0)),    # node features
            pl.BlockSpec((GB, P, P), lambda g: (g, 0, 0)),    # int8 adjacency blocks
            pl.BlockSpec((GB, P, 1), lambda g: (g, 0, 0)),    # valid-node mask
            pl.BlockSpec((F, D), rep2),                       # W_n2l
            pl.BlockSpec((1, D), rep2),                       # b_n2l
            pl.BlockSpec((D, D), rep2),                       # W_conv
            pl.BlockSpec((1, D), rep2),                       # b_conv
            pl.BlockSpec((D, O), rep2),                       # W_out
            pl.BlockSpec((1, O), rep2),                       # b_out
        ],
        out_specs=out_spec,
        compiler_params=pltpu.CompilerParams(
            dimension_semantics=("parallel",),                # shard grid steps over v7x's 2 TCs
            vmem_limit_bytes=_VMEM_LIMIT_BYTES),
        cost_estimate=pl.CostEstimate(flops=int(flops), transcendentals=0,
                                      bytes_accessed=int(bytes_accessed)),
    )(nf, a, m, w1, b1, w2, b2, w3, b3)
    return post(out)


def _linear_params(key, in_dim, out_dim):
    """Deterministic torch.nn.Linear-style init, stored as (in, out) + (1, out)."""
    kw, kb = jax.random.split(key)
    bound = 1.0 / jnp.sqrt(jnp.float32(in_dim))
    w = jax.random.uniform(kw, (in_dim, out_dim), jnp.float32, -bound, bound)
    b = jax.random.uniform(kb, (1, out_dim), jnp.float32, -bound, bound)
    return w, b


def _reference(node_feat, adj, mask, w_n2l, b_n2l, w_conv, b_conv, w_out, b_out):
    """Pure-f32 batched reference (identical math to the dense n2n / subg form)."""
    hi = jax.lax.Precision.HIGHEST
    msg = jnp.einsum('gpf,fd->gpd', node_feat, w_n2l, precision=hi) + b_n2l
    cur = jnp.maximum(msg, 0.0)
    for _ in range(MAX_LV):
        pooled = jnp.einsum('gpq,gqd->gpd', adj, cur, precision=hi)
        cur = jnp.maximum(
            jnp.einsum('gpd,de->gpe', pooled, w_conv, precision=hi) + b_conv + msg, 0.0)
    out = jnp.maximum(
        jnp.einsum('gpd,do->gpo', cur, w_out, precision=hi) + b_out, 0.0)
    return jnp.maximum(jnp.sum(out * mask, axis=1), 0.0)


if __name__ == "__main__":
    # 16 graphs, 8 per grid step (grid=(2,) keeps both v7x TCs busy), 128 padded nodes.
    num_graphs = 16      # G
    P = 128              # padded nodes per graph
    feat_dim = 16        # cmd_args.feat_dim
    latent_dim = 128     # cmd_args.latent_dim
    out_dim = 128        # cmd_args.out_dim

    key = jax.random.PRNGKey(0)
    k_feat, k_adj, k1, k2, k3 = jax.random.split(key, 5)

    # Variable-size graphs handled via padding + mask (128, 120, ..., 8 real nodes).
    num_nodes = jnp.array([P - 8 * g for g in range(num_graphs)], jnp.int32)
    valid = (jnp.arange(P)[None, :] < num_nodes[:, None]).astype(jnp.float32)   # (G, P)
    mask = valid[:, :, None]                                                    # (G, P, 1)

    # Node features, zeroed on padded rows (as PrepareFeatureLabel concatenation gives).
    node_feat = jax.random.normal(k_feat, (num_graphs, P, feat_dim), jnp.float32) * mask

    # Symmetric 0/1 adjacency per graph, no self loops, zeroed on padded rows/cols.
    ab = (jax.random.uniform(k_adj, (num_graphs, P, P)) < 0.1)
    ab = jnp.logical_or(ab, jnp.transpose(ab, (0, 2, 1)))
    ab = jnp.logical_and(ab, ~jnp.eye(P, dtype=bool)[None])
    vb = valid.astype(bool)
    ab = ab & vb[:, :, None] & vb[:, None, :]
    adj_i8 = ab.astype(jnp.int8)        # HBM-resident int8 adjacency for the kernel
    adj_f32 = ab.astype(jnp.float32)    # f32 copy for the pure-JAX reference

    # Deterministic parameter init (w_n2l, conv_params, out_params of EmbedMeanField).
    w_n2l, b_n2l = _linear_params(k1, feat_dim, latent_dim)
    w_conv, b_conv = _linear_params(k2, latent_dim, latent_dim)
    w_out, b_out = _linear_params(k3, latent_dim, out_dim)
    params = (w_n2l, b_n2l, w_conv, b_conv, w_out, b_out)

    # Fast path: bf16 MXU inputs with f32 accumulation.
    emb_bf16 = jax.block_until_ready(
        graph_ebd_forward(node_feat, adj_i8, mask, *params,
                          compute_dtype=jnp.bfloat16, graphs_per_step=8))
    # Bit-faithful path: pure f32 MXU inputs.
    emb_f32 = jax.block_until_ready(
        graph_ebd_forward(node_feat, adj_i8, mask, *params,
                          compute_dtype=jnp.float32, graphs_per_step=8))

    ref = _reference(node_feat, adj_f32, mask, *params)
    scale = float(jnp.max(jnp.abs(ref))) + 1e-6

    assert emb_bf16.shape == (num_graphs, out_dim)
    assert emb_f32.shape == (num_graphs, out_dim)
    err_f32 = float(jnp.max(jnp.abs(emb_f32 - ref))) / scale
    err_bf16 = float(jnp.max(jnp.abs(emb_bf16 - ref))) / scale
    assert err_f32 < 2e-2, f"f32 kernel mismatch: rel err {err_f32}"
    assert err_bf16 < 5e-2, f"bf16 kernel mismatch: rel err {err_bf16}"

    print("KERNEL_OK")
</pallas_src>

<mosaic_0001>
module attributes {stable_mosaic.version = 11 : i64} {
  func.func @_graph_ebd_kernel(%arg0: i32, %arg1: memref<8x128x16xbf16, #tpu.memory_space<vmem>>, %arg2: memref<8x128x128xi8, #tpu.memory_space<vmem>>, %arg3: memref<8x128x1xf32, #tpu.memory_space<vmem>>, %arg4: memref<16x128xbf16, #tpu.memory_space<vmem>>, %arg5: memref<1x128xf32, #tpu.memory_space<vmem>>, %arg6: memref<128x128xbf16, #tpu.memory_space<vmem>>, %arg7: memref<1x128xf32, #tpu.memory_space<vmem>>, %arg8: memref<128x128xbf16, #tpu.memory_space<vmem>>, %arg9: memref<1x128xf32, #tpu.memory_space<vmem>>, %arg10: memref<8x128xf32, #tpu.memory_space<vmem>>) attributes {dimension_semantics = [#tpu.dimension_semantics<parallel>], iteration_bounds = array<i64: 2>, scalar_prefetch = 0 : i64, scratch_operands = 0 : i64, tpu.core_type = #tpu.core_type<tc>, window_params = [{transform_indices = @transform_0, window_bounds = array<i64: 8, 128, 16>}, {transform_indices = @transform_1, window_bounds = array<i64: 8, 128, 128>}, {transform_indices = @transform_2, window_bounds = array<i64: 8, 128, 1>}, {pipeline_mode = #tpu.pipeline_mode<synchronous>, transform_indices = @transform_3, window_bounds = array<i64: 16, 128>}, {pipeline_mode = #tpu.pipeline_mode<synchronous>, transform_indices = @transform_4, window_bounds = array<i64: 1, 128>}, {pipeline_mode = #tpu.pipeline_mode<synchronous>, transform_indices = @transform_5, window_bounds = array<i64: 128, 128>}, {pipeline_mode = #tpu.pipeline_mode<synchronous>, transform_indices = @transform_6, window_bounds = array<i64: 1, 128>}, {pipeline_mode = #tpu.pipeline_mode<synchronous>, transform_indices = @transform_7, window_bounds = array<i64: 128, 128>}, {pipeline_mode = #tpu.pipeline_mode<synchronous>, transform_indices = @transform_8, window_bounds = array<i64: 1, 128>}, {transform_indices = @transform_9, window_bounds = array<i64: 8, 128>}]} {
    %c0 = arith.constant 0 : index
    %c0_0 = arith.constant 0 : index
    %c0_1 = arith.constant 0 : index
    %0 = vector.load %arg2[%c0, %c0_0, %c0_1] : memref<8x128x128xi8, #tpu.memory_space<vmem>>, vector<8x128x128xi8>
    %1 = arith.sitofp %0 : vector<8x128x128xi8> to vector<8x128x128xf32>
    %2 = arith.truncf %1 : vector<8x128x128xf32> to vector<8x128x128xbf16>
    %c0_2 = arith.constant 0 : index
    %c0_3 = arith.constant 0 : index
    %c0_4 = arith.constant 0 : index
    %3 = vector.load %arg3[%c0_2, %c0_3, %c0_4] : memref<8x128x1xf32, #tpu.memory_space<vmem>>, vector<8x128x1xf32>
    %c0_5 = arith.constant 0 : index
    %c0_6 = arith.constant 0 : index
    %4 = vector.load %arg6[%c0_5, %c0_6] : memref<128x128xbf16, #tpu.memory_space<vmem>>, vector<128x128xbf16>
    %c0_7 = arith.constant 0 : index
    %c0_8 = arith.constant 0 : index
    %c0_9 = arith.constant 0 : index
    %5 = vector.load %arg1[%c0_7, %c0_8, %c0_9] : memref<8x128x16xbf16, #tpu.memory_space<vmem>>, vector<8x128x16xbf16>
    %6 = vector.shape_cast %5 : vector<8x128x16xbf16> to vector<1024x16xbf16>
    %c0_10 = arith.constant 0 : index
    %c0_11 = arith.constant 0 : index
    %7 = vector.load %arg4[%c0_10, %c0_11] : memref<16x128xbf16, #tpu.memory_space<vmem>>, vector<16x128xbf16>
    %cst = arith.constant dense<0.000000e+00> : vector<1024x128xf32>
    %8 = tpu.matmul %6, %7, %cst {dimension_numbers = #tpu.dot_dimension_numbers<[1], [0], [0], [1], [0, 0, 1, 1], [], []>} : vector<1024x16xbf16>, vector<16x128xbf16>, vector<1024x128xf32> -> vector<1024x128xf32>
    %c0_12 = arith.constant 0 : index
    %c0_13 = arith.constant 0 : index
    %9 = vector.load %arg5[%c0_12, %c0_13] : memref<1x128xf32, #tpu.memory_space<vmem>>, vector<1x128xf32>
    %10 = vector.broadcast %9 : vector<1x128xf32> to vector<1024x128xf32>
    %11 = arith.addf %8, %10 : vector<1024x128xf32>
    %c0_14 = arith.constant 0 : index
    %c0_15 = arith.constant 0 : index
    %12 = vector.load %arg7[%c0_14, %c0_15] : memref<1x128xf32, #tpu.memory_space<vmem>>, vector<1x128xf32>
    %13 = vector.broadcast %12 : vector<1x128xf32> to vector<1024x128xf32>
    %14 = arith.addf %11, %13 : vector<1024x128xf32>
    %cst_16 = arith.constant 0.000000e+00 : f32
    %15 = vector.broadcast %cst_16 : f32 to vector<1024x128xf32>
    %16 = arith.maximumf %11, %15 : vector<1024x128xf32>
    %17 = arith.truncf %16 : vector<1024x128xf32> to vector<1024x128xbf16>
    %18 = vector.shape_cast %17 : vector<1024x128xbf16> to vector<8x128x128xbf16>
    "tpu.trace_start"() <{level = 10 : i32, message = "gpq,gqd->gpd"}> : () -> ()
    %cst_17 = arith.constant dense<0.000000e+00> : vector<8x128x128xf32>
    %19 = tpu.matmul %2, %18, %cst_17 {dimension_numbers = #tpu.dot_dimension_numbers<[2], [1], [1], [2], [0, 0, 0, 1, 1, 2], [0], [0]>} : vector<8x128x128xbf16>, vector<8x128x128xbf16>, vector<8x128x128xf32> -> vector<8x128x128xf32>
    "tpu.trace_stop"() : () -> ()
    %20 = vector.shape_cast %19 : vector<8x128x128xf32> to vector<1024x128xf32>
    %21 = arith.truncf %20 : vector<1024x128xf32> to vector<1024x128xbf16>
    %cst_18 = arith.constant dense<0.000000e+00> : vector<1024x128xf32>
    %22 = tpu.matmul %21, %4, %cst_18 {dimension_numbers = #tpu.dot_dimension_numbers<[1], [0], [0], [1], [0, 0, 1, 1], [], []>} : vector<1024x128xbf16>, vector<128x128xbf16>, vector<1024x128xf32> -> vector<1024x128xf32>
    %23 = arith.addf %22, %14 : vector<1024x128xf32>
    %cst_19 = arith.constant 0.000000e+00 : f32
    %24 = vector.broadcast %cst_19 : f32 to vector<1024x128xf32>
    %25 = arith.maximumf %23, %24 : vector<1024x128xf32>
    %26 = arith.truncf %25 : vector<1024x128xf32> to vector<1024x128xbf16>
    %27 = vector.shape_cast %26 : vector<1024x128xbf16> to vector<8x128x128xbf16>
    "tpu.trace_start"() <{level = 10 : i32, message = "gpq,gqd->gpd"}> : () -> ()
    %cst_20 = arith.constant dense<0.000000e+00> : vector<8x128x128xf32>
    %28 = tpu.matmul %2, %27, %cst_20 {dimension_numbers = #tpu.dot_dimension_numbers<[2], [1], [1], [2], [0, 0, 0, 1, 1, 2], [0], [0]>} : vector<8x128x128xbf16>, vector<8x128x128xbf16>, vector<8x128x128xf32> -> vector<8x128x128xf32>
    "tpu.trace_stop"() : () -> ()
    %29 = vector.shape_cast %28 : vector<8x128x128xf32> to vector<1024x128xf32>
    %30 = arith.truncf %29 : vector<1024x128xf32> to vector<1024x128xbf16>
    %cst_21 = arith.constant dense<0.000000e+00> : vector<1024x128xf32>
    %31 = tpu.matmul %30, %4, %cst_21 {dimension_numbers = #tpu.dot_dimension_numbers<[1], [0], [0], [1], [0, 0, 1, 1], [], []>} : vector<1024x128xbf16>, vector<128x128xbf16>, vector<1024x128xf32> -> vector<1024x128xf32>
    %32 = arith.addf %31, %14 : vector<1024x128xf32>
    %cst_22 = arith.constant 0.000000e+00 : f32
    %33 = vector.broadcast %cst_22 : f32 to vector<1024x128xf32>
    %34 = arith.maximumf %32, %33 : vector<1024x128xf32>
    %35 = arith.truncf %34 : vector<1024x128xf32> to vector<1024x128xbf16>
    %36 = vector.shape_cast %35 : vector<1024x128xbf16> to vector<8x128x128xbf16>
    "tpu.trace_start"() <{level = 10 : i32, message = "gpq,gqd->gpd"}> : () -> ()
    %cst_23 = arith.constant dense<0.000000e+00> : vector<8x128x128xf32>
    %37 = tpu.matmul %2, %36, %cst_23 {dimension_numbers = #tpu.dot_dimension_numbers<[2], [1], [1], [2], [0, 0, 0, 1, 1, 2], [0], [0]>} : vector<8x128x128xbf16>, vector<8x128x128xbf16>, vector<8x128x128xf32> -> vector<8x128x128xf32>
    "tpu.trace_stop"() : () -> ()
    %38 = vector.shape_cast %37 : vector<8x128x128xf32> to vector<1024x128xf32>
    %39 = arith.truncf %38 : vector<1024x128xf32> to vector<1024x128xbf16>
    %cst_24 = arith.constant dense<0.000000e+00> : vector<1024x128xf32>
    %40 = tpu.matmul %39, %4, %cst_24 {dimension_numbers = #tpu.dot_dimension_numbers<[1], [0], [0], [1], [0, 0, 1, 1], [], []>} : vector<1024x128xbf16>, vector<128x128xbf16>, vector<1024x128xf32> -> vector<1024x128xf32>
    %41 = arith.addf %40, %14 : vector<1024x128xf32>
    %cst_25 = arith.constant 0.000000e+00 : f32
    %42 = vector.broadcast %cst_25 : f32 to vector<1024x128xf32>
    %43 = arith.maximumf %41, %42 : vector<1024x128xf32>
    %44 = arith.truncf %43 : vector<1024x128xf32> to vector<1024x128xbf16>
    %c0_26 = arith.constant 0 : index
    %c0_27 = arith.constant 0 : index
    %45 = vector.load %arg8[%c0_26, %c0_27] : memref<128x128xbf16, #tpu.memory_space<vmem>>, vector<128x128xbf16>
    %cst_28 = arith.constant dense<0.000000e+00> : vector<1024x128xf32>
    %46 = tpu.matmul %44, %45, %cst_28 {dimension_numbers = #tpu.dot_dimension_numbers<[1], [0], [0], [1], [0, 0, 1, 1], [], []>} : vector<1024x128xbf16>, vector<128x128xbf16>, vector<1024x128xf32> -> vector<1024x128xf32>
    %c0_29 = arith.constant 0 : index
    %c0_30 = arith.constant 0 : index
    %47 = vector.load %arg9[%c0_29, %c0_30] : memref<1x128xf32, #tpu.memory_space<vmem>>, vector<1x128xf32>
    %48 = vector.broadcast %47 : vector<1x128xf32> to vector<1024x128xf32>
    %49 = arith.addf %46, %48 : vector<1024x128xf32>
    %cst_31 = arith.constant 0.000000e+00 : f32
    %50 = vector.broadcast %cst_31 : f32 to vector<1024x128xf32>
    %51 = arith.maximumf %49, %50 : vector<1024x128xf32>
    %52 = vector.shape_cast %51 : vector<1024x128xf32> to vector<8x128x128xf32>
    %53 = vector.broadcast %3 : vector<8x128x1xf32> to vector<8x128x128xf32>
    %54 = arith.mulf %52, %53 : vector<8x128x128xf32>
    %cst_32 = arith.constant dense<0.000000e+00> : vector<8x128xf32>
    %55 = vector.multi_reduction <add>, %54, %cst_32 [1] : vector<8x128x128xf32> to vector<8x128xf32>
    %cst_33 = arith.constant 0.000000e+00 : f32
    %56 = vector.broadcast %cst_33 : f32 to vector<8x128xf32>
    %57 = arith.maximumf %55, %56 : vector<8x128xf32>
    %c0_34 = arith.constant 0 : index
    %c0_35 = arith.constant 0 : index
    %58 = vector.load %arg10[%c0_34, %c0_35] : memref<8x128xf32, #tpu.memory_space<vmem>>, vector<8x128xf32>
    tpu.vector_store %arg10[%c0_34, %c0_35], %57 {strides = array<i32>} : memref<8x128xf32, #tpu.memory_space<vmem>>, vector<8x128xf32>,
    return
  }
  func.func @transform_0(%arg0: i32) -> (i32, i32, i32) {
    %c0_i32 = arith.constant 0 : i32
    %c0_i32_0 = arith.constant 0 : i32
    %c0_i32_1 = arith.constant 0 : i32
    return %arg0, %c0_i32, %c0_i32_0 : i32, i32, i32
  }
  func.func @transform_1(%arg0: i32) -> (i32, i32, i32) {
    %c0_i32 = arith.constant 0 : i32
    %c0_i32_0 = arith.constant 0 : i32
    %c0_i32_1 = arith.constant 0 : i32
    return %arg0, %c0_i32, %c0_i32_0 : i32, i32, i32
  }
  func.func @transform_2(%arg0: i32) -> (i32, i32, i32) {
    %c0_i32 = arith.constant 0 : i32
    %c0_i32_0 = arith.constant 0 : i32
    %c0_i32_1 = arith.constant 0 : i32
    return %arg0, %c0_i32, %c0_i32_0 : i32, i32, i32
  }
  func.func @transform_3(%arg0: i32) -> (i32, i32) {
    %c0_i32 = arith.constant 0 : i32
    %c0_i32_0 = arith.constant 0 : i32
    %c0_i32_1 = arith.constant 0 : i32
    return %c0_i32, %c0_i32_0 : i32, i32
  }
  func.func @transform_4(%arg0: i32) -> (i32, i32) {
    %c0_i32 = arith.constant 0 : i32
    %c0_i32_0 = arith.constant 0 : i32
    %c0_i32_1 = arith.constant 0 : i32
    return %c0_i32, %c0_i32_0 : i32, i32
  }
  func.func @transform_5(%arg0: i32) -> (i32, i32) {
    %c0_i32 = arith.constant 0 : i32
    %c0_i32_0 = arith.constant 0 : i32
    %c0_i32_1 = arith.constant 0 : i32
    return %c0_i32, %c0_i32_0 : i32, i32
  }
  func.func @transform_6(%arg0: i32) -> (i32, i32) {
    %c0_i32 = arith.constant 0 : i32
    %c0_i32_0 = arith.constant 0 : i32
    %c0_i32_1 = arith.constant 0 : i32
    return %c0_i32, %c0_i32_0 : i32, i32
  }
  func.func @transform_7(%arg0: i32) -> (i32, i32) {
    %c0_i32 = arith.constant 0 : i32
    %c0_i32_0 = arith.constant 0 : i32
    %c0_i32_1 = arith.constant 0 : i32
    return %c0_i32, %c0_i32_0 : i32, i32
  }
  func.func @transform_8(%arg0: i32) -> (i32, i32) {
    %c0_i32 = arith.constant 0 : i32
    %c0_i32_0 = arith.constant 0 : i32
    %c0_i32_1 = arith.constant 0 : i32
    return %c0_i32, %c0_i32_0 : i32, i32
  }
  func.func @transform_9(%arg0: i32) -> (i32, i32) {
    %c0_i32 = arith.constant 0 : i32
    %c0_i32_0 = arith.constant 0 : i32
    return %arg0, %c0_i32 : i32, i32
  }
}

</mosaic_0001>

<bundles_post_ra>
// kernel: graph_ebd_forward.1
= control target key start
LH: loop header
LB: loop body
LE: loop exit
PB: predicated region body
PF: predicated region fallthrough
CT: control target
= control target key end

     0   :  { %14 = vsyncpa [#allocation3], 0  ;;  %s13165_s0 = inlined_call_operand.vmem [shape: bf16[16,128,16], index: 0, kind: input, shape index: {}]   ;;  %s13166_s1 = inlined_call_operand.vmem [shape: s8[16,128,128], index: 1, kind: input, shape index: {}]   ;;  %s13167_s2 = inlined_call_operand.vmem [shape: f32[16,128,1], index: 2, kind: input, shape index: {}]   ;;  %s13168_s3 = inlined_call_operand.vmem [shape: bf16[16,128], index: 3, kind: input, shape index: {}]   ;;  %s13169_s4 = inlined_call_operand.vmem [shape: f32[1,128], index: 4, kind: input, shape index: {}]   ;;  %s13170_s5 = inlined_call_operand.vmem [shape: bf16[128,128], index: 5, kind: input, shape index: {}]   ;;  %s13171_s6 = inlined_call_operand.vmem [shape: f32[1,128], index: 6, kind: input, shape index: {}]   ;;  %s13172_s7 = inlined_call_operand.vmem [shape: bf16[128,128], index: 7, kind: input, shape index: {}]   ;;  %s13173_s8 = inlined_call_operand.vmem [shape: f32[1,128], index: 8, kind: input, shape index: {}]   ;;  %s13174_s9 = inlined_call_operand.hbm [shape: f32[16,128], index: 9, kind: output, shape index: {}]  }
   0x1   :  { %16 = vsyncpa [#allocation3 + $0x1], 0  ;;  %s9242_s30 = smov 0   ;;  %s9244_s10 = smov 0  }
   0x2   :  { %s9246_s11 = smov 0   ;;  %s9248_s12 = smov 0  }
   0x3 LB: > { %s8551_s13 = sadd.s32 4294967295, %s9189_s12   ;;  %s8552_s14 = sadd.s32 4294967294, %s9189_s12   ;;  %s9189_s12 = sphi %s9248_s12, %s14695_s12   ;;  %s9185_s11 = sphi %s9246_s11, %s14694_s11   ;;  %s9181_s10 = sphi %s9244_s10, %s14693_s10   ;;  %s9177_s30 = sphi %s9242_s30, %s14692_s30  }
   0x4   : > { %s9265_s15 = sadd.s32 1, %s9189_s12   ;;  %s233_s16 = sadd.s32 1, %s9185_s11 }
   0x5   : > { %s230_s17 = ssub.s32 %s9189_s12, %s9265_s15  ;;  %p243_p0 = scmp.ne.s32.totalorder %s9185_s11, %s9181_s10 }
   0x6   : > { %p231_p1 = scmp.eq.s32.totalorder %s230_s17, 0  ;;  %p244_p2 = scmp.eq.s32.totalorder %s8551_s13, 1 }
   0x7   : > { %p249_p3 = scmp.ne.s32.totalorder %s9181_s10, %s9177_s30  ;;  %p250_p4 = scmp.eq.s32.totalorder %s8552_s14, 1 }
   0x8   : > { %s9275_s18 = scalar_select %p231_p1, %s9185_s11, %s233_s16  }
   0x9   : > { %p9277_p5 = por %p244_p2, %p243_p0  ;;  %p9281_p6 = por %p250_p4, %p249_p3 }
   0xa   : > { %p8555_p7 = scmp.ge.s32.totalorder %s9189_s12, 1  ;;  %p316_p8 = scmp.lt.s32.totalorder %s9189_s12, 3 }
   0xc   : > { %p317_p9 = pnand %p8555_p7, %p316_p8 }
   0xe   : > { %320 = sbr.rel (%p317_p9) target bundleno = 4605 (0x11fd), region = 56 }
  0x13   : > { %v9033_v0 = vld [vmem:[%s13168_s3] sm:$0xff]  ;;  %s9290_s23 = sshll.u32 %s8551_s13, 3  ;;  %vm1407_vm0 = vcmask 130048   ;;  %vm8437_vm1 = vcmask 1041409   ;;  %vm8439_vm2 = vcmask 1042434   ;;  %vm8441_vm3 = vcmask 1043459  }
  0x14   : > { %p366_p10 = scmp.lt.s32.totalorder %s9290_s23, 15  ;;  %1607 = vmatpush.bf16.msra.mxu0 %v9033_v0  ;;  %9042 = vmatpush.bf16.msra.mxu1 %v9033_v0  ;;  %v9321_v9 = vld [vmem:[%s13169_s4] ss:$0 sm:$0xff]  ;;  %vm8443_vm4 = vcmask 1044484   ;;  %vm8445_vm5 = vcmask 1045509   ;;  %vm8447_vm6 = vcmask 1046534   ;;  %s8464_s17 = scalar_lea.hbm %s13174_s9, %s9290_s23 }
  0x15   : > { %9043 = vmatpush.bf16.msra.mxu3 %v9033_v0  ;;  %s362_s29 = sand.u32 1, %s9181_s10   ;;  %vm8449_vm7 = vcmask 1047559  }
  0x16   : > { %s9294_s24 = scalar_select %p366_p10, %s9290_s23, 15 }
  0x17   : > { %s8556_s13 = sshll.u32 %s362_s29, 3  ;;  %s8454_s26 = scalar_lea.sflag [#allocation3], %s362_s29 }
  0x18   : > { %s8958_s25 = sshll.u32 %s9294_s24, 6  ;;  %s8959_s14 = sshll.u32 %s9294_s24, 5 }
  0x19   : > { %s9300_s28 = scalar_lea.vmem %s13165_s0, %s8958_s25  ;;  %s9796_s21 = scalar_lea.vmem %s13166_s1, %s8959_s14 }
  0x1a   : > { %v8969_v1 = vld [vmem:[%s9300_s28] sm:$0xff]  ;;  %v8970_v2 = vld [vmem:[%s9300_s28 + $0x8] sm:$0xff]  ;;  %v8971_v3 = vld [vmem:[%s9300_s28 + $0x10] sm:$0xff]  ;;  %s8960_s14 = sshll.u32 %s9294_s24, 7  ;;  %s8468_s25 = sshll.u32 %s8464_s17, 4  ;;  %s8469_s25 = int_to_ptr.hbm [resolvable:$true] %s8468_s25 }
  0x1b   : > { %8826 = vmatmul.msk.bf16.vlgmr.msra.gmra.mxu0 %vm1407_vm0, %v8969_v1  ;;  %v8972_v4 = vld [vmem:[%s9300_s28 + $0x18] sm:$0xff]  ;;  %v8973_v5 = vld [vmem:[%s9300_s28 + $0x20] sm:$0xff]  ;;  %v8974_v6 = vld [vmem:[%s9300_s28 + $0x28] sm:$0xff]  ;;  %s12513_s22 = scalar_lea.vmem %s13167_s2, %s8960_s14  ;;  %s9141_s27 = sshra.s32 %s8469_s25, 4  ;;  %s9142_s27 = int_to_ptr.hbm [resolvable:$true] %s9141_s27 }
  0x1c   : > { %v8975_v7 = vld [vmem:[%s9300_s28 + $0x30] sm:$0xff]  ;;  %v8976_v8 = vld [vmem:[%s9300_s28 + $0x38] sm:$0xff]  ;;  %v8977_v10 = vld [vmem:[%s9300_s28 + $0x40] sm:$0xff]  ;;  %p9148_p0 = scmp.lt.s32.totalorder %s9142_s27, %s13174_s9 }
  0x1d   : > { %v8978_v19 = vld [vmem:[%s9300_s28 + $0x48] sm:$0xff]  ;;  %v8979_v31 = vld [vmem:[%s9300_s28 + $0x50] sm:$0xff]  ;;  %v8980_v43 = vld [vmem:[%s9300_s28 + $0x58] sm:$0xff] }
  0x1e   : > { %v8981_v55 = vld [vmem:[%s9300_s28 + $0x60] sm:$0xff]  ;;  %v8982_v61 = vld [vmem:[%s9300_s28 + $0x68] sm:$0xff]  ;;  %v8983_v0 = vld [vmem:[%s9300_s28 + $0x70] sm:$0xff] }
  0x2b   : > { %8827 = vmatmul.msk.bf16.gmra.mxu0 %vm1407_vm0, %v8970_v2 }
  0x3b   : > { %8828 = vmatmul.msk.bf16.gmra.mxu0 %vm1407_vm0, %v8971_v3  ;;  %v8984_v3 = vld [vmem:[%s9300_s28 + $0x78] sm:$0xff] }
  0x4b   : > { %8829 = vmatmul.msk.bf16.gmra.mxu0 %vm1407_vm0, %v8972_v4 }
  0x5b   : > { %8830 = vmatmul.msk.bf16.gmra.mxu0 %vm1407_vm0, %v8973_v5 }
  0x6b   : > { %8831 = vmatmul.msk.bf16.gmra.mxu0 %vm1407_vm0, %v8974_v6 }
  0x7b   : > { %8832 = vmatmul.msk.bf16.gmra.mxu0 %vm1407_vm0, %v8975_v7 }
  0x8b   : > { %8833 = vmatmul.msk.bf16.gmra.mxu0 %vm1407_vm0, %v8976_v8 }
  0x98   : > { %v1609_v11 = vpop.f32.mrf.mxu0 }
  0x99   : > { %v9325_v12 = vadd.f32 %v9321_v9, %v1609_v11 }
  0x9b   : > { %8834 = vmatmul.msk.bf16.gmra.mxu0 %vm1407_vm0, %v8977_v10  ;;  %v2061_v13 = vmax.f32 %v9325_v12, 0.0 }
  0x9d   : > { %v2189_v16 = vpack.c.bf16 %v2061_v13, %v2061_v13 }
  0x9f   : > { %v2381_v20 = vunpack.c.l.b16 %v2189_v16 }
  0xa0   : > { %v1611_v14 = vpop.f32.mrf.mxu0 }
  0xa1   : > { %v9330_v15 = vadd.f32 %v9321_v9, %v1611_v14 }
  0xa3   : > { %v2062_v17 = vmax.f32 %v9330_v15, 0.0 }
  0xa5   : > { %v2190_v18 = vpack.c.bf16 %v2062_v17, %v2062_v17 }
  0xa7   : > { %v2382_v21 = vunpack.c.l.b16 %v2190_v18 }
  0xa8   : > { %v1614_v22 = vpop.f32.mrf.mxu0 }
  0xa9   : > { %v9334_v23 = vpack.c.b16 %v2382_v21, %v2381_v20  ;;  %v9337_v24 = vadd.f32 %v9321_v9, %v1614_v22 }
  0xab   : > { %8835 = vmatmul.msk.bf16.gmra.mxu0 %vm1407_vm0, %v8978_v19  ;;  %v2063_v25 = vmax.f32 %v9337_v24, 0.0 }
  0xad   : > { %v2191_v28 = vpack.c.bf16 %v2063_v25, %v2063_v25 }
  0xaf   : > { %v2383_v32 = vunpack.c.l.b16 %v2191_v28 }
  0xb0   : > { %v1616_v26 = vpop.f32.mrf.mxu0 }
  0xb1   : > { %v9342_v27 = vadd.f32 %v9321_v9, %v1616_v26 }
  0xb3   : > { %v2064_v29 = vmax.f32 %v9342_v27, 0.0 }
  0xb5   : > { %v2192_v30 = vpack.c.bf16 %v2064_v29, %v2064_v29 }
  0xb7   : > { %v2384_v33 = vunpack.c.l.b16 %v2192_v30  ;;  %v8985_v30 = vld [vmem:[%s9300_s28 + $0x80] sm:$0xff] }
  0xb8   : > { %v1619_v34 = vpop.f32.mrf.mxu0 }
  0xb9   : > { %v9346_v35 = vpack.c.b16 %v2384_v33, %v2383_v32  ;;  %v9349_v36 = vadd.f32 %v9321_v9, %v1619_v34 }
  0xbb   : > { %8836 = vmatmul.msk.bf16.gmra.mxu0 %vm1407_vm0, %v8979_v31  ;;  %v2065_v37 = vmax.f32 %v9349_v36, 0.0 }
  0xbd   : > { %v2193_v40 = vpack.c.bf16 %v2065_v37, %v2065_v37 }
  0xbf   : > { %v2385_v44 = vunpack.c.l.b16 %v2193_v40 }
  0xc0   : > { %v1621_v38 = vpop.f32.mrf.mxu0 }
  0xc1   : > { %v9354_v39 = vadd.f32 %v9321_v9, %v1621_v38 }
  0xc3   : > { %v2066_v41 = vmax.f32 %v9354_v39, 0.0 }
  0xc5   : > { %v2194_v42 = vpack.c.bf16 %v2066_v41, %v2066_v41 }
  0xc7   : > { %v2386_v45 = vunpack.c.l.b16 %v2194_v42 }
  0xc8   : > { %v1624_v46 = vpop.f32.mrf.mxu0 }
  0xc9   : > { %v9358_v47 = vpack.c.b16 %v2386_v45, %v2385_v44  ;;  %v9361_v48 = vadd.f32 %v9321_v9, %v1624_v46 }
  0xcb   : > { %8837 = vmatmul.msk.bf16.gmra.mxu0 %vm1407_vm0, %v8980_v43  ;;  %v2067_v49 = vmax.f32 %v9361_v48, 0.0 }
  0xcd   : > { %v2195_v52 = vpack.c.bf16 %v2067_v49, %v2067_v49 }
  0xcf   : > { %v2387_v56 = vunpack.c.l.b16 %v2195_v52 }
  0xd0   : > { %v1626_v50 = vpop.f32.mrf.mxu0 }
  0xd1   : > { %v9366_v51 = vadd.f32 %v9321_v9, %v1626_v50 }
  0xd3   : > { %v2068_v53 = vmax.f32 %v9366_v51, 0.0 }
  0xd5   : > { %v2196_v54 = vpack.c.bf16 %v2068_v53, %v2068_v53 }
  0xd7   : > { %v2388_v57 = vunpack.c.l.b16 %v2196_v54 }
  0xd8   : > { %v1629_v58 = vpop.f32.mrf.mxu0 }
  0xd9   : > { %v9370_v59 = vpack.c.b16 %v2388_v57, %v2387_v56  ;;  %v9406_v26 = vadd.f32 %v9321_v9, %v1629_v58 }
  0xdb   : > { %8838 = vmatmul.msk.bf16.gmra.mxu0 %vm1407_vm0, %v8981_v55  ;;  %13702 = vst [vmem:[#allocation7_spill] sm:$0xff] %v9406_v26  ;;  %v2069_v41 = vmax.f32 %v9406_v26, 0.0 }
  0xdd   : > { %v2197_v50 = vpack.c.bf16 %v2069_v41, %v2069_v41 }
  0xe0   : > { %v1631_v60 = vpop.f32.mrf.mxu0 }
  0xe1   : > { %v9402_v20 = vadd.f32 %v9321_v9, %v1631_v60 }
  0xe3   : > { %13701 = vst [vmem:[#allocation6_spill] sm:$0xff] %v9402_v20  ;;  %v2070_v34 = vmax.f32 %v9402_v20, 0.0 }
  0xe5   : > { %v2198_v49 = vpack.c.bf16 %v2070_v34, %v2070_v34  ;;  %v8988_v34 = vld [vmem:[%s9300_s28 + $0x98] sm:$0xff] }
  0xe7   : > { %v2390_v57 = vunpack.c.l.b16 %v2198_v49 }
  0xe8   : > { %v1634_v62 = vpop.f32.mrf.mxu0 }
  0xe9   : > { %v9397_v16 = vadd.f32 %v9321_v9, %v1634_v62 }
  0xeb   : > { %8839 = vmatmul.msk.bf16.gmra.mxu0 %vm1407_vm0, %v8982_v61  ;;  %13700 = vst [vmem:[#allocation5_spill] sm:$0xff] %v9397_v16  ;;  %v2071_v28 = vmax.f32 %v9397_v16, 0.0  ;;  %v2389_v61 = vunpack.c.l.b16 %v2197_v50 }
  0xed   : > { %v2199_v42 = vpack.c.bf16 %v2071_v28, %v2071_v28  ;;  %v2401_v62 = vpack.c.b16 %v2390_v57, %v2389_v61  ;;  %v8990_v61 = vld [vmem:[%s9300_s28 + $0xa8] sm:$0xff] }
  0xef   : > { %v2391_v53 = vunpack.c.l.b16 %v2199_v42 }
  0xf0   : > { %v1636_v63 = vpop.f32.mrf.mxu0 }
  0xf1   : > { %v9390_v11 = vadd.f32 %v9321_v9, %v1636_v63 }
  0xf3   : > { %v2072_v21 = vmax.f32 %v9390_v11, 0.0 }
  0xf5   : > { %v2200_v40 = vpack.c.bf16 %v2072_v21, %v2072_v21 }
  0xf7   : > { %v2392_v46 = vunpack.c.l.b16 %v2200_v40 }
  0xf8   : > { %v1639_v1 = vpop.f32.mrf.mxu0 }
  0xf9   : > { %v9386_v7 = vadd.f32 %v9321_v9, %v1639_v1  ;;  %v2402_v56 = vpack.c.b16 %v2392_v46, %v2391_v53  ;;  %v8989_v53 = vld [vmem:[%s9300_s28 + $0xa0] sm:$0xff] }
  0xfb   : > { %8840 = vmatmul.msk.bf16.gmra.mxu0 %vm1407_vm0, %v8983_v0  ;;  %v2073_v17 = vmax.f32 %v9386_v7, 0.0  ;;  %v8986_v0 = vld [vmem:[%s9300_s28 + $0x88] sm:$0xff] }
  0xfd   : > { %v2201_v29 = vpack.c.bf16 %v2073_v17, %v2073_v17 }
  0xff   : > { %v2393_v44 = vunpack.c.l.b16 %v2201_v29 }
 0x100   : > { %v1641_v2 = vpop.f32.mrf.mxu0 }
 0x101   : > { %v9383_v6 = vadd.f32 %v9321_v9, %v1641_v2 }
 0x103   : > { %v2074_v13 = vmax.f32 %v9383_v6, 0.0 }
 0x105   : > { %v2202_v25 = vpack.c.bf16 %v2074_v13, %v2074_v13 }
 0x107   : > { %v2394_v38 = vunpack.c.l.b16 %v2202_v25 }
 0x108   : > { %v1644_v4 = vpop.f32.mrf.mxu0 }
 0x109   : > { %v9379_v5 = vadd.f32 %v9321_v9, %v1644_v4  ;;  %v2403_v45 = vpack.c.b16 %v2394_v38, %v2393_v44 }
 0x10b   : > { %8841 = vmatmul.msk.bf16.gmra.mxu0 %vm1407_vm0, %v8984_v3  ;;  %v2075_v8 = vmax.f32 %v9379_v5, 0.0 }
 0x10d   : > { %v2203_v18 = vpack.c.bf16 %v2075_v8, %v2075_v8 }
 0x10f   : > { %v2395_v31 = vunpack.c.l.b16 %v2203_v18 }
 0x110   : > { %v1646_v10 = vpop.f32.mrf.mxu0 }
 0x111   : > { %v9394_v14 = vadd.f32 %v9321_v9, %v1646_v10 }
 0x113   : > { %v2076_v19 = vmax.f32 %v9394_v14, 0.0 }
 0x115   : > { %v2204_v22 = vpack.c.bf16 %v2076_v19, %v2076_v19 }
 0x117   : > { %v2396_v32 = vunpack.c.l.b16 %v2204_v22  ;;  %v8987_v22 = vld [vmem:[%s9300_s28 + $0x90] sm:$0xff] }
 0x118   : > { %v1649_v33 = vpop.f32.mrf.mxu0 }
 0x119   : > { %v2404_v37 = vpack.c.b16 %v2396_v32, %v2395_v31  ;;  %v9413_v43 = vadd.f32 %v9321_v9, %v1649_v33 }
 0x11b   : > { %13703 = vst [vmem:[#allocation8_spill] sm:$0xff] %v9413_v43  ;;  %8842 = vmatmul.msk.bf16.gmra.mxu0 %vm1407_vm0, %v8985_v30  ;;  %2413 = vmatpush.bf16.msrb.mxu1 %v2404_v37  ;;  %v2077_v52 = vmax.f32 %v9413_v43, 0.0 }
 0x11d   : > { %v2205_v58 = vpack.c.bf16 %v2077_v52, %v2077_v52 }
 0x11f   : > { %2414 = vmatpush.bf16.msrb.mxu1 %v2403_v45  ;;  %v2526_v1 = vunpack.c.l.b16 %v2205_v58 }
 0x120   : > { %v1651_v54 = vpop.f32.mrf.mxu0 }
 0x121   : > { %v9418_v55 = vadd.f32 %v9321_v9, %v1651_v54 }
 0x123   : > { %13704 = vst [vmem:[#allocation9_spill] sm:$0xff] %v9418_v55  ;;  %v2078_v60 = vmax.f32 %v9418_v55, 0.0  ;;  %2415 = vmatpush.bf16.msrb.mxu1 %v2402_v56 }
 0x125   : > { %v2206_v63 = vpack.c.bf16 %v2078_v60, %v2078_v60 }
 0x127   : > { %2416 = vmatpush.bf16.msrb.mxu1 %v2401_v62  ;;  %v2527_v2 = vunpack.c.l.b16 %v2206_v63 }
 0x128   : > { %v1654_v3 = vpop.f32.mrf.mxu0 }
 0x129   : > { %v9422_v4 = vpack.c.b16 %v2527_v2, %v2526_v1  ;;  %v9425_v8 = vadd.f32 %v9321_v9, %v1654_v3  ;;  %v8991_v1 = vld [vmem:[%s9300_s28 + $0xb0] sm:$0xff] }
 0x12b   : > { %13705 = vst [vmem:[#allocation10_spill] sm:$0xff] %v9425_v8  ;;  %8843 = vmatmul.msk.bf16.gmra.mxu0 %vm1407_vm0, %v8986_v0  ;;  %2417 = vmatpush.bf16.msrb.mxu1 %v9370_v59  ;;  %v2079_v10 = vmax.f32 %v9425_v8, 0.0  ;;  %v9016_v0 = vld [vmem:[%s9300_s28 + $0x178] sm:$0xff] }
 0x12c   : > { %8873 = vmatmul.msk.bf16.vlgmr.msra.gmra.mxu3 %vm1407_vm0, %v9016_v0 }
 0x12d   : > { %v2207_v18 = vpack.c.bf16 %v2079_v10, %v2079_v10  ;;  %v9017_v10 = vld [vmem:[%s9300_s28 + $0x180] sm:$0xff] }
 0x12f   : > { %2418 = vmatpush.bf16.msrb.mxu1 %v9358_v47  ;;  %v2528_v25 = vunpack.c.l.b16 %v2207_v18 }
 0x130   : > { %v1656_v13 = vpop.f32.mrf.mxu0 }
 0x131   : > { %v9432_v17 = vadd.f32 %v9321_v9, %v1656_v13  ;;  %v8992_v13 = vld [vmem:[%s9300_s28 + $0xb8] sm:$0xff] }
 0x133   : > { %13706 = vst [vmem:[#allocation11_spill] sm:$0xff] %v9432_v17  ;;  %v2080_v19 = vmax.f32 %v9432_v17, 0.0  ;;  %2419 = vmatpush.bf16.msrb.mxu1 %v9346_v35 }
 0x135   : > { %v2208_v21 = vpack.c.bf16 %v2080_v19, %v2080_v19 }
 0x137   : > { %2420 = vmatpush.bf16.msrb.mxu1 %v9334_v23  ;;  %v2529_v59 = vunpack.c.l.b16 %v2208_v21 }
 0x138   : > { %v1659_v28 = vpop.f32.mrf.mxu0 }
 0x139   : > { %v9438_v29 = vpack.c.b16 %v2529_v59, %v2528_v25  ;;  %v9441_v47 = vadd.f32 %v9321_v9, %v1659_v28 }
 0x13b   : > { %13707 = vst [vmem:[#allocation12_spill] sm:$0xff] %v9441_v47  ;;  %8844 = vmatmul.msk.bf16.gmra.mxu0 %vm1407_vm0, %v8987_v22  ;;  %v2081_v30 = vmax.f32 %v9441_v47, 0.0 }
 0x13c   : > { %8874 = vmatmul.msk.bf16.gmra.mxu3 %vm1407_vm0, %v9017_v10 }
 0x13d   : > { %v2209_v32 = vpack.c.bf16 %v2081_v30, %v2081_v30 }
 0x13f   : > { %v2530_v37 = vunpack.c.l.b16 %v2209_v32 }
 0x140   : > { %v1661_v31 = vpop.f32.mrf.mxu0 }
 0x141   : > { %v9446_v35 = vadd.f32 %v9321_v9, %v1661_v31 }
 0x143   : > { %13708 = vst [vmem:[#allocation13_spill] sm:$0xff] %v9446_v35  ;;  %v2082_v23 = vmax.f32 %v9446_v35, 0.0 }
 0x145   : > { %v2210_v33 = vpack.c.bf16 %v2082_v23, %v2082_v23 }
 0x147   : > { %v2531_v38 = vunpack.c.l.b16 %v2210_v33 }
 0x148   : > { %v1664_v40 = vpop.f32.mrf.mxu0 }
 0x149   : > { %v9450_v41 = vpack.c.b16 %v2531_v38, %v2530_v37  ;;  %v9453_v42 = vadd.f32 %v9321_v9, %v1664_v40  ;;  %v9018_v37 = vld [vmem:[%s9300_s28 + $0x188] sm:$0xff] }
 0x14b   : > { %13709 = vst [vmem:[#allocation14_spill] sm:$0xff] %v9453_v42  ;;  %8845 = vmatmul.msk.bf16.gmra.mxu0 %vm1407_vm0, %v8988_v34  ;;  %v2083_v44 = vmax.f32 %v9453_v42, 0.0 }
 0x14c   : > { %8875 = vmatmul.msk.bf16.gmra.mxu3 %vm1407_vm0, %v9018_v37 }
 0x14d   : > { %v2211_v49 = vpack.c.bf16 %v2083_v44, %v2083_v44 }
 0x14f   : > { %v2532_v54 = vunpack.c.l.b16 %v2211_v49 }
 0x150   : > { %v1666_v45 = vpop.f32.mrf.mxu0 }
 0x151   : > { %v9458_v46 = vadd.f32 %v9321_v9, %v1666_v45 }
 0x153   : > { %13710 = vst [vmem:[#allocation15_spill] sm:$0xff] %v9458_v46  ;;  %v2084_v50 = vmax.f32 %v9458_v46, 0.0 }
 0x155   : > { %v2212_v52 = vpack.c.bf16 %v2084_v50, %v2084_v50 }
 0x157   : > { %v2533_v56 = vunpack.c.l.b16 %v2212_v52 }
 0x158   : > { %v1669_v57 = vpop.f32.mrf.mxu0 }
 0x159   : > { %v9462_v58 = vpack.c.b16 %v2533_v56, %v2532_v54  ;;  %v9504_v49 = vadd.f32 %v9321_v9, %v1669_v57 }
 0x15b   : > { %8846 = vmatmul.msk.bf16.gmra.mxu0 %vm1407_vm0, %v8989_v53  ;;  %13718 = vst [vmem:[#allocation23_spill] sm:$0xff] %v9504_v49  ;;  %v8993_v53 = vld [vmem:[%s9300_s28 + $0xc0] sm:$0xff] }
 0x160   : > { %v1671_v60 = vpop.f32.mrf.mxu0 }
 0x161   : > { %v9499_v38 = vadd.f32 %v9321_v9, %v1671_v60 }
 0x163   : > { %13717 = vst [vmem:[#allocation22_spill] sm:$0xff] %v9499_v38 }
 0x168   : > { %v1674_v62 = vpop.f32.mrf.mxu0 }
 0x169   : > { %v9493_v32 = vadd.f32 %v9321_v9, %v1674_v62  ;;  %v2086_v62 = vmax.f32 %v9499_v38, 0.0 }
 0x16b   : > { %8847 = vmatmul.msk.bf16.gmra.mxu0 %vm1407_vm0, %v8990_v61  ;;  %13716 = vst [vmem:[#allocation21_spill] sm:$0xff] %v9493_v32  ;;  %v2087_v50 = vmax.f32 %v9493_v32, 0.0 }
 0x170   : > { %v1676_v63 = vpop.f32.mrf.mxu0 }
 0x171   : > { %v9486_v28 = vadd.f32 %v9321_v9, %v1676_v63 }
 0x173   : > { %13714 = vst [vmem:[#allocation19_spill] sm:$0xff] %v9486_v28  ;;  %v2088_v40 = vmax.f32 %v9486_v28, 0.0 }
 0x175   : > { %v2216_v0 = vpack.c.bf16 %v2088_v40, %v2088_v40 }
 0x178   : > { %v1679_v2 = vpop.f32.mrf.mxu0 }
 0x179   : > { %v9482_v22 = vadd.f32 %v9321_v9, %v1679_v2  ;;  %v2215_v2 = vpack.c.bf16 %v2087_v50, %v2087_v50  ;;  %v9019_v50 = vld [vmem:[%s9300_s28 + $0x190] sm:$0xff] }
 0x17a   : > { %8876 = vmatmul.msk.bf16.gmra.mxu3 %vm1407_vm0, %v9019_v50  ;;  %v9021_v50 = vld [vmem:[%s9300_s28 + $0x1a0] sm:$0xff] }
 0x17b   : > { %8848 = vmatmul.msk.bf16.gmra.mxu0 %vm1407_vm0, %v8991_v1  ;;  %13713 = vst [vmem:[#allocation18_spill] sm:$0xff] %v9482_v22  ;;  %v2089_v23 = vmax.f32 %v9482_v22, 0.0  ;;  %v2085_v1 = vmax.f32 %v9504_v49, 0.0  ;;  %v9825_v22 = vld [vmem:[%s9796_s21 + $0x40] sm:$0xff] }
 0x17d   : > { %v2217_v52 = vpack.c.bf16 %v2089_v23, %v2089_v23 }
 0x17f   : > { %v2538_v57 = vunpack.c.l.b16 %v2217_v52  ;;  %v9010_v52 = vld [vmem:[%s9300_s28 + $0x148] sm:$0xff] }
 0x180   : > { %v1681_v3 = vpop.f32.mrf.mxu0  ;;  %8867 = vmatmul.msk.bf16.vlgmr.msra.gmra.mxu1 %vm1407_vm0, %v9010_v52  ;;  %v9012_v52 = vld [vmem:[%s9300_s28 + $0x158] sm:$0xff] }
 0x181   : > { %v9479_v21 = vadd.f32 %v9321_v9, %v1681_v3 }
 0x183   : > { %13712 = vst [vmem:[#allocation17_spill] sm:$0xff] %v9479_v21  ;;  %v2090_v30 = vmax.f32 %v9479_v21, 0.0  ;;  %v451_v21 = vunpack.c.0.s8 %v9825_v22 }
 0x185   : > { %v2218_v45 = vpack.c.bf16 %v2090_v30, %v2090_v30  ;;  %v2536_v30 = vunpack.c.l.b16 %v2215_v2 }
 0x187   : > { %v2539_v63 = vunpack.c.l.b16 %v2218_v45 }
 0x188   : > { %v1684_v18 = vpop.f32.mrf.mxu0 }
 0x189   : > { %v9475_v19 = vadd.f32 %v9321_v9, %v1684_v18  ;;  %v2548_v10 = vpack.c.b16 %v2539_v63, %v2538_v57  ;;  %v2214_v18 = vpack.c.bf16 %v2086_v62, %v2086_v62 }
 0x18b   : > { %13711 = vst [vmem:[#allocation16_spill] sm:$0xff] %v9475_v19  ;;  %8849 = vmatmul.msk.bf16.gmra.mxu0 %vm1407_vm0, %v8992_v13  ;;  %v2091_v25 = vmax.f32 %v9475_v19, 0.0  ;;  %v2537_v13 = vunpack.c.l.b16 %v2216_v0  ;;  %v2535_v37 = vunpack.c.l.b16 %v2214_v18  ;;  %v9020_v18 = vld [vmem:[%s9300_s28 + $0x198] sm:$0xff]  ;;  %v452_v19 = vunpack.c.1.s8 %v9825_v22 }
 0x18c   : > { %8877 = vmatmul.msk.bf16.gmra.mxu3 %vm1407_vm0, %v9020_v18 }
 0x18d   : > { %v2219_v34 = vpack.c.bf16 %v2091_v25, %v2091_v25  ;;  %v2213_v25 = vpack.c.bf16 %v2085_v1, %v2085_v1  ;;  %v580_v35 = vcvt.s32.f32 %v452_v19 }
 0x18f   : > { %v2540_v54 = vunpack.c.l.b16 %v2219_v34  ;;  %v2547_v34 = vpack.c.b16 %v2537_v13, %v2536_v30  ;;  %v2534_v45 = vunpack.c.l.b16 %v2213_v25  ;;  %v9011_v25 = vld [vmem:[%s9300_s28 + $0x150] sm:$0xff] }
 0x190   : > { %v1686_v59 = vpop.f32.mrf.mxu0  ;;  %8868 = vmatmul.msk.bf16.gmra.mxu1 %vm1407_vm0, %v9011_v25 }
 0x191   : > { %v9490_v31 = vadd.f32 %v9321_v9, %v1686_v59 }
 0x193   : > { %13715 = vst [vmem:[#allocation20_spill] sm:$0xff] %v9490_v31  ;;  %v2092_v33 = vmax.f32 %v9490_v31, 0.0 }
 0x195   : > { %v2220_v44 = vpack.c.bf16 %v2092_v33, %v2092_v33 }
 0x197   : > { %v2541_v56 = vunpack.c.l.b16 %v2220_v44 }
 0x198   : > { %v1689_v61 = vpop.f32.mrf.mxu0 }
 0x199   : > { %v2549_v60 = vpack.c.b16 %v2541_v56, %v2540_v54  ;;  %v9511_v3 = vadd.f32 %v9321_v9, %v1689_v61  ;;  %v8994_v56 = vld [vmem:[%s9300_s28 + $0xc8] sm:$0xff] }
 0x19b   : > { %13719 = vst [vmem:[#allocation24_spill] sm:$0xff] %v9511_v3  ;;  %8850 = vmatmul.msk.bf16.gmra.mxu0 %vm1407_vm0, %v8993_v53  ;;  %2558 = vmatpush.bf16.msra.mxu2 %v2549_v60  ;;  %v2093_v59 = vmax.f32 %v9511_v3, 0.0  ;;  %v2546_v53 = vpack.c.b16 %v2535_v37, %v2534_v45 }
 0x19c   : > { %8878 = vmatmul.msk.bf16.gmra.mxu3 %vm1407_vm0, %v9021_v50  ;;  %v9023_v50 = vld [vmem:[%s9300_s28 + $0x1b0] sm:$0xff] }
 0x19d   : > { %v2221_v40 = vpack.c.bf16 %v2093_v59, %v2093_v59 }
 0x19f   : > { %2559 = vmatpush.bf16.msra.mxu2 %v2548_v10  ;;  %v2671_v61 = vunpack.c.l.b16 %v2221_v40 }
 0x1a0   : > { %v1691_v23 = vpop.f32.mrf.mxu0  ;;  %8869 = vmatmul.msk.bf16.gmra.mxu1 %vm1407_vm0, %v9012_v52  ;;  %v9014_v52 = vld [vmem:[%s9300_s28 + $0x168] sm:$0xff] }
 0x1a1   : > { %v9516_v33 = vadd.f32 %v9321_v9, %v1691_v23 }
 0x1a3   : > { %13720 = vst [vmem:[#allocation25_spill] sm:$0xff] %v9516_v33  ;;  %v2094_v44 = vmax.f32 %v9516_v33, 0.0  ;;  %2560 = vmatpush.bf16.msra.mxu2 %v2547_v34 }
 0x1a5   : > { %v2222_v54 = vpack.c.bf16 %v2094_v44, %v2094_v44 }
 0x1a7   : > { %2561 = vmatpush.bf16.msra.mxu2 %v2546_v53  ;;  %v2672_v62 = vunpack.c.l.b16 %v2222_v54  ;;  %v8996_v54 = vld [vmem:[%s9300_s28 + $0xd8] sm:$0xff] }
 0x1a8   : > { %v1694_v60 = vpop.f32.mrf.mxu0 }
 0x1a9   : > { %v9524_v63 = vpack.c.b16 %v2672_v62, %v2671_v61  ;;  %v9527_v0 = vadd.f32 %v9321_v9, %v1694_v60 }
 0x1ab   : > { %13721 = vst [vmem:[#allocation26_spill] sm:$0xff] %v9527_v0  ;;  %8851 = vmatmul.msk.bf16.gmra.mxu0 %vm1407_vm0, %v8994_v56  ;;  %2562 = vmatpush.bf16.msra.mxu2 %v9462_v58  ;;  %v2095_v1 = vmax.f32 %v9527_v0, 0.0 }
 0x1ad   : > { %v2223_v10 = vpack.c.bf16 %v2095_v1, %v2095_v1 }
 0x1af   : > { %2563 = vmatpush.bf16.msra.mxu2 %v9450_v41  ;;  %v8995_v41 = vld [vmem:[%s9300_s28 + $0xd0] sm:$0xff]  ;;  %v2673_v59 = vunpack.c.l.b16 %v2223_v10 }
 0x1b0   : > { %v1696_v2 = vpop.f32.mrf.mxu0 }
 0x1b1   : > { %v9534_v57 = vadd.f32 %v9321_v9, %v1696_v2 }
 0x1b3   : > { %13722 = vst [vmem:[#allocation27_spill] sm:$0xff] %v9534_v57  ;;  %v2096_v13 = vmax.f32 %v9534_v57, 0.0  ;;  %2564 = vmatpush.bf16.msra.mxu2 %v9438_v29 }
 0x1b5   : > { %v2224_v58 = vpack.c.bf16 %v2096_v13, %v2096_v13 }
 0x1b7   : > { %2565 = vmatpush.bf16.msra.mxu2 %v9422_v4  ;;  %v2674_v30 = vunpack.c.l.b16 %v2224_v58  ;;  %v9022_v58 = vld [vmem:[%s9300_s28 + $0x1a8] sm:$0xff] }
 0x1b8   : > { %v1699_v23 = vpop.f32.mrf.mxu0  ;;  %8879 = vmatmul.msk.bf16.gmra.mxu3 %vm1407_vm0, %v9022_v58 }
 0x1b9   : > { %v9544_v34 = vpack.c.b16 %v2674_v30, %v2673_v59  ;;  %v9547_v29 = vadd.f32 %v9321_v9, %v1699_v23  ;;  %v8997_v30 = vld [vmem:[%s9300_s28 + $0xe0] sm:$0xff] }
 0x1bb   : > { %13723 = vst [vmem:[#allocation28_spill] sm:$0xff] %v9547_v29  ;;  %8852 = vmatmul.msk.bf16.gmra.mxu0 %vm1407_vm0, %v8995_v41  ;;  %v2097_v37 = vmax.f32 %v9547_v29, 0.0  ;;  %v9013_v41 = vld [vmem:[%s9300_s28 + $0x160] sm:$0xff] }
 0x1bc   : > { %8870 = vmatmul.msk.bf16.gmra.mxu1 %vm1407_vm0, %v9013_v41  ;;  %v9025_v41 = vld [vmem:[%s9300_s28 + $0x1c0] sm:$0xff] }
 0x1bd   : > { %v2225_v45 = vpack.c.bf16 %v2097_v37, %v2097_v37 }
 0x1bf   : > { %v2675_v56 = vunpack.c.l.b16 %v2225_v45 }
 0x1c0   : > { %v1701_v40 = vpop.f32.mrf.mxu0 }
 0x1c1   : > { %v9552_v44 = vadd.f32 %v9321_v9, %v1701_v40 }
 0x1c3   : > { %13724 = vst [vmem:[#allocation29_spill] sm:$0xff] %v9552_v44  ;;  %v2098_v4 = vmax.f32 %v9552_v44, 0.0 }
 0x1c5   : > { %v2226_v53 = vpack.c.bf16 %v2098_v4, %v2098_v4 }
 0x1c7   : > { %v2676_v61 = vunpack.c.l.b16 %v2226_v53  ;;  %v8998_v53 = vld [vmem:[%s9300_s28 + $0xe8] sm:$0xff] }
 0x1c8   : > { %v1704_v62 = vpop.f32.mrf.mxu0  ;;  %8880 = vmatmul.msk.bf16.gmra.mxu3 %vm1407_vm0, %v9023_v50 }
 0x1c9   : > { %v9560_v60 = vpack.c.b16 %v2676_v61, %v2675_v56  ;;  %v9563_v1 = vadd.f32 %v9321_v9, %v1704_v62  ;;  %v9024_v61 = vld [vmem:[%s9300_s28 + $0x1b8] sm:$0xff]  ;;  %v9015_v62 = vld [vmem:[%s9300_s28 + $0x170] sm:$0xff] }
 0x1cb   : > { %13725 = vst [vmem:[#allocation30_spill] sm:$0xff] %v9563_v1  ;;  %8853 = vmatmul.msk.bf16.gmra.mxu0 %vm1407_vm0, %v8996_v54  ;;  %v2099_v2 = vmax.f32 %v9563_v1, 0.0 }
 0x1cc   : > { %8871 = vmatmul.msk.bf16.gmra.mxu1 %vm1407_vm0, %v9014_v52 }
 0x1cd   : > { %v2227_v18 = vpack.c.bf16 %v2099_v2, %v2099_v2  ;;  %v8999_v2 = vld [vmem:[%s9300_s28 + $0xf0] sm:$0xff] }
 0x1cf   : > { %v2677_v23 = vunpack.c.l.b16 %v2227_v18  ;;  %v9590_v18 = vpop.f32.mrf.mxu3 }
 0x1d0   : > { %v1706_v10 = vpop.f32.mrf.mxu0 }
 0x1d1   : > { %v9568_v13 = vadd.f32 %v9321_v9, %v1706_v10 }
 0x1d3   : > { %13726 = vst [vmem:[#allocation31_spill] sm:$0xff] %v9568_v13  ;;  %v2100_v25 = vmax.f32 %v9568_v13, 0.0 }
 0x1d5   : > { %v2228_v59 = vpack.c.bf16 %v2100_v25, %v2100_v25 }
 0x1d7   : > { %v2678_v37 = vunpack.c.l.b16 %v2228_v59  ;;  %v9593_v58 = vpop.f32.mrf.mxu3  ;;  %v9000_v59 = vld [vmem:[%s9300_s28 + $0xf8] sm:$0xff] }
 0x1d8   : > { %v1709_v40 = vpop.f32.mrf.mxu0  ;;  %8881 = vmatmul.msk.bf16.gmra.mxu3 %vm1407_vm0, %v9024_v61 }
 0x1d9   : > { %v9576_v45 = vpack.c.b16 %v2678_v37, %v2677_v23 }
 0x1db   : > { %8854 = vmatmul.msk.bf16.gmra.mxu0 %vm1407_vm0, %v8997_v30 }
 0x1dc   : > { %8872 = vmatmul.msk.bf16.gmra.mxu1 %vm1407_vm0, %v9015_v62 }
 0x1df   : > { %v1849_v23 = vpop.f32.mrf.mxu3 }
 0x1e0   : > { %v1711_v4 = vpop.f32.mrf.mxu0  ;;  %v9610_v61 = vadd.f32 %v9321_v9, %v1849_v23 }
 0x1e1   : > { %v9631_v44 = vadd.f32 %v9321_v9, %v1711_v4 }
 0x1e2   : > { %13730 = vst [vmem:[#allocation35_spill] sm:$0xff] %v9610_v61 }
 0x1e3   : > { %13735 = vst [vmem:[#allocation40_spill] sm:$0xff] %v9631_v44  ;;  %v2102_v3 = vmax.f32 %v9631_v44, 0.0 }
 0x1e8   : > { %v1714_v54 = vpop.f32.mrf.mxu0  ;;  %8882 = vmatmul.msk.bf16.gmra.mxu3 %vm1407_vm0, %v9025_v41 }
 0x1eb   : > { %8855 = vmatmul.msk.bf16.gmra.mxu0 %vm1407_vm0, %v8998_v53 }
 0x1f0   : > { %v1716_v56 = vpop.f32.mrf.mxu0 }
 0x1f8   : > { %v1719_v10 = vpop.f32.mrf.mxu0 }
 0x1f9   : > { %v9606_v52 = vadd.f32 %v9321_v9, %v1719_v10  ;;  %v9621_v10 = vadd.f32 %v9321_v9, %v1714_v54 }
 0x1fb   : > { %8856 = vmatmul.msk.bf16.gmra.mxu0 %vm1407_vm0, %v8999_v2  ;;  %13729 = vst [vmem:[#allocation34_spill] sm:$0xff] %v9606_v52  ;;  %v9613_v2 = vadd.f32 %v9321_v9, %v1716_v56  ;;  %v2105_v23 = vmax.f32 %v9606_v52, 0.0 }
 0x1fc   : > { %13733 = vst [vmem:[#allocation38_spill] sm:$0xff] %v9621_v10 }
 0x1fd   : > { %13731 = vst [vmem:[#allocation36_spill] sm:$0xff] %v9613_v2 }
 0x200   : > { %v1721_v25 = vpop.f32.mrf.mxu0 }
 0x201   : > { %v9603_v50 = vadd.f32 %v9321_v9, %v1721_v25  ;;  %v2157_v25 = vmax.f32 %v9610_v61, 0.0  ;;  %v2104_v61 = vmax.f32 %v9613_v2, 0.0 }
 0x203   : > { %13728 = vst [vmem:[#allocation33_spill] sm:$0xff] %v9603_v50  ;;  %v2106_v41 = vmax.f32 %v9603_v50, 0.0  ;;  %v2285_v1 = vpack.c.bf16 %v2157_v25, %v2157_v25  ;;  %v2233_v25 = vpack.c.bf16 %v2105_v23, %v2105_v23 }
 0x205   : > { %v2234_v29 = vpack.c.bf16 %v2106_v41, %v2106_v41  ;;  %v3251_v57 = vunpack.c.l.b16 %v2285_v1  ;;  %v2232_v41 = vpack.c.bf16 %v2104_v61, %v2104_v61 }
 0x208   : > { %v1724_v30 = vpop.f32.mrf.mxu0 }
 0x209   : > { %v9599_v37 = vadd.f32 %v9321_v9, %v1724_v30  ;;  %v1851_v30 = vpop.f32.mrf.mxu3 }
 0x20b   : > { %13727 = vst [vmem:[#allocation32_spill] sm:$0xff] %v9599_v37  ;;  %8857 = vmatmul.msk.bf16.gmra.mxu0 %vm1407_vm0, %v9000_v59  ;;  %v2107_v53 = vmax.f32 %v9599_v37, 0.0  ;;  %v9624_v37 = vadd.f32 %v9321_v9, %v1851_v30  ;;  %v9635_v30 = vadd.f32 %v9321_v9, %v1709_v40 }
 0x20d   : > { %13734 = vst [vmem:[#allocation39_spill] sm:$0xff] %v9624_v37  ;;  %v2235_v13 = vpack.c.bf16 %v2107_v53, %v2107_v53  ;;  %v2158_v50 = vmax.f32 %v9624_v37, 0.0  ;;  %v2103_v53 = vmax.f32 %v9621_v10, 0.0  ;;  %v2101_v1 = vmax.f32 %v9635_v30, 0.0 }
 0x20e   : > { %13736 = vst [vmem:[#allocation41_spill] sm:$0xff] %v9635_v30  ;;  %v9007_v30 = vld [vmem:[%s9300_s28 + $0x130] sm:$0xff] }
 0x20f   : > { %v2286_v52 = vpack.c.bf16 %v2158_v50, %v2158_v50  ;;  %v2685_v37 = vunpack.c.l.b16 %v2235_v13  ;;  %v2231_v50 = vpack.c.bf16 %v2103_v53, %v2103_v53  ;;  %v2683_v13 = vunpack.c.l.b16 %v2233_v25 }
 0x210   : > { %v1726_v62 = vpop.f32.mrf.mxu0  ;;  %v2229_v44 = vpack.c.bf16 %v2101_v1, %v2101_v1  ;;  %v9661_v1 = vpop.f32.mrf.mxu1 }
 0x211   : > { %v9617_v59 = vadd.f32 %v9321_v9, %v1726_v62  ;;  %v9026_v62 = vld [vmem:[%s9300_s28 + $0x1c8] sm:$0xff]  ;;  %v3252_v4 = vunpack.c.l.b16 %v2286_v52  ;;  %v1854_v49 = vpop.f32.mrf.mxu3  ;;  %v2682_v52 = vunpack.c.l.b16 %v2232_v41 }
 0x212   : > { %8883 = vmatmul.msk.bf16.gmra.mxu3 %vm1407_vm0, %v9026_v62 }
 0x213   : > { %13732 = vst [vmem:[#allocation37_spill] sm:$0xff] %v9617_v59  ;;  %v2108_v56 = vmax.f32 %v9617_v59, 0.0  ;;  %v9001_v59 = vld [vmem:[%s9300_s28 + $0x100] sm:$0xff]  ;;  %v9641_v40 = vpack.c.b16 %v3252_v4, %v3251_v57  ;;  %v9650_v57 = vadd.f32 %v9321_v9, %v1854_v49 }
 0x215   : > { %v2236_v54 = vpack.c.bf16 %v2108_v56, %v2108_v56  ;;  %v2684_v56 = vunpack.c.l.b16 %v2234_v29  ;;  %v2681_v29 = vunpack.c.l.b16 %v2231_v50  ;;  %13738 = vst [vmem:[#allocation43_spill] sm:$0xff] %v9650_v57  ;;  %v9027_v50 = vld [vmem:[%s9300_s28 + $0x1d0] sm:$0xff] }
 0x217   : > { %v2686_v0 = vunpack.c.l.b16 %v2236_v54  ;;  %v2693_v23 = vpack.c.b16 %v2684_v56, %v2683_v13  ;;  %v2230_v54 = vpack.c.bf16 %v2102_v3, %v2102_v3  ;;  %v2692_v61 = vpack.c.b16 %v2682_v52, %v2681_v29 }
 0x218   : > { %v1729_v33 = vpop.f32.mrf.mxu0  ;;  %v2679_v56 = vunpack.c.l.b16 %v2229_v44  ;;  %v9666_v52 = vadd.f32 %v9321_v9, %v9590_v18 }
 0x219   : > { %v2694_v2 = vpack.c.b16 %v2686_v0, %v2685_v37  ;;  %v9645_v62 = vadd.f32 %v9321_v9, %v1729_v33  ;;  %v1856_v53 = vpop.f32.mrf.mxu3 }
 0x21a   : > { %v9657_v3 = vadd.f32 %v9321_v9, %v1856_v53  ;;  %13741 = vst [vmem:[#allocation46_spill] sm:$0xff] %v9666_v52  ;;  %v2155_v18 = vmax.f32 %v9666_v52, 0.0 }
 0x21b   : > { %13737 = vst [vmem:[#allocation42_spill] sm:$0xff] %v9645_v62  ;;  %8858 = vmatmul.msk.bf16.gmra.mxu0 %vm1407_vm0, %v9001_v59  ;;  %2703 = vmatpush.bf16.msrb.mxu3 %v2694_v2  ;;  %v2109_v0 = vmax.f32 %v9645_v62, 0.0  ;;  %v2680_v59 = vunpack.c.l.b16 %v2230_v54  ;;  %v2159_v2 = vmax.f32 %v9650_v57, 0.0  ;;  %v9670_v54 = vadd.f32 %v9321_v9, %v9593_v58  ;;  %v9005_v62 = vld [vmem:[%s9300_s28 + $0x120] sm:$0xff] }
 0x21c   : > { %13740 = vst [vmem:[#allocation45_spill] sm:$0xff] %v9657_v3  ;;  %v2160_v41 = vmax.f32 %v9657_v3, 0.0 }
 0x21d   : > { %v2237_v25 = vpack.c.bf16 %v2109_v0, %v2109_v0  ;;  %v2287_v49 = vpack.c.bf16 %v2159_v2, %v2159_v2  ;;  %13742 = vst [vmem:[#allocation47_spill] sm:$0xff] %v9670_v54 }
 0x21e   : > { %v2288_v29 = vpack.c.bf16 %v2160_v41, %v2160_v41 }
 0x21f   : > { %2704 = vmatpush.bf16.msrb.mxu3 %v2693_v23  ;;  %v2691_v23 = vpack.c.b16 %v2680_v59, %v2679_v56  ;;  %v3253_v0 = vunpack.c.l.b16 %v2287_v49  ;;  %v2816_v44 = vunpack.c.l.b16 %v2237_v25  ;;  %v2156_v56 = vmax.f32 %v9670_v54, 0.0  ;;  %v9685_v25 = vpop.f32.mrf.mxu1 }
 0x220   : > { %v1731_v37 = vpop.f32.mrf.mxu0  ;;  %v3254_v53 = vunpack.c.l.b16 %v2288_v29  ;;  %v2283_v49 = vpack.c.bf16 %v2155_v18, %v2155_v18 }
 0x221   : > { %v9653_v33 = vadd.f32 %v9321_v9, %v1731_v37  ;;  %v2284_v41 = vpack.c.bf16 %v2156_v56, %v2156_v56  ;;  %v9028_v56 = vld [vmem:[%s9300_s28 + $0x1d8] sm:$0xff] }
 0x222   : > { %8884 = vmatmul.msk.bf16.gmra.mxu3 %vm1407_vm0, %v9027_v50  ;;  %v9678_v3 = vpack.c.b16 %v3254_v53, %v3253_v0 }
 0x223   : > { %13739 = vst [vmem:[#allocation44_spill] sm:$0xff] %v9653_v33  ;;  %v2110_v4 = vmax.f32 %v9653_v33, 0.0  ;;  %2705 = vmatpush.bf16.msrb.mxu3 %v2692_v61  ;;  %v9002_v61 = vld [vmem:[%s9300_s28 + $0x108] sm:$0xff] }
 0x225   : > { %v2238_v13 = vpack.c.bf16 %v2110_v4, %v2110_v4  ;;  %v1859_v4 = vpop.f32.mrf.mxu3 }
 0x227   : > { %v2817_v37 = vunpack.c.l.b16 %v2238_v13  ;;  %2706 = vmatpush.bf16.msrb.mxu3 %v2691_v23  ;;  %v9690_v13 = vadd.f32 %v9321_v9, %v1859_v4  ;;  %v9702_v18 = vpop.f32.mrf.mxu1 }
 0x228   : > { %v1734_v2 = vpop.f32.mrf.mxu0 }
 0x229   : > { %v9674_v59 = vpack.c.b16 %v2817_v37, %v2816_v44  ;;  %v9681_v58 = vadd.f32 %v9321_v9, %v1734_v2  ;;  %13744 = vst [vmem:[#allocation49_spill] sm:$0xff] %v9690_v13  ;;  %v2161_v29 = vmax.f32 %v9690_v13, 0.0  ;;  %v3121_v37 = vunpack.c.l.b16 %v2284_v41 }
 0x22b   : > { %13743 = vst [vmem:[#allocation48_spill] sm:$0xff] %v9681_v58  ;;  %8859 = vmatmul.msk.bf16.gmra.mxu0 %vm1407_vm0, %v9002_v61  ;;  %2707 = vmatpush.bf16.msrb.mxu3 %v9576_v45  ;;  %v2111_v50 = vmax.f32 %v9681_v58, 0.0  ;;  %v3120_v45 = vunpack.c.l.b16 %v2283_v49 }
 0x22d   : > { %v1861_v44 = vpop.f32.mrf.mxu3  ;;  %v2239_v2 = vpack.c.bf16 %v2111_v50, %v2111_v50  ;;  %v3129_v13 = vpack.c.b16 %v3121_v37, %v3120_v45  ;;  %v9003_v50 = vld [vmem:[%s9300_s28 + $0x110] sm:$0xff] }
 0x22e   : > { %v9697_v61 = vadd.f32 %v9321_v9, %v1861_v44 }
 0x22f   : > { %2708 = vmatpush.bf16.msrb.mxu3 %v9560_v60  ;;  %v2289_v60 = vpack.c.bf16 %v2161_v29, %v2161_v29  ;;  %v2818_v41 = vunpack.c.l.b16 %v2239_v2  ;;  %v9716_v37 = vpop.f32.mrf.mxu1 }
 0x230   : > { %v1736_v23 = vpop.f32.mrf.mxu0  ;;  %13746 = vst [vmem:[#allocation51_spill] sm:$0xff] %v9697_v61  ;;  %v2162_v4 = vmax.f32 %v9697_v61, 0.0 }
 0x231   : > { %v9693_v0 = vadd.f32 %v9321_v9, %v1736_v23  ;;  %v3255_v57 = vunpack.c.l.b16 %v2289_v60 }
 0x232   : > { %v2290_v49 = vpack.c.bf16 %v2162_v4, %v2162_v4  ;;  %8885 = vmatmul.msk.bf16.gmra.mxu3 %vm1407_vm0, %v9028_v56 }
 0x233   : > { %13745 = vst [vmem:[#allocation50_spill] sm:$0xff] %v9693_v0  ;;  %v2112_v53 = vmax.f32 %v9693_v0, 0.0  ;;  %2709 = vmatpush.bf16.msrb.mxu3 %v9544_v34 }
 0x234   : > { %v3256_v34 = vunpack.c.l.b16 %v2290_v49 }
 0x235   : > { %v2240_v23 = vpack.c.bf16 %v2112_v53, %v2112_v53  ;;  %v1864_v29 = vpop.f32.mrf.mxu3 }
 0x236   : > { %v9710_v61 = vpack.c.b16 %v3256_v34, %v3255_v57 }
 0x237   : > { %v2819_v44 = vunpack.c.l.b16 %v2240_v23  ;;  %2710 = vmatpush.bf16.msrb.mxu3 %v9524_v63  ;;  %v9720_v63 = vadd.f32 %v9321_v9, %v1864_v29 }
 0x238   : > { %v1739_v54 = vpop.f32.mrf.mxu0 }
 0x239   : > { %v9708_v52 = vpack.c.b16 %v2819_v44, %v2818_v41  ;;  %v9713_v45 = vadd.f32 %v9321_v9, %v1739_v54  ;;  %13748 = vst [vmem:[#allocation53_spill] sm:$0xff] %v9720_v63  ;;  %v2163_v57 = vmax.f32 %v9720_v63, 0.0  ;;  %v9731_v41 = vpop.f32.mrf.mxu1  ;;  %v9029_v44 = vld [vmem:[%s9300_s28 + $0x1e0] sm:$0xff] }
 0x23b   : > { %3138 = vmatpush.bf16.msra.mxu3 %v3129_v13  ;;  %13747 = vst [vmem:[#allocation52_spill] sm:$0xff] %v9713_v45  ;;  %8860 = vmatmul.msk.bf16.gmra.mxu0 %vm1407_vm0, %v9003_v50  ;;  %v2113_v2 = vmax.f32 %v9713_v45, 0.0  ;;  %v2291_v23 = vpack.c.bf16 %v2163_v57, %v2163_v57  ;;  %v9004_v45 = vld [vmem:[%s9300_s28 + $0x118] sm:$0xff] }
 0x23d   : > { %v1866_v60 = vpop.f32.mrf.mxu3  ;;  %v2241_v4 = vpack.c.bf16 %v2113_v2, %v2113_v2  ;;  %v3257_v34 = vunpack.c.l.b16 %v2291_v23 }
 0x23e   : > { %v9727_v54 = vadd.f32 %v9321_v9, %v1866_v60 }
 0x240   : > { %v1741_v13 = vpop.f32.mrf.mxu0  ;;  %13750 = vst [vmem:[#allocation55_spill] sm:$0xff] %v9727_v54  ;;  %v2164_v49 = vmax.f32 %v9727_v54, 0.0 }
 0x241   : > { %v9723_v53 = vadd.f32 %v9321_v9, %v1741_v13  ;;  %v2820_v13 = vunpack.c.l.b16 %v2241_v4 }
 0x242   : > { %v2292_v29 = vpack.c.bf16 %v2164_v49, %v2164_v49  ;;  %8886 = vmatmul.msk.bf16.gmra.mxu3 %vm1407_vm0, %v9029_v44 }
 0x243   : > { %13749 = vst [vmem:[#allocation54_spill] sm:$0xff] %v9723_v53  ;;  %v2114_v56 = vmax.f32 %v9723_v53, 0.0 }
 0x244   : > { %v3258_v60 = vunpack.c.l.b16 %v2292_v29 }
 0x245   : > { %v2242_v50 = vpack.c.bf16 %v2114_v56, %v2114_v56  ;;  %v1869_v58 = vpop.f32.mrf.mxu3  ;;  %v9744_v56 = vpop.f32.mrf.mxu1 }
 0x246   : > { %v9738_v53 = vpack.c.b16 %v3258_v60, %v3257_v34  ;;  %v9748_v4 = vadd.f32 %v9321_v9, %v1869_v58  ;;  %v9030_v58 = vld [vmem:[%s9300_s28 + $0x1e8] sm:$0xff] }
 0x247   : > { %v2821_v63 = vunpack.c.l.b16 %v2242_v50 }
 0x248   : > { %v1744_v0 = vpop.f32.mrf.mxu0  ;;  %13752 = vst [vmem:[#allocation57_spill] sm:$0xff] %v9748_v4 }
 0x249   : > { %v9736_v2 = vpack.c.b16 %v2821_v63, %v2820_v13  ;;  %v9741_v57 = vadd.f32 %v9321_v9, %v1744_v0  ;;  %v2165_v63 = vmax.f32 %v9748_v4, 0.0 }
 0x24b   : > { %13751 = vst [vmem:[#allocation56_spill] sm:$0xff] %v9741_v57  ;;  %8861 = vmatmul.msk.bf16.gmra.mxu0 %vm1407_vm0, %v9004_v45  ;;  %v2115_v23 = vmax.f32 %v9741_v57, 0.0  ;;  %v2293_v29 = vpack.c.bf16 %v2165_v63, %v2165_v63 }
 0x24d   : > { %v1871_v50 = vpop.f32.mrf.mxu3  ;;  %v2243_v34 = vpack.c.bf16 %v2115_v23, %v2115_v23  ;;  %v1829_v60 = vpop.f32.mrf.mxu1  ;;  %v3259_v57 = vunpack.c.l.b16 %v2293_v29 }
 0x24e   : > { %v9755_v0 = vadd.f32 %v9321_v9, %v1871_v50 }
 0x24f   : > { %v2822_v4 = vunpack.c.l.b16 %v2243_v34 }
 0x250   : > { %v1746_v49 = vpop.f32.mrf.mxu0  ;;  %13754 = vst [vmem:[#allocation59_spill] sm:$0xff] %v9755_v0  ;;  %v2166_v13 = vmax.f32 %v9755_v0, 0.0 }
 0x251   : > { %v9751_v44 = vadd.f32 %v9321_v9, %v1746_v49 }
 0x252   : > { %v2294_v49 = vpack.c.bf16 %v2166_v13, %v2166_v13  ;;  %8887 = vmatmul.msk.bf16.gmra.mxu3 %vm1407_vm0, %v9030_v58  ;;  %v9031_v13 = vld [vmem:[%s9300_s28 + $0x1f0] sm:$0xff]  ;;  %v9006_v58 = vld [vmem:[%s9300_s28 + $0x128] sm:$0xff] }
 0x253   : > { %13753 = vst [vmem:[#allocation58_spill] sm:$0xff] %v9751_v44  ;;  %v2116_v45 = vmax.f32 %v9751_v44, 0.0  ;;  %v9032_v44 = vld [vmem:[%s9300_s28 + $0x1f8] sm:$0xff] }
 0x254   : > { %v3260_v23 = vunpack.c.l.b16 %v2294_v49 }
 0x255   : > { %v2244_v54 = vpack.c.bf16 %v2116_v45, %v2116_v45  ;;  %v9764_v50 = vpop.f32.mrf.mxu3  ;;  %v1831_v45 = vpop.f32.mrf.mxu1 }
 0x256   : > { %v9768_v0 = vpack.c.b16 %v3260_v23, %v3259_v57 }
 0x257   : > { %v2823_v33 = vunpack.c.l.b16 %v2244_v54 }
 0x258   : > { %v9762_v9 = vpop.f32.mrf.mxu0 }
 0x259   : > { %v9766_v63 = vpack.c.b16 %v2823_v33, %v2822_v4 }
 0x25b   : > { %8862 = vmatmul.msk.bf16.gmra.mxu0 %vm1407_vm0, %v9005_v62 }
 0x25d   : > { %v9773_v34 = vpop.f32.mrf.mxu3  ;;  %v1834_v54 = vpop.f32.mrf.mxu1 }
 0x260   : > { %v9771_v29 = vpop.f32.mrf.mxu0 }
 0x262   : > { %8888 = vmatmul.msk.bf16.gmra.mxu3 %vm1407_vm0, %v9031_v13  ;;  %v9801_v13 = vld [vmem:[%s13169_s4] ss:$0 sm:$0xff] }
 0x263   : > { %v9816_v31 = vadd.f32 %v9801_v13, %v9661_v1  ;;  %v9820_v28 = vadd.f32 %v9801_v13, %v9685_v25  ;;  %v9833_v1 = vadd.f32 %v9801_v13, %v1831_v45  ;;  %v9844_v17 = vadd.f32 %v9801_v13, %v9702_v18 }
 0x264   : > { %v9848_v45 = vadd.f32 %v9801_v13, %v9716_v37 }
 0x265   : > { %v9780_v33 = vpop.f32.mrf.mxu3  ;;  %v1836_v57 = vpop.f32.mrf.mxu1  ;;  %13758 = vst [vmem:[#allocation63_spill] sm:$0xff] %v9816_v31  ;;  %v2144_v47 = vmax.f32 %v9820_v28, 0.0 }
 0x266   : > { %v9807_v38 = vadd.f32 %v9801_v13, %v1836_v57  ;;  %13759 = vst [vmem:[#allocation64_spill] sm:$0xff] %v9820_v28  ;;  %v9828_v57 = vadd.f32 %v9801_v13, %v1829_v60  ;;  %v579_v60 = vcvt.s32.f32 %v451_v21  ;;  %v2150_v28 = vmax.f32 %v9833_v1, 0.0 }
 0x267   : > { %13761 = vst [vmem:[#allocation66_spill] sm:$0xff] %v9833_v1  ;;  %v2146_v20 = vmax.f32 %v9848_v45, 0.0 }
 0x268   : > { %v9778_v49 = vpop.f32.mrf.mxu0  ;;  %13756 = vst [vmem:[#allocation61_spill] sm:$0xff] %v9807_v38  ;;  %v2152_v46 = vmax.f32 %v9807_v38, 0.0  ;;  %v708_v38 = vpack.c.bf16 %v580_v35, %v580_v35  ;;  %v2149_v18 = vmax.f32 %v9828_v57, 0.0 }
 0x269   : > { %13760 = vst [vmem:[#allocation65_spill] sm:$0xff] %v9828_v57 }
 0x26a   : > { %13763 = vst [vmem:[#allocation68_spill] sm:$0xff] %v9844_v17  ;;  %v2280_v37 = vpack.c.bf16 %v2152_v46, %v2152_v46  ;;  %v2624_v26 = vunpack.c.l.b16 %v708_v38  ;;  %v2278_v46 = vpack.c.bf16 %v2150_v28, %v2150_v28 }
 0x26b   : > { %8863 = vmatmul.msk.bf16.gmra.mxu0 %vm1407_vm0, %v9006_v58  ;;  %v9804_v58 = vadd.f32 %v9801_v13, %v1834_v54  ;;  %13764 = vst [vmem:[#allocation69_spill] sm:$0xff] %v9848_v45  ;;  %v2274_v45 = vpack.c.bf16 %v2146_v20, %v2146_v20 }
 0x26c   : > { %v3117_v16 = vunpack.c.l.b16 %v2280_v37  ;;  %v9886_v37 = vadd.f32 %v9801_v13, %v9771_v29 }
 0x26d   : > { %v9785_v4 = vpop.f32.mrf.mxu3  ;;  %v1839_v23 = vpop.f32.mrf.mxu1  ;;  %13755 = vst [vmem:[#allocation60_spill] sm:$0xff] %v9804_v58  ;;  %v2151_v25 = vmax.f32 %v9804_v58, 0.0  ;;  %v9852_v58 = vadd.f32 %v9801_v13, %v9731_v41 }
 0x26e   : > { %13768 = vst [vmem:[#allocation73_spill] sm:$0xff] %v9886_v37 }
 0x26f   : > { %13765 = vst [vmem:[#allocation70_spill] sm:$0xff] %v9852_v58 }
 0x270   : > { %v9783_v62 = vpop.f32.mrf.mxu0 }
 0x272   : > { %8889 = vmatmul.msk.bf16.gmra.mxu3 %vm1407_vm0, %v9032_v44  ;;  %v9810_v44 = vadd.f32 %v9801_v13, %v1839_v23 }
 0x274   : > { %13757 = vst [vmem:[#allocation62_spill] sm:$0xff] %v9810_v44  ;;  %v2153_v54 = vmax.f32 %v9810_v44, 0.0  ;;  %v2143_v44 = vmax.f32 %v9816_v31, 0.0  ;;  %v2279_v31 = vpack.c.bf16 %v2151_v25, %v2151_v25  ;;  %v2277_v25 = vpack.c.bf16 %v2149_v18, %v2149_v18 }
 0x275   : > { %v9812_v32 = vpop.f32.mrf.mxu3  ;;  %v1841_v23 = vpop.f32.mrf.mxu1 }
 0x276   : > { %v2281_v42 = vpack.c.bf16 %v2153_v54, %v2153_v54  ;;  %v707_v54 = vpack.c.bf16 %v579_v60, %v579_v60  ;;  %v2147_v60 = vmax.f32 %v9852_v58, 0.0  ;;  %v3116_v1 = vunpack.c.l.b16 %v2279_v31 }
 0x278   : > { %v9791_v10 = vpop.f32.mrf.mxu0  ;;  %v3118_v55 = vunpack.c.l.b16 %v2281_v42  ;;  %v2623_v43 = vunpack.c.l.b16 %v707_v54  ;;  %v9869_v42 = vpack.c.bf16 %v2143_v44, %v2143_v44  ;;  %v2275_v58 = vpack.c.bf16 %v2147_v60, %v2147_v60 }
 0x279   : > { %v3127_v31 = vpack.c.b16 %v3117_v16, %v3116_v1  ;;  %v453_v16 = vunpack.c.2.s8 %v9825_v22  ;;  %v454_v1 = vunpack.c.3.s8 %v9825_v22  ;;  %v9892_v60 = vadd.f32 %v9801_v13, %v9778_v49 }
 0x27a   : > { %v9907_v22 = vadd.f32 %v9801_v13, %v9783_v62  ;;  %v9911_v49 = vadd.f32 %v9801_v13, %v9791_v10 }
 0x27b   : > { %8864 = vmatmul.msk.bf16.gmra.mxu0 %vm1407_vm0, %v9007_v30  ;;  %v9838_v30 = vadd.f32 %v9801_v13, %v1841_v23  ;;  %v9856_v23 = vadd.f32 %v9801_v13, %v9744_v56  ;;  %v2145_v56 = vmax.f32 %v9844_v17, 0.0  ;;  %v9008_v17 = vld [vmem:[%s9300_s28 + $0x138] sm:$0xff]  ;;  %13769 = vst [vmem:[#allocation74_spill] sm:$0xff] %v9892_v60  ;;  %v581_v29 = vcvt.s32.f32 %v453_v16 }
 0x27c   : > { %13771 = vst [vmem:[#allocation76_spill] sm:$0xff] %v9907_v22 }
 0x27d   : > { %13762 = vst [vmem:[#allocation67_spill] sm:$0xff] %v9838_v30  ;;  %v2154_v19 = vmax.f32 %v9838_v30, 0.0  ;;  %v9861_v8 = vpop.f32.mrf.mxu3  ;;  %v2148_v35 = vmax.f32 %v9856_v23, 0.0  ;;  %v9867_v30 = vpack.c.b16 %v2624_v26, %v2623_v43  ;;  %v9874_v54 = vpack.c.bf16 %v2145_v56, %v2145_v56 }
 0x27e   : > { %13766 = vst [vmem:[#allocation71_spill] sm:$0xff] %v9856_v23  ;;  %v3114_v26 = vunpack.c.l.b16 %v2277_v25  ;;  %v3115_v43 = vunpack.c.l.b16 %v2278_v46 }
 0x27f   : > { %v2282_v41 = vpack.c.bf16 %v2154_v19, %v2154_v19  ;;  %13767 = vst [vmem:[#allocation72_spill] sm:$0xff] %v9867_v30  ;;  %v9871_v19 = vpack.c.bf16 %v2144_v47, %v2144_v47  ;;  %v2276_v23 = vpack.c.bf16 %v2148_v35, %v2148_v35  ;;  %v3110_v18 = vunpack.c.l.b16 %v9874_v54  ;;  %v9901_v35 = vld [vmem:[%s9796_s21] sm:$0xff] }
 0x280   : > { %v1761_v21 = vpop.f32.mrf.mxu0  ;;  %v419_v25 = vunpack.c.0.s8 %v9901_v35  ;;  %v420_v46 = vunpack.c.1.s8 %v9901_v35  ;;  %13772 = vst [vmem:[#allocation77_spill] sm:$0xff] %v9911_v49 }
 0x281   : > { %v3119_v57 = vunpack.c.l.b16 %v2282_v41  ;;  %v3113_v56 = vunpack.c.l.b16 %v2276_v23  ;;  %v582_v23 = vcvt.s32.f32 %v454_v1 }
 0x282   : > { %2711 = vmatmul.bf16.vlgmr.msrb.gmra.mxu3 %v9867_v30 }
 0x283   : > { %v3128_v38 = vpack.c.b16 %v3119_v57, %v3118_v55  ;;  %v3111_v55 = vunpack.c.l.b16 %v2274_v45  ;;  %v3112_v57 = vunpack.c.l.b16 %v2275_v58  ;;  %v9895_v58 = vadd.f32 %v9801_v13, %v1761_v21 }
 0x285   : > { %3139 = vmatpush.bf16.msra.mxu3 %v3128_v38  ;;  %v1889_v28 = vpop.f32.mrf.mxu3  ;;  %v3125_v47 = vpack.c.b16 %v3113_v56, %v3112_v57 }
 0x286   : > { %v9898_v45 = vadd.f32 %v9801_v13, %v1889_v28  ;;  %v548_v28 = vcvt.s32.f32 %v420_v46  ;;  %v2120_v46 = vmax.f32 %v9907_v22, 0.0 }
 0x288   : > { %v1764_v41 = vpop.f32.mrf.mxu0  ;;  %13770 = vst [vmem:[#allocation75_spill] sm:$0xff] %v9898_v45  ;;  %v2173_v38 = vmax.f32 %v9898_v45, 0.0 }
 0x289   : > { %v9881_v20 = vadd.f32 %v9801_v13, %v1764_v41  ;;  %3140 = vmatpush.bf16.msra.mxu3 %v3127_v31  ;;  %v709_v41 = vpack.c.bf16 %v581_v29, %v581_v29  ;;  %v2122_v31 = vmax.f32 %v9895_v58, 0.0 }
 0x28a   : > { %v2301_v62 = vpack.c.bf16 %v2173_v38, %v2173_v38 }
 0x28b   : > { %8865 = vmatmul.msk.bf16.gmra.mxu0 %vm1407_vm0, %v9008_v17  ;;  %v3126_v17 = vpack.c.b16 %v3115_v43, %v3114_v26  ;;  %v2123_v21 = vmax.f32 %v9881_v20, 0.0  ;;  %v710_v26 = vpack.c.bf16 %v582_v23, %v582_v23  ;;  %v547_v43 = vcvt.s32.f32 %v419_v25 }
 0x28c   : > { %v2625_v44 = vunpack.c.l.b16 %v709_v41  ;;  %v676_v25 = vpack.c.bf16 %v548_v28, %v548_v28  ;;  %v2250_v56 = vpack.c.bf16 %v2122_v31, %v2122_v31  ;;  %v3124_v41 = vpack.c.b16 %v3111_v55, %v3110_v18 }
 0x28d   : > { %3141 = vmatpush.bf16.msra.mxu3 %v3126_v17  ;;  %v1891_v1 = vpop.f32.mrf.mxu3  ;;  %v2626_v30 = vunpack.c.l.b16 %v710_v26  ;;  %v675_v45 = vpack.c.bf16 %v547_v43, %v547_v43  ;;  %v2121_v17 = vmax.f32 %v9911_v49, 0.0  ;;  %v2251_v29 = vpack.c.bf16 %v2123_v21, %v2123_v21 }
 0x28e   : > { %v9920_v10 = vadd.f32 %v9801_v13, %v1891_v1  ;;  %v2334_v26 = vunpack.c.l.b16 %v676_v25  ;;  %v9930_v43 = vadd.f32 %v9801_v13, %v9762_v9  ;;  %v2119_v21 = vmax.f32 %v9892_v60, 0.0  ;;  %v10155_v60 = vld [vmem:[%s9796_s21 + $0xa0] sm:$0xff] }
 0x28f   : > { %v9926_v38 = vpack.c.b16 %v2626_v30, %v2625_v44  ;;  %v2333_v57 = vunpack.c.l.b16 %v675_v45  ;;  %v3396_v28 = vunpack.c.l.b16 %v2301_v62  ;;  %v2830_v22 = vunpack.c.l.b16 %v2251_v29  ;;  %v9009_v30 = vld [vmem:[%s9300_s28 + $0x140] sm:$0xff] }
 0x290   : > { %v1766_v54 = vpop.f32.mrf.mxu0  ;;  %13774 = vst [vmem:[#allocation79_spill] sm:$0xff] %v9920_v10  ;;  %v2118_v45 = vmax.f32 %v9886_v37, 0.0  ;;  %v2248_v9 = vpack.c.bf16 %v2120_v46, %v2120_v46  ;;  %v2829_v31 = vunpack.c.l.b16 %v2250_v56  ;;  %v13779_v29 = vunpack.c.l.b16 %v9871_v19 }
 0x291   : > { %v9917_v16 = vadd.f32 %v9801_v13, %v1766_v54  ;;  %v2174_v54 = vmax.f32 %v9920_v10, 0.0  ;;  %3142 = vmatpush.bf16.msra.mxu3 %v3125_v47  ;;  %13775 = vst [vmem:[#allocation80_spill] sm:$0xff] %v9926_v38  ;;  %v2249_v10 = vpack.c.bf16 %v2121_v17, %v2121_v17  ;;  %v9935_v44 = vpack.c.b16 %v2334_v26, %v2333_v57 }
 0x292   : > { %13776 = vst [vmem:[#allocation81_spill] sm:$0xff] %v9930_v43  ;;  %2716 = vmatmul.bf16.gmra.mxu3 %v9926_v38  ;;  %v13778_v17 = vunpack.c.l.b16 %v9869_v42  ;;  %v2117_v57 = vmax.f32 %v9930_v43, 0.0  ;;  %v2246_v56 = vpack.c.bf16 %v2118_v45, %v2118_v45 }
 0x293   : > { %13773 = vst [vmem:[#allocation78_spill] sm:$0xff] %v9917_v16  ;;  %v2124_v23 = vmax.f32 %v9917_v16, 0.0  ;;  %v2302_v16 = vpack.c.bf16 %v2174_v54, %v2174_v54  ;;  %2421 = vmatmul.bf16.vlgmr.msrb.gmra.mxu1 %v9935_v44  ;;  %v2828_v26 = vunpack.c.l.b16 %v2249_v10 }
 0x294   : > { %13777 = vst [vmem:[#allocation82_spill] sm:$0xff] %v9935_v44  ;;  %v3123_v25 = vpack.c.b16 %v13779_v29, %v13778_v17  ;;  %v2825_v29 = vunpack.c.l.b16 %v2246_v56 }
 0x295   : > { %v2252_v1 = vpack.c.bf16 %v2124_v23, %v2124_v23  ;;  %v3397_v55 = vunpack.c.l.b16 %v2302_v16  ;;  %3143 = vmatpush.bf16.msra.mxu3 %v3124_v41  ;;  %v1894_v62 = vpop.f32.mrf.mxu3  ;;  %v396_v16 = vld [vmem:[%s9796_s21 + $0x48] sm:$0xff]  ;;  %v2827_v41 = vunpack.c.l.b16 %v2248_v9 }
 0x296   : > { %v456_v46 = vunpack.c.1.s8 %v396_v16  ;;  %v9951_v42 = vadd.f32 %v9801_v13, %v1894_v62 }
 0x297   : > { %v2831_v47 = vunpack.c.l.b16 %v2252_v1  ;;  %v9945_v54 = vpack.c.b16 %v3397_v55, %v3396_v28  ;;  %v2247_v1 = vpack.c.bf16 %v2119_v21, %v2119_v21  ;;  %v2245_v55 = vpack.c.bf16 %v2117_v57, %v2117_v57 }
 0x298   : > { %v9938_v18 = vpop.f32.mrf.mxu0  ;;  %13780 = vst [vmem:[#allocation83_spill] sm:$0xff] %v9951_v42  ;;  %v584_v28 = vcvt.s32.f32 %v456_v46  ;;  %v2175_v10 = vmax.f32 %v9951_v42, 0.0  ;;  %v9968_v46 = vadd.f32 %v9801_v13, %v9861_v8 }
 0x299   : > { %v2839_v23 = vpack.c.b16 %v2831_v47, %v2830_v22  ;;  %3144 = vmatpush.bf16.msra.mxu3 %v3123_v25  ;;  %v455_v22 = vunpack.c.0.s8 %v396_v16  ;;  %v2838_v47 = vpack.c.b16 %v2829_v31, %v2828_v26  ;;  %v2826_v17 = vunpack.c.l.b16 %v2247_v1 }
 0x29a   : > { %v2303_v45 = vpack.c.bf16 %v2175_v10, %v2175_v10  ;;  %v2824_v26 = vunpack.c.l.b16 %v2245_v55  ;;  %13784 = vst [vmem:[#allocation87_spill] sm:$0xff] %v9968_v46  ;;  %v2172_v55 = vmax.f32 %v9968_v46, 0.0 }
 0x29b   : > { %8866 = vmatmul.msk.bf16.gmra.mxu0 %vm1407_vm0, %v9009_v30  ;;  %2848 = vmatpush.bf16.msra.mxu1 %v2839_v23  ;;  %v583_v19 = vcvt.s32.f32 %v455_v22  ;;  %v712_v23 = vpack.c.bf16 %v584_v28, %v584_v28  ;;  %v2837_v25 = vpack.c.b16 %v2827_v41, %v2826_v17  ;;  %v9964_v22 = vadd.f32 %v9801_v13, %v9812_v32 }
 0x29c   : > { %v2836_v56 = vpack.c.b16 %v2825_v29, %v2824_v26  ;;  %v3398_v41 = vunpack.c.l.b16 %v2303_v45  ;;  %v9979_v32 = vadd.f32 %v9801_v13, %v9785_v4  ;;  %v458_v29 = vunpack.c.3.s8 %v396_v16 }
 0x29d   : > { %v711_v30 = vpack.c.bf16 %v583_v19, %v583_v19  ;;  %v1896_v38 = vpop.f32.mrf.mxu3  ;;  %v2628_v62 = vunpack.c.l.b16 %v712_v23  ;;  %13783 = vst [vmem:[#allocation86_spill] sm:$0xff] %v9964_v22  ;;  %v2171_v8 = vmax.f32 %v9964_v22, 0.0  ;;  %v457_v23 = vunpack.c.2.s8 %v396_v16 }
 0x29e   : > { %v9957_v9 = vadd.f32 %v9801_v13, %v1896_v38  ;;  %13786 = vst [vmem:[#allocation89_spill] sm:$0xff] %v9979_v32 }
 0x29f   : > { %2849 = vmatpush.bf16.msra.mxu1 %v2838_v47  ;;  %v2627_v31 = vunpack.c.l.b16 %v711_v30  ;;  %v9973_v47 = vadd.f32 %v9801_v13, %v9780_v33  ;;  %v9987_v30 = vadd.f32 %v9801_v13, %v9764_v50  ;;  %v9992_v33 = vadd.f32 %v9801_v13, %v9773_v34 }
 0x2a0   : > { %v9954_v21 = vpop.f32.mrf.mxu0  ;;  %13781 = vst [vmem:[#allocation84_spill] sm:$0xff] %v9957_v9  ;;  %v2176_v57 = vmax.f32 %v9957_v9, 0.0  ;;  %v2299_v45 = vpack.c.bf16 %v2171_v8, %v2171_v8  ;;  %v585_v26 = vcvt.s32.f32 %v457_v23  ;;  %v586_v50 = vcvt.s32.f32 %v458_v29 }
 0x2a1   : > { %v9960_v1 = vpack.c.b16 %v2628_v62, %v2627_v31  ;;  %13785 = vst [vmem:[#allocation88_spill] sm:$0xff] %v9973_v47  ;;  %v2169_v4 = vmax.f32 %v9973_v47, 0.0  ;;  %v2300_v31 = vpack.c.bf16 %v2172_v55, %v2172_v55  ;;  %v2167_v34 = vmax.f32 %v9987_v30, 0.0 }
 0x2a2   : > { %v2304_v38 = vpack.c.bf16 %v2176_v57, %v2176_v57  ;;  %13787 = vst [vmem:[#allocation90_spill] sm:$0xff] %v9987_v30  ;;  %v2168_v57 = vmax.f32 %v9992_v33, 0.0  ;;  %v713_v16 = vpack.c.bf16 %v585_v26, %v585_v26  ;;  %v3265_v8 = vunpack.c.l.b16 %v2299_v45 }
 0x2a3   : > { %2850 = vmatpush.bf16.msra.mxu1 %v2837_v25  ;;  %13782 = vst [vmem:[#allocation85_spill] sm:$0xff] %v9960_v1  ;;  %2721 = vmatmul.bf16.gmra.mxu3 %v9960_v1  ;;  %v2170_v25 = vmax.f32 %v9979_v32, 0.0  ;;  %v3266_v55 = vunpack.c.l.b16 %v2300_v31  ;;  %v2295_v30 = vpack.c.bf16 %v2167_v34, %v2167_v34  ;;  %v10138_v1 = vld [vmem:[%s9796_s21 + $0x8] sm:$0xff] }
 0x2a4   : > { %v3399_v28 = vunpack.c.l.b16 %v2304_v38  ;;  %13788 = vst [vmem:[#allocation91_spill] sm:$0xff] %v9992_v33  ;;  %v2297_v38 = vpack.c.bf16 %v2169_v4, %v2169_v4  ;;  %v2296_v26 = vpack.c.bf16 %v2168_v57, %v2168_v57  ;;  %v397_v57 = vld [vmem:[%s9796_s21 + $0x50] sm:$0xff] }
 0x2a5   : > { %v1899_v17 = vpop.f32.mrf.mxu3  ;;  %v3274_v45 = vpack.c.b16 %v3266_v55, %v3265_v8 }
 0x2a6   : > { %v9983_v10 = vpack.c.b16 %v3399_v28, %v3398_v41  ;;  %v9997_v62 = vadd.f32 %v9801_v13, %v1899_v17  ;;  %v714_v41 = vpack.c.bf16 %v586_v50, %v586_v50  ;;  %v2298_v28 = vpack.c.bf16 %v2170_v25, %v2170_v25 }
 0x2a7   : > { %2851 = vmatpush.bf16.msra.mxu1 %v2836_v56  ;;  %v3263_v4 = vunpack.c.l.b16 %v2297_v38  ;;  %v459_v38 = vunpack.c.0.s8 %v397_v57 }
 0x2a8   : > { %v9975_v19 = vpop.f32.mrf.mxu0  ;;  %13789 = vst [vmem:[#allocation92_spill] sm:$0xff] %v9997_v62  ;;  %v2630_v29 = vunpack.c.l.b16 %v714_v41  ;;  %v3264_v25 = vunpack.c.l.b16 %v2298_v28  ;;  %v3261_v41 = vunpack.c.l.b16 %v2295_v30  ;;  %v460_v28 = vunpack.c.1.s8 %v397_v57 }
 0x2a9   : > { %v587_v8 = vcvt.s32.f32 %v459_v38 }
 0x2ab   : > { %2852 = vmatpush.bf16.msra.mxu1 %v9766_v63  ;;  %v2177_v63 = vmax.f32 %v9997_v62, 0.0  ;;  %v715_v30 = vpack.c.bf16 %v587_v8, %v587_v8  ;;  %v461_v8 = vunpack.c.2.s8 %v397_v57 }
 0x2ad   : > { %v1901_v17 = vpop.f32.mrf.mxu3  ;;  %v2305_v42 = vpack.c.bf16 %v2177_v63, %v2177_v63 }
 0x2ae   : > { %v10006_v23 = vadd.f32 %v9801_v13, %v1901_v17  ;;  %v3262_v17 = vunpack.c.l.b16 %v2296_v26 }
 0x2af   : > { %2853 = vmatpush.bf16.msra.mxu1 %v9736_v2  ;;  %v2629_v2 = vunpack.c.l.b16 %v713_v16  ;;  %v3400_v31 = vunpack.c.l.b16 %v2305_v42 }
 0x2b0   : > { %v10003_v56 = vpop.f32.mrf.mxu0  ;;  %13790 = vst [vmem:[#allocation93_spill] sm:$0xff] %v10006_v23  ;;  %v2178_v9 = vmax.f32 %v10006_v23, 0.0 }
 0x2b1   : > { %v10010_v62 = vpack.c.b16 %v2630_v29, %v2629_v2  ;;  %v3273_v2 = vpack.c.b16 %v3264_v25, %v3263_v4 }
 0x2b2   : > { %v2306_v50 = vpack.c.bf16 %v2178_v9, %v2178_v9  ;;  %v3272_v9 = vpack.c.b16 %v3262_v17, %v3261_v41 }
 0x2b3   : > { %2854 = vmatpush.bf16.msra.mxu1 %v9708_v52  ;;  %13791 = vst [vmem:[#allocation94_spill] sm:$0xff] %v10010_v62  ;;  %2726 = vmatmul.bf16.gmra.mxu3 %v10010_v62 }
 0x2b4   : > { %v3401_v52 = vunpack.c.l.b16 %v2306_v50 }
 0x2b5   : > { %v1904_v16 = vpop.f32.mrf.mxu3 }
 0x2b6   : > { %v10016_v34 = vpack.c.b16 %v3401_v52, %v3400_v31  ;;  %v10020_v42 = vadd.f32 %v9801_v13, %v1904_v16  ;;  %v2631_v31 = vunpack.c.l.b16 %v715_v30 }
 0x2b7   : > { %2855 = vmatpush.bf16.msra.mxu1 %v9674_v59  ;;  %v588_v59 = vcvt.s32.f32 %v460_v28 }
 0x2b8   : > { %v10014_v63 = vpop.f32.mrf.mxu0  ;;  %13792 = vst [vmem:[#allocation95_spill] sm:$0xff] %v10020_v42  ;;  %v2179_v55 = vmax.f32 %v10020_v42, 0.0 }
 0x2b9   : > { %v716_v26 = vpack.c.bf16 %v588_v59, %v588_v59 }
 0x2ba   : > { %v2307_v25 = vpack.c.bf16 %v2179_v55, %v2179_v55  ;;  %v589_v55 = vcvt.s32.f32 %v461_v8 }
 0x2bb   : > { %3283 = vmatpush.bf16.msrb.mxu1 %v3274_v45  ;;  %v2632_v50 = vunpack.c.l.b16 %v716_v26 }
 0x2bc   : > { %v3402_v41 = vunpack.c.l.b16 %v2307_v25 }
 0x2bd   : > { %v1906_v4 = vpop.f32.mrf.mxu3  ;;  %v10030_v16 = vpack.c.b16 %v2632_v50, %v2631_v31 }
 0x2be   : > { %v10026_v45 = vadd.f32 %v9801_v13, %v1906_v4 }
 0x2bf   : > { %3284 = vmatpush.bf16.msrb.mxu1 %v3273_v2  ;;  %13794 = vst [vmem:[#allocation97_spill] sm:$0xff] %v10030_v16 }
 0x2c0   : > { %v10023_v29 = vpop.f32.mrf.mxu0  ;;  %13793 = vst [vmem:[#allocation96_spill] sm:$0xff] %v10026_v45  ;;  %v2180_v52 = vmax.f32 %v10026_v45, 0.0 }
 0x2c2   : > { %v2308_v17 = vpack.c.bf16 %v2180_v52, %v2180_v52 }
 0x2c3   : > { %3285 = vmatpush.bf16.msrb.mxu1 %v3272_v9  ;;  %2731 = vmatmul.bf16.gmra.mxu3 %v10030_v16 }
 0x2c4   : > { %v3403_v38 = vunpack.c.l.b16 %v2308_v17 }
 0x2c5   : > { %v1909_v28 = vpop.f32.mrf.mxu3 }
 0x2c6   : > { %v10036_v9 = vpack.c.b16 %v3403_v38, %v3402_v41  ;;  %v10040_v59 = vadd.f32 %v9801_v13, %v1909_v28 }
 0x2c7   : > { %3286 = vmatpush.bf16.msrb.mxu1 %v9768_v0  ;;  %v462_v0 = vunpack.c.3.s8 %v397_v57 }
 0x2c8   : > { %v10033_v2 = vpop.f32.mrf.mxu0  ;;  %13795 = vst [vmem:[#allocation98_spill] sm:$0xff] %v10040_v59  ;;  %v2181_v26 = vmax.f32 %v10040_v59, 0.0 }
 0x2c9   : > { %v590_v30 = vcvt.s32.f32 %v462_v0 }
 0x2ca   : > { %v2309_v50 = vpack.c.bf16 %v2181_v26, %v2181_v26 }
 0x2cb   : > { %3287 = vmatpush.bf16.msrb.mxu1 %v9738_v53  ;;  %v717_v53 = vpack.c.bf16 %v589_v55, %v589_v55  ;;  %v718_v25 = vpack.c.bf16 %v590_v30, %v590_v30  ;;  %v398_v30 = vld [vmem:[%s9796_s21 + $0x58] sm:$0xff] }
 0x2cc   : > { %v3404_v38 = vunpack.c.l.b16 %v2309_v50  ;;  %v463_v26 = vunpack.c.0.s8 %v398_v30  ;;  %v466_v45 = vunpack.c.3.s8 %v398_v30 }
 0x2cd   : > { %v1911_v31 = vpop.f32.mrf.mxu3  ;;  %v2633_v57 = vunpack.c.l.b16 %v717_v53  ;;  %v2634_v52 = vunpack.c.l.b16 %v718_v25  ;;  %v464_v53 = vunpack.c.1.s8 %v398_v30 }
 0x2ce   : > { %v591_v25 = vcvt.s32.f32 %v463_v26  ;;  %v594_v26 = vcvt.s32.f32 %v466_v45  ;;  %v422_v45 = vunpack.c.3.s8 %v9901_v35 }
 0x2cf   : > { %3288 = vmatpush.bf16.msrb.mxu1 %v9710_v61  ;;  %v10047_v61 = vadd.f32 %v9801_v13, %v1911_v31  ;;  %v10051_v17 = vpack.c.b16 %v2634_v52, %v2633_v57 }
 0x2d0   : > { %v10043_v4 = vpop.f32.mrf.mxu0  ;;  %v719_v57 = vpack.c.bf16 %v591_v25, %v591_v25  ;;  %v722_v46 = vpack.c.bf16 %v594_v26, %v594_v26 }
 0x2d1   : > { %13796 = vst [vmem:[#allocation99_spill] sm:$0xff] %v10047_v61  ;;  %v2182_v41 = vmax.f32 %v10047_v61, 0.0 }
 0x2d2   : > { %13797 = vst [vmem:[#allocation100_spill] sm:$0xff] %v10051_v17 }
 0x2d3   : > { %3289 = vmatpush.bf16.msrb.mxu1 %v9678_v3  ;;  %v2310_v28 = vpack.c.bf16 %v2182_v41, %v2182_v41  ;;  %2736 = vmatmul.bf16.gmra.mxu3 %v10051_v17  ;;  %v2635_v41 = vunpack.c.l.b16 %v719_v57 }
 0x2d5   : > { %v3405_v8 = vunpack.c.l.b16 %v2310_v28  ;;  %v10056_v0 = vpop.f32.mrf.mxu3 }
 0x2d7   : > { %3290 = vmatpush.bf16.msrb.mxu1 %v9641_v40  ;;  %v10058_v55 = vpack.c.b16 %v3405_v8, %v3404_v38  ;;  %v592_v40 = vcvt.s32.f32 %v464_v53  ;;  %v465_v8 = vunpack.c.2.s8 %v398_v30  ;;  %v421_v30 = vunpack.c.2.s8 %v9901_v35 }
 0x2d8   : > { %v10054_v3 = vpop.f32.mrf.mxu0 }
 0x2d9   : > { %v720_v52 = vpack.c.bf16 %v592_v40, %v592_v40  ;;  %v593_v59 = vcvt.s32.f32 %v465_v8  ;;  %v2638_v40 = vunpack.c.l.b16 %v722_v46  ;;  %v549_v8 = vcvt.s32.f32 %v421_v30 }
 0x2db   : > { %v2636_v23 = vunpack.c.l.b16 %v720_v52  ;;  %v721_v61 = vpack.c.bf16 %v593_v59, %v593_v59  ;;  %v550_v59 = vcvt.s32.f32 %v422_v45  ;;  %v10097_v45 = vadd.f32 %v9801_v13, %v9938_v18 }
 0x2dc   : > { %v10113_v18 = vadd.f32 %v9801_v13, %v10014_v63 }
 0x2dd   : > { %v10063_v50 = vpop.f32.mrf.mxu3  ;;  %v10065_v42 = vpack.c.b16 %v2636_v23, %v2635_v41  ;;  %v2637_v25 = vunpack.c.l.b16 %v721_v61  ;;  %v677_v61 = vpack.c.bf16 %v549_v8, %v549_v8  ;;  %v678_v46 = vpack.c.bf16 %v550_v59, %v550_v59 }
 0x2de   : > { %v10109_v59 = vadd.f32 %v9801_v13, %v10003_v56  ;;  %13806 = vst [vmem:[#allocation109_spill] sm:$0xff] %v10113_v18  ;;  %v10124_v56 = vadd.f32 %v9801_v13, %v10023_v29 }
 0x2df   : > { %13798 = vst [vmem:[#allocation101_spill] sm:$0xff] %v10065_v42  ;;  %v10070_v33 = vpack.c.b16 %v2638_v40, %v2637_v25  ;;  %v2335_v40 = vunpack.c.l.b16 %v677_v61  ;;  %v2336_v47 = vunpack.c.l.b16 %v678_v46 }
 0x2e0   : > { %v10061_v31 = vpop.f32.mrf.mxu0  ;;  %13805 = vst [vmem:[#allocation108_spill] sm:$0xff] %v10109_v59 }
 0x2e1   : > { %13799 = vst [vmem:[#allocation102_spill] sm:$0xff] %v10070_v33  ;;  %v10084_v22 = vpack.c.b16 %v2336_v47, %v2335_v40 }
 0x2e2   : > { %13809 = vst [vmem:[#allocation112_spill] sm:$0xff] %v10124_v56 }
 0x2e3   : > { %2741 = vmatmul.bf16.gmra.mxu3 %v10065_v42  ;;  %13801 = vst [vmem:[#allocation104_spill] sm:$0xff] %v10084_v22  ;;  %v10090_v42 = vld [vmem:[%s9796_s21 + $0x20] sm:$0xff]  ;;  %2426 = vmatmul.bf16.gmra.mxu1 %v10084_v22 }
 0x2e4   : > { %v435_v35 = vunpack.c.0.s8 %v10090_v42  ;;  %v436_v30 = vunpack.c.1.s8 %v10090_v42 }
 0x2e5   : > { %v10068_v38 = vpop.f32.mrf.mxu3 }
 0x2e6   : > { %v563_v61 = vcvt.s32.f32 %v435_v35  ;;  %v564_v46 = vcvt.s32.f32 %v436_v30  ;;  %v10128_v35 = vadd.f32 %v9801_v13, %v10043_v4  ;;  %v423_v4 = vunpack.c.0.s8 %v10138_v1 }
 0x2e8   : > { %v1794_v28 = vpop.f32.mrf.mxu0  ;;  %13810 = vst [vmem:[#allocation113_spill] sm:$0xff] %v10128_v35  ;;  %v691_v30 = vpack.c.bf16 %v563_v61, %v563_v61  ;;  %v692_v17 = vpack.c.bf16 %v564_v46, %v564_v46  ;;  %v424_v61 = vunpack.c.1.s8 %v10138_v1 }
 0x2e9   : > { %v10131_v63 = vadd.f32 %v9801_v13, %v1794_v28  ;;  %v10144_v28 = vadd.f32 %v9801_v13, %v10061_v31  ;;  %v10159_v31 = vadd.f32 %v9801_v13, %v10033_v2 }
 0x2ea   : > { %v2478_v29 = vunpack.c.l.b16 %v691_v30  ;;  %v551_v30 = vcvt.s32.f32 %v423_v4 }
 0x2eb   : > { %13811 = vst [vmem:[#allocation114_spill] sm:$0xff] %v10131_v63  ;;  %v2135_v22 = vmax.f32 %v10131_v63, 0.0 }
 0x2ec   : > { %13812 = vst [vmem:[#allocation115_spill] sm:$0xff] %v10144_v28 }
 0x2ed   : > { %v10072_v57 = vpop.f32.mrf.mxu3  ;;  %13815 = vst [vmem:[#allocation118_spill] sm:$0xff] %v10159_v31  ;;  %v2263_v49 = vpack.c.bf16 %v2135_v22, %v2135_v22 }
 0x2f0   : > { %v1796_v53 = vpop.f32.mrf.mxu0 }
 0x2f3   : > { %2746 = vmatmul.bf16.gmra.mxu3 %v10070_v33 }
 0x2f5   : > { %v10075_v52 = vpop.f32.mrf.mxu3 }
 0x2f8   : > { %v1799_v23 = vpop.f32.mrf.mxu0 }
 0x2f9   : > { %v10100_v8 = vadd.f32 %v9801_v13, %v1799_v23  ;;  %v10116_v23 = vadd.f32 %v9801_v13, %v1796_v53 }
 0x2fb   : > { %13803 = vst [vmem:[#allocation106_spill] sm:$0xff] %v10100_v8  ;;  %v2137_v53 = vmax.f32 %v10100_v8, 0.0  ;;  %v2136_v46 = vmax.f32 %v10116_v23, 0.0 }
 0x2fc   : > { %13807 = vst [vmem:[#allocation110_spill] sm:$0xff] %v10116_v23 }
 0x2fd   : > { %v10079_v25 = vpop.f32.mrf.mxu3  ;;  %v2265_v43 = vpack.c.bf16 %v2137_v53, %v2137_v53  ;;  %v2264_v53 = vpack.c.bf16 %v2136_v46, %v2136_v46 }
 0x300   : > { %v1801_v41 = vpop.f32.mrf.mxu0 }
 0x301   : > { %v10087_v33 = vadd.f32 %v9801_v13, %v1801_v41  ;;  %v10105_v41 = vadd.f32 %v9801_v13, %v9975_v19 }
 0x303   : > { %13802 = vst [vmem:[#allocation105_spill] sm:$0xff] %v10087_v33  ;;  %v2138_v40 = vmax.f32 %v10087_v33, 0.0  ;;  %v2479_v33 = vunpack.c.l.b16 %v692_v17  ;;  %v552_v17 = vcvt.s32.f32 %v424_v61  ;;  %v2127_v46 = vmax.f32 %v10105_v41, 0.0 }
 0x304   : > { %13804 = vst [vmem:[#allocation107_spill] sm:$0xff] %v10105_v41 }
 0x305   : > { %v2266_v8 = vpack.c.bf16 %v2138_v40, %v2138_v40 }
 0x307   : > { %v2974_v61 = vunpack.c.l.b16 %v2266_v8 }
 0x308   : > { %v1804_v26 = vpop.f32.mrf.mxu0 }
 0x309   : > { %v10082_v32 = vadd.f32 %v9801_v13, %v1804_v26 }
 0x30b   : > { %13800 = vst [vmem:[#allocation103_spill] sm:$0xff] %v10082_v32  ;;  %v2139_v47 = vmax.f32 %v10082_v32, 0.0  ;;  %v10151_v32 = vpack.c.b16 %v2479_v33, %v2478_v29  ;;  %v679_v33 = vpack.c.bf16 %v551_v30, %v551_v30  ;;  %v2134_v29 = vmax.f32 %v10144_v28, 0.0 }
 0x30c   : > { %v2973_v30 = vunpack.c.l.b16 %v2265_v43  ;;  %v2130_v43 = vmax.f32 %v10124_v56, 0.0 }
 0x30d   : > { %v2267_v16 = vpack.c.bf16 %v2139_v47, %v2139_v47  ;;  %13814 = vst [vmem:[#allocation117_spill] sm:$0xff] %v10151_v32  ;;  %2566 = vmatmul.bf16.vlgmr.msra.gmra.mxu2 %v10151_v32  ;;  %v2337_v63 = vunpack.c.l.b16 %v679_v33  ;;  %v2262_v22 = vpack.c.bf16 %v2134_v29, %v2134_v29 }
 0x30e   : > { %v2983_v33 = vpack.c.b16 %v2974_v61, %v2973_v30  ;;  %v2125_v61 = vmax.f32 %v10097_v45, 0.0 }
 0x30f   : > { %v2975_v44 = vunpack.c.l.b16 %v2267_v16  ;;  %v499_v16 = vunpack.c.0.s8 %v10155_v60  ;;  %v2970_v56 = vunpack.c.l.b16 %v2262_v22  ;;  %v10201_v22 = vadd.f32 %v9801_v13, %v10079_v25 }
 0x310   : > { %v1806_v26 = vpop.f32.mrf.mxu0  ;;  %v10211_v25 = vadd.f32 %v9801_v13, %v10072_v57 }
 0x311   : > { %v10120_v19 = vadd.f32 %v9801_v13, %v1806_v26  ;;  %v10135_v26 = vpop.f32.mrf.mxu3  ;;  %13821 = vst [vmem:[#allocation124_spill] sm:$0xff] %v10201_v22 }
 0x312   : > { %13823 = vst [vmem:[#allocation126_spill] sm:$0xff] %v10211_v25 }
 0x313   : > { %13808 = vst [vmem:[#allocation111_spill] sm:$0xff] %v10120_v19  ;;  %v2140_v62 = vmax.f32 %v10120_v19, 0.0  ;;  %v10149_v19 = vadd.f32 %v9801_v13, %v10054_v3  ;;  %v680_v3 = vpack.c.bf16 %v552_v17, %v552_v17  ;;  %v10172_v17 = vadd.f32 %v9801_v13, %v9954_v21 }
 0x315   : > { %v2268_v47 = vpack.c.bf16 %v2140_v62, %v2140_v62  ;;  %13813 = vst [vmem:[#allocation116_spill] sm:$0xff] %v10149_v19  ;;  %v2132_v62 = vmax.f32 %v10128_v35, 0.0  ;;  %v2338_v23 = vunpack.c.l.b16 %v680_v3  ;;  %v2133_v2 = vmax.f32 %v10149_v19, 0.0 }
 0x316   : > { %13817 = vst [vmem:[#allocation120_spill] sm:$0xff] %v10172_v17  ;;  %v2972_v3 = vunpack.c.l.b16 %v2264_v53  ;;  %v2126_v29 = vmax.f32 %v10172_v17, 0.0  ;;  %v426_v17 = vunpack.c.3.s8 %v10138_v1 }
 0x317   : > { %v2976_v37 = vunpack.c.l.b16 %v2268_v47  ;;  %v500_v47 = vunpack.c.1.s8 %v10155_v60  ;;  %v10176_v8 = vpack.c.b16 %v2338_v23, %v2337_v63  ;;  %v2261_v19 = vpack.c.bf16 %v2133_v2, %v2133_v2 }
 0x318   : > { %v1809_v40 = vpop.f32.mrf.mxu0  ;;  %v2971_v23 = vunpack.c.l.b16 %v2263_v49  ;;  %v2260_v63 = vpack.c.bf16 %v2132_v62, %v2132_v62 }
 0x319   : > { %v2984_v4 = vpack.c.b16 %v2976_v37, %v2975_v44  ;;  %v10168_v35 = vadd.f32 %v9801_v13, %v1809_v40  ;;  %v2129_v37 = vmax.f32 %v10113_v18, 0.0  ;;  %v2131_v44 = vmax.f32 %v10159_v31, 0.0  ;;  %13818 = vst [vmem:[#allocation121_spill] sm:$0xff] %v10176_v8  ;;  %v10179_v32 = vpop.f32.mrf.mxu3  ;;  %2431 = vmatmul.bf16.gmra.mxu1 %v10176_v8 }
 0x31a   : > { %v2128_v40 = vmax.f32 %v10109_v59, 0.0  ;;  %v628_v21 = vcvt.s32.f32 %v500_v47  ;;  %v10187_v18 = vpack.c.bf16 %v2127_v46, %v2127_v46  ;;  %v2982_v47 = vpack.c.b16 %v2972_v3, %v2971_v23 }
 0x31b   : > { %13816 = vst [vmem:[#allocation119_spill] sm:$0xff] %v10168_v35  ;;  %2993 = vmatpush.bf16.msrb.mxu2 %v2984_v4  ;;  %v627_v4 = vcvt.s32.f32 %v499_v16  ;;  %v2141_v28 = vmax.f32 %v10168_v35, 0.0  ;;  %v2257_v53 = vpack.c.bf16 %v2129_v37, %v2129_v37  ;;  %v2259_v30 = vpack.c.bf16 %v2131_v44, %v2131_v44 }
 0x31c   : > { %v756_v8 = vpack.c.bf16 %v628_v21, %v628_v21  ;;  %v2258_v35 = vpack.c.bf16 %v2130_v43, %v2130_v43  ;;  %v2969_v59 = vunpack.c.l.b16 %v2261_v19  ;;  %v2968_v41 = vunpack.c.l.b16 %v2260_v63 }
 0x31d   : > { %v755_v2 = vpack.c.bf16 %v627_v4, %v627_v4  ;;  %v2269_v49 = vpack.c.bf16 %v2141_v28, %v2141_v28  ;;  %v2967_v37 = vunpack.c.l.b16 %v2259_v30  ;;  %v2965_v44 = vunpack.c.l.b16 %v2257_v53 }
 0x31e   : > { %v425_v46 = vunpack.c.2.s8 %v10138_v1  ;;  %v2981_v28 = vpack.c.b16 %v2970_v56, %v2969_v59  ;;  %v3059_v43 = vunpack.c.l.b16 %v756_v8  ;;  %v554_v4 = vcvt.s32.f32 %v426_v17 }
 0x31f   : > { %2994 = vmatpush.bf16.msrb.mxu2 %v2983_v33  ;;  %v2256_v33 = vpack.c.bf16 %v2128_v40, %v2128_v40  ;;  %v3058_v40 = vunpack.c.l.b16 %v755_v2  ;;  %v3106_v21 = vunpack.c.l.b16 %v2269_v49  ;;  %v2980_v63 = vpack.c.b16 %v2968_v41, %v2967_v37 }
 0x320   : > { %v1811_v31 = vpop.f32.mrf.mxu0  ;;  %v553_v19 = vcvt.s32.f32 %v425_v46  ;;  %v2966_v53 = vunpack.c.l.b16 %v2258_v35  ;;  %v682_v56 = vpack.c.bf16 %v554_v4, %v554_v4  ;;  %v501_v30 = vunpack.c.2.s8 %v10155_v60 }
 0x321   : > { %v10190_v16 = vadd.f32 %v9801_v13, %v1811_v31  ;;  %v10197_v31 = vadd.f32 %v9801_v13, %v10075_v52  ;;  %v10203_v1 = vpop.f32.mrf.mxu3  ;;  %v10207_v52 = vadd.f32 %v9801_v13, %v10068_v38  ;;  %v502_v41 = vunpack.c.3.s8 %v10155_v60 }
 0x322   : > { %v681_v59 = vpack.c.bf16 %v553_v19, %v553_v19  ;;  %v2188_v35 = vmax.f32 %v10201_v22, 0.0  ;;  %v2340_v38 = vunpack.c.l.b16 %v682_v56  ;;  %v2253_v49 = vpack.c.bf16 %v2125_v61, %v2125_v61 }
 0x323   : > { %13819 = vst [vmem:[#allocation122_spill] sm:$0xff] %v10190_v16  ;;  %v2142_v62 = vmax.f32 %v10190_v16, 0.0  ;;  %2995 = vmatpush.bf16.msrb.mxu2 %v2982_v47  ;;  %v2187_v8 = vmax.f32 %v10197_v31, 0.0  ;;  %v10217_v47 = vpack.c.b16 %v3059_v43, %v3058_v40  ;;  %v2964_v57 = vunpack.c.l.b16 %v2256_v33 }
 0x324   : > { %13820 = vst [vmem:[#allocation123_spill] sm:$0xff] %v10197_v31  ;;  %v2339_v2 = vunpack.c.l.b16 %v681_v59  ;;  %v10221_v37 = vadd.f32 %v9801_v13, %v10056_v0  ;;  %v10225_v46 = vadd.f32 %v9801_v13, %v10063_v50  ;;  %v2979_v60 = vpack.c.b16 %v2966_v53, %v2965_v44 }
 0x325   : > { %v2270_v3 = vpack.c.bf16 %v2142_v62, %v2142_v62  ;;  %13822 = vst [vmem:[#allocation125_spill] sm:$0xff] %v10207_v52  ;;  %v2254_v62 = vpack.c.bf16 %v2126_v29, %v2126_v29  ;;  %v2186_v40 = vmax.f32 %v10211_v25, 0.0  ;;  %v629_v61 = vcvt.s32.f32 %v501_v30 }
 0x326   : > { %13824 = vst [vmem:[#allocation127_spill] sm:$0xff] %v10217_v47  ;;  %v630_v43 = vcvt.s32.f32 %v502_v41  ;;  %v2315_v19 = vpack.c.bf16 %v2187_v8, %v2187_v8  ;;  %v2316_v33 = vpack.c.bf16 %v2188_v35, %v2188_v35  ;;  %v2963_v0 = vunpack.c.l.b16 %v10187_v18 }
 0x327   : > { %v3107_v23 = vunpack.c.l.b16 %v2270_v3  ;;  %2996 = vmatpush.bf16.msrb.mxu2 %v2981_v28  ;;  %13825 = vst [vmem:[#allocation128_spill] sm:$0xff] %v10221_v37  ;;  %v10227_v3 = vpack.c.b16 %v2340_v38, %v2339_v2  ;;  %v2185_v28 = vmax.f32 %v10207_v52, 0.0  ;;  %v2962_v13 = vunpack.c.l.b16 %v2254_v62 }
 0x328   : > { %13826 = vst [vmem:[#allocation129_spill] sm:$0xff] %v10225_v46  ;;  %v2183_v50 = vmax.f32 %v10221_v37, 0.0  ;;  %v2184_v29 = vmax.f32 %v10225_v46, 0.0  ;;  %v2978_v44 = vpack.c.b16 %v2964_v57, %v2963_v0  ;;  %v2961_v4 = vunpack.c.l.b16 %v2253_v49 }
 0x329   : > { %v3122_v17 = vpack.c.b16 %v3107_v23, %v3106_v21  ;;  %13827 = vst [vmem:[#allocation130_spill] sm:$0xff] %v10227_v3  ;;  %2436 = vmatmul.bf16.gmra.mxu1 %v10227_v3  ;;  %v2313_v21 = vpack.c.bf16 %v2185_v28, %v2185_v28  ;;  %v2314_v23 = vpack.c.bf16 %v2186_v40, %v2186_v40  ;;  %v10236_v59 = vpop.f32.mrf.mxu3  ;;  %v3410_v56 = vunpack.c.l.b16 %v2315_v19 }
 0x32a   : > { %v758_v53 = vpack.c.bf16 %v630_v43, %v630_v43  ;;  %v3411_v8 = vunpack.c.l.b16 %v2316_v33  ;;  %v2977_v18 = vpack.c.b16 %v2962_v13, %v2961_v4  ;;  %v2311_v30 = vpack.c.bf16 %v2183_v50, %v2183_v50 }
 0x32b   : > { %2997 = vmatpush.bf16.msrb.mxu2 %v2980_v63  ;;  %3145 = vmatpush.bf16.msra.mxu3 %v3122_v17  ;;  %v757_v63 = vpack.c.bf16 %v629_v61, %v629_v61  ;;  %v389_v17 = vld [vmem:[%s9796_s21 + $0x10] sm:$0xff]  ;;  %v2312_v41 = vpack.c.bf16 %v2184_v29, %v2184_v29  ;;  %v3408_v38 = vunpack.c.l.b16 %v2313_v21  ;;  %v3409_v62 = vunpack.c.l.b16 %v2314_v23  ;;  %v408_v61 = vld [vmem:[%s9796_s21 + $0xa8] sm:$0xff] }
 0x32c   : > { %v427_v35 = vunpack.c.0.s8 %v389_v17  ;;  %v428_v2 = vunpack.c.1.s8 %v389_v17  ;;  %v3061_v49 = vunpack.c.l.b16 %v758_v53  ;;  %v3406_v33 = vunpack.c.l.b16 %v2311_v30 }
 0x32d   : > { %v3060_v57 = vunpack.c.l.b16 %v757_v63  ;;  %v3407_v0 = vunpack.c.l.b16 %v2312_v41  ;;  %v3418_v13 = vpack.c.b16 %v3409_v62, %v3408_v38  ;;  %v503_v50 = vunpack.c.0.s8 %v408_v61 }
 0x32e   : > { %3146 = vmatmul.bf16.vlgmr.msra.gmra.mxu3 %v10217_v47  ;;  %v555_v28 = vcvt.s32.f32 %v427_v35  ;;  %v556_v40 = vcvt.s32.f32 %v428_v2  ;;  %v504_v29 = vunpack.c.1.s8 %v408_v61  ;;  %v430_v30 = vunpack.c.3.s8 %v389_v17 }
 0x32f   : > { %2998 = vmatpush.bf16.msrb.mxu2 %v2979_v60  ;;  %v3419_v60 = vpack.c.b16 %v3411_v8, %v3410_v56  ;;  %v3417_v53 = vpack.c.b16 %v3407_v0, %v3406_v33  ;;  %v631_v56 = vcvt.s32.f32 %v503_v50  ;;  %v506_v33 = vunpack.c.3.s8 %v408_v61  ;;  %v390_v50 = vld [vmem:[%s9796_s21 + $0x18] sm:$0xff] }
 0x330   : > { %v683_v43 = vpack.c.bf16 %v555_v28, %v555_v28  ;;  %v684_v19 = vpack.c.bf16 %v556_v40, %v556_v40  ;;  %v632_v8 = vcvt.s32.f32 %v504_v29  ;;  %v558_v35 = vcvt.s32.f32 %v430_v30 }
 0x331   : > { %v10242_v23 = vpop.f32.mrf.mxu3  ;;  %v759_v2 = vpack.c.bf16 %v631_v56, %v631_v56 }
 0x332   : > { %v2341_v4 = vunpack.c.l.b16 %v683_v43  ;;  %v2342_v21 = vunpack.c.l.b16 %v684_v19  ;;  %v760_v38 = vpack.c.bf16 %v632_v8, %v632_v8 }
 0x333   : > { %2999 = vmatpush.bf16.msrb.mxu2 %v2978_v44  ;;  %v10240_v44 = vpack.c.b16 %v3061_v49, %v3060_v57  ;;  %v686_v57 = vpack.c.bf16 %v558_v35, %v558_v35 }
 0x334   : > { %v10244_v63 = vpack.c.b16 %v2342_v21, %v2341_v4  ;;  %v3063_v28 = vunpack.c.l.b16 %v760_v38  ;;  %v431_v4 = vunpack.c.0.s8 %v390_v50 }
 0x335   : > { %13828 = vst [vmem:[#allocation131_spill] sm:$0xff] %v10240_v44  ;;  %v2344_v43 = vunpack.c.l.b16 %v686_v57 }
 0x336   : > { %13829 = vst [vmem:[#allocation132_spill] sm:$0xff] %v10244_v63  ;;  %v559_v21 = vcvt.s32.f32 %v431_v4 }
 0x337   : > { %3000 = vmatpush.bf16.msrb.mxu2 %v2977_v18  ;;  %v429_v18 = vunpack.c.2.s8 %v389_v17  ;;  %v505_v17 = vunpack.c.2.s8 %v408_v61 }
 0x338   : > { %v687_v8 = vpack.c.bf16 %v559_v21, %v559_v21 }
 0x339   : > { %2441 = vmatmul.bf16.gmra.mxu1 %v10244_v63  ;;  %v557_v41 = vcvt.s32.f32 %v429_v18  ;;  %v10249_v49 = vpop.f32.mrf.mxu3 }
 0x33b   : > { %3428 = vmatpush.bf16.msra.mxu2 %v3419_v60  ;;  %v685_v62 = vpack.c.bf16 %v557_v41, %v557_v41  ;;  %v3062_v60 = vunpack.c.l.b16 %v759_v2  ;;  %v2345_v41 = vunpack.c.l.b16 %v687_v8  ;;  %v409_v2 = vld [vmem:[%s9796_s21 + $0xb0] sm:$0xff] }
 0x33c   : > { %v507_v57 = vunpack.c.0.s8 %v409_v2 }
 0x33d   : > { %v2343_v40 = vunpack.c.l.b16 %v685_v62  ;;  %v10252_v19 = vpack.c.b16 %v3063_v28, %v3062_v60  ;;  %v508_v60 = vunpack.c.1.s8 %v409_v2 }
 0x33e   : > { %3151 = vmatmul.bf16.gmra.mxu3 %v10240_v44  ;;  %v635_v28 = vcvt.s32.f32 %v507_v57 }
 0x33f   : > { %3429 = vmatpush.bf16.msra.mxu2 %v3418_v13  ;;  %13830 = vst [vmem:[#allocation133_spill] sm:$0xff] %v10252_v19  ;;  %v10254_v0 = vpack.c.b16 %v2344_v43, %v2343_v40  ;;  %v634_v13 = vcvt.s32.f32 %v506_v33  ;;  %v636_v40 = vcvt.s32.f32 %v508_v60  ;;  %v434_v43 = vunpack.c.3.s8 %v390_v50 }
 0x341   : > { %13831 = vst [vmem:[#allocation134_spill] sm:$0xff] %v10254_v0  ;;  %v10260_v29 = vpop.f32.mrf.mxu3  ;;  %v762_v56 = vpack.c.bf16 %v634_v13, %v634_v13  ;;  %v562_v33 = vcvt.s32.f32 %v434_v43  ;;  %v764_v13 = vpack.c.bf16 %v636_v40, %v636_v40 }
 0x343   : > { %3430 = vmatpush.bf16.msra.mxu2 %v3417_v53  ;;  %v3065_v30 = vunpack.c.l.b16 %v762_v56 }
 0x347   : > { %3431 = vmatpush.bf16.msra.mxu2 %v10058_v55  ;;  %v633_v55 = vcvt.s32.f32 %v505_v17 }
 0x349   : > { %2446 = vmatmul.bf16.gmra.mxu1 %v10254_v0  ;;  %v761_v53 = vpack.c.bf16 %v633_v55, %v633_v55  ;;  %v10265_v38 = vpop.f32.mrf.mxu3  ;;  %v763_v55 = vpack.c.bf16 %v635_v28, %v635_v28 }
 0x34b   : > { %3432 = vmatpush.bf16.msra.mxu2 %v10036_v9  ;;  %v432_v9 = vunpack.c.1.s8 %v390_v50  ;;  %v3064_v18 = vunpack.c.l.b16 %v761_v53  ;;  %v3067_v53 = vunpack.c.l.b16 %v764_v13  ;;  %v8965_v13 = vld [vmem:[%s13170_s5 + $0x20] sm:$0xff] }
 0x34d   : > { %v560_v61 = vcvt.s32.f32 %v432_v9  ;;  %v10267_v62 = vpack.c.b16 %v3065_v30, %v3064_v18  ;;  %v690_v9 = vpack.c.bf16 %v562_v33, %v562_v33  ;;  %v509_v18 = vunpack.c.2.s8 %v409_v2 }
 0x34e   : > { %3156 = vmatmul.bf16.gmra.mxu3 %v10252_v19  ;;  %v510_v30 = vunpack.c.3.s8 %v409_v2  ;;  %v8967_v2 = vld [vmem:[%s13170_s5 + $0x30] sm:$0xff] }
 0x34f   : > { %3433 = vmatpush.bf16.msra.mxu2 %v10016_v34  ;;  %v688_v34 = vpack.c.bf16 %v560_v61, %v560_v61  ;;  %13832 = vst [vmem:[#allocation135_spill] sm:$0xff] %v10267_v62  ;;  %v3066_v61 = vunpack.c.l.b16 %v763_v55  ;;  %v2348_v8 = vunpack.c.l.b16 %v690_v9  ;;  %v637_v57 = vcvt.s32.f32 %v509_v18  ;;  %v410_v55 = vld [vmem:[%s9796_s21 + $0xb8] sm:$0xff] }
 0x350   : > { %v638_v60 = vcvt.s32.f32 %v510_v30  ;;  %v511_v9 = vunpack.c.0.s8 %v410_v55  ;;  %v437_v18 = vunpack.c.2.s8 %v10090_v42  ;;  %v438_v30 = vunpack.c.3.s8 %v10090_v42  ;;  %v8962_v42 = vld [vmem:[%s13170_s5 + $0x8] sm:$0xff] }
 0x351   : > { %v2346_v35 = vunpack.c.l.b16 %v688_v34  ;;  %v10273_v21 = vpop.f32.mrf.mxu3  ;;  %v10275_v34 = vpack.c.b16 %v3067_v53, %v3066_v61  ;;  %v765_v28 = vpack.c.bf16 %v637_v57, %v637_v57  ;;  %v512_v61 = vunpack.c.1.s8 %v410_v55  ;;  %v8964_v53 = vld [vmem:[%s13170_s5 + $0x18] sm:$0xff] }
 0x352   : > { %v766_v40 = vpack.c.bf16 %v638_v60, %v638_v60  ;;  %v565_v57 = vcvt.s32.f32 %v437_v18  ;;  %v566_v60 = vcvt.s32.f32 %v438_v30  ;;  %v513_v18 = vunpack.c.2.s8 %v410_v55 }
 0x353   : > { %3434 = vmatpush.bf16.msra.mxu2 %v9983_v10  ;;  %v10269_v10 = vpack.c.b16 %v2346_v35, %v2345_v41  ;;  %13834 = vst [vmem:[#allocation137_spill] sm:$0xff] %v10275_v34  ;;  %v8968_v35 = vld [vmem:[%s13170_s5 + $0x38] sm:$0xff]  ;;  %v3068_v43 = vunpack.c.l.b16 %v765_v28  ;;  %v514_v30 = vunpack.c.3.s8 %v410_v55 }
 0x354   : > { %3589 = vmatpush.bf16.msrb.mxu3 %v8968_v35  ;;  %v8963_v35 = vld [vmem:[%s13170_s5 + $0x10] sm:$0xff] }
 0x355   : > { %13833 = vst [vmem:[#allocation136_spill] sm:$0xff] %v10269_v10 }
 0x357   : > { %3435 = vmatpush.bf16.msra.mxu2 %v9945_v54  ;;  %v433_v54 = vunpack.c.2.s8 %v390_v50 }
 0x358   : > { %3590 = vmatpush.bf16.msrb.mxu3 %v8967_v2 }
 0x359   : > { %2451 = vmatmul.bf16.gmra.mxu1 %v10269_v10  ;;  %v561_v17 = vcvt.s32.f32 %v433_v54  ;;  %v10279_v50 = vpop.f32.mrf.mxu3  ;;  %v8966_v54 = vld [vmem:[%s13170_s5 + $0x28] sm:$0xff] }
 0x35b   : > { %v689_v4 = vpack.c.bf16 %v561_v17, %v561_v17  ;;  %v3069_v17 = vunpack.c.l.b16 %v766_v40 }
 0x35c   : > { %3591 = vmatpush.bf16.msrb.mxu3 %v8966_v54  ;;  %v693_v54 = vpack.c.bf16 %v565_v57, %v565_v57 }
 0x35d   : > { %v2347_v56 = vunpack.c.l.b16 %v689_v4  ;;  %v10298_v4 = vpack.c.b16 %v3069_v17, %v3068_v43  ;;  %v694_v43 = vpack.c.bf16 %v566_v60, %v566_v60  ;;  %v2422_v17 = vpop.f32.mrf.mxu1  ;;  %v392_v60 = vld [vmem:[%s9796_s21 + $0x28] sm:$0xff] }
 0x35e   : > { %3161 = vmatmul.bf16.gmra.mxu3 %v10267_v62 }
 0x35f   : > { %v10277_v41 = vpack.c.b16 %v2348_v8, %v2347_v56  ;;  %13836 = vst [vmem:[#allocation139_spill] sm:$0xff] %v10298_v4  ;;  %v639_v56 = vcvt.s32.f32 %v511_v9  ;;  %v640_v8 = vcvt.s32.f32 %v512_v61  ;;  %v2481_v9 = vunpack.c.l.b16 %v694_v43 }
 0x360   : > { %3592 = vmatpush.bf16.msrb.mxu3 %v8965_v13  ;;  %v2480_v13 = vunpack.c.l.b16 %v693_v54  ;;  %v439_v54 = vunpack.c.0.s8 %v392_v60  ;;  %v440_v43 = vunpack.c.1.s8 %v392_v60 }
 0x361   : > { %13835 = vst [vmem:[#allocation138_spill] sm:$0xff] %v10277_v41  ;;  %v10292_v33 = vpop.f32.mrf.mxu3  ;;  %v767_v28 = vpack.c.bf16 %v639_v56, %v639_v56  ;;  %v768_v40 = vpack.c.bf16 %v640_v8, %v640_v8  ;;  %v8961_v56 = vld [vmem:[%s13170_s5] sm:$0xff] }
 0x363   : > { %v3070_v61 = vunpack.c.l.b16 %v767_v28  ;;  %v641_v28 = vcvt.s32.f32 %v513_v18 }
 0x364   : > { %3593 = vmatpush.bf16.msrb.mxu3 %v8964_v53  ;;  %v3071_v53 = vunpack.c.l.b16 %v768_v40  ;;  %v642_v40 = vcvt.s32.f32 %v514_v30  ;;  %v441_v30 = vunpack.c.2.s8 %v392_v60 }
 0x365   : > { %v2424_v57 = vpop.f32.mrf.mxu1 }
 0x366   : > { %v10320_v8 = vpack.c.b16 %v3071_v53, %v3070_v61 }
 0x368   : > { %3594 = vmatpush.bf16.msrb.mxu3 %v8963_v35  ;;  %13838 = vst [vmem:[#allocation141_spill] sm:$0xff] %v10320_v8 }
 0x369   : > { %2456 = vmatmul.bf16.gmra.mxu1 %v10277_v41  ;;  %v10309_v2 = vpop.f32.mrf.mxu3 }
 0x36c   : > { %3595 = vmatpush.bf16.msrb.mxu3 %v8962_v42  ;;  %v567_v42 = vcvt.s32.f32 %v439_v54 }
 0x36d   : > { %v2427_v37 = vpop.f32.mrf.mxu1 }
 0x36e   : > { %3166 = vmatmul.bf16.gmra.mxu3 %v10275_v34  ;;  %v770_v34 = vpack.c.bf16 %v642_v40, %v642_v40  ;;  %v695_v62 = vpack.c.bf16 %v567_v42, %v567_v42 }
 0x370   : > { %3596 = vmatpush.bf16.msrb.mxu3 %v8961_v56  ;;  %v2482_v53 = vunpack.c.l.b16 %v695_v62  ;;  %v3073_v56 = vunpack.c.l.b16 %v770_v34  ;;  %v569_v62 = vcvt.s32.f32 %v441_v30 }
 0x371   : > { %v10322_v35 = vpop.f32.mrf.mxu3 }
 0x372   : > { %v697_v42 = vpack.c.bf16 %v569_v62, %v569_v62 }
 0x374   : > { %v2484_v34 = vunpack.c.l.b16 %v697_v42 }
 0x379   : > { %v10326_v55 = vpop.f32.mrf.mxu3 }
 0x37e   : > { %3171 = vmatmul.bf16.gmra.mxu3 %v10298_v4  ;;  %v10314_v4 = vpack.c.b16 %v2481_v9, %v2480_v13  ;;  %v568_v13 = vcvt.s32.f32 %v440_v43  ;;  %v769_v9 = vpack.c.bf16 %v641_v28, %v641_v28  ;;  %v442_v28 = vunpack.c.3.s8 %v392_v60  ;;  %v2429_v43 = vpop.f32.mrf.mxu1 }
 0x380   : > { %13837 = vst [vmem:[#allocation140_spill] sm:$0xff] %v10314_v4  ;;  %2571 = vmatmul.bf16.gmra.mxu2 %v10314_v4  ;;  %v696_v61 = vpack.c.bf16 %v568_v13, %v568_v13  ;;  %v3072_v44 = vunpack.c.l.b16 %v769_v9  ;;  %v570_v54 = vcvt.s32.f32 %v442_v28 }
 0x381   : > { %v10334_v40 = vpop.f32.mrf.mxu3 }
 0x382   : > { %v2483_v19 = vunpack.c.l.b16 %v696_v61  ;;  %v10331_v18 = vpack.c.b16 %v3073_v56, %v3072_v44  ;;  %v698_v13 = vpack.c.bf16 %v570_v54, %v570_v54  ;;  %v393_v56 = vld [vmem:[%s9796_s21 + $0x30] sm:$0xff] }
 0x383   : > { %v443_v60 = vunpack.c.0.s8 %v393_v56 }
 0x384   : > { %v10328_v47 = vpack.c.b16 %v2483_v19, %v2482_v53  ;;  %13840 = vst [vmem:[#allocation143_spill] sm:$0xff] %v10331_v18  ;;  %v2485_v19 = vunpack.c.l.b16 %v698_v13  ;;  %v3477_v53 = vpack.c.bf16 %v2424_v57, %v2422_v17  ;;  %v3478_v57 = vpack.c.bf16 %v2429_v43, %v2427_v37 }
 0x386   : > { %13839 = vst [vmem:[#allocation142_spill] sm:$0xff] %v10328_v47  ;;  %v10336_v9 = vpack.c.b16 %v2485_v19, %v2484_v34 }
 0x388   : > { %13841 = vst [vmem:[#allocation144_spill] sm:$0xff] %v10336_v9 }
 0x389   : > { %v10339_v44 = vpop.f32.mrf.mxu3 }
 0x38e   : > { %3176 = vmatmul.bf16.gmra.mxu3 %v10320_v8  ;;  %v571_v8 = vcvt.s32.f32 %v443_v60 }
 0x390   : > { %2576 = vmatmul.bf16.gmra.mxu2 %v10328_v47  ;;  %v699_v62 = vpack.c.bf16 %v571_v8, %v571_v8 }
 0x392   : > { %v2486_v42 = vunpack.c.l.b16 %v699_v62 }
 0x396   : > { %v2432_v61 = vpop.f32.mrf.mxu1 }
 0x39e   : > { %3181 = vmatmul.bf16.gmra.mxu3 %v10331_v18  ;;  %v444_v18 = vunpack.c.1.s8 %v393_v56  ;;  %v2434_v34 = vpop.f32.mrf.mxu1 }
 0x3a0   : > { %2581 = vmatmul.bf16.gmra.mxu2 %v10336_v9  ;;  %v572_v30 = vcvt.s32.f32 %v444_v18  ;;  %v446_v18 = vunpack.c.3.s8 %v393_v56 }
 0x3a2   : > { %v700_v54 = vpack.c.bf16 %v572_v30, %v572_v30  ;;  %v574_v30 = vcvt.s32.f32 %v446_v18 }
 0x3a4   : > { %v2487_v13 = vunpack.c.l.b16 %v700_v54 }
 0x3a6   : > { %v10344_v19 = vpack.c.b16 %v2487_v13, %v2486_v42  ;;  %v2437_v60 = vpop.f32.mrf.mxu1  ;;  %v702_v42 = vpack.c.bf16 %v574_v30, %v574_v30 }
 0x3a8   : > { %13842 = vst [vmem:[#allocation145_spill] sm:$0xff] %v10344_v19  ;;  %v2489_v46 = vunpack.c.l.b16 %v702_v42 }
 0x3ae   : > { %3597 = vmatmul.bf16.vlgmr.msrb.gmra.mxu3 %v3477_v53  ;;  %v445_v53 = vunpack.c.2.s8 %v393_v56  ;;  %v2439_v37 = vpop.f32.mrf.mxu1  ;;  %v3479_v56 = vpack.c.bf16 %v2434_v34, %v2432_v61 }
 0x3af   : > { %v3480_v34 = vpack.c.bf16 %v2439_v37, %v2437_v60 }
 0x3b0   : > { %2586 = vmatmul.bf16.gmra.mxu2 %v10344_v19  ;;  %v573_v8 = vcvt.s32.f32 %v445_v53 }
 0x3b1   : > { %v10342_v28 = vpop.f32.mrf.mxu3 }
 0x3b2   : > { %v701_v54 = vpack.c.bf16 %v573_v8, %v573_v8 }
 0x3b4   : > { %v2488_v13 = vunpack.c.l.b16 %v701_v54 }
 0x3b6   : > { %v10353_v52 = vpack.c.b16 %v2489_v46, %v2488_v13  ;;  %v2442_v42 = vpop.f32.mrf.mxu1 }
 0x3b8   : > { %13843 = vst [vmem:[#allocation146_spill] sm:$0xff] %v10353_v52 }
 0x3b9   : > { %v10347_v22 = vpop.f32.mrf.mxu3 }
 0x3be   : > { %3602 = vmatmul.bf16.gmra.mxu3 %v3478_v57  ;;  %v394_v57 = vld [vmem:[%s9796_s21 + $0x38] sm:$0xff] }
 0x3bf   : > { %v447_v53 = vunpack.c.0.s8 %v394_v57  ;;  %v448_v18 = vunpack.c.1.s8 %v394_v57 }
 0x3c0   : > { %2591 = vmatmul.bf16.gmra.mxu2 %v10353_v52 }
 0x3c1   : > { %v10351_v62 = vpop.f32.mrf.mxu3  ;;  %v575_v17 = vcvt.s32.f32 %v447_v53  ;;  %v576_v8 = vcvt.s32.f32 %v448_v18  ;;  %v449_v53 = vunpack.c.2.s8 %v394_v57  ;;  %v450_v18 = vunpack.c.3.s8 %v394_v57 }
 0x3c3   : > { %v703_v54 = vpack.c.bf16 %v575_v17, %v575_v17  ;;  %v704_v46 = vpack.c.bf16 %v576_v8, %v576_v8  ;;  %v577_v43 = vcvt.s32.f32 %v449_v53  ;;  %v578_v17 = vcvt.s32.f32 %v450_v18 }
 0x3c5   : > { %v2490_v13 = vunpack.c.l.b16 %v703_v54  ;;  %v2491_v31 = vunpack.c.l.b16 %v704_v46  ;;  %v705_v54 = vpack.c.bf16 %v577_v43, %v577_v43  ;;  %v706_v46 = vpack.c.bf16 %v578_v17, %v578_v17 }
 0x3c7   : > { %v10363_v52 = vpack.c.b16 %v2491_v31, %v2490_v13  ;;  %v2492_v31 = vunpack.c.l.b16 %v705_v54  ;;  %v2493_v13 = vunpack.c.l.b16 %v706_v46  ;;  %v2567_v46 = vpop.f32.mrf.mxu2 }
 0x3c9   : > { %v10356_v25 = vpop.f32.mrf.mxu3  ;;  %13844 = vst [vmem:[#allocation147_spill] sm:$0xff] %v10363_v52  ;;  %v10372_v9 = vpack.c.b16 %v2493_v13, %v2492_v31 }
 0x3cb   : > { %13845 = vst [vmem:[#allocation148_spill] sm:$0xff] %v10372_v9 }
 0x3ce   : > { %3607 = vmatmul.bf16.gmra.mxu3 %v3479_v56  ;;  %v2444_v56 = vpop.f32.mrf.mxu1 }
 0x3cf   : > { %v3481_v37 = vpack.c.bf16 %v2444_v56, %v2442_v42  ;;  %v10406_v42 = vld [vmem:[%s13171_s6] ss:$0 sm:$0xff] }
 0x3d0   : > { %2596 = vmatmul.bf16.gmra.mxu2 %v10363_v52 }
 0x3d1   : > { %v10361_v30 = vpop.f32.mrf.mxu3 }
 0x3d6   : > { %v2447_v52 = vpop.f32.mrf.mxu1 }
 0x3d9   : > { %v10366_v19 = vpop.f32.mrf.mxu3 }
 0x3de   : > { %3612 = vmatmul.bf16.gmra.mxu3 %v3480_v34  ;;  %v2449_v34 = vpop.f32.mrf.mxu1 }
 0x3df   : > { %v3482_v17 = vpack.c.bf16 %v2449_v34, %v2447_v52  ;;  %v10415_v52 = vadd.f32 %v10406_v42, %v9330_v15 }
 0x3e0   : > { %2601 = vmatmul.bf16.gmra.mxu2 %v10372_v9 }
 0x3e1   : > { %v10370_v8 = vpop.f32.mrf.mxu3  ;;  %13854 = vst [vmem:[#allocation157_spill] sm:$0xff] %v10415_v52 }
 0x3e6   : > { %v2452_v18 = vpop.f32.mrf.mxu1 }
 0x3e9   : > { %v10375_v47 = vpop.f32.mrf.mxu3 }
 0x3ee   : > { %3617 = vmatmul.bf16.gmra.mxu3 %v3481_v37  ;;  %v2454_v31 = vpop.f32.mrf.mxu1  ;;  %v2569_v37 = vpop.f32.mrf.mxu2 }
 0x3ef   : > { %v3483_v56 = vpack.c.bf16 %v2454_v31, %v2452_v18 }
 0x3f1   : > { %v10379_v57 = vpop.f32.mrf.mxu3 }
 0x3f2   : > { %13846 = vst [vmem:[#allocation149_spill] sm:$0xff] %v10379_v57 }
 0x3f6   : > { %v2457_v60 = vpop.f32.mrf.mxu1 }
 0x3f9   : > { %v10381_v53 = vpop.f32.mrf.mxu3 }
 0x3fe   : > { %3622 = vmatmul.bf16.gmra.mxu3 %v3482_v17  ;;  %v2459_v43 = vpop.f32.mrf.mxu1 }
 0x3ff   : > { %v3484_v34 = vpack.c.bf16 %v2459_v43, %v2457_v60  ;;  %v10410_v60 = vadd.f32 %v10406_v42, %v9325_v12 }
 0x401   : > { %v10385_v54 = vpop.f32.mrf.mxu3  ;;  %13853 = vst [vmem:[#allocation156_spill] sm:$0xff] %v10410_v60 }
 0x402   : > { %13847 = vst [vmem:[#allocation150_spill] sm:$0xff] %v10385_v54 }
 0x403   : > { %v2572_v9 = vpop.f32.mrf.mxu2 }
 0x409   : > { %v10387_v13 = vpop.f32.mrf.mxu3 }
 0x40a   : > { %13848 = vst [vmem:[#allocation151_spill] sm:$0xff] %v10387_v13 }
 0x40b   : > { %v2574_v16 = vpop.f32.mrf.mxu2 }
 0x40e   : > { %3627 = vmatmul.bf16.gmra.mxu3 %v3483_v56  ;;  %v3485_v56 = vpack.c.bf16 %v2569_v37, %v2567_v46 }
 0x411   : > { %v10391_v61 = vpop.f32.mrf.mxu3 }
 0x412   : > { %13849 = vst [vmem:[#allocation152_spill] sm:$0xff] %v10391_v61 }
 0x413   : > { %v2577_v31 = vpop.f32.mrf.mxu2 }
 0x419   : > { %v10393_v4 = vpop.f32.mrf.mxu3 }
 0x41a   : > { %13850 = vst [vmem:[#allocation153_spill] sm:$0xff] %v10393_v4 }
 0x41e   : > { %3632 = vmatmul.bf16.gmra.mxu3 %v3484_v34  ;;  %v2579_v34 = vpop.f32.mrf.mxu2 }
 0x421   : > { %v10397_v17 = vpop.f32.mrf.mxu3 }
 0x422   : > { %13851 = vst [vmem:[#allocation154_spill] sm:$0xff] %v10397_v17 }
 0x426   : > { %v2582_v4 = vpop.f32.mrf.mxu2 }
 0x429   : > { %v10399_v41 = vpop.f32.mrf.mxu3 }
 0x42a   : > { %13852 = vst [vmem:[#allocation155_spill] sm:$0xff] %v10399_v41  ;;  %v3486_v41 = vpack.c.bf16 %v2574_v16, %v2572_v9 }
 0x42e   : > { %3637 = vmatmul.bf16.gmra.mxu3 %v3485_v56 }
 0x431   : > { %v3598_v10 = vpop.f32.mrf.mxu3 }
 0x432   : > { %v3599_v43 = vadd.f32 %v3598_v10, %v10410_v60  ;;  %v10420_v10 = vadd.f32 %v10406_v42, %v9337_v24 }
 0x434   : > { %v3918_v18 = vmax.f32 %v3599_v43, 0.0  ;;  %13855 = vst [vmem:[#allocation158_spill] sm:$0xff] %v10420_v10  ;;  %v10427_v43 = vadd.f32 %v10406_v42, %v9342_v27 }
 0x436   : > { %v4046_v17 = vpack.c.bf16 %v3918_v18, %v3918_v18  ;;  %13856 = vst [vmem:[#allocation159_spill] sm:$0xff] %v10427_v43  ;;  %v3487_v18 = vpack.c.bf16 %v2579_v34, %v2577_v31 }
 0x438   : > { %v4190_v54 = vunpack.c.l.b16 %v4046_v17 }
 0x439   : > { %v3600_v46 = vpop.f32.mrf.mxu3 }
 0x43a   : > { %v3601_v37 = vadd.f32 %v3600_v46, %v10415_v52 }
 0x43c   : > { %v3919_v61 = vmax.f32 %v3601_v37, 0.0 }
 0x43e   : > { %v4047_v56 = vpack.c.bf16 %v3919_v61, %v3919_v61  ;;  %3642 = vmatmul.bf16.gmra.mxu3 %v3486_v41  ;;  %v2584_v61 = vpop.f32.mrf.mxu2 }
 0x440   : > { %v4191_v12 = vunpack.c.l.b16 %v4047_v56 }
 0x441   : > { %v3603_v13 = vpop.f32.mrf.mxu3 }
 0x442   : > { %v10422_v60 = vpack.c.b16 %v4191_v12, %v4190_v54  ;;  %v3604_v15 = vadd.f32 %v3603_v13, %v10420_v10  ;;  %v10432_v13 = vadd.f32 %v10406_v42, %v9349_v36 }
 0x444   : > { %v3920_v16 = vmax.f32 %v3604_v15, 0.0  ;;  %13857 = vst [vmem:[#allocation160_spill] sm:$0xff] %v10432_v13 }
 0x446   : > { %v4048_v17 = vpack.c.bf16 %v3920_v16, %v3920_v16  ;;  %v2587_v27 = vpop.f32.mrf.mxu2 }
 0x448   : > { %v4192_v24 = vunpack.c.l.b16 %v4048_v17  ;;  %v3488_v17 = vpack.c.bf16 %v2584_v61, %v2582_v4  ;;  %v10451_v4 = vadd.f32 %v10406_v42, %v9366_v51 }
 0x449   : > { %v3605_v9 = vpop.f32.mrf.mxu3 }
 0x44a   : > { %v3606_v41 = vadd.f32 %v3605_v9, %v10427_v43  ;;  %v10439_v9 = vadd.f32 %v10406_v42, %v9354_v39  ;;  %13860 = vst [vmem:[#allocation163_spill] sm:$0xff] %v10451_v4 }
 0x44c   : > { %v3921_v46 = vmax.f32 %v3606_v41, 0.0  ;;  %13858 = vst [vmem:[#allocation161_spill] sm:$0xff] %v10439_v9 }
 0x44e   : > { %v4049_v37 = vpack.c.bf16 %v3921_v46, %v3921_v46  ;;  %3647 = vmatmul.bf16.gmra.mxu3 %v3487_v18  ;;  %v2589_v46 = vpop.f32.mrf.mxu2 }
 0x450   : > { %v4193_v56 = vunpack.c.l.b16 %v4049_v37 }
 0x451   : > { %v3608_v54 = vpop.f32.mrf.mxu3 }
 0x452   : > { %v10434_v12 = vpack.c.b16 %v4193_v56, %v4192_v24  ;;  %v3609_v15 = vadd.f32 %v3608_v54, %v10432_v13  ;;  %v10444_v54 = vadd.f32 %v10406_v42, %v9361_v48 }
 0x454   : > { %v3922_v31 = vmax.f32 %v3609_v15, 0.0  ;;  %13859 = vst [vmem:[#allocation162_spill] sm:$0xff] %v10444_v54 }
 0x456   : > { %v4050_v41 = vpack.c.bf16 %v3922_v31, %v3922_v31  ;;  %v2592_v15 = vpop.f32.mrf.mxu2 }
 0x458   : > { %v4194_v36 = vunpack.c.l.b16 %v4050_v41  ;;  %v3489_v41 = vpack.c.bf16 %v2589_v46, %v2587_v27 }
 0x459   : > { %v3610_v34 = vpop.f32.mrf.mxu3 }
 0x45a   : > { %v3611_v16 = vadd.f32 %v3610_v34, %v10439_v9 }
 0x45c   : > { %v3923_v18 = vmax.f32 %v3611_v16, 0.0 }
 0x45e   : > { %v4051_v37 = vpack.c.bf16 %v3923_v18, %v3923_v18  ;;  %3652 = vmatmul.bf16.gmra.mxu3 %v3488_v17 }
 0x460   : > { %v4195_v24 = vunpack.c.l.b16 %v4051_v37 }
 0x461   : > { %v3613_v56 = vpop.f32.mrf.mxu3 }
 0x462   : > { %v10446_v13 = vpack.c.b16 %v4195_v24, %v4194_v36  ;;  %v3614_v39 = vadd.f32 %v3613_v56, %v10444_v54  ;;  %v2594_v24 = vpop.f32.mrf.mxu2  ;;  %v399_v54 = vld [vmem:[%s9796_s21 + $0x60] sm:$0xff] }
 0x463   : > { %v467_v9 = vunpack.c.0.s8 %v399_v54  ;;  %v468_v51 = vunpack.c.1.s8 %v399_v54 }
 0x464   : > { %v3924_v61 = vmax.f32 %v3614_v39, 0.0 }
 0x465   : > { %v595_v43 = vcvt.s32.f32 %v467_v9  ;;  %v596_v39 = vcvt.s32.f32 %v468_v51 }
 0x466   : > { %v4052_v16 = vpack.c.bf16 %v3924_v61, %v3924_v61 }
 0x467   : > { %v723_v10 = vpack.c.bf16 %v595_v43, %v595_v43  ;;  %v724_v52 = vpack.c.bf16 %v596_v39, %v596_v39 }
 0x468   : > { %v4196_v48 = vunpack.c.l.b16 %v4052_v16 }
 0x469   : > { %v3615_v31 = vpop.f32.mrf.mxu3  ;;  %v2768_v27 = vunpack.c.l.b16 %v723_v10  ;;  %v2769_v46 = vunpack.c.l.b16 %v724_v52 }
 0x46a   : > { %v3616_v34 = vadd.f32 %v3615_v31, %v10451_v4  ;;  %v2597_v61 = vpop.f32.mrf.mxu2 }
 0x46b   : > { %v10461_v16 = vpack.c.b16 %v2769_v46, %v2768_v27  ;;  %v400_v27 = vld [vmem:[%s9796_s21 + $0x68] sm:$0xff] }
 0x46c   : > { %v3925_v17 = vmax.f32 %v3616_v34, 0.0  ;;  %v3490_v34 = vpack.c.bf16 %v2594_v24, %v2592_v15  ;;  %v471_v46 = vunpack.c.0.s8 %v400_v27 }
 0x46d   : > { %13861 = vst [vmem:[#allocation164_spill] sm:$0xff] %v10461_v16  ;;  %2856 = vmatmul.bf16.vlgmr.msra.gmra.mxu1 %v10461_v16 }
 0x46e   : > { %v4053_v18 = vpack.c.bf16 %v3925_v17, %v3925_v17  ;;  %3657 = vmatmul.bf16.gmra.mxu3 %v3489_v41  ;;  %v469_v17 = vunpack.c.2.s8 %v399_v54 }
 0x470   : > { %v4197_v37 = vunpack.c.l.b16 %v4053_v18  ;;  %v470_v18 = vunpack.c.3.s8 %v399_v54  ;;  %v597_v9 = vcvt.s32.f32 %v469_v17  ;;  %v599_v54 = vcvt.s32.f32 %v471_v46 }
 0x471   : > { %v10454_v36 = vpop.f32.mrf.mxu3  ;;  %v474_v46 = vunpack.c.3.s8 %v400_v27 }
 0x472   : > { %v10456_v56 = vpack.c.b16 %v4197_v37, %v4196_v48  ;;  %v2599_v48 = vpop.f32.mrf.mxu2  ;;  %v598_v37 = vcvt.s32.f32 %v470_v18  ;;  %v725_v43 = vpack.c.bf16 %v597_v9, %v597_v9  ;;  %v727_v17 = vpack.c.bf16 %v599_v54, %v599_v54 }
 0x473   : > { %v3491_v52 = vpack.c.bf16 %v2599_v48, %v2597_v61  ;;  %v10473_v48 = vadd.f32 %v10406_v42, %v9379_v5  ;;  %v602_v54 = vcvt.s32.f32 %v474_v46  ;;  %v10487_v5 = vadd.f32 %v10406_v42, %v9390_v11 }
 0x474   : > { %v726_v51 = vpack.c.bf16 %v598_v37, %v598_v37  ;;  %v2770_v4 = vunpack.c.l.b16 %v725_v43  ;;  %v2772_v57 = vunpack.c.l.b16 %v727_v17 }
 0x475   : > { %13864 = vst [vmem:[#allocation167_spill] sm:$0xff] %v10473_v48 }
 0x476   : > { %v2771_v10 = vunpack.c.l.b16 %v726_v51  ;;  %13867 = vst [vmem:[#allocation170_spill] sm:$0xff] %v10487_v5 }
 0x478   : > { %v10464_v0 = vpack.c.b16 %v2771_v10, %v2770_v4  ;;  %v10477_v10 = vadd.f32 %v10406_v42, %v9383_v6  ;;  %v10491_v6 = vadd.f32 %v10406_v42, %v9394_v14 }
 0x479   : > { %v10459_v31 = vpop.f32.mrf.mxu3 }
 0x47a   : > { %13862 = vst [vmem:[#allocation165_spill] sm:$0xff] %v10464_v0  ;;  %v2602_v15 = vpop.f32.mrf.mxu2 }
 0x47b   : > { %13865 = vst [vmem:[#allocation168_spill] sm:$0xff] %v10477_v10 }
 0x47c   : > { %13868 = vst [vmem:[#allocation171_spill] sm:$0xff] %v10491_v6 }
 0x47d   : > { %2861 = vmatmul.bf16.gmra.mxu1 %v10464_v0 }
 0x47e   : > { %3662 = vmatmul.bf16.gmra.mxu3 %v3490_v34  ;;  %v472_v34 = vunpack.c.1.s8 %v400_v27 }
 0x480   : > { %v600_v16 = vcvt.s32.f32 %v472_v34 }
 0x481   : > { %v3623_v41 = vpop.f32.mrf.mxu3 }
 0x482   : > { %v728_v18 = vpack.c.bf16 %v600_v16, %v600_v16  ;;  %v2604_v9 = vpop.f32.mrf.mxu2 }
 0x483   : > { %v3492_v51 = vpack.c.bf16 %v2604_v9, %v2602_v15  ;;  %v730_v9 = vpack.c.bf16 %v602_v54, %v602_v54 }
 0x484   : > { %v2773_v43 = vunpack.c.l.b16 %v728_v18 }
 0x485   : > { %v2775_v46 = vunpack.c.l.b16 %v730_v9 }
 0x486   : > { %v10468_v61 = vpack.c.b16 %v2773_v43, %v2772_v57  ;;  %v10482_v57 = vadd.f32 %v10406_v42, %v9386_v7  ;;  %v13869_v43 = vld [vmem:[#allocation5_spill] sm:$0xff] }
 0x487   : > { %v10496_v7 = vadd.f32 %v10406_v42, %v13869_v43 }
 0x488   : > { %13863 = vst [vmem:[#allocation166_spill] sm:$0xff] %v10468_v61 }
 0x489   : > { %v3625_v39 = vpop.f32.mrf.mxu3  ;;  %13866 = vst [vmem:[#allocation169_spill] sm:$0xff] %v10482_v57 }
 0x48a   : > { %13870 = vst [vmem:[#allocation5_spill] sm:$0xff] %v10496_v7 }
 0x48d   : > { %2866 = vmatmul.bf16.gmra.mxu1 %v10468_v61 }
 0x48e   : > { %3667 = vmatmul.bf16.gmra.mxu3 %v3491_v52  ;;  %v473_v52 = vunpack.c.2.s8 %v400_v27 }
 0x490   : > { %v601_v34 = vcvt.s32.f32 %v473_v52 }
 0x491   : > { %v3628_v24 = vpop.f32.mrf.mxu3 }
 0x492   : > { %v3629_v17 = vadd.f32 %v3628_v24, %v10482_v57  ;;  %v729_v27 = vpack.c.bf16 %v601_v34, %v601_v34  ;;  %v3493_v24 = vpack.c.bf16 %v10179_v32, %v10135_v26 }
 0x494   : > { %v2774_v52 = vunpack.c.l.b16 %v729_v27  ;;  %v3930_v34 = vmax.f32 %v3629_v17, 0.0 }
 0x496   : > { %v10507_v57 = vpack.c.b16 %v2775_v46, %v2774_v52  ;;  %v13876_v46 = vld [vmem:[#allocation8_spill] sm:$0xff] }
 0x498   : > { %13873 = vst [vmem:[#allocation172_spill] sm:$0xff] %v10507_v57 }
 0x499   : > { %v3630_v37 = vpop.f32.mrf.mxu3 }
 0x49a   : > { %v3631_v15 = vadd.f32 %v3630_v37, %v10477_v10  ;;  %v3626_v37 = vadd.f32 %v3625_v39, %v10487_v5  ;;  %v13871_v10 = vld [vmem:[#allocation6_spill] sm:$0xff]  ;;  %v13874_v39 = vld [vmem:[#allocation7_spill] sm:$0xff]  ;;  %v13878_v5 = vld [vmem:[#allocation9_spill] sm:$0xff] }
 0x49b   : > { %v10502_v14 = vadd.f32 %v10406_v42, %v13871_v10 }
 0x49c   : > { %v3929_v9 = vmax.f32 %v3626_v37, 0.0 }
 0x49d   : > { %13872 = vst [vmem:[#allocation6_spill] sm:$0xff] %v10502_v14  ;;  %v3621_v27 = vadd.f32 %v10459_v31, %v10502_v14  ;;  %2871 = vmatmul.bf16.gmra.mxu1 %v10507_v57  ;;  %v401_v14 = vld [vmem:[%s9796_s21 + $0x70] sm:$0xff] }
 0x49e   : > { %3672 = vmatmul.bf16.gmra.mxu3 %v3492_v51  ;;  %v4057_v31 = vpack.c.bf16 %v3929_v9, %v3929_v9 }
 0x4a1   : > { %v3633_v4 = vpop.f32.mrf.mxu3 }
 0x4a2   : > { %v3634_v16 = vadd.f32 %v3633_v4, %v10473_v48  ;;  %v3931_v4 = vmax.f32 %v3631_v15, 0.0  ;;  %v10511_v15 = vadd.f32 %v10406_v42, %v13874_v39  ;;  %v10520_v39 = vadd.f32 %v10406_v42, %v13876_v46 }
 0x4a3   : > { %v10526_v46 = vadd.f32 %v10406_v42, %v13878_v5 }
 0x4a4   : > { %v3932_v18 = vmax.f32 %v3634_v16, 0.0  ;;  %v3624_v16 = vadd.f32 %v3623_v41, %v10496_v7  ;;  %13875 = vst [vmem:[#allocation7_spill] sm:$0xff] %v10511_v15  ;;  %v4059_v10 = vpack.c.bf16 %v3931_v4, %v3931_v4  ;;  %v3619_v32 = vadd.f32 %v10454_v36, %v10511_v15 }
 0x4a5   : > { %v4058_v41 = vpack.c.bf16 %v3930_v34, %v3930_v34  ;;  %13877 = vst [vmem:[#allocation8_spill] sm:$0xff] %v10520_v39  ;;  %v475_v36 = vunpack.c.0.s8 %v401_v14 }
 0x4a6   : > { %v4060_v54 = vpack.c.bf16 %v3932_v18, %v3932_v18  ;;  %v3928_v26 = vmax.f32 %v3624_v16, 0.0  ;;  %v4203_v37 = vunpack.c.l.b16 %v4059_v10  ;;  %v476_v16 = vunpack.c.1.s8 %v401_v14  ;;  %13879 = vst [vmem:[#allocation9_spill] sm:$0xff] %v10526_v46 }
 0x4a7   : > { %v4202_v7 = vunpack.c.l.b16 %v4058_v41 }
 0x4a8   : > { %v4204_v17 = vunpack.c.l.b16 %v4060_v54  ;;  %v4201_v54 = vunpack.c.l.b16 %v4057_v31  ;;  %v604_v15 = vcvt.s32.f32 %v476_v16 }
 0x4a9   : > { %v3635_v51 = vpop.f32.mrf.mxu3 }
 0x4aa   : > { %v3636_v11 = vadd.f32 %v3635_v51, %v10491_v6  ;;  %v732_v41 = vpack.c.bf16 %v604_v15, %v604_v15 }
 0x4ac   : > { %v3933_v43 = vmax.f32 %v3636_v11, 0.0  ;;  %v3927_v11 = vmax.f32 %v3621_v27, 0.0  ;;  %v4212_v27 = vpack.c.b16 %v4203_v37, %v4202_v7  ;;  %v2777_v31 = vunpack.c.l.b16 %v732_v41 }
 0x4ad   : > { %v3494_v7 = vpack.c.bf16 %v10236_v59, %v10203_v1 }
 0x4ae   : > { %v4061_v51 = vpack.c.bf16 %v3933_v43, %v3933_v43  ;;  %3677 = vmatmul.bf16.gmra.mxu3 %v3493_v24  ;;  %v3926_v43 = vmax.f32 %v3619_v32, 0.0  ;;  %v4056_v24 = vpack.c.bf16 %v3928_v26, %v3928_v26  ;;  %v4055_v34 = vpack.c.bf16 %v3927_v11, %v3927_v11 }
 0x4b0   : > { %v4205_v18 = vunpack.c.l.b16 %v4061_v51  ;;  %v603_v51 = vcvt.s32.f32 %v475_v36  ;;  %v4054_v9 = vpack.c.bf16 %v3926_v43, %v3926_v43  ;;  %v4200_v10 = vunpack.c.l.b16 %v4056_v24 }
 0x4b1   : > { %v3638_v52 = vpop.f32.mrf.mxu3 }
 0x4b2   : > { %v4213_v4 = vpack.c.b16 %v4205_v18, %v4204_v17  ;;  %v3639_v6 = vadd.f32 %v3638_v52, %v10520_v39  ;;  %v731_v26 = vpack.c.bf16 %v603_v51, %v603_v51  ;;  %v4199_v17 = vunpack.c.l.b16 %v4055_v34 }
 0x4b3   : > { %v4198_v37 = vunpack.c.l.b16 %v4054_v9  ;;  %v477_v51 = vunpack.c.2.s8 %v401_v14  ;;  %v478_v9 = vunpack.c.3.s8 %v401_v14 }
 0x4b4   : > { %4222 = vmatpush.bf16.msra.mxu1 %v4213_v4  ;;  %v3934_v32 = vmax.f32 %v3639_v6, 0.0  ;;  %v4211_v4 = vpack.c.b16 %v4201_v54, %v4200_v10  ;;  %v2776_v11 = vunpack.c.l.b16 %v731_v26  ;;  %v13881_v54 = vld [vmem:[#allocation10_spill] sm:$0xff]  ;;  %v13883_v26 = vld [vmem:[#allocation11_spill] sm:$0xff] }
 0x4b5   : > { %v4210_v24 = vpack.c.b16 %v4199_v17, %v4198_v37  ;;  %v605_v10 = vcvt.s32.f32 %v477_v51  ;;  %v10544_v41 = vadd.f32 %v10406_v42, %v13883_v26 }
 0x4b6   : > { %v4062_v36 = vpack.c.bf16 %v3934_v32, %v3934_v32  ;;  %v10531_v43 = vpack.c.b16 %v2777_v31, %v2776_v11  ;;  %v606_v32 = vcvt.s32.f32 %v478_v9  ;;  %v13888_v9 = vld [vmem:[#allocation13_spill] sm:$0xff] }
 0x4b7   : > { %13884 = vst [vmem:[#allocation11_spill] sm:$0xff] %v10544_v41 }
 0x4b8   : > { %4223 = vmatpush.bf16.msra.mxu1 %v4212_v27  ;;  %13880 = vst [vmem:[#allocation173_spill] sm:$0xff] %v10531_v43  ;;  %v4287_v15 = vunpack.c.l.b16 %v4062_v36  ;;  %v10536_v27 = vadd.f32 %v10406_v42, %v13881_v54 }
 0x4b9   : > { %v3640_v18 = vpop.f32.mrf.mxu3  ;;  %2876 = vmatmul.bf16.gmra.mxu1 %v10531_v43 }
 0x4ba   : > { %v3641_v52 = vadd.f32 %v3640_v18, %v10526_v46  ;;  %13882 = vst [vmem:[#allocation10_spill] sm:$0xff] %v10536_v27  ;;  %v733_v18 = vpack.c.bf16 %v605_v10, %v605_v10  ;;  %v10565_v10 = vadd.f32 %v10406_v42, %v13888_v9 }
 0x4bc   : > { %v3935_v5 = vmax.f32 %v3641_v52, 0.0  ;;  %4224 = vmatpush.bf16.msra.mxu1 %v4211_v4  ;;  %v734_v52 = vpack.c.bf16 %v606_v32, %v606_v32  ;;  %v2778_v31 = vunpack.c.l.b16 %v733_v18  ;;  %13889 = vst [vmem:[#allocation13_spill] sm:$0xff] %v10565_v10 }
 0x4be   : > { %v4063_v6 = vpack.c.bf16 %v3935_v5, %v3935_v5  ;;  %3682 = vmatmul.bf16.gmra.mxu3 %v3494_v7  ;;  %v2779_v7 = vunpack.c.l.b16 %v734_v52 }
 0x4c0   : > { %v4288_v16 = vunpack.c.l.b16 %v4063_v6  ;;  %4225 = vmatpush.bf16.msra.mxu1 %v4210_v24  ;;  %v10551_v36 = vpack.c.b16 %v2779_v7, %v2778_v31 }
 0x4c1   : > { %v3643_v34 = vpop.f32.mrf.mxu3 }
 0x4c2   : > { %v10538_v1 = vpack.c.b16 %v4288_v16, %v4287_v15  ;;  %v3644_v59 = vadd.f32 %v3643_v34, %v10536_v27  ;;  %13885 = vst [vmem:[#allocation174_spill] sm:$0xff] %v10551_v36  ;;  %v13886_v15 = vld [vmem:[#allocation12_spill] sm:$0xff] }
 0x4c3   : > { %v10557_v16 = vadd.f32 %v10406_v42, %v13886_v15 }
 0x4c4   : > { %4226 = vmatpush.bf16.msra.mxu1 %v10456_v56  ;;  %v3936_v17 = vmax.f32 %v3644_v59, 0.0  ;;  %v3495_v56 = vpack.c.bf16 %v10249_v49, %v10242_v23  ;;  %v402_v49 = vld [vmem:[%s9796_s21 + $0x78] sm:$0xff] }
 0x4c5   : > { %13887 = vst [vmem:[#allocation12_spill] sm:$0xff] %v10557_v16  ;;  %v479_v34 = vunpack.c.0.s8 %v402_v49  ;;  %v480_v54 = vunpack.c.1.s8 %v402_v49 }
 0x4c6   : > { %v4064_v14 = vpack.c.bf16 %v3936_v17, %v3936_v17 }
 0x4c7   : > { %v607_v59 = vcvt.s32.f32 %v479_v34  ;;  %v608_v51 = vcvt.s32.f32 %v480_v54 }
 0x4c8   : > { %4227 = vmatpush.bf16.msra.mxu1 %v10446_v13  ;;  %v4289_v13 = vunpack.c.l.b16 %v4064_v14 }
 0x4c9   : > { %v3645_v4 = vpop.f32.mrf.mxu3  ;;  %2881 = vmatmul.bf16.gmra.mxu1 %v10551_v36  ;;  %v736_v26 = vpack.c.bf16 %v608_v51, %v608_v51 }
 0x4ca   : > { %v3646_v11 = vadd.f32 %v3645_v4, %v10544_v41 }
 0x4cb   : > { %v2781_v4 = vunpack.c.l.b16 %v736_v26 }
 0x4cc   : > { %v3937_v37 = vmax.f32 %v3646_v11, 0.0  ;;  %4228 = vmatpush.bf16.msra.mxu1 %v10434_v12  ;;  %v3496_v11 = vpack.c.bf16 %v10265_v38, %v10260_v29  ;;  %v481_v29 = vunpack.c.2.s8 %v402_v49  ;;  %v482_v38 = vunpack.c.3.s8 %v402_v49 }
 0x4ce   : > { %v4065_v5 = vpack.c.bf16 %v3937_v37, %v3937_v37  ;;  %3687 = vmatmul.bf16.gmra.mxu3 %v3495_v56  ;;  %v609_v34 = vcvt.s32.f32 %v481_v29  ;;  %v610_v54 = vcvt.s32.f32 %v482_v38 }
 0x4d0   : > { %v4290_v6 = vunpack.c.l.b16 %v4065_v5  ;;  %4229 = vmatpush.bf16.msra.mxu1 %v10422_v60  ;;  %v735_v60 = vpack.c.bf16 %v607_v59, %v607_v59  ;;  %v13893_v59 = vld [vmem:[#allocation15_spill] sm:$0xff] }
 0x4d1   : > { %v3648_v24 = vpop.f32.mrf.mxu3  ;;  %v10582_v51 = vadd.f32 %v10406_v42, %v13893_v59 }
 0x4d2   : > { %v10559_v23 = vpack.c.b16 %v4290_v6, %v4289_v13  ;;  %v3649_v12 = vadd.f32 %v3648_v24, %v10557_v16  ;;  %v2780_v52 = vunpack.c.l.b16 %v735_v60  ;;  %v13891_v6 = vld [vmem:[#allocation14_spill] sm:$0xff]  ;;  %v738_v60 = vpack.c.bf16 %v610_v54, %v610_v54  ;;  %v13916_v16 = vld [vmem:[#allocation24_spill] sm:$0xff] }
 0x4d3   : > { %v10575_v24 = vadd.f32 %v10406_v42, %v13891_v6  ;;  %13894 = vst [vmem:[#allocation15_spill] sm:$0xff] %v10582_v51  ;;  %v10670_v41 = vadd.f32 %v10406_v42, %v13916_v16 }
 0x4d4   : > { %v3938_v32 = vmax.f32 %v3649_v12, 0.0  ;;  %v10570_v56 = vpack.c.b16 %v2781_v4, %v2780_v52  ;;  %v2783_v52 = vunpack.c.l.b16 %v738_v60  ;;  %v3497_v4 = vpack.c.bf16 %v10279_v50, %v10273_v21 }
 0x4d5   : > { %13892 = vst [vmem:[#allocation14_spill] sm:$0xff] %v10575_v24  ;;  %v3498_v60 = vpack.c.bf16 %v10309_v2, %v10292_v33  ;;  %v3499_v33 = vpack.c.bf16 %v10326_v55, %v10322_v35  ;;  %v3500_v35 = vpack.c.bf16 %v10339_v44, %v10334_v40 }
 0x4d6   : > { %v4066_v31 = vpack.c.bf16 %v3938_v32, %v3938_v32  ;;  %13890 = vst [vmem:[#allocation175_spill] sm:$0xff] %v10570_v56  ;;  %v737_v32 = vpack.c.bf16 %v609_v34, %v609_v34 }
 0x4d7   : > { %13917 = vst [vmem:[#allocation24_spill] sm:$0xff] %v10670_v41 }
 0x4d8   : > { %v4291_v37 = vunpack.c.l.b16 %v4066_v31 }
 0x4d9   : > { %v3650_v17 = vpop.f32.mrf.mxu3  ;;  %2886 = vmatmul.bf16.gmra.mxu1 %v10570_v56 }
 0x4da   : > { %v3651_v18 = vadd.f32 %v3650_v17, %v10565_v10 }
 0x4dc   : > { %v3939_v7 = vmax.f32 %v3651_v18, 0.0  ;;  %v2782_v18 = vunpack.c.l.b16 %v737_v32 }
 0x4de   : > { %v4067_v14 = vpack.c.bf16 %v3939_v7, %v3939_v7  ;;  %3692 = vmatmul.bf16.gmra.mxu3 %v3496_v11  ;;  %v10587_v49 = vpack.c.b16 %v2783_v52, %v2782_v18  ;;  %v403_v7 = vld [vmem:[%s9796_s21 + $0x80] sm:$0xff] }
 0x4e0   : > { %v4292_v5 = vunpack.c.l.b16 %v4067_v14  ;;  %13895 = vst [vmem:[#allocation176_spill] sm:$0xff] %v10587_v49 }
 0x4e1   : > { %v3653_v13 = vpop.f32.mrf.mxu3 }
 0x4e2   : > { %v10577_v15 = vpack.c.b16 %v4292_v5, %v4291_v37  ;;  %v3654_v12 = vadd.f32 %v3653_v13, %v10575_v24  ;;  %v483_v37 = vunpack.c.0.s8 %v403_v7  ;;  %v484_v5 = vunpack.c.1.s8 %v403_v7  ;;  %v13914_v24 = vld [vmem:[#allocation23_spill] sm:$0xff] }
 0x4e4   : > { %v3940_v9 = vmax.f32 %v3654_v12, 0.0  ;;  %v611_v12 = vcvt.s32.f32 %v483_v37  ;;  %v612_v29 = vcvt.s32.f32 %v484_v5 }
 0x4e6   : > { %v4068_v11 = vpack.c.bf16 %v3940_v9, %v3940_v9  ;;  %v739_v34 = vpack.c.bf16 %v611_v12, %v611_v12  ;;  %v740_v54 = vpack.c.bf16 %v612_v29, %v612_v29  ;;  %v404_v12 = vld [vmem:[%s9796_s21 + $0x88] sm:$0xff] }
 0x4e7   : > { %v488_v29 = vunpack.c.1.s8 %v404_v12  ;;  %v489_v55 = vunpack.c.2.s8 %v404_v12 }
 0x4e8   : > { %v4293_v13 = vunpack.c.l.b16 %v4068_v11  ;;  %v2913_v50 = vunpack.c.l.b16 %v739_v34  ;;  %v2914_v59 = vunpack.c.l.b16 %v740_v54 }
 0x4e9   : > { %v3655_v26 = vpop.f32.mrf.mxu3  ;;  %2891 = vmatmul.bf16.gmra.mxu1 %v10587_v49  ;;  %v616_v54 = vcvt.s32.f32 %v488_v29  ;;  %v13899_v29 = vld [vmem:[#allocation16_spill] sm:$0xff] }
 0x4ea   : > { %v3656_v17 = vadd.f32 %v3655_v26, %v10582_v51  ;;  %v10595_v9 = vpack.c.b16 %v2914_v59, %v2913_v50  ;;  %v485_v26 = vunpack.c.2.s8 %v403_v7 }
 0x4ec   : > { %v3941_v31 = vmax.f32 %v3656_v17, 0.0  ;;  %13896 = vst [vmem:[#allocation177_spill] sm:$0xff] %v10595_v9  ;;  %3001 = vmatmul.bf16.vlgmr.msrb.gmra.mxu2 %v10595_v9  ;;  %v486_v17 = vunpack.c.3.s8 %v403_v7  ;;  %v613_v18 = vcvt.s32.f32 %v485_v26  ;;  %v487_v7 = vunpack.c.0.s8 %v404_v12 }
 0x4ee   : > { %v4069_v14 = vpack.c.bf16 %v3941_v31, %v3941_v31  ;;  %3697 = vmatmul.bf16.gmra.mxu3 %v3497_v4  ;;  %v614_v52 = vcvt.s32.f32 %v486_v17  ;;  %v741_v11 = vpack.c.bf16 %v613_v18, %v613_v18  ;;  %v615_v34 = vcvt.s32.f32 %v487_v7 }
 0x4f0   : > { %v4294_v6 = vunpack.c.l.b16 %v4069_v14  ;;  %v742_v31 = vpack.c.bf16 %v614_v52, %v614_v52  ;;  %v10602_v14 = vpop.f32.mrf.mxu1  ;;  %v2915_v37 = vunpack.c.l.b16 %v741_v11  ;;  %v743_v59 = vpack.c.bf16 %v615_v34, %v615_v34 }
 0x4f1   : > { %v10591_v38 = vpop.f32.mrf.mxu3  ;;  %v10621_v34 = vadd.f32 %v10406_v42, %v13899_v29  ;;  %v13906_v29 = vld [vmem:[#allocation19_spill] sm:$0xff] }
 0x4f2   : > { %v10593_v21 = vpack.c.b16 %v4294_v6, %v4293_v13  ;;  %v2916_v5 = vunpack.c.l.b16 %v742_v31  ;;  %v2917_v26 = vunpack.c.l.b16 %v743_v59  ;;  %v490_v31 = vunpack.c.3.s8 %v404_v12  ;;  %v13903_v12 = vld [vmem:[#allocation18_spill] sm:$0xff] }
 0x4f3   : > { %13900 = vst [vmem:[#allocation16_spill] sm:$0xff] %v10621_v34 }
 0x4f4   : > { %v10604_v13 = vpack.c.b16 %v2916_v5, %v2915_v37  ;;  %v617_v37 = vcvt.s32.f32 %v489_v55  ;;  %v618_v5 = vcvt.s32.f32 %v490_v31 }
 0x4f6   : > { %13897 = vst [vmem:[#allocation178_spill] sm:$0xff] %v10604_v13  ;;  %v746_v59 = vpack.c.bf16 %v618_v5, %v618_v5 }
 0x4f8   : > { %v2859_v2 = vpop.f32.mrf.mxu1 }
 0x4f9   : > { %v10598_v32 = vpop.f32.mrf.mxu3 }
 0x4fc   : > { %3006 = vmatmul.bf16.gmra.mxu2 %v10604_v13 }
 0x4fe   : > { %3702 = vmatmul.bf16.gmra.mxu3 %v3498_v60  ;;  %v744_v60 = vpack.c.bf16 %v616_v54, %v616_v54  ;;  %v745_v54 = vpack.c.bf16 %v617_v37, %v617_v37  ;;  %v10637_v37 = vadd.f32 %v10406_v42, %v13906_v29  ;;  %v13912_v29 = vld [vmem:[#allocation22_spill] sm:$0xff] }
 0x500   : > { %v2918_v17 = vunpack.c.l.b16 %v744_v60  ;;  %v10612_v52 = vpop.f32.mrf.mxu1  ;;  %v13901_v60 = vld [vmem:[#allocation17_spill] sm:$0xff]  ;;  %v2919_v44 = vunpack.c.l.b16 %v745_v54  ;;  %13907 = vst [vmem:[#allocation19_spill] sm:$0xff] %v10637_v37 }
 0x501   : > { %v3663_v4 = vpop.f32.mrf.mxu3  ;;  %v13910_v54 = vld [vmem:[#allocation21_spill] sm:$0xff] }
 0x502   : > { %v10610_v18 = vpack.c.b16 %v2918_v17, %v2917_v26  ;;  %v10625_v26 = vadd.f32 %v10406_v42, %v13901_v60  ;;  %v2920_v17 = vunpack.c.l.b16 %v746_v59  ;;  %v13908_v60 = vld [vmem:[#allocation20_spill] sm:$0xff]  ;;  %v10647_v59 = vadd.f32 %v10406_v42, %v13910_v54 }
 0x503   : > { %v10642_v51 = vadd.f32 %v10406_v42, %v13908_v60 }
 0x504   : > { %13898 = vst [vmem:[#allocation179_spill] sm:$0xff] %v10610_v18  ;;  %v10633_v31 = vpack.c.b16 %v2920_v17, %v2919_v44  ;;  %v3664_v60 = vadd.f32 %v3663_v4, %v10647_v59 }
 0x505   : > { %13902 = vst [vmem:[#allocation17_spill] sm:$0xff] %v10625_v26 }
 0x506   : > { %13905 = vst [vmem:[#allocation180_spill] sm:$0xff] %v10633_v31 }
 0x507   : > { %13909 = vst [vmem:[#allocation20_spill] sm:$0xff] %v10642_v51 }
 0x508   : > { %v10617_v7 = vpop.f32.mrf.mxu1  ;;  %13911 = vst [vmem:[#allocation21_spill] sm:$0xff] %v10647_v59  ;;  %v3944_v59 = vmax.f32 %v3664_v60, 0.0 }
 0x509   : > { %v3665_v6 = vpop.f32.mrf.mxu3 }
 0x50a   : > { %v4072_v39 = vpack.c.bf16 %v3944_v59, %v3944_v59 }
 0x50c   : > { %3011 = vmatmul.bf16.gmra.mxu2 %v10610_v18 }
 0x50e   : > { %3707 = vmatmul.bf16.gmra.mxu3 %v3499_v33 }
 0x511   : > { %v3668_v50 = vpop.f32.mrf.mxu3 }
 0x519   : > { %v3670_v11 = vpop.f32.mrf.mxu3 }
 0x51a   : > { %v3671_v55 = vadd.f32 %v3670_v11, %v10625_v26  ;;  %v3666_v11 = vadd.f32 %v3665_v6, %v10637_v37  ;;  %v10661_v6 = vadd.f32 %v10406_v42, %v13914_v24 }
 0x51c   : > { %3016 = vmatmul.bf16.gmra.mxu2 %v10633_v31  ;;  %v3947_v17 = vmax.f32 %v3671_v55, 0.0  ;;  %13915 = vst [vmem:[#allocation23_spill] sm:$0xff] %v10661_v6 }
 0x51e   : > { %3712 = vmatmul.bf16.gmra.mxu3 %v3500_v35  ;;  %v10630_v35 = vadd.f32 %v10406_v42, %v13903_v12 }
 0x520   : > { %13904 = vst [vmem:[#allocation18_spill] sm:$0xff] %v10630_v35  ;;  %v3669_v5 = vadd.f32 %v3668_v50, %v10630_v35  ;;  %v10653_v50 = vadd.f32 %v10406_v42, %v13912_v29  ;;  %v10656_v35 = vpop.f32.mrf.mxu1  ;;  %v4075_v29 = vpack.c.bf16 %v3947_v17, %v3947_v17 }
 0x521   : > { %v3673_v33 = vpop.f32.mrf.mxu3 }
 0x522   : > { %v3674_v40 = vadd.f32 %v3673_v33, %v10621_v34  ;;  %13913 = vst [vmem:[#allocation22_spill] sm:$0xff] %v10653_v50  ;;  %v3501_v34 = vpack.c.bf16 %v2859_v2, %v10602_v14  ;;  %v3661_v55 = vadd.f32 %v10598_v32, %v10653_v50 }
 0x524   : > { %v3948_v33 = vmax.f32 %v3674_v40, 0.0  ;;  %v3946_v40 = vmax.f32 %v3669_v5, 0.0  ;;  %v3943_v32 = vmax.f32 %v3661_v55, 0.0  ;;  %v13919_v55 = vld [vmem:[#allocation25_spill] sm:$0xff] }
 0x526   : > { %v4076_v26 = vpack.c.bf16 %v3948_v33, %v3948_v33  ;;  %v3659_v33 = vadd.f32 %v10591_v38, %v10661_v6  ;;  %v4074_v14 = vpack.c.bf16 %v3946_v40, %v3946_v40 }
 0x528   : > { %v4301_v2 = vunpack.c.l.b16 %v4076_v26  ;;  %v3942_v46 = vmax.f32 %v3659_v33, 0.0  ;;  %v4299_v38 = vunpack.c.l.b16 %v4074_v14  ;;  %v2869_v40 = vpop.f32.mrf.mxu1 }
 0x529   : > { %v3675_v44 = vpop.f32.mrf.mxu3 }
 0x52a   : > { %v3676_v12 = vadd.f32 %v3675_v44, %v10642_v51  ;;  %v3945_v44 = vmax.f32 %v3666_v11, 0.0  ;;  %v405_v51 = vld [vmem:[%s9796_s21 + $0x90] sm:$0xff] }
 0x52b   : > { %v491_v4 = vunpack.c.0.s8 %v405_v51  ;;  %v492_v5 = vunpack.c.1.s8 %v405_v51 }
 0x52c   : > { %v3949_v54 = vmax.f32 %v3676_v12, 0.0  ;;  %v4073_v11 = vpack.c.bf16 %v3945_v44, %v3945_v44  ;;  %v10677_v44 = vadd.f32 %v10406_v42, %v13919_v55 }
 0x52d   : > { %v619_v10 = vcvt.s32.f32 %v491_v4  ;;  %v620_v24 = vcvt.s32.f32 %v492_v5  ;;  %v4071_v4 = vpack.c.bf16 %v3943_v32, %v3943_v32 }
 0x52e   : > { %v4077_v37 = vpack.c.bf16 %v3949_v54, %v3949_v54  ;;  %3717 = vmatmul.bf16.gmra.mxu3 %v3501_v34  ;;  %v4300_v54 = vunpack.c.l.b16 %v4075_v29  ;;  %v4298_v5 = vunpack.c.l.b16 %v4073_v11  ;;  %13920 = vst [vmem:[#allocation25_spill] sm:$0xff] %v10677_v44  ;;  %v4297_v29 = vunpack.c.l.b16 %v4072_v39 }
 0x52f   : > { %v747_v50 = vpack.c.bf16 %v619_v10, %v619_v10  ;;  %v748_v27 = vpack.c.bf16 %v620_v24, %v620_v24  ;;  %v4070_v10 = vpack.c.bf16 %v3942_v46, %v3942_v46  ;;  %v4296_v14 = vunpack.c.l.b16 %v4071_v4  ;;  %v13921_v4 = vld [vmem:[#allocation26_spill] sm:$0xff] }
 0x530   : > { %v4302_v12 = vunpack.c.l.b16 %v4077_v37  ;;  %v4309_v16 = vpack.c.b16 %v4300_v54, %v4299_v38  ;;  %v3502_v24 = vpack.c.bf16 %v10617_v7, %v10612_v52  ;;  %v493_v39 = vunpack.c.2.s8 %v405_v51  ;;  %v2872_v54 = vpop.f32.mrf.mxu1 }
 0x531   : > { %v3678_v17 = vpop.f32.mrf.mxu3  ;;  %v2921_v26 = vunpack.c.l.b16 %v747_v50  ;;  %v2922_v37 = vunpack.c.l.b16 %v748_v27  ;;  %v4308_v50 = vpack.c.b16 %v4298_v5, %v4297_v29  ;;  %v10685_v5 = vadd.f32 %v10406_v42, %v13921_v4 }
 0x532   : > { %v4310_v34 = vpack.c.b16 %v4302_v12, %v4301_v2  ;;  %v3679_v60 = vadd.f32 %v3678_v17, %v10670_v41  ;;  %v4295_v2 = vunpack.c.l.b16 %v4070_v10  ;;  %v494_v17 = vunpack.c.3.s8 %v405_v51 }
 0x533   : > { %v10673_v6 = vpack.c.b16 %v2922_v37, %v2921_v26  ;;  %13922 = vst [vmem:[#allocation26_spill] sm:$0xff] %v10685_v5 }
 0x534   : > { %4319 = vmatpush.bf16.msrb.mxu2 %v4310_v34  ;;  %v3950_v33 = vmax.f32 %v3679_v60, 0.0  ;;  %v4307_v46 = vpack.c.b16 %v4296_v14, %v4295_v2  ;;  %v621_v60 = vcvt.s32.f32 %v493_v39  ;;  %v622_v26 = vcvt.s32.f32 %v494_v17 }
 0x535   : > { %13918 = vst [vmem:[#allocation181_spill] sm:$0xff] %v10673_v6  ;;  %3021 = vmatmul.bf16.gmra.mxu2 %v10673_v6 }
 0x536   : > { %v4078_v12 = vpack.c.bf16 %v3950_v33, %v3950_v33  ;;  %v750_v52 = vpack.c.bf16 %v622_v26, %v622_v26  ;;  %v13924_v33 = vld [vmem:[#allocation27_spill] sm:$0xff]  ;;  %v13926_v26 = vld [vmem:[#allocation28_spill] sm:$0xff] }
 0x538   : > { %4320 = vmatpush.bf16.msrb.mxu2 %v4309_v16  ;;  %v4384_v34 = vunpack.c.l.b16 %v4078_v12  ;;  %v749_v16 = vpack.c.bf16 %v621_v60, %v621_v60  ;;  %v2924_v10 = vunpack.c.l.b16 %v750_v52 }
 0x539   : > { %v3680_v59 = vpop.f32.mrf.mxu3 }
 0x53a   : > { %v3681_v27 = vadd.f32 %v3680_v59, %v10677_v44  ;;  %v2923_v51 = vunpack.c.l.b16 %v749_v16  ;;  %v10695_v59 = vadd.f32 %v10406_v42, %v13924_v33 }
 0x53c   : > { %v3951_v32 = vmax.f32 %v3681_v27, 0.0  ;;  %4321 = vmatpush.bf16.msrb.mxu2 %v4308_v50  ;;  %v10691_v29 = vpack.c.b16 %v2924_v10, %v2923_v51  ;;  %13925 = vst [vmem:[#allocation27_spill] sm:$0xff] %v10695_v59  ;;  %v2874_v50 = vpop.f32.mrf.mxu1  ;;  %v13929_v10 = vld [vmem:[#allocation29_spill] sm:$0xff] }
 0x53e   : > { %v4079_v11 = vpack.c.bf16 %v3951_v32, %v3951_v32  ;;  %3722 = vmatmul.bf16.gmra.mxu3 %v3502_v24  ;;  %13923 = vst [vmem:[#allocation182_spill] sm:$0xff] %v10691_v29  ;;  %v406_v32 = vld [vmem:[%s9796_s21 + $0x98] sm:$0xff] }
 0x53f   : > { %v496_v39 = vunpack.c.1.s8 %v406_v32 }
 0x540   : > { %v4385_v38 = vunpack.c.l.b16 %v4079_v11  ;;  %4322 = vmatpush.bf16.msrb.mxu2 %v4307_v46  ;;  %v495_v46 = vunpack.c.0.s8 %v406_v32 }
 0x541   : > { %v3683_v37 = vpop.f32.mrf.mxu3 }
 0x542   : > { %v10687_v7 = vpack.c.b16 %v4385_v38, %v4384_v34  ;;  %v3684_v55 = vadd.f32 %v3683_v37, %v10685_v5  ;;  %v624_v38 = vcvt.s32.f32 %v496_v39  ;;  %v10706_v37 = vadd.f32 %v10406_v42, %v13926_v26  ;;  %v13931_v26 = vld [vmem:[#allocation30_spill] sm:$0xff] }
 0x543   : > { %v498_v39 = vunpack.c.3.s8 %v406_v32 }
 0x544   : > { %4323 = vmatpush.bf16.msrb.mxu2 %v10593_v21  ;;  %v3952_v14 = vmax.f32 %v3684_v55, 0.0  ;;  %v3503_v21 = vpack.c.bf16 %v2869_v40, %v10656_v35  ;;  %13927 = vst [vmem:[#allocation28_spill] sm:$0xff] %v10706_v37  ;;  %v752_v40 = vpack.c.bf16 %v624_v38, %v624_v38 }
 0x545   : > { %3026 = vmatmul.bf16.gmra.mxu2 %v10691_v29  ;;  %v626_v38 = vcvt.s32.f32 %v498_v39 }
 0x546   : > { %v4080_v12 = vpack.c.bf16 %v3952_v14, %v3952_v14  ;;  %v2926_v55 = vunpack.c.l.b16 %v752_v40 }
 0x548   : > { %4324 = vmatpush.bf16.msrb.mxu2 %v10577_v15  ;;  %v4386_v17 = vunpack.c.l.b16 %v4080_v12  ;;  %v623_v15 = vcvt.s32.f32 %v495_v46  ;;  %v3504_v12 = vpack.c.bf16 %v2874_v50, %v2872_v54  ;;  %v497_v46 = vunpack.c.2.s8 %v406_v32 }
 0x549   : > { %v3685_v27 = vpop.f32.mrf.mxu3 }
 0x54a   : > { %v3686_v2 = vadd.f32 %v3685_v27, %v10695_v59  ;;  %v751_v35 = vpack.c.bf16 %v623_v15, %v623_v15  ;;  %v625_v15 = vcvt.s32.f32 %v497_v46  ;;  %v13947_v59 = vld [vmem:[#allocation38_spill] sm:$0xff] }
 0x54c   : > { %v3953_v24 = vmax.f32 %v3686_v2, 0.0  ;;  %4325 = vmatpush.bf16.msrb.mxu2 %v10559_v23  ;;  %v2877_v23 = vpop.f32.mrf.mxu1  ;;  %v2925_v52 = vunpack.c.l.b16 %v751_v35  ;;  %v10721_v35 = vadd.f32 %v10406_v42, %v13931_v26  ;;  %v753_v40 = vpack.c.bf16 %v625_v15, %v625_v15 }
 0x54e   : > { %v4081_v11 = vpack.c.bf16 %v3953_v24, %v3953_v24  ;;  %3727 = vmatmul.bf16.gmra.mxu3 %v3503_v21  ;;  %v10711_v51 = vpack.c.b16 %v2926_v55, %v2925_v52  ;;  %13932 = vst [vmem:[#allocation30_spill] sm:$0xff] %v10721_v35  ;;  %v2927_v50 = vunpack.c.l.b16 %v753_v40 }
 0x550   : > { %v4387_v34 = vunpack.c.l.b16 %v4081_v11  ;;  %4326 = vmatpush.bf16.msrb.mxu2 %v10538_v1  ;;  %13928 = vst [vmem:[#allocation183_spill] sm:$0xff] %v10711_v51  ;;  %v10715_v1 = vadd.f32 %v10406_v42, %v13929_v10 }
 0x551   : > { %v3688_v60 = vpop.f32.mrf.mxu3 }
 0x552   : > { %v10708_v4 = vpack.c.b16 %v4387_v34, %v4386_v17  ;;  %v3689_v16 = vadd.f32 %v3688_v60, %v10706_v37  ;;  %13930 = vst [vmem:[#allocation29_spill] sm:$0xff] %v10715_v1 }
 0x554   : > { %v3954_v33 = vmax.f32 %v3689_v16, 0.0  ;;  %v2879_v24 = vpop.f32.mrf.mxu1  ;;  %v754_v16 = vpack.c.bf16 %v626_v38, %v626_v38 }
 0x555   : > { %3031 = vmatmul.bf16.gmra.mxu2 %v10711_v51 }
 0x556   : > { %v4082_v2 = vpack.c.bf16 %v3954_v33, %v3954_v33  ;;  %v2928_v55 = vunpack.c.l.b16 %v754_v16  ;;  %v13934_v33 = vld [vmem:[#allocation31_spill] sm:$0xff] }
 0x558   : > { %v4388_v17 = vunpack.c.l.b16 %v4082_v2  ;;  %v10726_v10 = vpack.c.b16 %v2928_v55, %v2927_v50 }
 0x559   : > { %v3690_v14 = vpop.f32.mrf.mxu3 }
 0x55a   : > { %v3691_v27 = vadd.f32 %v3690_v14, %v10715_v1  ;;  %13933 = vst [vmem:[#allocation184_spill] sm:$0xff] %v10726_v10  ;;  %v10730_v14 = vadd.f32 %v10406_v42, %v13934_v33  ;;  %v10737_v33 = vld [vmem:[%s9796_s21 + $0xc0] sm:$0xff] }
 0x55c   : > { %v3955_v21 = vmax.f32 %v3691_v27, 0.0  ;;  %v2882_v32 = vpop.f32.mrf.mxu1  ;;  %13935 = vst [vmem:[#allocation31_spill] sm:$0xff] %v10730_v14 }
 0x55e   : > { %v4083_v11 = vpack.c.bf16 %v3955_v21, %v3955_v21  ;;  %3732 = vmatmul.bf16.gmra.mxu3 %v3504_v12 }
 0x560   : > { %v4389_v34 = vunpack.c.l.b16 %v4083_v11  ;;  %v3505_v11 = vpack.c.bf16 %v2879_v24, %v2877_v23  ;;  %v515_v23 = vunpack.c.0.s8 %v10737_v33  ;;  %v516_v24 = vunpack.c.1.s8 %v10737_v33 }
 0x561   : > { %v3693_v60 = vpop.f32.mrf.mxu3 }
 0x562   : > { %v10723_v52 = vpack.c.b16 %v4389_v34, %v4388_v17  ;;  %v3694_v54 = vadd.f32 %v3693_v60, %v10721_v35 }
 0x564   : > { %v3956_v27 = vmax.f32 %v3694_v54, 0.0  ;;  %v2884_v38 = vpop.f32.mrf.mxu1 }
 0x565   : > { %3036 = vmatmul.bf16.gmra.mxu2 %v10726_v10  ;;  %v3506_v40 = vpack.c.bf16 %v2884_v38, %v2882_v32 }
 0x566   : > { %v4084_v21 = vpack.c.bf16 %v3956_v27, %v3956_v27 }
 0x568   : > { %v4390_v17 = vunpack.c.l.b16 %v4084_v21 }
 0x569   : > { %v3695_v2 = vpop.f32.mrf.mxu3 }
 0x56a   : > { %v3696_v12 = vadd.f32 %v3695_v2, %v10730_v14  ;;  %v643_v2 = vcvt.s32.f32 %v515_v23  ;;  %v10751_v23 = vld [vmem:[%s13171_s6] ss:$0 sm:$0xff] }
 0x56c   : > { %v3957_v46 = vmax.f32 %v3696_v12, 0.0  ;;  %v2887_v26 = vpop.f32.mrf.mxu1  ;;  %v644_v12 = vcvt.s32.f32 %v516_v24  ;;  %v13937_v24 = vld [vmem:[#allocation32_spill] sm:$0xff] }
 0x56e   : > { %v4085_v39 = vpack.c.bf16 %v3957_v46, %v3957_v46  ;;  %3737 = vmatmul.bf16.gmra.mxu3 %v3505_v11  ;;  %v771_v11 = vpack.c.bf16 %v643_v2, %v643_v2  ;;  %v772_v46 = vpack.c.bf16 %v644_v12, %v644_v12  ;;  %v13939_v2 = vld [vmem:[#allocation33_spill] sm:$0xff] }
 0x56f   : > { %v3002_v54 = vpop.f32.mrf.mxu2  ;;  %v10759_v12 = vadd.f32 %v10751_v23, %v13939_v2 }
 0x570   : > { %v4391_v34 = vunpack.c.l.b16 %v4085_v39  ;;  %v3203_v32 = vunpack.c.l.b16 %v771_v11 }
 0x571   : > { %v3698_v15 = vpop.f32.mrf.mxu3  ;;  %13940 = vst [vmem:[#allocation33_spill] sm:$0xff] %v10759_v12 }
 0x572   : > { %v10734_v60 = vpack.c.b16 %v4391_v34, %v4390_v17  ;;  %v3204_v17 = vunpack.c.l.b16 %v772_v46 }
 0x574   : > { %v2889_v50 = vpop.f32.mrf.mxu1  ;;  %v10741_v38 = vpack.c.b16 %v3204_v17, %v3203_v32  ;;  %v13945_v17 = vld [vmem:[#allocation37_spill] sm:$0xff] }
 0x575   : > { %v3507_v27 = vpack.c.bf16 %v2889_v50, %v2887_v26 }
 0x576   : > { %13936 = vst [vmem:[#allocation185_spill] sm:$0xff] %v10741_v38  ;;  %3291 = vmatmul.bf16.vlgmr.msrb.gmra.mxu1 %v10741_v38 }
 0x577   : > { %v3004_v21 = vpop.f32.mrf.mxu2 }
 0x579   : > { %v3700_v42 = vpop.f32.mrf.mxu3 }
 0x57c   : > { %v2892_v39 = vpop.f32.mrf.mxu1 }
 0x57e   : > { %3742 = vmatmul.bf16.gmra.mxu3 %v3506_v40 }
 0x57f   : > { %v10744_v40 = vpop.f32.mrf.mxu2 }
 0x581   : > { %v3703_v16 = vpop.f32.mrf.mxu3 }
 0x584   : > { %v2894_v14 = vpop.f32.mrf.mxu1 }
 0x585   : > { %v3508_v1 = vpack.c.bf16 %v2894_v14, %v2892_v39  ;;  %v13941_v14 = vld [vmem:[#allocation34_spill] sm:$0xff]  ;;  %v13943_v39 = vld [vmem:[#allocation36_spill] sm:$0xff] }
 0x586   : > { %v10769_v32 = vadd.f32 %v10751_v23, %v13943_v39 }
 0x587   : > { %v10746_v50 = vpop.f32.mrf.mxu2 }
 0x588   : > { %13944 = vst [vmem:[#allocation36_spill] sm:$0xff] %v10769_v32 }
 0x589   : > { %v3705_v55 = vpop.f32.mrf.mxu3 }
 0x58e   : > { %3747 = vmatmul.bf16.gmra.mxu3 %v3507_v27  ;;  %v10755_v27 = vadd.f32 %v10751_v23, %v13937_v24  ;;  %v10773_v24 = vadd.f32 %v10751_v23, %v13945_v17 }
 0x58f   : > { %v10787_v44 = vpop.f32.mrf.mxu2 }
 0x590   : > { %13938 = vst [vmem:[#allocation32_spill] sm:$0xff] %v10755_v27 }
 0x591   : > { %v3708_v34 = vpop.f32.mrf.mxu3  ;;  %13946 = vst [vmem:[#allocation37_spill] sm:$0xff] %v10773_v24 }
 0x599   : > { %v3710_v35 = vpop.f32.mrf.mxu3 }
 0x59a   : > { %v3711_v46 = vadd.f32 %v3710_v35, %v10759_v12  ;;  %v13949_v12 = vld [vmem:[#allocation40_spill] sm:$0xff] }
 0x59b   : > { %v10784_v39 = vadd.f32 %v10751_v23, %v13949_v12 }
 0x59c   : > { %v3963_v5 = vmax.f32 %v3711_v46, 0.0 }
 0x59d   : > { %13950 = vst [vmem:[#allocation40_spill] sm:$0xff] %v10784_v39 }
 0x59e   : > { %3752 = vmatmul.bf16.gmra.mxu3 %v3508_v1  ;;  %v10764_v1 = vadd.f32 %v10751_v23, %v13941_v14  ;;  %v3706_v14 = vadd.f32 %v3705_v55, %v10769_v32  ;;  %v3701_v55 = vadd.f32 %v3700_v42, %v10784_v39 }
 0x5a0   : > { %13942 = vst [vmem:[#allocation34_spill] sm:$0xff] %v10764_v1  ;;  %v3709_v37 = vadd.f32 %v3708_v34, %v10764_v1  ;;  %v3509_v1 = vpack.c.bf16 %v3004_v21, %v3002_v54  ;;  %v3961_v46 = vmax.f32 %v3706_v14, 0.0  ;;  %v3959_v42 = vmax.f32 %v3701_v55, 0.0  ;;  %v13955_v55 = vld [vmem:[#allocation44_spill] sm:$0xff] }
 0x5a1   : > { %v3713_v26 = vpop.f32.mrf.mxu3 }
 0x5a2   : > { %v3714_v11 = vadd.f32 %v3713_v26, %v10755_v27  ;;  %v10778_v26 = vadd.f32 %v10751_v23, %v13947_v59  ;;  %v3962_v34 = vmax.f32 %v3709_v37, 0.0  ;;  %v13951_v59 = vld [vmem:[#allocation41_spill] sm:$0xff]  ;;  %v13953_v37 = vld [vmem:[#allocation42_spill] sm:$0xff]  ;;  %v4089_v14 = vpack.c.bf16 %v3961_v46, %v3961_v46 }
 0x5a3   : > { %v10791_v48 = vadd.f32 %v10751_v23, %v13951_v59  ;;  %v10797_v54 = vadd.f32 %v10751_v23, %v13953_v37  ;;  %v4087_v39 = vpack.c.bf16 %v3959_v42, %v3959_v42  ;;  %v10804_v46 = vadd.f32 %v10751_v23, %v13955_v55 }
 0x5a4   : > { %v3964_v2 = vmax.f32 %v3714_v11, 0.0  ;;  %13948 = vst [vmem:[#allocation38_spill] sm:$0xff] %v10778_v26  ;;  %v3704_v17 = vadd.f32 %v3703_v16, %v10778_v26  ;;  %v4090_v16 = vpack.c.bf16 %v3962_v34, %v3962_v34  ;;  %v4395_v56 = vunpack.c.l.b16 %v4089_v14 }
 0x5a5   : > { %13952 = vst [vmem:[#allocation41_spill] sm:$0xff] %v10791_v48  ;;  %v3699_v12 = vadd.f32 %v3698_v15, %v10791_v48  ;;  %v3510_v42 = vpack.c.bf16 %v10746_v50, %v10744_v40 }
 0x5a6   : > { %v4092_v11 = vpack.c.bf16 %v3964_v2, %v3964_v2  ;;  %v3960_v32 = vmax.f32 %v3704_v17, 0.0  ;;  %13954 = vst [vmem:[#allocation42_spill] sm:$0xff] %v10797_v54  ;;  %v517_v2 = vunpack.c.2.s8 %v10737_v33  ;;  %v4396_v34 = vunpack.c.l.b16 %v4090_v16 }
 0x5a7   : > { %v3958_v15 = vmax.f32 %v3699_v12, 0.0  ;;  %13956 = vst [vmem:[#allocation44_spill] sm:$0xff] %v10804_v46  ;;  %v4393_v16 = vunpack.c.l.b16 %v4087_v39  ;;  %v412_v39 = vld [vmem:[%s9796_s21 + $0xc8] sm:$0xff] }
 0x5a8   : > { %v4398_v26 = vunpack.c.l.b16 %v4092_v11  ;;  %v4088_v17 = vpack.c.bf16 %v3960_v32, %v3960_v32  ;;  %v3014_v11 = vpop.f32.mrf.mxu2 }
 0x5a9   : > { %v3715_v27 = vpop.f32.mrf.mxu3 }
 0x5aa   : > { %v3716_v35 = vadd.f32 %v3715_v27, %v10773_v24  ;;  %v4091_v27 = vpack.c.bf16 %v3963_v5, %v3963_v5 }
 0x5ac   : > { %v3965_v41 = vmax.f32 %v3716_v35, 0.0  ;;  %v518_v35 = vunpack.c.3.s8 %v10737_v33  ;;  %v4397_v5 = vunpack.c.l.b16 %v4091_v27 }
 0x5ae   : > { %v4093_v24 = vpack.c.bf16 %v3965_v41, %v3965_v41  ;;  %3757 = vmatmul.bf16.gmra.mxu3 %v3509_v1  ;;  %v645_v1 = vcvt.s32.f32 %v517_v2  ;;  %v646_v59 = vcvt.s32.f32 %v518_v35  ;;  %v4406_v36 = vpack.c.b16 %v4397_v5, %v4396_v34 }
 0x5b0   : > { %v4399_v49 = vunpack.c.l.b16 %v4093_v24  ;;  %v773_v37 = vpack.c.bf16 %v645_v1, %v645_v1  ;;  %v774_v48 = vpack.c.bf16 %v646_v59, %v646_v59 }
 0x5b1   : > { %v3718_v21 = vpop.f32.mrf.mxu3 }
 0x5b2   : > { %v4407_v41 = vpack.c.b16 %v4399_v49, %v4398_v26  ;;  %v3719_v24 = vadd.f32 %v3718_v21, %v10797_v54  ;;  %v3205_v43 = vunpack.c.l.b16 %v773_v37  ;;  %v3206_v33 = vunpack.c.l.b16 %v774_v48  ;;  %v14037_v54 = vld [vmem:[#allocation111_spill] sm:$0xff] }
 0x5b3   : > { %v4086_v49 = vpack.c.bf16 %v3958_v15, %v3958_v15  ;;  %v4394_v26 = vunpack.c.l.b16 %v4088_v17  ;;  %v519_v15 = vunpack.c.0.s8 %v412_v39  ;;  %v13958_v17 = vld [vmem:[#allocation48_spill] sm:$0xff] }
 0x5b4   : > { %4416 = vmatpush.bf16.msrb.mxu1 %v4407_v41  ;;  %v3966_v27 = vmax.f32 %v3719_v24, 0.0  ;;  %v10806_v12 = vpack.c.b16 %v3206_v33, %v3205_v43  ;;  %v3017_v41 = vpop.f32.mrf.mxu2  ;;  %v10815_v34 = vadd.f32 %v10751_v23, %v13958_v17 }
 0x5b5   : > { %v4405_v2 = vpack.c.b16 %v4395_v56, %v4394_v26  ;;  %v4392_v35 = vunpack.c.l.b16 %v4086_v49  ;;  %v520_v56 = vunpack.c.1.s8 %v412_v39  ;;  %v647_v40 = vcvt.s32.f32 %v519_v15  ;;  %v13963_v15 = vld [vmem:[#allocation52_spill] sm:$0xff] }
 0x5b6   : > { %13957 = vst [vmem:[#allocation186_spill] sm:$0xff] %v10806_v12  ;;  %3296 = vmatmul.bf16.gmra.mxu1 %v10806_v12  ;;  %v4094_v48 = vpack.c.bf16 %v3966_v27, %v3966_v27  ;;  %v13960_v27 = vld [vmem:[#allocation50_spill] sm:$0xff] }
 0x5b7   : > { %13959 = vst [vmem:[#allocation48_spill] sm:$0xff] %v10815_v34  ;;  %v648_v50 = vcvt.s32.f32 %v520_v56  ;;  %v775_v33 = vpack.c.bf16 %v647_v40, %v647_v40  ;;  %v10835_v56 = vadd.f32 %v10751_v23, %v13963_v15  ;;  %v13968_v15 = vld [vmem:[#allocation56_spill] sm:$0xff] }
 0x5b8   : > { %4417 = vmatpush.bf16.msrb.mxu1 %v4406_v36  ;;  %v4404_v36 = vpack.c.b16 %v4393_v16, %v4392_v35  ;;  %v4481_v43 = vunpack.c.l.b16 %v4094_v48 }
 0x5b9   : > { %v3720_v32 = vpop.f32.mrf.mxu3  ;;  %v776_v55 = vpack.c.bf16 %v648_v50, %v648_v50  ;;  %v3207_v49 = vunpack.c.l.b16 %v775_v33  ;;  %13964 = vst [vmem:[#allocation52_spill] sm:$0xff] %v10835_v56 }
 0x5ba   : > { %v3721_v21 = vadd.f32 %v3720_v32, %v10804_v46  ;;  %v10823_v32 = vadd.f32 %v10751_v23, %v13960_v27 }
 0x5bb   : > { %v3208_v26 = vunpack.c.l.b16 %v776_v55 }
 0x5bc   : > { %v3967_v14 = vmax.f32 %v3721_v21, 0.0  ;;  %4418 = vmatpush.bf16.msrb.mxu1 %v4405_v2  ;;  %13961 = vst [vmem:[#allocation50_spill] sm:$0xff] %v10823_v32  ;;  %v3019_v2 = vpop.f32.mrf.mxu2 }
 0x5bd   : > { %v10826_v35 = vpack.c.b16 %v3208_v26, %v3207_v49 }
 0x5be   : > { %v4095_v5 = vpack.c.bf16 %v3967_v14, %v3967_v14  ;;  %3762 = vmatmul.bf16.gmra.mxu3 %v3510_v42  ;;  %v3511_v42 = vpack.c.bf16 %v3014_v11, %v10787_v44 }
 0x5bf   : > { %13962 = vst [vmem:[#allocation187_spill] sm:$0xff] %v10826_v35 }
 0x5c0   : > { %v4482_v1 = vunpack.c.l.b16 %v4095_v5  ;;  %4419 = vmatpush.bf16.msrb.mxu1 %v4404_v36 }
 0x5c1   : > { %v3723_v59 = vpop.f32.mrf.mxu3 }
 0x5c2   : > { %v10817_v24 = vpack.c.b16 %v4482_v1, %v4481_v43  ;;  %v3724_v37 = vadd.f32 %v3723_v59, %v10815_v34  ;;  %v521_v1 = vunpack.c.2.s8 %v412_v39  ;;  %v522_v59 = vunpack.c.3.s8 %v412_v39 }
 0x5c4   : > { %4420 = vmatpush.bf16.msrb.mxu1 %v10734_v60  ;;  %v3968_v16 = vmax.f32 %v3724_v37, 0.0  ;;  %v3022_v40 = vpop.f32.mrf.mxu2  ;;  %v649_v44 = vcvt.s32.f32 %v521_v1  ;;  %v650_v11 = vcvt.s32.f32 %v522_v59 }
 0x5c6   : > { %3301 = vmatmul.bf16.gmra.mxu1 %v10826_v35  ;;  %v4096_v60 = vpack.c.bf16 %v3968_v16, %v3968_v16  ;;  %v777_v50 = vpack.c.bf16 %v649_v44, %v649_v44  ;;  %v778_v37 = vpack.c.bf16 %v650_v11, %v650_v11  ;;  %v10851_v44 = vadd.f32 %v10751_v23, %v13968_v15 }
 0x5c8   : > { %4421 = vmatpush.bf16.msrb.mxu1 %v10723_v52  ;;  %v4483_v36 = vunpack.c.l.b16 %v4096_v60  ;;  %v3209_v33 = vunpack.c.l.b16 %v777_v50  ;;  %v3210_v55 = vunpack.c.l.b16 %v778_v37  ;;  %13969 = vst [vmem:[#allocation56_spill] sm:$0xff] %v10851_v44 }
 0x5c9   : > { %v3725_v21 = vpop.f32.mrf.mxu3 }
 0x5ca   : > { %v3726_v48 = vadd.f32 %v3725_v21, %v10823_v32  ;;  %v10844_v27 = vpack.c.b16 %v3210_v55, %v3209_v33 }
 0x5cc   : > { %v3969_v14 = vmax.f32 %v3726_v48, 0.0  ;;  %4422 = vmatpush.bf16.msrb.mxu1 %v10708_v4  ;;  %13967 = vst [vmem:[#allocation188_spill] sm:$0xff] %v10844_v27  ;;  %v3512_v48 = vpack.c.bf16 %v3019_v2, %v3017_v41 }
 0x5ce   : > { %v4097_v5 = vpack.c.bf16 %v3969_v14, %v3969_v14  ;;  %3767 = vmatmul.bf16.gmra.mxu3 %v3511_v42  ;;  %v3024_v42 = vpop.f32.mrf.mxu2 }
 0x5d0   : > { %v4484_v43 = vunpack.c.l.b16 %v4097_v5  ;;  %4423 = vmatpush.bf16.msrb.mxu1 %v10687_v7  ;;  %v13965_v7 = vld [vmem:[#allocation54_spill] sm:$0xff] }
 0x5d1   : > { %v3728_v52 = vpop.f32.mrf.mxu3  ;;  %v10842_v49 = vadd.f32 %v10751_v23, %v13965_v7 }
 0x5d2   : > { %v10837_v17 = vpack.c.b16 %v4484_v43, %v4483_v36  ;;  %v3729_v4 = vadd.f32 %v3728_v52, %v10835_v56  ;;  %v413_v43 = vld [vmem:[%s9796_s21 + $0xd0] sm:$0xff] }
 0x5d3   : > { %13966 = vst [vmem:[#allocation54_spill] sm:$0xff] %v10842_v49  ;;  %v523_v1 = vunpack.c.0.s8 %v413_v43  ;;  %v524_v59 = vunpack.c.1.s8 %v413_v43 }
 0x5d4   : > { %v3970_v39 = vmax.f32 %v3729_v4, 0.0 }
 0x5d5   : > { %v651_v4 = vcvt.s32.f32 %v523_v1  ;;  %v652_v50 = vcvt.s32.f32 %v524_v59 }
 0x5d6   : > { %3306 = vmatmul.bf16.gmra.mxu1 %v10844_v27  ;;  %v4098_v21 = vpack.c.bf16 %v3970_v39, %v3970_v39  ;;  %v3027_v33 = vpop.f32.mrf.mxu2  ;;  %v13970_v39 = vld [vmem:[#allocation58_spill] sm:$0xff] }
 0x5d7   : > { %v779_v2 = vpack.c.bf16 %v651_v4, %v651_v4  ;;  %v780_v37 = vpack.c.bf16 %v652_v50, %v652_v50  ;;  %v525_v50 = vunpack.c.2.s8 %v413_v43 }
 0x5d8   : > { %v4485_v5 = vunpack.c.l.b16 %v4098_v21 }
 0x5d9   : > { %v3730_v26 = vpop.f32.mrf.mxu3  ;;  %v3211_v55 = vunpack.c.l.b16 %v779_v2  ;;  %v3212_v7 = vunpack.c.l.b16 %v780_v37  ;;  %v653_v37 = vcvt.s32.f32 %v525_v50 }
 0x5da   : > { %v3731_v16 = vadd.f32 %v3730_v26, %v10842_v49  ;;  %v10858_v26 = vadd.f32 %v10751_v23, %v13970_v39 }
 0x5dc   : > { %v3971_v60 = vmax.f32 %v3731_v16, 0.0  ;;  %13971 = vst [vmem:[#allocation58_spill] sm:$0xff] %v10858_v26 }
 0x5de   : > { %v4099_v14 = vpack.c.bf16 %v3971_v60, %v3971_v60  ;;  %3772 = vmatmul.bf16.gmra.mxu3 %v3512_v48  ;;  %v10860_v48 = vpack.c.b16 %v3212_v7, %v3211_v55  ;;  %v3029_v4 = vpop.f32.mrf.mxu2  ;;  %v781_v7 = vpack.c.bf16 %v653_v37, %v653_v37 }
 0x5e0   : > { %v4486_v36 = vunpack.c.l.b16 %v4099_v14  ;;  %13972 = vst [vmem:[#allocation189_spill] sm:$0xff] %v10860_v48 }
 0x5e1   : > { %v3733_v52 = vpop.f32.mrf.mxu3 }
 0x5e2   : > { %v10853_v11 = vpack.c.b16 %v4486_v36, %v4485_v5  ;;  %v3734_v41 = vadd.f32 %v3733_v52, %v10851_v44  ;;  %v3513_v5 = vpack.c.bf16 %v3024_v42, %v3022_v40 }
 0x5e4   : > { %v3972_v16 = vmax.f32 %v3734_v41, 0.0  ;;  %v526_v41 = vunpack.c.3.s8 %v413_v43 }
 0x5e6   : > { %3311 = vmatmul.bf16.gmra.mxu1 %v10860_v48  ;;  %v4100_v14 = vpack.c.bf16 %v3972_v16, %v3972_v16  ;;  %v654_v55 = vcvt.s32.f32 %v526_v41 }
 0x5e8   : > { %v4487_v1 = vunpack.c.l.b16 %v4100_v14  ;;  %v782_v39 = vpack.c.bf16 %v654_v55, %v654_v55  ;;  %v3514_v14 = vpack.c.bf16 %v3029_v4, %v3027_v33 }
 0x5e9   : > { %v3735_v21 = vpop.f32.mrf.mxu3 }
 0x5ea   : > { %v3736_v60 = vadd.f32 %v3735_v21, %v10858_v26  ;;  %v3213_v21 = vunpack.c.l.b16 %v781_v7  ;;  %v3214_v16 = vunpack.c.l.b16 %v782_v39 }
 0x5ec   : > { %v3973_v36 = vmax.f32 %v3736_v60, 0.0  ;;  %v10870_v42 = vpack.c.b16 %v3214_v16, %v3213_v21  ;;  %v3032_v60 = vpop.f32.mrf.mxu2  ;;  %v10877_v16 = vld [vmem:[%s9796_s21 + $0xe0] sm:$0xff] }
 0x5ed   : > { %v531_v26 = vunpack.c.0.s8 %v10877_v16  ;;  %v532_v33 = vunpack.c.1.s8 %v10877_v16 }
 0x5ee   : > { %v4101_v52 = vpack.c.bf16 %v3973_v36, %v3973_v36  ;;  %3777 = vmatmul.bf16.gmra.mxu3 %v3513_v5  ;;  %13973 = vst [vmem:[#allocation190_spill] sm:$0xff] %v10870_v42  ;;  %v414_v5 = vld [vmem:[%s9796_s21 + $0xd8] sm:$0xff] }
 0x5ef   : > { %v527_v36 = vunpack.c.0.s8 %v414_v5 }
 0x5f0   : > { %v4488_v59 = vunpack.c.l.b16 %v4101_v52  ;;  %v528_v52 = vunpack.c.1.s8 %v414_v5 }
 0x5f1   : > { %v10864_v15 = vpop.f32.mrf.mxu3 }
 0x5f2   : > { %v10866_v2 = vpack.c.b16 %v4488_v59, %v4487_v1  ;;  %v655_v1 = vcvt.s32.f32 %v527_v36  ;;  %v656_v59 = vcvt.s32.f32 %v528_v52  ;;  %v660_v36 = vcvt.s32.f32 %v532_v33 }
 0x5f4   : > { %v3034_v50 = vpop.f32.mrf.mxu2  ;;  %v783_v41 = vpack.c.bf16 %v655_v1, %v655_v1  ;;  %v784_v37 = vpack.c.bf16 %v656_v59, %v656_v59  ;;  %v788_v1 = vpack.c.bf16 %v660_v36, %v660_v36 }
 0x5f5   : > { %v3515_v4 = vpack.c.bf16 %v3034_v50, %v3032_v60 }
 0x5f6   : > { %3316 = vmatmul.bf16.gmra.mxu1 %v10870_v42  ;;  %v3215_v55 = vunpack.c.l.b16 %v783_v41  ;;  %v3216_v7 = vunpack.c.l.b16 %v784_v37  ;;  %v3349_v37 = vunpack.c.l.b16 %v788_v1  ;;  %v13981_v1 = vld [vmem:[#allocation76_spill] sm:$0xff] }
 0x5f8   : > { %v10874_v21 = vpack.c.b16 %v3216_v7, %v3215_v55  ;;  %v529_v55 = vunpack.c.2.s8 %v414_v5  ;;  %v530_v7 = vunpack.c.3.s8 %v414_v5  ;;  %v10890_v5 = vadd.f32 %v10751_v23, %v9881_v20 }
 0x5f9   : > { %v10868_v40 = vpop.f32.mrf.mxu3 }
 0x5fa   : > { %13974 = vst [vmem:[#allocation191_spill] sm:$0xff] %v10874_v21  ;;  %v657_v56 = vcvt.s32.f32 %v529_v55  ;;  %v658_v32 = vcvt.s32.f32 %v530_v7  ;;  %v10911_v55 = vpop.f32.mrf.mxu1 }
 0x5fb   : > { %13977 = vst [vmem:[#allocation194_spill] sm:$0xff] %v10890_v5 }
 0x5fc   : > { %v3037_v59 = vpop.f32.mrf.mxu2  ;;  %v785_v34 = vpack.c.bf16 %v657_v56, %v657_v56  ;;  %v786_v46 = vpack.c.bf16 %v658_v32, %v658_v32 }
 0x5fe   : > { %3782 = vmatmul.bf16.gmra.mxu3 %v3514_v14  ;;  %v659_v14 = vcvt.s32.f32 %v531_v26  ;;  %v3217_v60 = vunpack.c.l.b16 %v785_v34  ;;  %v3218_v26 = vunpack.c.l.b16 %v786_v46  ;;  %v13979_v46 = vld [vmem:[#allocation77_spill] sm:$0xff] }
 0x5ff   : > { %v10899_v32 = vadd.f32 %v10751_v23, %v13979_v46 }
 0x600   : > { %v787_v52 = vpack.c.bf16 %v659_v14, %v659_v14 }
 0x601   : > { %v3743_v43 = vpop.f32.mrf.mxu3  ;;  %13980 = vst [vmem:[#allocation77_spill] sm:$0xff] %v10899_v32 }
 0x602   : > { %v3348_v41 = vunpack.c.l.b16 %v787_v52  ;;  %v10894_v52 = vadd.f32 %v10751_v23, %v9895_v58 }
 0x604   : > { %v10882_v49 = vpack.c.b16 %v3349_v37, %v3348_v41  ;;  %v3039_v50 = vpop.f32.mrf.mxu2  ;;  %13978 = vst [vmem:[#allocation195_spill] sm:$0xff] %v10894_v52  ;;  %v13983_v41 = vld [vmem:[#allocation78_spill] sm:$0xff] }
 0x605   : > { %v3516_v14 = vpack.c.bf16 %v3039_v50, %v3037_v59  ;;  %v10904_v59 = vadd.f32 %v10751_v23, %v13981_v1  ;;  %v10908_v20 = vadd.f32 %v10751_v23, %v13983_v41  ;;  %v13989_v1 = vld [vmem:[#allocation82_spill] sm:$0xff] }
 0x606   : > { %3321 = vmatmul.bf16.gmra.mxu1 %v10874_v21  ;;  %13975 = vst [vmem:[#allocation192_spill] sm:$0xff] %v10882_v49  ;;  %3436 = vmatmul.bf16.vlgmr.msra.gmra.mxu2 %v10882_v49 }
 0x607   : > { %13982 = vst [vmem:[#allocation76_spill] sm:$0xff] %v10904_v59 }
 0x608   : > { %13984 = vst [vmem:[#allocation78_spill] sm:$0xff] %v10908_v20 }
 0x609   : > { %v3745_v39 = vpop.f32.mrf.mxu3 }
 0x60a   : > { %v3746_v50 = vadd.f32 %v3745_v39, %v10904_v59 }
 0x60e   : > { %3787 = vmatmul.bf16.gmra.mxu3 %v3515_v4  ;;  %v10885_v4 = vpack.c.b16 %v3218_v26, %v3217_v60  ;;  %v13985_v60 = vld [vmem:[#allocation74_spill] sm:$0xff] }
 0x60f   : > { %v10915_v26 = vadd.f32 %v10751_v23, %v13985_v60 }
 0x610   : > { %13976 = vst [vmem:[#allocation193_spill] sm:$0xff] %v10885_v4 }
 0x611   : > { %v3748_v44 = vpop.f32.mrf.mxu3  ;;  %13986 = vst [vmem:[#allocation74_spill] sm:$0xff] %v10915_v26 }
 0x612   : > { %v3749_v37 = vadd.f32 %v3748_v44, %v10899_v32  ;;  %v3744_v44 = vadd.f32 %v3743_v43, %v10915_v26  ;;  %v10936_v26 = vpop.f32.mrf.mxu1 }
 0x616   : > { %3326 = vmatmul.bf16.gmra.mxu1 %v10885_v4  ;;  %v14041_v4 = vld [vmem:[#allocation115_spill] sm:$0xff] }
 0x619   : > { %v3750_v33 = vpop.f32.mrf.mxu3 }
 0x61a   : > { %v3751_v56 = vadd.f32 %v3750_v33, %v10894_v52  ;;  %v13990_v52 = vld [vmem:[#allocation81_spill] sm:$0xff] }
 0x61b   : > { %v10927_v60 = vadd.f32 %v10751_v23, %v13990_v52  ;;  %v10940_v52 = vadd.f32 %v10751_v23, %v10097_v45 }
 0x61c   : > { %v3979_v33 = vmax.f32 %v3751_v56, 0.0  ;;  %v3977_v56 = vmax.f32 %v3746_v50, 0.0 }
 0x61d   : > { %13991 = vst [vmem:[#allocation81_spill] sm:$0xff] %v10927_v60  ;;  %v3739_v43 = vadd.f32 %v10864_v15, %v10927_v60 }
 0x61e   : > { %3792 = vmatmul.bf16.gmra.mxu3 %v3516_v14  ;;  %13993 = vst [vmem:[#allocation196_spill] sm:$0xff] %v10940_v52 }
 0x621   : > { %v3753_v36 = vpop.f32.mrf.mxu3 }
 0x622   : > { %v3754_v34 = vadd.f32 %v3753_v36, %v10890_v5  ;;  %v13987_v36 = vld [vmem:[#allocation73_spill] sm:$0xff] }
 0x623   : > { %v10921_v46 = vadd.f32 %v10751_v23, %v13987_v36  ;;  %v13992_v36 = vpack.c.bf16 %v10347_v22, %v10342_v28  ;;  %v4105_v22 = vpack.c.bf16 %v3977_v56, %v3977_v56 }
 0x624   : > { %v3980_v58 = vmax.f32 %v3754_v34, 0.0  ;;  %v3978_v34 = vmax.f32 %v3749_v37, 0.0  ;;  %v3976_v37 = vmax.f32 %v3744_v44, 0.0 }
 0x625   : > { %13988 = vst [vmem:[#allocation73_spill] sm:$0xff] %v10921_v46  ;;  %v3741_v39 = vadd.f32 %v10868_v40, %v10921_v46  ;;  %v13994_v46 = vld [vmem:[#allocation120_spill] sm:$0xff] }
 0x626   : > { %4230 = vmatmul.bf16.vlgmr.msra.gmra.mxu1 %v13989_v1  ;;  %v4108_v41 = vpack.c.bf16 %v3980_v58, %v3980_v58  ;;  %v4106_v58 = vpack.c.bf16 %v3978_v34, %v3978_v34  ;;  %v4104_v15 = vpack.c.bf16 %v3976_v37, %v3976_v37  ;;  %v10947_v45 = vadd.f32 %v10751_v23, %v13994_v46  ;;  %v13996_v37 = vld [vmem:[#allocation104_spill] sm:$0xff] }
 0x627   : > { %v3975_v50 = vmax.f32 %v3741_v39, 0.0  ;;  %v13997_v46 = vpack.c.bf16 %v10356_v25, %v10351_v62  ;;  %v14000_v25 = vld [vmem:[#allocation108_spill] sm:$0xff] }
 0x628   : > { %v4493_v44 = vunpack.c.l.b16 %v4106_v58  ;;  %13995 = vst [vmem:[#allocation120_spill] sm:$0xff] %v10947_v45  ;;  %v4491_v5 = vunpack.c.l.b16 %v4104_v15  ;;  %v13998_v15 = vld [vmem:[#allocation107_spill] sm:$0xff]  ;;  %v10970_v62 = vadd.f32 %v10751_v23, %v14000_v25 }
 0x629   : > { %v3755_v7 = vpop.f32.mrf.mxu3 }
 0x62a   : > { %v3756_v14 = vadd.f32 %v3755_v7, %v10908_v20  ;;  %v4107_v7 = vpack.c.bf16 %v3979_v33, %v3979_v33  ;;  %14001 = vst [vmem:[#allocation108_spill] sm:$0xff] %v10970_v62 }
 0x62c   : > { %v3981_v32 = vmax.f32 %v3756_v14, 0.0  ;;  %v4495_v14 = vunpack.c.l.b16 %v4108_v41  ;;  %v4494_v28 = vunpack.c.l.b16 %v4107_v7  ;;  %v4492_v41 = vunpack.c.l.b16 %v4105_v22 }
 0x62e   : > { %v4109_v20 = vpack.c.bf16 %v3981_v32, %v3981_v32  ;;  %3797 = vmatmul.bf16.gmra.mxu3 %v13992_v36  ;;  %v3974_v36 = vmax.f32 %v3739_v43, 0.0  ;;  %v4503_v60 = vpack.c.b16 %v4494_v28, %v4493_v44  ;;  %v4502_v43 = vpack.c.b16 %v4492_v41, %v4491_v5 }
 0x630   : > { %v4496_v1 = vunpack.c.l.b16 %v4109_v20  ;;  %v4103_v20 = vpack.c.bf16 %v3975_v50, %v3975_v50  ;;  %v4102_v59 = vpack.c.bf16 %v3974_v36, %v3974_v36 }
 0x631   : > { %v3758_v40 = vpop.f32.mrf.mxu3 }
 0x632   : > { %v4504_v33 = vpack.c.b16 %v4496_v1, %v4495_v14  ;;  %v3759_v34 = vadd.f32 %v3758_v40, %v10940_v52  ;;  %v4490_v56 = vunpack.c.l.b16 %v4103_v20  ;;  %v4489_v58 = vunpack.c.l.b16 %v4102_v59 }
 0x633   : > { %v10949_v39 = vpop.f32.mrf.mxu1  ;;  %v10962_v59 = vadd.f32 %v10751_v23, %v13998_v15 }
 0x634   : > { %4513 = vmatpush.bf16.msra.mxu2 %v4504_v33  ;;  %v3982_v32 = vmax.f32 %v3759_v34, 0.0  ;;  %v4501_v22 = vpack.c.b16 %v4490_v56, %v4489_v58  ;;  %v14002_v56 = vld [vmem:[#allocation121_spill] sm:$0xff] }
 0x635   : > { %13999 = vst [vmem:[#allocation107_spill] sm:$0xff] %v10962_v59 }
 0x636   : > { %4235 = vmatmul.bf16.gmra.mxu1 %v13996_v37  ;;  %v4110_v14 = vpack.c.bf16 %v3982_v32, %v3982_v32  ;;  %v14025_v37 = vld [vmem:[#allocation155_spill] sm:$0xff] }
 0x638   : > { %4514 = vmatpush.bf16.msra.mxu2 %v4503_v60  ;;  %v4578_v60 = vunpack.c.l.b16 %v4110_v14 }
 0x639   : > { %v3760_v1 = vpop.f32.mrf.mxu3 }
 0x63a   : > { %v3761_v7 = vadd.f32 %v3760_v1, %v10947_v45 }
 0x63b   : > { %v10956_v33 = vpop.f32.mrf.mxu1 }
 0x63c   : > { %v3983_v40 = vmax.f32 %v3761_v7, 0.0  ;;  %4515 = vmatpush.bf16.msra.mxu2 %v4502_v43 }
 0x63e   : > { %v4111_v50 = vpack.c.bf16 %v3983_v40, %v3983_v40  ;;  %3802 = vmatmul.bf16.gmra.mxu3 %v13997_v46 }
 0x640   : > { %v4579_v28 = vunpack.c.l.b16 %v4111_v50  ;;  %4516 = vmatpush.bf16.msra.mxu2 %v4501_v22  ;;  %v14004_v22 = vld [vmem:[#allocation109_spill] sm:$0xff] }
 0x641   : > { %v3763_v36 = vpop.f32.mrf.mxu3 }
 0x642   : > { %v10964_v32 = vpack.c.b16 %v4579_v28, %v4578_v60  ;;  %v3764_v44 = vadd.f32 %v3763_v36, %v10962_v59  ;;  %v10988_v60 = vadd.f32 %v10751_v23, %v14004_v22 }
 0x643   : > { %v10973_v20 = vpop.f32.mrf.mxu1 }
 0x644   : > { %4517 = vmatpush.bf16.msra.mxu2 %v10866_v2  ;;  %v3984_v34 = vmax.f32 %v3764_v44, 0.0  ;;  %v14003_v2 = vpack.c.bf16 %v10366_v19, %v10361_v30  ;;  %14005 = vst [vmem:[#allocation109_spill] sm:$0xff] %v10988_v60  ;;  %v14006_v19 = vld [vmem:[#allocation112_spill] sm:$0xff] }
 0x645   : > { %v10995_v30 = vadd.f32 %v10751_v23, %v14006_v19  ;;  %v14011_v19 = vld [vmem:[#allocation113_spill] sm:$0xff] }
 0x646   : > { %4240 = vmatmul.bf16.gmra.mxu1 %v14002_v56  ;;  %v4112_v7 = vpack.c.bf16 %v3984_v34, %v3984_v34 }
 0x647   : > { %14007 = vst [vmem:[#allocation112_spill] sm:$0xff] %v10995_v30 }
 0x648   : > { %4518 = vmatpush.bf16.msra.mxu2 %v10853_v11  ;;  %v4580_v14 = vunpack.c.l.b16 %v4112_v7 }
 0x649   : > { %v3765_v41 = vpop.f32.mrf.mxu3 }
 0x64a   : > { %v3766_v1 = vadd.f32 %v3765_v41, %v10970_v62  ;;  %v14026_v62 = vld [vmem:[#allocation154_spill] sm:$0xff] }
 0x64b   : > { %v10982_v11 = vpop.f32.mrf.mxu1  ;;  %v14027_v59 = vpack.c.bf16 %v14025_v37, %v14026_v62 }
 0x64c   : > { %v3985_v43 = vmax.f32 %v3766_v1, 0.0  ;;  %4519 = vmatpush.bf16.msra.mxu2 %v10837_v17  ;;  %v14008_v1 = vpack.c.bf16 %v10375_v47, %v10370_v8  ;;  %v11017_v47 = vadd.f32 %v10751_v23, %v14011_v19 }
 0x64e   : > { %v4113_v58 = vpack.c.bf16 %v3985_v43, %v3985_v43  ;;  %3807 = vmatmul.bf16.gmra.mxu3 %v14003_v2  ;;  %14012 = vst [vmem:[#allocation113_spill] sm:$0xff] %v11017_v47 }
 0x650   : > { %v4581_v40 = vunpack.c.l.b16 %v4113_v58  ;;  %4520 = vmatpush.bf16.msra.mxu2 %v10817_v24 }
 0x651   : > { %v3768_v50 = vpop.f32.mrf.mxu3 }
 0x652   : > { %v10990_v17 = vpack.c.b16 %v4581_v40, %v4580_v14  ;;  %v3769_v28 = vadd.f32 %v3768_v50, %v10988_v60  ;;  %v14009_v40 = vld [vmem:[#allocation118_spill] sm:$0xff] }
 0x653   : > { %v10997_v24 = vpop.f32.mrf.mxu1  ;;  %v11010_v50 = vadd.f32 %v10751_v23, %v14009_v40 }
 0x654   : > { %v3986_v36 = vmax.f32 %v3769_v28, 0.0 }
 0x655   : > { %14010 = vst [vmem:[#allocation118_spill] sm:$0xff] %v11010_v50 }
 0x656   : > { %4245 = vmatmul.bf16.gmra.mxu1 %v10227_v3  ;;  %v4114_v25 = vpack.c.bf16 %v3986_v36, %v3986_v36 }
 0x658   : > { %v4582_v7 = vunpack.c.l.b16 %v4114_v25 }
 0x659   : > { %v3770_v15 = vpop.f32.mrf.mxu3 }
 0x65a   : > { %v3771_v44 = vadd.f32 %v3770_v15, %v10995_v30 }
 0x65b   : > { %v11004_v58 = vpop.f32.mrf.mxu1 }
 0x65c   : > { %v3987_v34 = vmax.f32 %v3771_v44, 0.0 }
 0x65e   : > { %v4115_v41 = vpack.c.bf16 %v3987_v34, %v3987_v34  ;;  %3812 = vmatmul.bf16.gmra.mxu3 %v14008_v1  ;;  %v14013_v1 = vld [vmem:[#allocation149_spill] sm:$0xff] }
 0x660   : > { %v4583_v43 = vunpack.c.l.b16 %v4115_v41 }
 0x661   : > { %v3773_v2 = vpop.f32.mrf.mxu3 }
 0x662   : > { %v11012_v22 = vpack.c.b16 %v4583_v43, %v4582_v7  ;;  %v3774_v28 = vadd.f32 %v3773_v2, %v11010_v50  ;;  %v14014_v7 = vpack.c.bf16 %v10381_v53, %v14013_v1  ;;  %v14017_v53 = vld [vmem:[#allocation150_spill] sm:$0xff]  ;;  %v14021_v50 = vld [vmem:[#allocation152_spill] sm:$0xff] }
 0x663   : > { %v11019_v36 = vpop.f32.mrf.mxu1 }
 0x664   : > { %v3988_v8 = vmax.f32 %v3774_v28, 0.0  ;;  %v533_v28 = vunpack.c.2.s8 %v10877_v16 }
 0x666   : > { %4250 = vmatmul.bf16.gmra.mxu1 %v10244_v63  ;;  %v4116_v25 = vpack.c.bf16 %v3988_v8, %v3988_v8  ;;  %v661_v46 = vcvt.s32.f32 %v533_v28 }
 0x668   : > { %v4584_v43 = vunpack.c.l.b16 %v4116_v25  ;;  %v789_v63 = vpack.c.bf16 %v661_v46, %v661_v46  ;;  %v416_v46 = vld [vmem:[%s9796_s21 + $0xe8] sm:$0xff] }
 0x669   : > { %v3775_v15 = vpop.f32.mrf.mxu3 }
 0x66a   : > { %v3776_v44 = vadd.f32 %v3775_v15, %v11017_v47  ;;  %v14020_v47 = vld [vmem:[#allocation153_spill] sm:$0xff] }
 0x66b   : > { %v11026_v40 = vpop.f32.mrf.mxu1  ;;  %v14022_v56 = vpack.c.bf16 %v14020_v47, %v14021_v50  ;;  %v14024_v47 = vld [vmem:[#allocation138_spill] sm:$0xff] }
 0x66c   : > { %v3989_v34 = vmax.f32 %v3776_v44, 0.0  ;;  %v14015_v44 = vld [vmem:[#allocation134_spill] sm:$0xff] }
 0x66e   : > { %v4117_v41 = vpack.c.bf16 %v3989_v34, %v3989_v34  ;;  %3817 = vmatmul.bf16.gmra.mxu3 %v14014_v7  ;;  %v14016_v34 = vld [vmem:[#allocation151_spill] sm:$0xff] }
 0x66f   : > { %v14018_v1 = vpack.c.bf16 %v14016_v34, %v14017_v53  ;;  %v14019_v34 = vld [vmem:[#allocation136_spill] sm:$0xff]  ;;  %v3350_v53 = vunpack.c.l.b16 %v789_v63 }
 0x670   : > { %v4585_v2 = vunpack.c.l.b16 %v4117_v41 }
 0x671   : > { %v11028_v19 = vpop.f32.mrf.mxu3 }
 0x672   : > { %v11032_v14 = vpack.c.b16 %v4585_v2, %v4584_v43  ;;  %v534_v43 = vunpack.c.3.s8 %v10877_v16 }
 0x673   : > { %v11034_v15 = vpop.f32.mrf.mxu1 }
 0x674   : > { %v662_v5 = vcvt.s32.f32 %v534_v43  ;;  %v536_v43 = vunpack.c.1.s8 %v416_v46 }
 0x676   : > { %4255 = vmatmul.bf16.gmra.mxu1 %v14015_v44  ;;  %v790_v3 = vpack.c.bf16 %v662_v5, %v662_v5  ;;  %v535_v5 = vunpack.c.0.s8 %v416_v46  ;;  %v664_v63 = vcvt.s32.f32 %v536_v43  ;;  %v14029_v43 = vld [vmem:[#allocation103_spill] sm:$0xff] }
 0x679   : > { %v11036_v8 = vpop.f32.mrf.mxu3 }
 0x67b   : > { %v11042_v25 = vpop.f32.mrf.mxu1 }
 0x67e   : > { %3822 = vmatmul.bf16.gmra.mxu3 %v14018_v1  ;;  %v3351_v1 = vunpack.c.l.b16 %v790_v3  ;;  %v663_v3 = vcvt.s32.f32 %v535_v5 }
 0x680   : > { %v11054_v7 = vpack.c.b16 %v3351_v1, %v3350_v53  ;;  %v791_v50 = vpack.c.bf16 %v663_v3, %v663_v3  ;;  %v11077_v3 = vadd.f32 %v10751_v23, %v14029_v43 }
 0x681   : > { %v3783_v41 = vpop.f32.mrf.mxu3 }
 0x682   : > { %14023 = vst [vmem:[#allocation149_spill] sm:$0xff] %v11054_v7  ;;  %3441 = vmatmul.bf16.gmra.mxu2 %v11054_v7  ;;  %v3352_v53 = vunpack.c.l.b16 %v791_v50  ;;  %v14039_v7 = vld [vmem:[#allocation114_spill] sm:$0xff] }
 0x683   : > { %v11048_v2 = vpop.f32.mrf.mxu1  ;;  %14030 = vst [vmem:[#allocation150_spill] sm:$0xff] %v11077_v3 }
 0x686   : > { %4260 = vmatmul.bf16.gmra.mxu1 %v14019_v34 }
 0x689   : > { %v3785_v44 = vpop.f32.mrf.mxu3 }
 0x68b   : > { %v11056_v30 = vpop.f32.mrf.mxu1 }
 0x68e   : > { %3827 = vmatmul.bf16.gmra.mxu3 %v14022_v56  ;;  %v792_v56 = vpack.c.bf16 %v664_v63, %v664_v63  ;;  %v14031_v63 = vld [vmem:[#allocation105_spill] sm:$0xff] }
 0x68f   : > { %v11081_v50 = vadd.f32 %v10751_v23, %v14031_v63  ;;  %v11096_v63 = vadd.f32 %v10751_v23, %v14037_v54  ;;  %v11108_v54 = vadd.f32 %v10751_v23, %v14041_v4 }
 0x690   : > { %v3353_v1 = vunpack.c.l.b16 %v792_v56 }
 0x691   : > { %v3788_v16 = vpop.f32.mrf.mxu3  ;;  %14032 = vst [vmem:[#allocation153_spill] sm:$0xff] %v11081_v50 }
 0x692   : > { %v11068_v45 = vpack.c.b16 %v3353_v1, %v3352_v53  ;;  %v537_v53 = vunpack.c.2.s8 %v416_v46  ;;  %v538_v1 = vunpack.c.3.s8 %v416_v46  ;;  %14038 = vst [vmem:[#allocation154_spill] sm:$0xff] %v11096_v63 }
 0x693   : > { %v11062_v34 = vpop.f32.mrf.mxu1  ;;  %14042 = vst [vmem:[#allocation105_spill] sm:$0xff] %v11108_v54 }
 0x694   : > { %14028 = vst [vmem:[#allocation151_spill] sm:$0xff] %v11068_v45  ;;  %3446 = vmatmul.bf16.gmra.mxu2 %v11068_v45 }
 0x696   : > { %4265 = vmatmul.bf16.gmra.mxu1 %v14024_v47  ;;  %v14035_v47 = vld [vmem:[#allocation110_spill] sm:$0xff] }
 0x697   : > { %v11091_v5 = vadd.f32 %v10751_v23, %v14035_v47 }
 0x699   : > { %v3790_v60 = vpop.f32.mrf.mxu3  ;;  %14036 = vst [vmem:[#allocation155_spill] sm:$0xff] %v11091_v5  ;;  %v3786_v46 = vadd.f32 %v3785_v44, %v11091_v5  ;;  %v14044_v44 = vld [vmem:[#allocation116_spill] sm:$0xff] }
 0x69a   : > { %v3791_v56 = vadd.f32 %v3790_v60, %v11081_v50  ;;  %v11102_v60 = vadd.f32 %v10751_v23, %v14039_v7 }
 0x69b   : > { %v11070_v28 = vpop.f32.mrf.mxu1 }
 0x69c   : > { %14040 = vst [vmem:[#allocation103_spill] sm:$0xff] %v11102_v60  ;;  %v3995_v47 = vmax.f32 %v3791_v56, 0.0  ;;  %v11114_v56 = vadd.f32 %v10751_v23, %v14044_v44 }
 0x69e   : > { %3832 = vmatmul.bf16.gmra.mxu3 %v14027_v59  ;;  %v14033_v59 = vld [vmem:[#allocation106_spill] sm:$0xff] }
 0x69f   : > { %v11086_v62 = vadd.f32 %v10751_v23, %v14033_v59  ;;  %v666_v59 = vcvt.s32.f32 %v538_v1  ;;  %v14043_v1 = vld [vmem:[#allocation72_spill] sm:$0xff]  ;;  %14045 = vst [vmem:[#allocation106_spill] sm:$0xff] %v11114_v56 }
 0x6a1   : > { %v3793_v52 = vpop.f32.mrf.mxu3  ;;  %14034 = vst [vmem:[#allocation152_spill] sm:$0xff] %v11086_v62  ;;  %v3789_v43 = vadd.f32 %v3788_v16, %v11086_v62  ;;  %v794_v62 = vpack.c.bf16 %v666_v59, %v666_v59  ;;  %v4123_v59 = vpack.c.bf16 %v3995_v47, %v3995_v47 }
 0x6a2   : > { %v3794_v37 = vadd.f32 %v3793_v52, %v11077_v3  ;;  %v665_v3 = vcvt.s32.f32 %v537_v53 }
 0x6a3   : > { %v11098_v52 = vpop.f32.mrf.mxu1  ;;  %v3994_v53 = vmax.f32 %v3789_v43, 0.0  ;;  %v3355_v48 = vunpack.c.l.b16 %v794_v62 }
 0x6a4   : > { %v3996_v45 = vmax.f32 %v3794_v37, 0.0  ;;  %v793_v16 = vpack.c.bf16 %v665_v3, %v665_v3  ;;  %v3784_v37 = vadd.f32 %v3783_v41, %v11102_v60  ;;  %v3781_v3 = vadd.f32 %v11036_v8, %v11108_v54 }
 0x6a5   : > { %v14046_v41 = vpack.c.bf16 %v10936_v26, %v10911_v55  ;;  %v4122_v62 = vpack.c.bf16 %v3994_v53, %v3994_v53  ;;  %v14048_v26 = vld [vmem:[#allocation119_spill] sm:$0xff]  ;;  %v14050_v55 = vld [vmem:[#allocation122_spill] sm:$0xff] }
 0x6a6   : > { %4424 = vmatmul.bf16.vlgmr.msrb.gmra.mxu1 %v14043_v1  ;;  %v4124_v21 = vpack.c.bf16 %v3996_v45, %v3996_v45  ;;  %v3354_v42 = vunpack.c.l.b16 %v793_v16  ;;  %v3992_v45 = vmax.f32 %v3784_v37, 0.0  ;;  %v417_v1 = vld [vmem:[%s9796_s21 + $0xf0] sm:$0xff] }
 0x6a7   : > { %v539_v54 = vunpack.c.0.s8 %v417_v1  ;;  %v540_v60 = vunpack.c.1.s8 %v417_v1 }
 0x6a8   : > { %v11121_v43 = vpack.c.b16 %v3355_v48, %v3354_v42  ;;  %v4592_v16 = vunpack.c.l.b16 %v4124_v21  ;;  %v11132_v48 = vadd.f32 %v10751_v23, %v14048_v26  ;;  %v4120_v21 = vpack.c.bf16 %v3992_v45, %v3992_v45 }
 0x6a9   : > { %v3795_v50 = vpop.f32.mrf.mxu3  ;;  %v667_v45 = vcvt.s32.f32 %v539_v54  ;;  %v14053_v54 = vpack.c.bf16 %v10956_v33, %v10949_v39 }
 0x6aa   : > { %v3796_v49 = vadd.f32 %v3795_v50, %v11096_v63  ;;  %v3993_v50 = vmax.f32 %v3786_v46, 0.0  ;;  %14047 = vst [vmem:[#allocation110_spill] sm:$0xff] %v11121_v43  ;;  %3451 = vmatmul.bf16.gmra.mxu2 %v11121_v43  ;;  %v3991_v46 = vmax.f32 %v3781_v3, 0.0  ;;  %v11138_v63 = vadd.f32 %v10751_v23, %v14050_v55 }
 0x6ab   : > { %v11126_v8 = vpop.f32.mrf.mxu1  ;;  %14049 = vst [vmem:[#allocation111_spill] sm:$0xff] %v11132_v48 }
 0x6ac   : > { %v3997_v7 = vmax.f32 %v3796_v49, 0.0  ;;  %v3779_v49 = vadd.f32 %v11028_v19, %v11114_v56  ;;  %v4121_v42 = vpack.c.bf16 %v3993_v50, %v3993_v50  ;;  %v4591_v19 = vunpack.c.l.b16 %v4123_v59  ;;  %14051 = vst [vmem:[#allocation114_spill] sm:$0xff] %v11138_v63 }
 0x6ad   : > { %v4588_v50 = vunpack.c.l.b16 %v4120_v21 }
 0x6ae   : > { %v4125_v4 = vpack.c.bf16 %v3997_v7, %v3997_v7  ;;  %3837 = vmatmul.bf16.gmra.mxu3 %v14046_v41  ;;  %v3990_v53 = vmax.f32 %v3779_v49, 0.0  ;;  %v4590_v7 = vunpack.c.l.b16 %v4122_v62  ;;  %v4119_v41 = vpack.c.bf16 %v3991_v46, %v3991_v46 }
 0x6af   : > { %v4589_v3 = vunpack.c.l.b16 %v4121_v42  ;;  %v668_v62 = vcvt.s32.f32 %v540_v60  ;;  %v795_v42 = vpack.c.bf16 %v667_v45, %v667_v45  ;;  %v14055_v45 = vld [vmem:[#allocation63_spill] sm:$0xff] }
 0x6b0   : > { %v4593_v44 = vunpack.c.l.b16 %v4125_v4  ;;  %v4600_v56 = vpack.c.b16 %v4591_v19, %v4590_v7  ;;  %v4118_v26 = vpack.c.bf16 %v3990_v53, %v3990_v53  ;;  %v14052_v7 = vld [vmem:[#allocation80_spill] sm:$0xff] }
 0x6b1   : > { %v3798_v47 = vpop.f32.mrf.mxu3  ;;  %v796_v19 = vpack.c.bf16 %v668_v62, %v668_v62  ;;  %v3356_v53 = vunpack.c.l.b16 %v795_v42  ;;  %v541_v62 = vunpack.c.2.s8 %v417_v1 }
 0x6b2   : > { %v4601_v37 = vpack.c.b16 %v4593_v44, %v4592_v16  ;;  %v3799_v4 = vadd.f32 %v3798_v47, %v11132_v48  ;;  %v4587_v16 = vunpack.c.l.b16 %v4119_v41  ;;  %v4599_v47 = vpack.c.b16 %v4589_v3, %v4588_v50 }
 0x6b3   : > { %v11140_v49 = vpop.f32.mrf.mxu1  ;;  %v3357_v21 = vunpack.c.l.b16 %v796_v19  ;;  %v669_v19 = vcvt.s32.f32 %v541_v62 }
 0x6b4   : > { %4610 = vmatpush.bf16.msra.mxu1 %v4601_v37  ;;  %v3998_v59 = vmax.f32 %v3799_v4, 0.0  ;;  %v4586_v37 = vunpack.c.l.b16 %v4118_v26 }
 0x6b5   : > { %v11147_v4 = vpack.c.b16 %v3357_v21, %v3356_v53  ;;  %v797_v21 = vpack.c.bf16 %v669_v19, %v669_v19 }
 0x6b6   : > { %4429 = vmatmul.bf16.gmra.mxu1 %v14052_v7  ;;  %v4126_v55 = vpack.c.bf16 %v3998_v59, %v3998_v59  ;;  %v4598_v60 = vpack.c.b16 %v4587_v16, %v4586_v37  ;;  %v542_v16 = vunpack.c.3.s8 %v417_v1 }
 0x6b7   : > { %14054 = vst [vmem:[#allocation115_spill] sm:$0xff] %v11147_v4 }
 0x6b8   : > { %4611 = vmatpush.bf16.msra.mxu1 %v4600_v56  ;;  %v4675_v41 = vunpack.c.l.b16 %v4126_v55  ;;  %v670_v37 = vcvt.s32.f32 %v542_v16  ;;  %v11186_v16 = vld [vmem:[%s13171_s6] ss:$0 sm:$0xff] }
 0x6b9   : > { %v3800_v44 = vpop.f32.mrf.mxu3 }
 0x6ba   : > { %v3801_v46 = vadd.f32 %v3800_v44, %v11138_v63  ;;  %3456 = vmatmul.bf16.gmra.mxu2 %v11147_v4  ;;  %v14057_v44 = vld [vmem:[#allocation64_spill] sm:$0xff]  ;;  %v14089_v63 = vld [vmem:[#allocation67_spill] sm:$0xff] }
 0x6bb   : > { %v11150_v26 = vpop.f32.mrf.mxu1 }
 0x6bc   : > { %v3999_v48 = vmax.f32 %v3801_v46, 0.0  ;;  %4612 = vmatpush.bf16.msra.mxu1 %v4599_v47  ;;  %v11164_v46 = vadd.f32 %v10751_v23, %v14057_v44 }
 0x6be   : > { %v4127_v56 = vpack.c.bf16 %v3999_v48, %v3999_v48  ;;  %3842 = vmatmul.bf16.gmra.mxu3 %v14053_v54  ;;  %v11156_v48 = vadd.f32 %v10751_v23, %v14055_v45  ;;  %14058 = vst [vmem:[#allocation119_spill] sm:$0xff] %v11164_v46  ;;  %v14059_v54 = vld [vmem:[#allocation85_spill] sm:$0xff]  ;;  %v3358_v23 = vunpack.c.l.b16 %v797_v21 }
 0x6c0   : > { %v4676_v3 = vunpack.c.l.b16 %v4127_v56  ;;  %4613 = vmatpush.bf16.msra.mxu1 %v4598_v60  ;;  %14056 = vst [vmem:[#allocation116_spill] sm:$0xff] %v11156_v48  ;;  %v798_v56 = vpack.c.bf16 %v670_v37, %v670_v37 }
 0x6c1   : > { %v3803_v50 = vpop.f32.mrf.mxu3 }
 0x6c2   : > { %v11158_v39 = vpack.c.b16 %v4676_v3, %v4675_v41  ;;  %v3804_v33 = vadd.f32 %v3803_v50, %v11156_v48  ;;  %v3359_v60 = vunpack.c.l.b16 %v798_v56 }
 0x6c3   : > { %v11167_v42 = vpop.f32.mrf.mxu1 }
 0x6c4   : > { %4614 = vmatpush.bf16.msra.mxu1 %v11032_v14  ;;  %v4000_v47 = vmax.f32 %v3804_v33, 0.0  ;;  %v11175_v3 = vpack.c.b16 %v3359_v60, %v3358_v23 }
 0x6c6   : > { %4434 = vmatmul.bf16.gmra.mxu1 %v14059_v54  ;;  %v4128_v14 = vpack.c.bf16 %v4000_v47, %v4000_v47  ;;  %14061 = vst [vmem:[#allocation122_spill] sm:$0xff] %v11175_v3  ;;  %v418_v47 = vld [vmem:[%s9796_s21 + $0xf8] sm:$0xff]  ;;  %s9143_s21 = scalar_lea.hbm %s9142_s27, 8 }
 0x6c7   : > { %v543_v19 = vunpack.c.0.s8 %v418_v47  ;;  %v544_v37 = vunpack.c.1.s8 %v418_v47  ;;  %p9144_p11 = scmp.ne.s32.totalorder %s9142_s27, %s9143_s21 }
 0x6c8   : > { %4615 = vmatpush.bf16.msra.mxu1 %v11012_v22  ;;  %v14060_v22 = vpack.c.bf16 %v10982_v11, %v10973_v20  ;;  %v4677_v50 = vunpack.c.l.b16 %v4128_v14  ;;  %v14062_v20 = vld [vmem:[#allocation68_spill] sm:$0xff] }
 0x6c9   : > { %v3805_v55 = vpop.f32.mrf.mxu3  ;;  %v11190_v11 = vadd.f32 %v11186_v16, %v14062_v20  ;;  %v671_v14 = vcvt.s32.f32 %v543_v19  ;;  %p9145_p12 = pnand %p9144_p11, %p9277_p5 }
 0x6ca   : > { %v3806_v53 = vadd.f32 %v3805_v55, %v11164_v46  ;;  %3461 = vmatmul.bf16.gmra.mxu2 %v11175_v3  ;;  %v14064_v55 = vld [vmem:[#allocation69_spill] sm:$0xff]  ;;  %v14087_v46 = vld [vmem:[#allocation46_spill] sm:$0xff] }
 0x6cb   : > { %v11179_v33 = vpop.f32.mrf.mxu1  ;;  %14063 = vst [vmem:[#allocation63_spill] sm:$0xff] %v11190_v11  ;;  %v11280_v48 = vadd.f32 %v11186_v16, %v14087_v46  ;;  %p9146_p13 = pneg %p9145_p12 }
 0x6cc   : > { %v4001_v1 = vmax.f32 %v3806_v53, 0.0  ;;  %4616 = vmatpush.bf16.msra.mxu1 %v10990_v17  ;;  %v11198_v53 = vadd.f32 %v11186_v16, %v14064_v55  ;;  %v14067_v55 = vpack.c.bf16 %v11004_v58, %v10997_v24  ;;  %v545_v58 = vunpack.c.2.s8 %v418_v47 }
 0x6cd   : > { %14088 = vst [vmem:[#allocation46_spill] sm:$0xff] %v11280_v48 }
 0x6ce   : > { %v4129_v41 = vpack.c.bf16 %v4001_v1, %v4001_v1  ;;  %3847 = vmatmul.bf16.gmra.mxu3 %v14060_v22  ;;  %14065 = vst [vmem:[#allocation64_spill] sm:$0xff] %v11198_v53  ;;  %v672_v1 = vcvt.s32.f32 %v544_v37 }
 0x6d0   : > { %v4678_v45 = vunpack.c.l.b16 %v4129_v41  ;;  %4617 = vmatpush.bf16.msra.mxu1 %v10964_v32  ;;  %v799_v41 = vpack.c.bf16 %v671_v14, %v671_v14  ;;  %v800_v22 = vpack.c.bf16 %v672_v1, %v672_v1  ;;  %v14069_v1 = vld [vmem:[#allocation70_spill] sm:$0xff] }
 0x6d1   : > { %v3808_v62 = vpop.f32.mrf.mxu3 }
 0x6d2   : > { %v11192_v44 = vpack.c.b16 %v4678_v45, %v4677_v50  ;;  %v3809_v32 = vadd.f32 %v3808_v62, %v11190_v11  ;;  %v14066_v50 = vld [vmem:[#allocation94_spill] sm:$0xff]  ;;  %v3360_v20 = vunpack.c.l.b16 %v799_v41  ;;  %v3361_v17 = vunpack.c.l.b16 %v800_v22  ;;  %v14071_v22 = vld [vmem:[#allocation71_spill] sm:$0xff] }
 0x6d3   : > { %v11200_v56 = vpop.f32.mrf.mxu1 }
 0x6d4   : > { %v4002_v21 = vmax.f32 %v3809_v32, 0.0  ;;  %v11207_v32 = vpack.c.b16 %v3361_v17, %v3360_v20  ;;  %v546_v17 = vunpack.c.3.s8 %v418_v47  ;;  %v673_v20 = vcvt.s32.f32 %v545_v58 }
 0x6d6   : > { %4439 = vmatmul.bf16.gmra.mxu1 %v14066_v50  ;;  %v4130_v45 = vpack.c.bf16 %v4002_v21, %v4002_v21  ;;  %14068 = vst [vmem:[#allocation68_spill] sm:$0xff] %v11207_v32 }
 0x6d8   : > { %v4679_v19 = vunpack.c.l.b16 %v4130_v45 }
 0x6d9   : > { %v3810_v23 = vpop.f32.mrf.mxu3 }
 0x6da   : > { %v3811_v60 = vadd.f32 %v3810_v23, %v11198_v53  ;;  %3466 = vmatmul.bf16.gmra.mxu2 %v11207_v32  ;;  %v14083_v53 = vld [vmem:[#allocation102_spill] sm:$0xff] }
 0x6db   : > { %v11210_v23 = vpop.f32.mrf.mxu1 }
 0x6dc   : > { %v4003_v62 = vmax.f32 %v3811_v60, 0.0  ;;  %v11216_v60 = vadd.f32 %v11186_v16, %v14069_v1  ;;  %v801_v1 = vpack.c.bf16 %v673_v20, %v673_v20 }
 0x6de   : > { %v4131_v59 = vpack.c.bf16 %v4003_v62, %v4003_v62  ;;  %3852 = vmatmul.bf16.gmra.mxu3 %v14067_v55  ;;  %14070 = vst [vmem:[#allocation69_spill] sm:$0xff] %v11216_v60  ;;  %v674_v55 = vcvt.s32.f32 %v546_v17  ;;  %v3362_v7 = vunpack.c.l.b16 %v801_v1  ;;  %v14076_v1 = vld [vmem:[#allocation100_spill] sm:$0xff] }
 0x6e0   : > { %v4680_v37 = vunpack.c.l.b16 %v4131_v59  ;;  %v11223_v59 = vadd.f32 %v11186_v16, %v14071_v22  ;;  %v802_v54 = vpack.c.bf16 %v674_v55, %v674_v55  ;;  %v14074_v22 = vpack.c.bf16 %v11026_v40, %v11019_v36 }
 0x6e1   : > { %v3813_v14 = vpop.f32.mrf.mxu3  ;;  %v14077_v36 = vpack.c.bf16 %v11042_v25, %v11034_v15  ;;  %v14081_v25 = vld [vmem:[#allocation140_spill] sm:$0xff] }
 0x6e2   : > { %v11218_v41 = vpack.c.b16 %v4680_v37, %v4679_v19  ;;  %v3814_v24 = vadd.f32 %v3813_v14, %v11216_v60  ;;  %14072 = vst [vmem:[#allocation70_spill] sm:$0xff] %v11223_v59  ;;  %v14073_v19 = vld [vmem:[#allocation97_spill] sm:$0xff]  ;;  %v3363_v47 = vunpack.c.l.b16 %v802_v54 }
 0x6e3   : > { %v11225_v62 = vpop.f32.mrf.mxu1 }
 0x6e4   : > { %v4004_v45 = vmax.f32 %v3814_v24, 0.0  ;;  %v11232_v24 = vpack.c.b16 %v3363_v47, %v3362_v7  ;;  %v14078_v7 = vld [vmem:[#allocation117_spill] sm:$0xff] }
 0x6e6   : > { %4444 = vmatmul.bf16.gmra.mxu1 %v14073_v19  ;;  %v4132_v37 = vpack.c.bf16 %v4004_v45, %v4004_v45  ;;  %14075 = vst [vmem:[#allocation71_spill] sm:$0xff] %v11232_v24  ;;  %v14080_v45 = vpack.c.bf16 %v11056_v30, %v11048_v2 }
 0x6e8   : > { %v4681_v58 = vunpack.c.l.b16 %v4132_v37 }
 0x6e9   : > { %v3815_v21 = vpop.f32.mrf.mxu3 }
 0x6ea   : > { %v3816_v50 = vadd.f32 %v3815_v21, %v11223_v59  ;;  %3471 = vmatmul.bf16.gmra.mxu2 %v11232_v24  ;;  %v14093_v24 = vld [vmem:[#allocation47_spill] sm:$0xff] }
 0x6eb   : > { %v11235_v21 = vpop.f32.mrf.mxu1  ;;  %v11294_v32 = vadd.f32 %v11186_v16, %v14093_v24 }
 0x6ec   : > { %v4005_v14 = vmax.f32 %v3816_v50, 0.0 }
 0x6ed   : > { %14094 = vst [vmem:[#allocation47_spill] sm:$0xff] %v11294_v32 }
 0x6ee   : > { %v4133_v60 = vpack.c.bf16 %v4005_v14, %v4005_v14  ;;  %3857 = vmatmul.bf16.gmra.mxu3 %v14074_v22  ;;  %v3437_v14 = vpop.f32.mrf.mxu2 }
 0x6f0   : > { %v4682_v17 = vunpack.c.l.b16 %v4133_v60 }
 0x6f1   : > { %v3818_v20 = vpop.f32.mrf.mxu3 }
 0x6f2   : > { %v11239_v50 = vpack.c.b16 %v4682_v17, %v4681_v58  ;;  %v14079_v17 = vld [vmem:[#allocation101_spill] sm:$0xff] }
 0x6f3   : > { %v11241_v54 = vpop.f32.mrf.mxu1 }
 0x6f6   : > { %4449 = vmatmul.bf16.gmra.mxu1 %v14076_v1  ;;  %v3439_v58 = vpop.f32.mrf.mxu2  ;;  %v14095_v1 = vld [vmem:[#allocation61_spill] sm:$0xff] }
 0x6f7   : > { %v11298_v46 = vadd.f32 %v11186_v16, %v14095_v1  ;;  %v14099_v1 = vld [vmem:[#allocation66_spill] sm:$0xff] }
 0x6f9   : > { %v3820_v55 = vpop.f32.mrf.mxu3  ;;  %14096 = vst [vmem:[#allocation61_spill] sm:$0xff] %v11298_v46 }
 0x6fa   : > { %4327 = vmatmul.bf16.vlgmr.msrb.gmra.mxu2 %v14078_v7  ;;  %v14101_v7 = vld [vmem:[#allocation65_spill] sm:$0xff] }
 0x6fb   : > { %v11247_v40 = vpop.f32.mrf.mxu1 }
 0x6fe   : > { %3862 = vmatmul.bf16.gmra.mxu3 %v14077_v36 }
 0x701   : > { %v3823_v60 = vpop.f32.mrf.mxu3 }
 0x703   : > { %v11252_v47 = vpop.f32.mrf.mxu1 }
 0x705   : > { %v11263_v37 = vpop.f32.mrf.mxu2 }
 0x706   : > { %4454 = vmatmul.bf16.gmra.mxu1 %v14079_v17  ;;  %v14084_v17 = vpack.c.bf16 %v11070_v28, %v11062_v34  ;;  %v14091_v28 = vld [vmem:[#allocation62_spill] sm:$0xff] }
 0x709   : > { %v3825_v22 = vpop.f32.mrf.mxu3 }
 0x70a   : > { %4332 = vmatmul.bf16.gmra.mxu2 %v14081_v25  ;;  %v11313_v25 = vadd.f32 %v11186_v16, %v14099_v1 }
 0x70b   : > { %v11258_v15 = vpop.f32.mrf.mxu1 }
 0x70c   : > { %14100 = vst [vmem:[#allocation66_spill] sm:$0xff] %v11313_v25 }
 0x70d   : > { %v11271_v30 = vpop.f32.mrf.mxu2 }
 0x70e   : > { %3867 = vmatmul.bf16.gmra.mxu3 %v14080_v45  ;;  %v14086_v45 = vld [vmem:[#allocation142_spill] sm:$0xff] }
 0x711   : > { %v3828_v36 = vpop.f32.mrf.mxu3 }
 0x713   : > { %v11265_v19 = vpop.f32.mrf.mxu1 }
 0x714   : > { %14082 = vst [vmem:[#allocation197_spill] sm:$0xff] %v11265_v19  ;;  %v11319_v19 = vadd.f32 %v11186_v16, %v14101_v7 }
 0x716   : > { %4459 = vmatmul.bf16.gmra.mxu1 %v14083_v53  ;;  %v11284_v53 = vadd.f32 %v11186_v16, %v14089_v63  ;;  %14102 = vst [vmem:[#allocation65_spill] sm:$0xff] %v11319_v19 }
 0x717   : > { %v11307_v43 = vpop.f32.mrf.mxu2 }
 0x718   : > { %14090 = vst [vmem:[#allocation67_spill] sm:$0xff] %v11284_v53 }
 0x719   : > { %v3830_v59 = vpop.f32.mrf.mxu3 }
 0x71a   : > { %4337 = vmatmul.bf16.gmra.mxu2 %v14086_v45  ;;  %v3831_v5 = vadd.f32 %v3830_v59, %v11284_v53  ;;  %v3826_v59 = vadd.f32 %v3825_v22, %v11298_v46  ;;  %v3533_v45 = vpack.c.bf16 %v3439_v58, %v3437_v14  ;;  %v3819_v58 = vadd.f32 %v3818_v20, %v11319_v19 }
 0x71b   : > { %v11273_v2 = vpop.f32.mrf.mxu1 }
 0x71c   : > { %14085 = vst [vmem:[#allocation198_spill] sm:$0xff] %v11273_v2  ;;  %v4011_v24 = vmax.f32 %v3831_v5, 0.0  ;;  %v3821_v5 = vadd.f32 %v3820_v55, %v11313_v25  ;;  %v4009_v22 = vmax.f32 %v3826_v59, 0.0 }
 0x71e   : > { %3872 = vmatmul.bf16.gmra.mxu3 %v14084_v17  ;;  %v11289_v17 = vadd.f32 %v11186_v16, %v14091_v28 }
 0x720   : > { %14092 = vst [vmem:[#allocation62_spill] sm:$0xff] %v11289_v17  ;;  %v3829_v3 = vadd.f32 %v3828_v36, %v11289_v17 }
 0x721   : > { %v3833_v11 = vpop.f32.mrf.mxu3 }
 0x722   : > { %v3834_v34 = vadd.f32 %v3833_v11, %v11280_v48  ;;  %v14097_v11 = vld [vmem:[#allocation60_spill] sm:$0xff] }
 0x723   : > { %v11301_v4 = vpop.f32.mrf.mxu1  ;;  %v11305_v48 = vadd.f32 %v11186_v16, %v14097_v11 }
 0x724   : > { %v4012_v63 = vmax.f32 %v3834_v34, 0.0  ;;  %v4010_v34 = vmax.f32 %v3829_v3, 0.0  ;;  %v14103_v3 = vld [vmem:[#allocation144_spill] sm:$0xff] }
 0x725   : > { %14098 = vst [vmem:[#allocation60_spill] sm:$0xff] %v11305_v48  ;;  %v3824_v36 = vadd.f32 %v3823_v60, %v11305_v48 }
 0x726   : > { %4618 = vmatmul.bf16.vlgmr.msra.gmra.mxu1 %v10595_v9  ;;  %v4140_v11 = vpack.c.bf16 %v4012_v63, %v4012_v63 }
 0x727   : > { %v4008_v1 = vmax.f32 %v3824_v36, 0.0  ;;  %v4006_v36 = vmax.f32 %v3819_v58, 0.0 }
 0x728   : > { %v4689_v9 = vunpack.c.l.b16 %v4140_v11 }
 0x729   : > { %v3835_v28 = vpop.f32.mrf.mxu3  ;;  %v4134_v2 = vpack.c.bf16 %v4006_v36, %v4006_v36 }
 0x72a   : > { %v3836_v53 = vadd.f32 %v3835_v28, %v11294_v32  ;;  %v4139_v28 = vpack.c.bf16 %v4011_v24, %v4011_v24  ;;  %v4138_v32 = vpack.c.bf16 %v4010_v34, %v4010_v34  ;;  %4342 = vmatmul.bf16.gmra.mxu2 %v14103_v3  ;;  %v3449_v24 = vpop.f32.mrf.mxu2  ;;  %v4136_v34 = vpack.c.bf16 %v4008_v1, %v4008_v1 }
 0x72b   : > { %v11323_v60 = vpop.f32.mrf.mxu1  ;;  %v4683_v1 = vunpack.c.l.b16 %v4134_v2 }
 0x72c   : > { %v4013_v17 = vmax.f32 %v3836_v53, 0.0  ;;  %v14104_v53 = vld [vmem:[#allocation35_spill] sm:$0xff]  ;;  %v4688_v59 = vunpack.c.l.b16 %v4139_v28  ;;  %v4687_v11 = vunpack.c.l.b16 %v4138_v32  ;;  %v4685_v55 = vunpack.c.l.b16 %v4136_v34 }
 0x72d   : > { %v11328_v7 = vadd.f32 %v11186_v16, %v14104_v53  ;;  %v14106_v53 = vld [vmem:[#allocation39_spill] sm:$0xff]  ;;  %v3534_v28 = vpack.c.bf16 %v11271_v30, %v11263_v37  ;;  %v14119_v37 = vld [vmem:[#allocation53_spill] sm:$0xff] }
 0x72e   : > { %v4141_v14 = vpack.c.bf16 %v4013_v17, %v4013_v17  ;;  %3877 = vmatmul.bf16.gmra.mxu3 %v3533_v45  ;;  %v4007_v17 = vmax.f32 %v3821_v5, 0.0  ;;  %v4137_v45 = vpack.c.bf16 %v4009_v22, %v4009_v22  ;;  %v4697_v48 = vpack.c.b16 %v4688_v59, %v4687_v11  ;;  %v14109_v30 = vld [vmem:[#allocation43_spill] sm:$0xff] }
 0x72f   : > { %14105 = vst [vmem:[#allocation35_spill] sm:$0xff] %v11328_v7  ;;  %v11335_v3 = vadd.f32 %v11186_v16, %v14106_v53  ;;  %v11350_v2 = vadd.f32 %v11186_v16, %v14109_v30  ;;  %v14111_v53 = vld [vmem:[#allocation45_spill] sm:$0xff] }
 0x730   : > { %v4690_v46 = vunpack.c.l.b16 %v4141_v14  ;;  %v4135_v19 = vpack.c.bf16 %v4007_v17, %v4007_v17  ;;  %v4686_v25 = vunpack.c.l.b16 %v4137_v45 }
 0x731   : > { %v3838_v63 = vpop.f32.mrf.mxu3  ;;  %14107 = vst [vmem:[#allocation39_spill] sm:$0xff] %v11335_v3 }
 0x732   : > { %v4698_v20 = vpack.c.b16 %v4690_v46, %v4689_v9  ;;  %v3839_v14 = vadd.f32 %v3838_v63, %v11328_v7  ;;  %v4684_v46 = vunpack.c.l.b16 %v4135_v19  ;;  %v4696_v58 = vpack.c.b16 %v4686_v25, %v4685_v55  ;;  %v3452_v45 = vpop.f32.mrf.mxu2  ;;  %v14108_v25 = vld [vmem:[#allocation145_spill] sm:$0xff]  ;;  %14110 = vst [vmem:[#allocation43_spill] sm:$0xff] %v11350_v2  ;;  %v14134_v7 = vld [vmem:[#allocation87_spill] sm:$0xff] }
 0x733   : > { %v11337_v22 = vpop.f32.mrf.mxu1 }
 0x734   : > { %4707 = vmatpush.bf16.msrb.mxu2 %v4698_v20  ;;  %v4014_v5 = vmax.f32 %v3839_v14, 0.0 }
 0x736   : > { %4623 = vmatmul.bf16.gmra.mxu1 %v10604_v13  ;;  %v4142_v63 = vpack.c.bf16 %v4014_v5, %v4014_v5  ;;  %v11358_v5 = vadd.f32 %v11186_v16, %v14111_v53 }
 0x738   : > { %4708 = vmatpush.bf16.msrb.mxu2 %v4697_v48  ;;  %v4695_v48 = vpack.c.b16 %v4684_v46, %v4683_v1  ;;  %v4772_v20 = vunpack.c.l.b16 %v4142_v63  ;;  %14112 = vst [vmem:[#allocation45_spill] sm:$0xff] %v11358_v5 }
 0x739   : > { %v3840_v9 = vpop.f32.mrf.mxu3 }
 0x73a   : > { %v3841_v32 = vadd.f32 %v3840_v9, %v11335_v3  ;;  %4347 = vmatmul.bf16.gmra.mxu2 %v14108_v25  ;;  %v3454_v14 = vpop.f32.mrf.mxu2  ;;  %v14130_v3 = vld [vmem:[#allocation88_spill] sm:$0xff] }
 0x73b   : > { %v11343_v19 = vpop.f32.mrf.mxu1 }
 0x73c   : > { %v4015_v17 = vmax.f32 %v3841_v32, 0.0  ;;  %4709 = vmatpush.bf16.msrb.mxu2 %v4696_v58  ;;  %v3535_v58 = vpack.c.bf16 %v3449_v24, %v11307_v43  ;;  %v14113_v43 = vld [vmem:[#allocation146_spill] sm:$0xff]  ;;  %v14114_v24 = vld [vmem:[#allocation49_spill] sm:$0xff] }
 0x73e   : > { %v4143_v59 = vpack.c.bf16 %v4015_v17, %v4015_v17  ;;  %3882 = vmatmul.bf16.gmra.mxu3 %v3534_v28 }
 0x740   : > { %v4773_v36 = vunpack.c.l.b16 %v4143_v59  ;;  %4710 = vmatpush.bf16.msrb.mxu2 %v4695_v48 }
 0x741   : > { %v3843_v34 = vpop.f32.mrf.mxu3 }
 0x742   : > { %v11352_v55 = vpack.c.b16 %v4773_v36, %v4772_v20  ;;  %v3844_v11 = vadd.f32 %v3843_v34, %v11350_v2  ;;  %v3457_v20 = vpop.f32.mrf.mxu2  ;;  %v11375_v34 = vadd.f32 %v11186_v16, %v14114_v24  ;;  %v14118_v36 = vld [vmem:[#allocation147_spill] sm:$0xff] }
 0x743   : > { %v11361_v46 = vpop.f32.mrf.mxu1 }
 0x744   : > { %4711 = vmatpush.bf16.msrb.mxu2 %v11239_v50  ;;  %v4016_v9 = vmax.f32 %v3844_v11, 0.0  ;;  %14115 = vst [vmem:[#allocation49_spill] sm:$0xff] %v11375_v34  ;;  %v14116_v11 = vld [vmem:[#allocation51_spill] sm:$0xff] }
 0x746   : > { %4628 = vmatmul.bf16.gmra.mxu1 %v10610_v18  ;;  %v4144_v1 = vpack.c.bf16 %v4016_v9, %v4016_v9 }
 0x748   : > { %4712 = vmatpush.bf16.msrb.mxu2 %v11218_v41  ;;  %v4774_v17 = vunpack.c.l.b16 %v4144_v1 }
 0x749   : > { %v3845_v32 = vpop.f32.mrf.mxu3 }
 0x74a   : > { %v3846_v28 = vadd.f32 %v3845_v32, %v11358_v5  ;;  %4352 = vmatmul.bf16.gmra.mxu2 %v14113_v43  ;;  %v3459_v1 = vpop.f32.mrf.mxu2 }
 0x74b   : > { %v11368_v41 = vpop.f32.mrf.mxu1 }
 0x74c   : > { %v4017_v63 = vmax.f32 %v3846_v28, 0.0  ;;  %4713 = vmatpush.bf16.msrb.mxu2 %v11192_v44 }
 0x74e   : > { %v4145_v50 = vpack.c.bf16 %v4017_v63, %v4017_v63  ;;  %3887 = vmatmul.bf16.gmra.mxu3 %v3535_v58  ;;  %v3536_v58 = vpack.c.bf16 %v3454_v14, %v3452_v45  ;;  %v11395_v45 = vadd.f32 %v11186_v16, %v14119_v37 }
 0x750   : > { %v4775_v59 = vunpack.c.l.b16 %v4145_v50  ;;  %4714 = vmatpush.bf16.msrb.mxu2 %v11158_v39  ;;  %v11382_v39 = vadd.f32 %v11186_v16, %v14116_v11  ;;  %14120 = vst [vmem:[#allocation53_spill] sm:$0xff] %v11395_v45 }
 0x751   : > { %v3848_v48 = vpop.f32.mrf.mxu3 }
 0x752   : > { %v11377_v44 = vpack.c.b16 %v4775_v59, %v4774_v17  ;;  %v3849_v30 = vadd.f32 %v3848_v48, %v11375_v34  ;;  %14117 = vst [vmem:[#allocation51_spill] sm:$0xff] %v11382_v39 }
 0x753   : > { %v11384_v9 = vpop.f32.mrf.mxu1 }
 0x754   : > { %v4018_v53 = vmax.f32 %v3849_v30, 0.0 }
 0x756   : > { %4633 = vmatmul.bf16.gmra.mxu1 %v10633_v31  ;;  %v4146_v63 = vpack.c.bf16 %v4018_v53, %v4018_v53  ;;  %v3537_v31 = vpack.c.bf16 %v3459_v1, %v3457_v20 }
 0x758   : > { %v4776_v59 = vunpack.c.l.b16 %v4146_v63 }
 0x759   : > { %v3850_v32 = vpop.f32.mrf.mxu3 }
 0x75a   : > { %v3851_v28 = vadd.f32 %v3850_v32, %v11382_v39  ;;  %4357 = vmatmul.bf16.gmra.mxu2 %v14118_v36  ;;  %v3462_v32 = vpop.f32.mrf.mxu2  ;;  %v14123_v39 = vld [vmem:[#allocation148_spill] sm:$0xff]  ;;  %v14141_v36 = vld [vmem:[#allocation57_spill] sm:$0xff] }
 0x75b   : > { %v11388_v24 = vpop.f32.mrf.mxu1  ;;  %v11467_v43 = vadd.f32 %v11186_v16, %v14141_v36 }
 0x75c   : > { %v4019_v50 = vmax.f32 %v3851_v28, 0.0  ;;  %v14121_v28 = vld [vmem:[#allocation55_spill] sm:$0xff] }
 0x75d   : > { %14142 = vst [vmem:[#allocation57_spill] sm:$0xff] %v11467_v43 }
 0x75e   : > { %v4147_v17 = vpack.c.bf16 %v4019_v50, %v4019_v50  ;;  %3892 = vmatmul.bf16.gmra.mxu3 %v3536_v58  ;;  %v11402_v58 = vadd.f32 %v11186_v16, %v14121_v28 }
 0x760   : > { %v4777_v48 = vunpack.c.l.b16 %v4147_v17  ;;  %14122 = vst [vmem:[#allocation55_spill] sm:$0xff] %v11402_v58 }
 0x761   : > { %v3853_v11 = vpop.f32.mrf.mxu3 }
 0x762   : > { %v11397_v14 = vpack.c.b16 %v4777_v48, %v4776_v59  ;;  %v3854_v53 = vadd.f32 %v3853_v11, %v11395_v45  ;;  %v3464_v48 = vpop.f32.mrf.mxu2 }
 0x763   : > { %v11404_v50 = vpop.f32.mrf.mxu1  ;;  %v3538_v1 = vpack.c.bf16 %v3464_v48, %v3462_v32 }
 0x764   : > { %v4020_v63 = vmax.f32 %v3854_v53, 0.0 }
 0x766   : > { %4638 = vmatmul.bf16.gmra.mxu1 %v10673_v6  ;;  %v4148_v37 = vpack.c.bf16 %v4020_v63, %v4020_v63 }
 0x768   : > { %v4778_v11 = vunpack.c.l.b16 %v4148_v37 }
 0x769   : > { %v3855_v17 = vpop.f32.mrf.mxu3 }
 0x76a   : > { %v3856_v30 = vadd.f32 %v3855_v17, %v11402_v58  ;;  %4362 = vmatmul.bf16.gmra.mxu2 %v14123_v39  ;;  %v3467_v20 = vpop.f32.mrf.mxu2 }
 0x76b   : > { %v11408_v45 = vpop.f32.mrf.mxu1 }
 0x76c   : > { %v4021_v18 = vmax.f32 %v3856_v30, 0.0  ;;  %v14124_v30 = vld [vmem:[#allocation164_spill] sm:$0xff] }
 0x76e   : > { %v4149_v59 = vpack.c.bf16 %v4021_v18, %v4021_v18  ;;  %3897 = vmatmul.bf16.gmra.mxu3 %v3537_v31 }
 0x770   : > { %v4779_v13 = vunpack.c.l.b16 %v4149_v59 }
 0x771   : > { %v3858_v28 = vpop.f32.mrf.mxu3 }
 0x772   : > { %v11411_v53 = vpack.c.b16 %v4779_v13, %v4778_v11  ;;  %v3469_v63 = vpop.f32.mrf.mxu2 }
 0x773   : > { %v11413_v34 = vpop.f32.mrf.mxu1  ;;  %v3539_v59 = vpack.c.bf16 %v3469_v63, %v3467_v20  ;;  %v14126_v63 = vld [vmem:[#allocation86_spill] sm:$0xff] }
 0x776   : > { %4643 = vmatmul.bf16.gmra.mxu1 %v10691_v29 }
 0x779   : > { %v3860_v17 = vpop.f32.mrf.mxu3 }
 0x77a   : > { %4521 = vmatmul.bf16.vlgmr.msra.gmra.mxu2 %v14124_v30  ;;  %v3472_v13 = vpop.f32.mrf.mxu2  ;;  %v14139_v30 = vld [vmem:[#allocation59_spill] sm:$0xff] }
 0x77b   : > { %v11416_v18 = vpop.f32.mrf.mxu1  ;;  %v11462_v39 = vadd.f32 %v11186_v16, %v14139_v30 }
 0x77d   : > { %14140 = vst [vmem:[#allocation59_spill] sm:$0xff] %v11462_v39 }
 0x77e   : > { %3902 = vmatmul.bf16.gmra.mxu3 %v3538_v1 }
 0x781   : > { %v3863_v31 = vpop.f32.mrf.mxu3 }
 0x782   : > { %v3474_v48 = vpop.f32.mrf.mxu2 }
 0x783   : > { %v11419_v6 = vpop.f32.mrf.mxu1  ;;  %v3540_v29 = vpack.c.bf16 %v3474_v48, %v3472_v13  ;;  %v11440_v13 = vadd.f32 %v11186_v16, %v14130_v3  ;;  %v14132_v48 = vld [vmem:[#allocation91_spill] sm:$0xff] }
 0x785   : > { %14131 = vst [vmem:[#allocation88_spill] sm:$0xff] %v11440_v13 }
 0x786   : > { %4648 = vmatmul.bf16.gmra.mxu1 %v10711_v51  ;;  %v11431_v51 = vadd.f32 %v11186_v16, %v14126_v63  ;;  %v11449_v63 = vadd.f32 %v11186_v16, %v14134_v7 }
 0x788   : > { %14127 = vst [vmem:[#allocation86_spill] sm:$0xff] %v11431_v51 }
 0x789   : > { %v3865_v37 = vpop.f32.mrf.mxu3  ;;  %14135 = vst [vmem:[#allocation87_spill] sm:$0xff] %v11449_v63 }
 0x78a   : > { %4526 = vmatmul.bf16.gmra.mxu2 %v10464_v0 }
 0x78b   : > { %v11423_v32 = vpop.f32.mrf.mxu1 }
 0x78e   : > { %3907 = vmatmul.bf16.gmra.mxu3 %v3539_v59  ;;  %v14128_v59 = vld [vmem:[#allocation89_spill] sm:$0xff] }
 0x78f   : > { %v11435_v5 = vadd.f32 %v11186_v16, %v14128_v59 }
 0x791   : > { %v3868_v11 = vpop.f32.mrf.mxu3  ;;  %14129 = vst [vmem:[#allocation89_spill] sm:$0xff] %v11435_v5 }
 0x793   : > { %v11426_v58 = vpop.f32.mrf.mxu1 }
 0x794   : > { %14125 = vst [vmem:[#allocation199_spill] sm:$0xff] %v11426_v58 }
 0x796   : > { %4653 = vmatmul.bf16.gmra.mxu1 %v10726_v10  ;;  %v11445_v10 = vadd.f32 %v11186_v16, %v14132_v48 }
 0x798   : > { %14133 = vst [vmem:[#allocation91_spill] sm:$0xff] %v11445_v10 }
 0x799   : > { %v3870_v1 = vpop.f32.mrf.mxu3 }
 0x79a   : > { %4531 = vmatmul.bf16.gmra.mxu2 %v10468_v61  ;;  %v3869_v61 = vadd.f32 %v3868_v11, %v11440_v13 }
 0x79b   : > { %v11452_v0 = vpop.f32.mrf.mxu1 }
 0x79c   : > { %14136 = vst [vmem:[#allocation200_spill] sm:$0xff] %v11452_v0  ;;  %v4026_v11 = vmax.f32 %v3869_v61, 0.0 }
 0x79e   : > { %3912 = vmatmul.bf16.gmra.mxu3 %v3540_v29  ;;  %v3871_v29 = vadd.f32 %v3870_v1, %v11435_v5  ;;  %v3866_v1 = vadd.f32 %v3865_v37, %v11445_v10  ;;  %v4154_v10 = vpack.c.bf16 %v4026_v11, %v4026_v11 }
 0x7a0   : > { %v4027_v5 = vmax.f32 %v3871_v29, 0.0  ;;  %v4025_v25 = vmax.f32 %v3866_v1, 0.0 }
 0x7a1   : > { %v3873_v20 = vpop.f32.mrf.mxu3 }
 0x7a2   : > { %v3874_v2 = vadd.f32 %v3873_v20, %v11431_v51  ;;  %v14137_v51 = vld [vmem:[#allocation90_spill] sm:$0xff]  ;;  %v4155_v37 = vpack.c.bf16 %v4027_v5, %v4027_v5  ;;  %v4784_v5 = vunpack.c.l.b16 %v4154_v10 }
 0x7a3   : > { %v11456_v3 = vadd.f32 %v11186_v16, %v14137_v51  ;;  %v3861_v51 = vadd.f32 %v3860_v17, %v11462_v39 }
 0x7a4   : > { %v4028_v59 = vmax.f32 %v3874_v2, 0.0 }
 0x7a5   : > { %14138 = vst [vmem:[#allocation90_spill] sm:$0xff] %v11456_v3  ;;  %v3864_v7 = vadd.f32 %v3863_v31, %v11456_v3  ;;  %v4023_v61 = vmax.f32 %v3861_v51, 0.0  ;;  %v4153_v31 = vpack.c.bf16 %v4025_v25, %v4025_v25 }
 0x7a6   : > { %v4156_v2 = vpack.c.bf16 %v4028_v59, %v4028_v59  ;;  %v4785_v59 = vunpack.c.l.b16 %v4155_v37 }
 0x7a8   : > { %v4786_v30 = vunpack.c.l.b16 %v4156_v2 }
 0x7a9   : > { %v3875_v20 = vpop.f32.mrf.mxu3 }
 0x7aa   : > { %v3876_v48 = vadd.f32 %v3875_v20, %v11449_v63  ;;  %v3859_v20 = vadd.f32 %v3858_v28, %v11467_v43  ;;  %v4024_v63 = vmax.f32 %v3864_v7, 0.0  ;;  %4536 = vmatmul.bf16.gmra.mxu2 %v10507_v57  ;;  %v4783_v28 = vunpack.c.l.b16 %v4153_v31  ;;  %v9113_v31 = vld [vmem:[%s13170_s5 + $0x18] sm:$0xff]  ;;  %v14159_v57 = vld [vmem:[#allocation125_spill] sm:$0xff] }
 0x7ab   : > { %v4794_v7 = vpack.c.b16 %v4785_v59, %v4784_v5  ;;  %v9116_v5 = vld [vmem:[%s13170_s5] sm:$0xff] }
 0x7ac   : > { %v4029_v13 = vmax.f32 %v3876_v48, 0.0  ;;  %v11474_v48 = vpop.f32.mrf.mxu1  ;;  %v4022_v17 = vmax.f32 %v3859_v20, 0.0  ;;  %v4152_v1 = vpack.c.bf16 %v4024_v63, %v4024_v63 }
 0x7ae   : > { %v4157_v29 = vpack.c.bf16 %v4029_v13, %v4029_v13  ;;  %v4151_v13 = vpack.c.bf16 %v4023_v61, %v4023_v61  ;;  %v4150_v11 = vpack.c.bf16 %v4022_v17, %v4022_v17  ;;  %v4782_v2 = vunpack.c.l.b16 %v4152_v1  ;;  %v9115_v1 = vld [vmem:[%s13170_s5 + $0x8] sm:$0xff] }
 0x7b0   : > { %v4787_v0 = vunpack.c.l.b16 %v4157_v29  ;;  %v4781_v43 = vunpack.c.l.b16 %v4151_v13  ;;  %v4793_v39 = vpack.c.b16 %v4783_v28, %v4782_v2  ;;  %v4780_v51 = vunpack.c.l.b16 %v4150_v11 }
 0x7b1   : > { %v11471_v58 = vpop.f32.mrf.mxu3 }
 0x7b2   : > { %v4795_v36 = vpack.c.b16 %v4787_v0, %v4786_v30  ;;  %v4792_v0 = vpack.c.b16 %v4781_v43, %v4780_v51  ;;  %v9109_v43 = vld [vmem:[%s13170_s5 + $0x38] sm:$0xff]  ;;  %v9112_v30 = vld [vmem:[%s13170_s5 + $0x20] sm:$0xff] }
 0x7b4   : > { %4804 = vmatpush.bf16.msrb.mxu1 %v4795_v36  ;;  %v11478_v25 = vpop.f32.mrf.mxu1  ;;  %v9114_v36 = vld [vmem:[%s13170_s5 + $0x10] sm:$0xff] }
 0x7b8   : > { %4805 = vmatpush.bf16.msrb.mxu1 %v4794_v7 }
 0x7b9   : > { %v11476_v29 = vpop.f32.mrf.mxu3 }
 0x7bc   : > { %4806 = vmatpush.bf16.msrb.mxu1 %v4793_v39  ;;  %v11483_v10 = vpop.f32.mrf.mxu1 }
 0x7bd   : > { %14143 = vst [vmem:[#allocation201_spill] sm:$0xff] %v11483_v10  ;;  %v14178_v10 = vld [vmem:[#allocation191_spill] sm:$0xff] }
 0x7c0   : > { %4807 = vmatpush.bf16.msrb.mxu1 %v4792_v0 }
 0x7c1   : > { %v11480_v37 = vpop.f32.mrf.mxu3 }
 0x7c4   : > { %4808 = vmatpush.bf16.msrb.mxu1 %v11411_v53  ;;  %v11490_v20 = vpop.f32.mrf.mxu1 }
 0x7c5   : > { %14144 = vst [vmem:[#allocation202_spill] sm:$0xff] %v11490_v20  ;;  %v14172_v20 = vld [vmem:[#allocation96_spill] sm:$0xff] }
 0x7c8   : > { %4809 = vmatpush.bf16.msrb.mxu1 %v11397_v14  ;;  %v9110_v14 = vld [vmem:[%s13170_s5 + $0x30] sm:$0xff] }
 0x7c9   : > { %v11486_v63 = vpop.f32.mrf.mxu3 }
 0x7cc   : > { %4810 = vmatpush.bf16.msrb.mxu1 %v11377_v44  ;;  %v11506_v44 = vpop.f32.mrf.mxu1 }
 0x7cd   : > { %14145 = vst [vmem:[#allocation203_spill] sm:$0xff] %v11506_v44  ;;  %v14170_v44 = vld [vmem:[#allocation98_spill] sm:$0xff] }
 0x7d0   : > { %4811 = vmatpush.bf16.msrb.mxu1 %v11352_v55  ;;  %v9111_v55 = vld [vmem:[%s13170_s5 + $0x28] sm:$0xff] }
 0x7d1   : > { %v11492_v39 = vpop.f32.mrf.mxu3 }
 0x7d3   : > { %4812 = vmatmul.bf16.vlgmr.msrb.gmra.mxu1 %v10741_v38  ;;  %v14157_v38 = vld [vmem:[#allocation126_spill] sm:$0xff] }
 0x7d4   : > { %5014 = vmatpush.bf16.msra.mxu1 %v9109_v43  ;;  %v11517_v59 = vpop.f32.mrf.mxu1 }
 0x7d5   : > { %14146 = vst [vmem:[#allocation204_spill] sm:$0xff] %v11517_v59 }
 0x7d8   : > { %5015 = vmatpush.bf16.msra.mxu1 %v9110_v14 }
 0x7d9   : > { %v11501_v53 = vpop.f32.mrf.mxu3 }
 0x7dc   : > { %5016 = vmatpush.bf16.msra.mxu1 %v9111_v55  ;;  %v11528_v13 = vpop.f32.mrf.mxu1  ;;  %v14151_v55 = vld [vmem:[#allocation189_spill] sm:$0xff] }
 0x7dd   : > { %14147 = vst [vmem:[#allocation205_spill] sm:$0xff] %v11528_v13  ;;  %v14165_v13 = vld [vmem:[#allocation128_spill] sm:$0xff] }
 0x7e0   : > { %5017 = vmatpush.bf16.msra.mxu1 %v9112_v30 }
 0x7e1   : > { %v11511_v61 = vpop.f32.mrf.mxu3 }
 0x7e3   : > { %4817 = vmatmul.bf16.gmra.mxu1 %v10806_v12  ;;  %v14156_v12 = vld [vmem:[#allocation190_spill] sm:$0xff] }
 0x7e4   : > { %5018 = vmatpush.bf16.msra.mxu1 %v9113_v31  ;;  %v11531_v7 = vpop.f32.mrf.mxu1 }
 0x7e5   : > { %14148 = vst [vmem:[#allocation206_spill] sm:$0xff] %v11531_v7 }
 0x7e8   : > { %5019 = vmatpush.bf16.msra.mxu1 %v9114_v36 }
 0x7e9   : > { %v3895_v17 = vpop.f32.mrf.mxu3 }
 0x7ec   : > { %5020 = vmatpush.bf16.msra.mxu1 %v9115_v1  ;;  %v11533_v51 = vpop.f32.mrf.mxu1 }
 0x7ed   : > { %14149 = vst [vmem:[#allocation207_spill] sm:$0xff] %v11533_v51 }
 0x7f0   : > { %5021 = vmatpush.bf16.msra.mxu1 %v9116_v5  ;;  %v14154_v5 = vld [vmem:[#allocation123_spill] sm:$0xff] }
 0x7f1   : > { %v3898_v28 = vpop.f32.mrf.mxu3 }
 0x7f3   : > { %4822 = vmatmul.bf16.gmra.mxu1 %v10826_v35  ;;  %v11545_v35 = vadd.f32 %v11186_v16, %v14154_v5  ;;  %v14163_v5 = vld [vmem:[#allocation124_spill] sm:$0xff] }
 0x7f4   : > { %v11536_v43 = vpop.f32.mrf.mxu1  ;;  %v11564_v51 = vadd.f32 %v11186_v16, %v14163_v5 }
 0x7f5   : > { %14150 = vst [vmem:[#allocation208_spill] sm:$0xff] %v11536_v43 }
 0x7f6   : > { %14155 = vst [vmem:[#allocation123_spill] sm:$0xff] %v11545_v35 }
 0x7f7   : > { %14164 = vst [vmem:[#allocation124_spill] sm:$0xff] %v11564_v51 }
 0x7f9   : > { %v3900_v11 = vpop.f32.mrf.mxu3 }
 0x7fc   : > { %v11539_v30 = vpop.f32.mrf.mxu1 }
 0x7fd   : > { %14152 = vst [vmem:[#allocation209_spill] sm:$0xff] %v11539_v30 }
 0x801   : > { %v3903_v2 = vpop.f32.mrf.mxu3 }
 0x803   : > { %4827 = vmatmul.bf16.gmra.mxu1 %v10844_v27  ;;  %v11550_v27 = vadd.f32 %v11186_v16, %v14157_v38 }
 0x804   : > { %v11541_v36 = vpop.f32.mrf.mxu1 }
 0x805   : > { %14153 = vst [vmem:[#allocation210_spill] sm:$0xff] %v11541_v36  ;;  %v14161_v36 = vld [vmem:[#allocation129_spill] sm:$0xff] }
 0x806   : > { %14158 = vst [vmem:[#allocation126_spill] sm:$0xff] %v11550_v27  ;;  %v11560_v43 = vadd.f32 %v11186_v16, %v14161_v36 }
 0x808   : > { %14162 = vst [vmem:[#allocation129_spill] sm:$0xff] %v11560_v43 }
 0x809   : > { %v3905_v0 = vpop.f32.mrf.mxu3 }
 0x811   : > { %v3908_v14 = vpop.f32.mrf.mxu3 }
 0x813   : > { %4832 = vmatmul.bf16.gmra.mxu1 %v14151_v55  ;;  %v11555_v55 = vadd.f32 %v11186_v16, %v14159_v57  ;;  %v3906_v57 = vadd.f32 %v3905_v0, %v11560_v43 }
 0x815   : > { %14160 = vst [vmem:[#allocation125_spill] sm:$0xff] %v11555_v55 }
 0x819   : > { %v3910_v31 = vpop.f32.mrf.mxu3 }
 0x81a   : > { %v3911_v30 = vadd.f32 %v3910_v31, %v11550_v27  ;;  %v11572_v31 = vpop.f32.mrf.mxu1  ;;  %v14168_v27 = vld [vmem:[#allocation99_spill] sm:$0xff] }
 0x81b   : > { %14167 = vst [vmem:[#allocation211_spill] sm:$0xff] %v11572_v31  ;;  %v11577_v59 = vadd.f32 %v11186_v16, %v14168_v27 }
 0x81d   : > { %14169 = vst [vmem:[#allocation99_spill] sm:$0xff] %v11577_v59  ;;  %v3901_v0 = vadd.f32 %v3900_v11, %v11577_v59  ;;  %v14176_v59 = vld [vmem:[#allocation93_spill] sm:$0xff] }
 0x81f   : > { %v4039_v11 = vmax.f32 %v3901_v0, 0.0 }
 0x821   : > { %v3913_v1 = vpop.f32.mrf.mxu3 }
 0x822   : > { %v3914_v3 = vadd.f32 %v3913_v1, %v11545_v35  ;;  %v11569_v1 = vadd.f32 %v11186_v16, %v14165_v13  ;;  %v4043_v35 = vmax.f32 %v3911_v30, 0.0  ;;  %v11582_v13 = vadd.f32 %v11186_v16, %v14170_v44 }
 0x823   : > { %4837 = vmatmul.bf16.gmra.mxu1 %v14156_v12  ;;  %v3909_v12 = vadd.f32 %v3908_v14, %v11555_v55  ;;  %v4041_v30 = vmax.f32 %v3906_v57, 0.0 }
 0x824   : > { %v4044_v38 = vmax.f32 %v3914_v3, 0.0  ;;  %14166 = vst [vmem:[#allocation128_spill] sm:$0xff] %v11569_v1  ;;  %v3904_v5 = vadd.f32 %v3903_v2, %v11569_v1  ;;  %v4171_v43 = vpack.c.bf16 %v4043_v35, %v4043_v35  ;;  %v3899_v27 = vadd.f32 %v3898_v28, %v11582_v13 }
 0x825   : > { %v4042_v14 = vmax.f32 %v3909_v12, 0.0  ;;  %14171 = vst [vmem:[#allocation98_spill] sm:$0xff] %v11582_v13  ;;  %v4169_v57 = vpack.c.bf16 %v4041_v30, %v4041_v30  ;;  %v4167_v30 = vpack.c.bf16 %v4039_v11, %v4039_v11  ;;  %v14189_v13 = vld [vmem:[#allocation193_spill] sm:$0xff] }
 0x826   : > { %v4172_v3 = vpack.c.bf16 %v4044_v38, %v4044_v38  ;;  %v4882_v35 = vunpack.c.l.b16 %v4171_v43 }
 0x827   : > { %v4170_v2 = vpack.c.bf16 %v4042_v14, %v4042_v14 }
 0x828   : > { %v4883_v12 = vunpack.c.l.b16 %v4172_v3  ;;  %v11602_v3 = vpop.f32.mrf.mxu1 }
 0x829   : > { %v3915_v7 = vpop.f32.mrf.mxu3  ;;  %v4881_v14 = vunpack.c.l.b16 %v4170_v2 }
 0x82a   : > { %v3916_v36 = vadd.f32 %v3915_v7, %v11564_v51  ;;  %v11587_v7 = vadd.f32 %v11186_v16, %v14172_v20  ;;  %v4040_v51 = vmax.f32 %v3904_v5, 0.0  ;;  %v11597_v20 = vadd.f32 %v11186_v16, %v14176_v59 }
 0x82c   : > { %v4045_v55 = vmax.f32 %v3916_v36, 0.0  ;;  %14173 = vst [vmem:[#allocation96_spill] sm:$0xff] %v11587_v7  ;;  %v14174_v36 = vld [vmem:[#allocation95_spill] sm:$0xff]  ;;  %v3896_v44 = vadd.f32 %v3895_v17, %v11587_v7  ;;  %v4168_v5 = vpack.c.bf16 %v4040_v51, %v4040_v51  ;;  %v14179_v17 = vld [vmem:[#allocation92_spill] sm:$0xff]  ;;  %v3891_v43 = vadd.f32 %v11501_v53, %v11597_v20 }
 0x82d   : > { %v11592_v1 = vadd.f32 %v11186_v16, %v14174_v36  ;;  %14177 = vst [vmem:[#allocation93_spill] sm:$0xff] %v11597_v20  ;;  %v11606_v0 = vadd.f32 %v11186_v16, %v14179_v17  ;;  %v14181_v36 = vld [vmem:[#allocation84_spill] sm:$0xff]  ;;  %v14183_v17 = vld [vmem:[#allocation83_spill] sm:$0xff] }
 0x82e   : > { %v4173_v31 = vpack.c.bf16 %v4045_v55, %v4045_v55  ;;  %v4037_v59 = vmax.f32 %v3896_v44, 0.0  ;;  %v4035_v44 = vmax.f32 %v3891_v43, 0.0 }
 0x82f   : > { %14175 = vst [vmem:[#allocation95_spill] sm:$0xff] %v11592_v1  ;;  %v3894_v28 = vadd.f32 %v11511_v61, %v11592_v1  ;;  %v11612_v61 = vadd.f32 %v11186_v16, %v14181_v36  ;;  %v3889_v51 = vadd.f32 %v11492_v39, %v11606_v0 }
 0x830   : > { %v4884_v38 = vunpack.c.l.b16 %v4173_v31  ;;  %v4038_v31 = vmax.f32 %v3899_v27, 0.0  ;;  %14180 = vst [vmem:[#allocation92_spill] sm:$0xff] %v11606_v0  ;;  %v4165_v11 = vpack.c.bf16 %v4037_v59, %v4037_v59  ;;  %v4163_v59 = vpack.c.bf16 %v4035_v44, %v4035_v44 }
 0x831   : > { %14182 = vst [vmem:[#allocation84_spill] sm:$0xff] %v11612_v61  ;;  %v4036_v27 = vmax.f32 %v3894_v28, 0.0  ;;  %v3886_v53 = vadd.f32 %v11486_v63, %v11612_v61  ;;  %v4034_v28 = vmax.f32 %v3889_v51, 0.0 }
 0x832   : > { %v4892_v55 = vpack.c.b16 %v4884_v38, %v4883_v12  ;;  %v4880_v12 = vunpack.c.l.b16 %v4169_v57  ;;  %v4891_v38 = vpack.c.b16 %v4882_v35, %v4881_v14  ;;  %v4166_v2 = vpack.c.bf16 %v4038_v31, %v4038_v31  ;;  %v14185_v14 = vld [vmem:[#allocation79_spill] sm:$0xff] }
 0x833   : > { %4842 = vmatmul.bf16.gmra.mxu1 %v14178_v10  ;;  %v11618_v10 = vadd.f32 %v11186_v16, %v14183_v17  ;;  %v4878_v57 = vunpack.c.l.b16 %v4167_v30  ;;  %v11624_v36 = vadd.f32 %v11186_v16, %v14185_v14  ;;  %v4164_v31 = vpack.c.bf16 %v4036_v27, %v4036_v27 }
 0x834   : > { %4901 = vmatpush.bf16.msra.mxu2 %v4892_v55  ;;  %v4879_v55 = vunpack.c.l.b16 %v4168_v5  ;;  %v4877_v5 = vunpack.c.l.b16 %v4166_v2  ;;  %v4033_v43 = vmax.f32 %v3886_v53, 0.0  ;;  %v4876_v30 = vunpack.c.l.b16 %v4165_v11 }
 0x835   : > { %14184 = vst [vmem:[#allocation83_spill] sm:$0xff] %v11618_v10  ;;  %v3884_v39 = vadd.f32 %v11480_v37, %v11618_v10  ;;  %v3881_v63 = vadd.f32 %v11476_v29, %v11624_v36  ;;  %v4162_v27 = vpack.c.bf16 %v4034_v28, %v4034_v28  ;;  %v4875_v2 = vunpack.c.l.b16 %v4164_v31 }
 0x836   : > { %v4890_v35 = vpack.c.b16 %v4880_v12, %v4879_v55  ;;  %14186 = vst [vmem:[#allocation79_spill] sm:$0xff] %v11624_v36  ;;  %v11634_v12 = vpop.f32.mrf.mxu1  ;;  %v4889_v55 = vpack.c.b16 %v4878_v57, %v4877_v5  ;;  %v4161_v14 = vpack.c.bf16 %v4033_v43, %v4033_v43 }
 0x837   : > { %v4032_v51 = vmax.f32 %v3884_v39, 0.0  ;;  %v4873_v44 = vunpack.c.l.b16 %v4162_v27 }
 0x838   : > { %4902 = vmatpush.bf16.msra.mxu2 %v4891_v38  ;;  %v14187_v38 = vld [vmem:[#allocation75_spill] sm:$0xff]  ;;  %v4872_v7 = vunpack.c.l.b16 %v4161_v14 }
 0x839   : > { %v11630_v17 = vadd.f32 %v11186_v16, %v14187_v38  ;;  %v4874_v16 = vunpack.c.l.b16 %v4163_v59  ;;  %v4888_v38 = vpack.c.b16 %v4876_v30, %v4875_v2  ;;  %v4160_v53 = vpack.c.bf16 %v4032_v51, %v4032_v51  ;;  %v14208_v51 = vld [vmem:[#allocation176_spill] sm:$0xff] }
 0x83a   : > { %v14190_v59 = vpack.c.bf16 %v11126_v8, %v11098_v52  ;;  %v14192_v52 = vpack.c.bf16 %v11179_v33, %v11167_v42  ;;  %v14194_v42 = vpack.c.bf16 %v11235_v21, %v11225_v62 }
 0x83b   : > { %14188 = vst [vmem:[#allocation75_spill] sm:$0xff] %v11630_v17  ;;  %v3879_v37 = vadd.f32 %v11471_v58, %v11630_v17  ;;  %v4887_v57 = vpack.c.b16 %v4874_v16, %v4873_v44  ;;  %v4871_v1 = vunpack.c.l.b16 %v4160_v53  ;;  %v14196_v44 = vld [vmem:[#allocation173_spill] sm:$0xff] }
 0x83c   : > { %4903 = vmatpush.bf16.msra.mxu2 %v4890_v35  ;;  %v4031_v35 = vmax.f32 %v3881_v63, 0.0 }
 0x83d   : > { %v4030_v29 = vmax.f32 %v3879_v37, 0.0  ;;  %v4886_v28 = vpack.c.b16 %v4872_v7, %v4871_v1  ;;  %v14191_v1 = vpack.c.bf16 %v11150_v26, %v11140_v49  ;;  %v14193_v49 = vpack.c.bf16 %v11210_v23, %v11200_v56 }
 0x83e   : > { %v4159_v11 = vpack.c.bf16 %v4031_v35, %v4031_v35  ;;  %v11639_v58 = vpop.f32.mrf.mxu1  ;;  %v14195_v56 = vpack.c.bf16 %v11247_v40, %v11241_v54 }
 0x83f   : > { %v4158_v5 = vpack.c.bf16 %v4030_v29, %v4030_v29  ;;  %v4328_v29 = vpop.f32.mrf.mxu2 }
 0x840   : > { %4904 = vmatpush.bf16.msra.mxu2 %v4889_v55  ;;  %v4870_v39 = vunpack.c.l.b16 %v4159_v11 }
 0x841   : > { %v4869_v31 = vunpack.c.l.b16 %v4158_v5  ;;  %v14198_v5 = vpack.c.bf16 %v11258_v15, %v11252_v47 }
 0x843   : > { %4847 = vmatmul.bf16.gmra.mxu1 %v14189_v13  ;;  %v4885_v63 = vpack.c.b16 %v4870_v39, %v4869_v31 }
 0x844   : > { %4905 = vmatpush.bf16.msra.mxu2 %v4888_v38  ;;  %v14207_v38 = vld [vmem:[#allocation156_spill] sm:$0xff] }
 0x847   : > { %v4330_v23 = vpop.f32.mrf.mxu2  ;;  %4541 = vmatmul.bf16.gmra.mxu2 %v14196_v44  ;;  %v14225_v44 = vld [vmem:[#allocation5_spill] sm:$0xff] }
 0x848   : > { %4906 = vmatpush.bf16.msra.mxu2 %v4887_v57  ;;  %v4958_v62 = vpack.c.bf16 %v4330_v23, %v4328_v29  ;;  %v14210_v29 = vld [vmem:[#allocation158_spill] sm:$0xff] }
 0x84c   : > { %4907 = vmatpush.bf16.msra.mxu2 %v4886_v28  ;;  %v14199_v28 = vld [vmem:[#allocation174_spill] sm:$0xff] }
 0x84f   : > { %v4333_v21 = vpop.f32.mrf.mxu2 }
 0x850   : > { %v11641_v43 = vpop.f32.mrf.mxu1  ;;  %4908 = vmatpush.bf16.msra.mxu2 %v4885_v63 }
 0x853   : > { %5022 = vmatmul.bf16.vlgmr.msra.gmra.mxu1 %v14190_v59  ;;  %v14202_v59 = vld [vmem:[#allocation198_spill] sm:$0xff] }
 0x857   : > { %v4335_v39 = vpop.f32.mrf.mxu2  ;;  %4546 = vmatmul.bf16.gmra.mxu2 %v14199_v28 }
 0x858   : > { %v11646_v30 = vpop.f32.mrf.mxu1  ;;  %v4959_v36 = vpack.c.bf16 %v4335_v39, %v4333_v21 }
 0x85f   : > { %v4338_v31 = vpop.f32.mrf.mxu2 }
 0x860   : > { %v11650_v37 = vpop.f32.mrf.mxu1 }
 0x863   : > { %5027 = vmatmul.bf16.gmra.mxu1 %v14191_v1  ;;  %v14203_v1 = vld [vmem:[#allocation197_spill] sm:$0xff] }
 0x868   : > { %v11655_v7 = vpop.f32.mrf.mxu1 }
 0x870   : > { %v11659_v27 = vpop.f32.mrf.mxu1 }
 0x873   : > { %5032 = vmatmul.bf16.gmra.mxu1 %v14192_v52  ;;  %v14204_v52 = vpack.c.bf16 %v14202_v59, %v14203_v1  ;;  %v14209_v1 = vld [vmem:[#allocation157_spill] sm:$0xff] }
 0x878   : > { %v11664_v8 = vpop.f32.mrf.mxu1 }
 0x880   : > { %v11668_v35 = vpop.f32.mrf.mxu1 }
 0x883   : > { %5037 = vmatmul.bf16.gmra.mxu1 %v14193_v49  ;;  %v4340_v49 = vpop.f32.mrf.mxu2 }
 0x884   : > { %v4960_v21 = vpack.c.bf16 %v4340_v49, %v4338_v31 }
 0x888   : > { %v11673_v26 = vpop.f32.mrf.mxu1 }
 0x890   : > { %v11677_v16 = vpop.f32.mrf.mxu1 }
 0x893   : > { %5042 = vmatmul.bf16.gmra.mxu1 %v14194_v42  ;;  %v14205_v42 = vld [vmem:[#allocation175_spill] sm:$0xff] }
 0x894   : > { %4551 = vmatmul.bf16.gmra.mxu2 %v14205_v42 }
 0x898   : > { %v11682_v33 = vpop.f32.mrf.mxu1 }
 0x8a0   : > { %v11686_v53 = vpop.f32.mrf.mxu1 }
 0x8a3   : > { %5047 = vmatmul.bf16.gmra.mxu1 %v14195_v56  ;;  %v4343_v56 = vpop.f32.mrf.mxu2 }
 0x8a8   : > { %v11692_v11 = vpop.f32.mrf.mxu1 }
 0x8ab   : > { %v4345_v2 = vpop.f32.mrf.mxu2  ;;  %4556 = vmatmul.bf16.gmra.mxu2 %v14208_v51  ;;  %v14212_v51 = vld [vmem:[#allocation159_spill] sm:$0xff] }
 0x8ac   : > { %v4961_v31 = vpack.c.bf16 %v4345_v2, %v4343_v56 }
 0x8b0   : > { %v11696_v57 = vpop.f32.mrf.mxu1 }
 0x8b1   : > { %14197 = vst [vmem:[#allocation212_spill] sm:$0xff] %v11696_v57 }
 0x8b3   : > { %5052 = vmatmul.bf16.gmra.mxu1 %v14198_v5  ;;  %v4348_v10 = vpop.f32.mrf.mxu2 }
 0x8b8   : > { %v11702_v54 = vpop.f32.mrf.mxu1 }
 0x8b9   : > { %14200 = vst [vmem:[#allocation213_spill] sm:$0xff] %v11702_v54 }
 0x8c0   : > { %v11706_v63 = vpop.f32.mrf.mxu1 }
 0x8c1   : > { %14201 = vst [vmem:[#allocation214_spill] sm:$0xff] %v11706_v63 }
 0x8c3   : > { %5057 = vmatmul.bf16.gmra.mxu1 %v14204_v52 }
 0x8c8   : > { %v11712_v47 = vpop.f32.mrf.mxu1 }
 0x8c9   : > { %14206 = vst [vmem:[#allocation198_spill] sm:$0xff] %v11712_v47 }
 0x8d0   : > { %v5023_v5 = vpop.f32.mrf.mxu1 }
 0x8d1   : > { %v5024_v40 = vadd.f32 %v5023_v5, %v14207_v38  ;;  %v14211_v5 = vld [vmem:[#allocation127_spill] sm:$0xff] }
 0x8d3   : > { %5062 = vmatmul.bf16.gmra.mxu1 %v4958_v62  ;;  %v5343_v14 = vmax.f32 %v5024_v40, 0.0  ;;  %v4350_v40 = vpop.f32.mrf.mxu2  ;;  %4715 = vmatmul.bf16.vlgmr.msrb.gmra.mxu2 %v14211_v5  ;;  %v14215_v5 = vld [vmem:[#allocation161_spill] sm:$0xff] }
 0x8d4   : > { %v4962_v2 = vpack.c.bf16 %v4350_v40, %v4348_v10  ;;  %v14221_v10 = vld [vmem:[#allocation168_spill] sm:$0xff] }
 0x8d5   : > { %v5471_v55 = vpack.c.bf16 %v5343_v14, %v5343_v14 }
 0x8d7   : > { %v5615_v0 = vunpack.c.l.b16 %v5471_v55 }
 0x8d8   : > { %v5025_v59 = vpop.f32.mrf.mxu1 }
 0x8d9   : > { %v5026_v52 = vadd.f32 %v5025_v59, %v14209_v1 }
 0x8db   : > { %v5344_v13 = vmax.f32 %v5026_v52, 0.0  ;;  %v4353_v1 = vpop.f32.mrf.mxu2 }
 0x8dd   : > { %v5472_v20 = vpack.c.bf16 %v5344_v13, %v5344_v13 }
 0x8df   : > { %v5616_v61 = vunpack.c.l.b16 %v5472_v20 }
 0x8e0   : > { %v5028_v15 = vpop.f32.mrf.mxu1 }
 0x8e1   : > { %v11719_v17 = vpack.c.b16 %v5616_v61, %v5615_v0  ;;  %v5029_v23 = vadd.f32 %v5028_v15, %v14210_v29  ;;  %v14213_v61 = vld [vmem:[#allocation160_spill] sm:$0xff] }
 0x8e3   : > { %5067 = vmatmul.bf16.gmra.mxu1 %v4959_v36  ;;  %v5345_v62 = vmax.f32 %v5029_v23, 0.0  ;;  %v4355_v15 = vpop.f32.mrf.mxu2  ;;  %v14214_v23 = vld [vmem:[#allocation131_spill] sm:$0xff] }
 0x8e4   : > { %4720 = vmatmul.bf16.gmra.mxu2 %v14214_v23  ;;  %v14218_v23 = vld [vmem:[#allocation163_spill] sm:$0xff] }
 0x8e5   : > { %v5473_v14 = vpack.c.bf16 %v5345_v62, %v5345_v62 }
 0x8e7   : > { %v5617_v55 = vunpack.c.l.b16 %v5473_v14 }
 0x8e8   : > { %v5030_v38 = vpop.f32.mrf.mxu1 }
 0x8e9   : > { %v5031_v59 = vadd.f32 %v5030_v38, %v14212_v51 }
 0x8eb   : > { %v5346_v52 = vmax.f32 %v5031_v59, 0.0  ;;  %v4358_v51 = vpop.f32.mrf.mxu2 }
 0x8ed   : > { %v5474_v13 = vpack.c.bf16 %v5346_v52, %v5346_v52 }
 0x8ef   : > { %v5618_v20 = vunpack.c.l.b16 %v5474_v13 }
 0x8f0   : > { %v5033_v42 = vpop.f32.mrf.mxu1 }
 0x8f1   : > { %v11724_v0 = vpack.c.b16 %v5618_v20, %v5617_v55  ;;  %v5034_v39 = vadd.f32 %v5033_v42, %v14213_v61  ;;  %v14216_v55 = vld [vmem:[#allocation162_spill] sm:$0xff] }
 0x8f3   : > { %5072 = vmatmul.bf16.gmra.mxu1 %v4960_v21  ;;  %v5347_v36 = vmax.f32 %v5034_v39, 0.0  ;;  %v4360_v21 = vpop.f32.mrf.mxu2  ;;  %v14217_v39 = vld [vmem:[#allocation133_spill] sm:$0xff] }
 0x8f4   : > { %4725 = vmatmul.bf16.gmra.mxu2 %v14217_v39  ;;  %v14223_v39 = vld [vmem:[#allocation170_spill] sm:$0xff] }
 0x8f5   : > { %v5475_v62 = vpack.c.bf16 %v5347_v36, %v5347_v36 }
 0x8f7   : > { %v5619_v14 = vunpack.c.l.b16 %v5475_v62 }
 0x8f8   : > { %v5035_v29 = vpop.f32.mrf.mxu1 }
 0x8f9   : > { %v5036_v38 = vadd.f32 %v5035_v29, %v14215_v5 }
 0x8fb   : > { %v5348_v59 = vmax.f32 %v5036_v38, 0.0  ;;  %v4363_v5 = vpop.f32.mrf.mxu2 }
 0x8fd   : > { %v5476_v52 = vpack.c.bf16 %v5348_v59, %v5348_v59 }
 0x8ff   : > { %v5620_v13 = vunpack.c.l.b16 %v5476_v52 }
 0x900   : > { %v5038_v28 = vpop.f32.mrf.mxu1 }
 0x901   : > { %v11729_v49 = vpack.c.b16 %v5620_v13, %v5619_v14  ;;  %v5039_v42 = vadd.f32 %v5038_v28, %v14216_v55  ;;  %v14219_v14 = vld [vmem:[#allocation135_spill] sm:$0xff] }
 0x903   : > { %5077 = vmatmul.bf16.gmra.mxu1 %v4961_v31  ;;  %v5349_v20 = vmax.f32 %v5039_v42, 0.0  ;;  %v4365_v28 = vpop.f32.mrf.mxu2  ;;  %v4963_v42 = vpack.c.bf16 %v4355_v15, %v4353_v1  ;;  %v14224_v15 = vld [vmem:[#allocation171_spill] sm:$0xff] }
 0x904   : > { %4730 = vmatmul.bf16.gmra.mxu2 %v14219_v14 }
 0x905   : > { %v5477_v36 = vpack.c.bf16 %v5349_v20, %v5349_v20  ;;  %v4964_v20 = vpack.c.bf16 %v4360_v21, %v4358_v51 }
 0x907   : > { %v5621_v62 = vunpack.c.l.b16 %v5477_v36 }
 0x908   : > { %v5040_v61 = vpop.f32.mrf.mxu1 }
 0x909   : > { %v5041_v29 = vadd.f32 %v5040_v61, %v14218_v23 }
 0x90b   : > { %v5350_v38 = vmax.f32 %v5041_v29, 0.0 }
 0x90d   : > { %v5478_v59 = vpack.c.bf16 %v5350_v38, %v5350_v38  ;;  %v4965_v38 = vpack.c.bf16 %v4365_v28, %v4363_v5  ;;  %v14226_v5 = vld [vmem:[#allocation6_spill] sm:$0xff] }
 0x90f   : > { %v5622_v52 = vunpack.c.l.b16 %v5478_v59  ;;  %v14220_v59 = vld [vmem:[#allocation167_spill] sm:$0xff] }
 0x910   : > { %v5043_v63 = vpop.f32.mrf.mxu1 }
 0x911   : > { %v11734_v56 = vpack.c.b16 %v5622_v52, %v5621_v62  ;;  %v14222_v62 = vld [vmem:[#allocation169_spill] sm:$0xff] }
 0x913   : > { %5082 = vmatmul.bf16.gmra.mxu1 %v4962_v2 }
 0x918   : > { %v5045_v13 = vpop.f32.mrf.mxu1 }
 0x919   : > { %v5046_v28 = vadd.f32 %v5045_v13, %v14226_v5 }
 0x920   : > { %v5048_v31 = vpop.f32.mrf.mxu1 }
 0x921   : > { %v5049_v51 = vadd.f32 %v5048_v31, %v14225_v44 }
 0x923   : > { %5087 = vmatmul.bf16.gmra.mxu1 %v4963_v42 }
 0x928   : > { %v5050_v55 = vpop.f32.mrf.mxu1 }
 0x929   : > { %v5051_v47 = vadd.f32 %v5050_v55, %v14223_v39 }
 0x930   : > { %v5053_v61 = vpop.f32.mrf.mxu1 }
 0x931   : > { %v5054_v52 = vadd.f32 %v5053_v61, %v14222_v62  ;;  %v5353_v61 = vmax.f32 %v5049_v51, 0.0 }
 0x933   : > { %5092 = vmatmul.bf16.gmra.mxu1 %v4964_v20  ;;  %v5355_v21 = vmax.f32 %v5054_v52, 0.0  ;;  %v5481_v52 = vpack.c.bf16 %v5353_v61, %v5353_v61 }
 0x938   : > { %v5055_v29 = vpop.f32.mrf.mxu1 }
 0x939   : > { %v5056_v40 = vadd.f32 %v5055_v29, %v14221_v10  ;;  %v14227_v29 = vld [vmem:[#allocation7_spill] sm:$0xff] }
 0x93a   : > { %v5044_v10 = vadd.f32 %v5043_v63, %v14227_v29 }
 0x93b   : > { %v5356_v1 = vmax.f32 %v5056_v40, 0.0  ;;  %v5352_v40 = vmax.f32 %v5046_v28, 0.0 }
 0x93c   : > { %v5351_v31 = vmax.f32 %v5044_v10, 0.0 }
 0x940   : > { %v5058_v36 = vpop.f32.mrf.mxu1 }
 0x941   : > { %v5059_v23 = vadd.f32 %v5058_v36, %v14220_v59  ;;  %v5354_v36 = vmax.f32 %v5051_v47, 0.0  ;;  %v14229_v47 = vpack.c.bf16 %v11323_v60, %v11301_v4 }
 0x943   : > { %5097 = vmatmul.bf16.gmra.mxu1 %v4965_v38  ;;  %v5357_v2 = vmax.f32 %v5059_v23, 0.0  ;;  %v5484_v38 = vpack.c.bf16 %v5356_v1, %v5356_v1  ;;  %v5483_v23 = vpack.c.bf16 %v5355_v21, %v5355_v21  ;;  %v5482_v39 = vpack.c.bf16 %v5354_v36, %v5354_v36 }
 0x944   : > { %v5625_v1 = vunpack.c.l.b16 %v5481_v52  ;;  %v14233_v52 = vld [vmem:[#allocation11_spill] sm:$0xff] }
 0x945   : > { %v5485_v20 = vpack.c.bf16 %v5357_v2, %v5357_v2  ;;  %v5627_v2 = vunpack.c.l.b16 %v5483_v23  ;;  %v5626_v63 = vunpack.c.l.b16 %v5482_v39  ;;  %v14231_v23 = vld [vmem:[#allocation10_spill] sm:$0xff] }
 0x947   : > { %v5629_v62 = vunpack.c.l.b16 %v5485_v20  ;;  %v5636_v20 = vpack.c.b16 %v5626_v63, %v5625_v1  ;;  %v14235_v1 = vpack.c.bf16 %v11368_v41, %v11361_v46 }
 0x948   : > { %v5060_v14 = vpop.f32.mrf.mxu1 }
 0x949   : > { %v5061_v42 = vadd.f32 %v5060_v14, %v14224_v15  ;;  %v5628_v14 = vunpack.c.l.b16 %v5484_v38 }
 0x94b   : > { %v5358_v57 = vmax.f32 %v5061_v42, 0.0  ;;  %v14228_v42 = vld [vmem:[#allocation8_spill] sm:$0xff]  ;;  %v5637_v13 = vpack.c.b16 %v5628_v14, %v5627_v2 }
 0x94d   : > { %v5486_v59 = vpack.c.bf16 %v5358_v57, %v5358_v57  ;;  %v5480_v57 = vpack.c.bf16 %v5352_v40, %v5352_v40  ;;  %v14232_v40 = vpack.c.bf16 %v11343_v19, %v11337_v22 }
 0x94f   : > { %v5630_v54 = vunpack.c.l.b16 %v5486_v59  ;;  %v5479_v59 = vpack.c.bf16 %v5351_v31, %v5351_v31  ;;  %v5624_v10 = vunpack.c.l.b16 %v5480_v57 }
 0x950   : > { %v5063_v55 = vpop.f32.mrf.mxu1 }
 0x951   : > { %v5638_v15 = vpack.c.b16 %v5630_v54, %v5629_v62  ;;  %v5064_v44 = vadd.f32 %v5063_v55, %v14228_v42  ;;  %v14230_v62 = vld [vmem:[#allocation9_spill] sm:$0xff]  ;;  %v5623_v28 = vunpack.c.l.b16 %v5479_v59 }
 0x953   : > { %5102 = vmatmul.bf16.gmra.mxu1 %v14229_v47  ;;  %9044 = vmatpush.bf16.msrb.mxu2 %v5638_v15  ;;  %v5359_v51 = vmax.f32 %v5064_v44, 0.0  ;;  %v5635_v60 = vpack.c.b16 %v5624_v10, %v5623_v28  ;;  %v14236_v10 = vld [vmem:[#allocation13_spill] sm:$0xff] }
 0x954   : > { %5647 = vmatpush.bf16.msrb.mxu1 %v5638_v15 }
 0x955   : > { %v5487_v36 = vpack.c.bf16 %v5359_v51, %v5359_v51 }
 0x957   : > { %9045 = vmatpush.bf16.msrb.mxu2 %v5637_v13  ;;  %v5712_v15 = vunpack.c.l.b16 %v5487_v36 }
 0x958   : > { %5648 = vmatpush.bf16.msrb.mxu1 %v5637_v13  ;;  %v5065_v54 = vpop.f32.mrf.mxu1 }
 0x959   : > { %v5066_v21 = vadd.f32 %v5065_v54, %v14230_v62 }
 0x95b   : > { %v5360_v38 = vmax.f32 %v5066_v21, 0.0  ;;  %9046 = vmatpush.bf16.msrb.mxu2 %v5636_v20 }
 0x95c   : > { %5649 = vmatpush.bf16.msrb.mxu1 %v5636_v20 }
 0x95d   : > { %v5488_v4 = vpack.c.bf16 %v5360_v38, %v5360_v38 }
 0x95f   : > { %v5713_v39 = vunpack.c.l.b16 %v5488_v4  ;;  %9047 = vmatpush.bf16.msrb.mxu2 %v5635_v60 }
 0x960   : > { %5650 = vmatpush.bf16.msrb.mxu1 %v5635_v60  ;;  %v5068_v61 = vpop.f32.mrf.mxu1  ;;  %v14237_v60 = vld [vmem:[#allocation14_spill] sm:$0xff] }
 0x961   : > { %v11750_v44 = vpack.c.b16 %v5713_v39, %v5712_v15  ;;  %v5069_v55 = vadd.f32 %v5068_v61, %v14231_v23  ;;  %v14238_v39 = vpack.c.bf16 %v11388_v24, %v11384_v9  ;;  %v14239_v61 = vld [vmem:[#allocation15_spill] sm:$0xff]  ;;  %v4971_v24 = vpack.c.bf16 %v11416_v18, %v11413_v34 }
 0x962   : > { %v14242_v18 = vld [vmem:[#allocation199_spill] sm:$0xff] }
 0x963   : > { %5107 = vmatmul.bf16.gmra.mxu1 %v14232_v40  ;;  %9048 = vmatpush.bf16.msrb.mxu2 %v11734_v56  ;;  %v5361_v14 = vmax.f32 %v5069_v55, 0.0 }
 0x964   : > { %5651 = vmatpush.bf16.msrb.mxu1 %v11734_v56 }
 0x965   : > { %v5489_v47 = vpack.c.bf16 %v5361_v14, %v5361_v14 }
 0x967   : > { %9049 = vmatpush.bf16.msrb.mxu2 %v11729_v49  ;;  %v5714_v19 = vunpack.c.l.b16 %v5489_v47 }
 0x968   : > { %5652 = vmatpush.bf16.msrb.mxu1 %v11729_v49  ;;  %v5070_v31 = vpop.f32.mrf.mxu1  ;;  %v14234_v49 = vld [vmem:[#allocation12_spill] sm:$0xff] }
 0x969   : > { %v5071_v2 = vadd.f32 %v5070_v31, %v14233_v52 }
 0x96b   : > { %v5362_v57 = vmax.f32 %v5071_v2, 0.0  ;;  %9050 = vmatpush.bf16.msrb.mxu2 %v11724_v0 }
 0x96c   : > { %5653 = vmatpush.bf16.msrb.mxu1 %v11724_v0 }
 0x96d   : > { %v5490_v22 = vpack.c.bf16 %v5362_v57, %v5362_v57 }
 0x96f   : > { %v5715_v63 = vunpack.c.l.b16 %v5490_v22  ;;  %9051 = vmatpush.bf16.msrb.mxu2 %v11719_v17  ;;  %v4970_v22 = vpack.c.bf16 %v11408_v45, %v11404_v50  ;;  %v4972_v45 = vpack.c.bf16 %v11423_v32, %v11419_v6 }
 0x970   : > { %5654 = vmatpush.bf16.msrb.mxu1 %v11719_v17  ;;  %v5073_v56 = vpop.f32.mrf.mxu1 }
 0x971   : > { %v11765_v13 = vpack.c.b16 %v5715_v63, %v5714_v19  ;;  %v5074_v59 = vadd.f32 %v5073_v56, %v14234_v49  ;;  %v4522_v56 = vpop.f32.mrf.mxu2 }
 0x973   : > { %5112 = vmatmul.bf16.gmra.mxu1 %v14235_v1  ;;  %v5363_v51 = vmax.f32 %v5074_v59, 0.0  ;;  %v14240_v1 = vld [vmem:[#allocation137_spill] sm:$0xff] }
 0x975   : > { %v5491_v21 = vpack.c.bf16 %v5363_v51, %v5363_v51 }
 0x977   : > { %v5716_v36 = vunpack.c.l.b16 %v5491_v21  ;;  %v14241_v21 = vld [vmem:[#allocation139_spill] sm:$0xff] }
 0x978   : > { %v5075_v54 = vpop.f32.mrf.mxu1 }
 0x979   : > { %v5076_v0 = vadd.f32 %v5075_v54, %v14236_v10  ;;  %v4524_v59 = vpop.f32.mrf.mxu2  ;;  %4735 = vmatmul.bf16.gmra.mxu2 %v14240_v1 }
 0x97b   : > { %v5364_v20 = vmax.f32 %v5076_v0, 0.0 }
 0x97d   : > { %v5492_v28 = vpack.c.bf16 %v5364_v20, %v5364_v20 }
 0x97f   : > { %v5717_v38 = vunpack.c.l.b16 %v5492_v28 }
 0x980   : > { %v5078_v4 = vpop.f32.mrf.mxu1 }
 0x981   : > { %v11772_v17 = vpack.c.b16 %v5717_v38, %v5716_v36  ;;  %v5079_v15 = vadd.f32 %v5078_v4, %v14237_v60  ;;  %v11786_v54 = vpop.f32.mrf.mxu2  ;;  %v14243_v36 = vld [vmem:[#allocation200_spill] sm:$0xff] }
 0x982   : > { %v4973_v38 = vpack.c.bf16 %v14243_v36, %v14242_v18  ;;  %v14244_v4 = vld [vmem:[#allocation16_spill] sm:$0xff] }
 0x983   : > { %5117 = vmatmul.bf16.gmra.mxu1 %v14238_v39  ;;  %v5365_v46 = vmax.f32 %v5079_v15, 0.0  ;;  %v14245_v39 = vld [vmem:[#allocation17_spill] sm:$0xff] }
 0x985   : > { %v5493_v40 = vpack.c.bf16 %v5365_v46, %v5365_v46 }
 0x987   : > { %v5718_v2 = vunpack.c.l.b16 %v5493_v40  ;;  %v14247_v40 = vld [vmem:[#allocation141_spill] sm:$0xff] }
 0x988   : > { %v5080_v41 = vpop.f32.mrf.mxu1 }
 0x989   : > { %v5081_v55 = vadd.f32 %v5080_v41, %v14239_v61  ;;  %v11790_v50 = vpop.f32.mrf.mxu2  ;;  %4740 = vmatmul.bf16.gmra.mxu2 %v14241_v21  ;;  %v14246_v41 = vld [vmem:[#allocation18_spill] sm:$0xff] }
 0x98b   : > { %v5366_v14 = vmax.f32 %v5081_v55, 0.0 }
 0x98d   : > { %v5494_v31 = vpack.c.bf16 %v5366_v14, %v5366_v14 }
 0x98f   : > { %v5719_v47 = vunpack.c.l.b16 %v5494_v31  ;;  %v14248_v31 = vld [vmem:[#allocation19_spill] sm:$0xff] }
 0x990   : > { %v5083_v57 = vpop.f32.mrf.mxu1 }
 0x991   : > { %v11781_v19 = vpack.c.b16 %v5719_v47, %v5718_v2  ;;  %v11793_v28 = vpop.f32.mrf.mxu2 }
 0x993   : > { %5122 = vmatmul.bf16.gmra.mxu1 %v4970_v22  ;;  %v14249_v22 = vld [vmem:[#allocation20_spill] sm:$0xff] }
 0x998   : > { %v5085_v63 = vpop.f32.mrf.mxu1 }
 0x999   : > { %v11800_v32 = vpop.f32.mrf.mxu2  ;;  %4745 = vmatmul.bf16.gmra.mxu2 %v14247_v40 }
 0x9a0   : > { %v5088_v9 = vpop.f32.mrf.mxu1 }
 0x9a3   : > { %5127 = vmatmul.bf16.gmra.mxu1 %v4971_v24 }
 0x9a8   : > { %v5090_v51 = vpop.f32.mrf.mxu1 }
 0x9a9   : > { %v5091_v2 = vadd.f32 %v5090_v51, %v14248_v31  ;;  %v11808_v51 = vpop.f32.mrf.mxu2 }
 0x9b0   : > { %v5093_v0 = vpop.f32.mrf.mxu1 }
 0x9b1   : > { %v5094_v55 = vadd.f32 %v5093_v0, %v14246_v41  ;;  %v14252_v41 = vld [vmem:[#allocation23_spill] sm:$0xff] }
 0x9b2   : > { %v5084_v61 = vadd.f32 %v5083_v57, %v14252_v41 }
 0x9b3   : > { %5132 = vmatmul.bf16.gmra.mxu1 %v4972_v45  ;;  %v14250_v45 = vld [vmem:[#allocation21_spill] sm:$0xff]  ;;  %v5371_v36 = vmax.f32 %v5094_v55, 0.0  ;;  %v4974_v55 = vpack.c.bf16 %v4524_v59, %v4522_v56 }
 0x9b4   : > { %v5089_v18 = vadd.f32 %v5088_v9, %v14250_v45  ;;  %v14254_v45 = vld [vmem:[#allocation143_spill] sm:$0xff] }
 0x9b5   : > { %v5499_v10 = vpack.c.bf16 %v5371_v36, %v5371_v36 }
 0x9b6   : > { %v5369_v60 = vmax.f32 %v5089_v18, 0.0 }
 0x9b8   : > { %v5095_v20 = vpop.f32.mrf.mxu1  ;;  %v5497_v31 = vpack.c.bf16 %v5369_v60, %v5369_v60 }
 0x9b9   : > { %v5096_v46 = vadd.f32 %v5095_v20, %v14245_v39  ;;  %v5370_v39 = vmax.f32 %v5091_v2, 0.0  ;;  %v14253_v2 = vld [vmem:[#allocation24_spill] sm:$0xff] }
 0x9bb   : > { %v5372_v47 = vmax.f32 %v5096_v46, 0.0 }
 0x9bd   : > { %v5500_v0 = vpack.c.bf16 %v5372_v47, %v5372_v47 }
 0x9bf   : > { %v5725_v9 = vunpack.c.l.b16 %v5500_v0 }
 0x9c0   : > { %v5098_v34 = vpop.f32.mrf.mxu1 }
 0x9c1   : > { %v5099_v15 = vadd.f32 %v5098_v34, %v14244_v4  ;;  %v14251_v4 = vld [vmem:[#allocation22_spill] sm:$0xff] }
 0x9c2   : > { %v5086_v20 = vadd.f32 %v5085_v63, %v14251_v4  ;;  %v5724_v63 = vunpack.c.l.b16 %v5499_v10 }
 0x9c3   : > { %5137 = vmatmul.bf16.gmra.mxu1 %v4973_v38  ;;  %v5373_v6 = vmax.f32 %v5099_v15, 0.0 }
 0x9c4   : > { %v5368_v46 = vmax.f32 %v5086_v20, 0.0  ;;  %v5734_v36 = vpack.c.b16 %v5725_v9, %v5724_v63  ;;  %v4539_v20 = vpop.f32.mrf.mxu2  ;;  %4750 = vmatmul.bf16.gmra.mxu2 %v14254_v45 }
 0x9c5   : > { %v5501_v34 = vpack.c.bf16 %v5373_v6, %v5373_v6 }
 0x9c6   : > { %v5496_v57 = vpack.c.bf16 %v5368_v46, %v5368_v46 }
 0x9c7   : > { %v5726_v49 = vunpack.c.l.b16 %v5501_v34 }
 0x9c8   : > { %v5100_v14 = vpop.f32.mrf.mxu1  ;;  %v5721_v56 = vunpack.c.l.b16 %v5496_v57 }
 0x9c9   : > { %v5101_v24 = vadd.f32 %v5100_v14, %v14249_v22  ;;  %v5498_v22 = vpack.c.bf16 %v5370_v39, %v5370_v39 }
 0x9cb   : > { %v5374_v38 = vmax.f32 %v5101_v24, 0.0  ;;  %v5367_v24 = vmax.f32 %v5084_v61, 0.0  ;;  %v5723_v18 = vunpack.c.l.b16 %v5498_v22 }
 0x9cd   : > { %v5502_v15 = vpack.c.bf16 %v5374_v38, %v5374_v38  ;;  %v5495_v34 = vpack.c.bf16 %v5367_v24, %v5367_v24  ;;  %v5722_v38 = vunpack.c.l.b16 %v5497_v31  ;;  %v4542_v31 = vpop.f32.mrf.mxu2  ;;  %v14256_v24 = vld [vmem:[#allocation26_spill] sm:$0xff] }
 0x9cf   : > { %v5727_v52 = vunpack.c.l.b16 %v5502_v15  ;;  %v5733_v60 = vpack.c.b16 %v5723_v18, %v5722_v38  ;;  %v5720_v10 = vunpack.c.l.b16 %v5495_v34  ;;  %v14257_v18 = vld [vmem:[#allocation192_spill] sm:$0xff]  ;;  %v14258_v34 = vld [vmem:[#allocation27_spill] sm:$0xff] }
 0x9d0   : > { %v5103_v14 = vpop.f32.mrf.mxu1 }
 0x9d1   : > { %v5735_v6 = vpack.c.b16 %v5727_v52, %v5726_v49  ;;  %v5104_v47 = vadd.f32 %v5103_v14, %v14253_v2  ;;  %v14255_v52 = vld [vmem:[#allocation25_spill] sm:$0xff]  ;;  %v5732_v46 = vpack.c.b16 %v5721_v56, %v5720_v10 }
 0x9d2   : > { %v14259_v10 = vld [vmem:[#allocation117_spill] sm:$0xff] }
 0x9d3   : > { %5142 = vmatmul.bf16.gmra.mxu1 %v4974_v55  ;;  %5744 = vmatpush.bf16.msrb.mxu0 %v5735_v6  ;;  %v5375_v15 = vmax.f32 %v5104_v47, 0.0  ;;  %v4975_v55 = vpack.c.bf16 %v11790_v50, %v11786_v54 }
 0x9d5   : > { %v5503_v61 = vpack.c.bf16 %v5375_v15, %v5375_v15  ;;  %v4544_v57 = vpop.f32.mrf.mxu2  ;;  %4909 = vmatmul.bf16.vlgmr.msra.gmra.mxu2 %v14257_v18 }
 0x9d7   : > { %5745 = vmatpush.bf16.msrb.mxu0 %v5734_v36  ;;  %v5809_v22 = vunpack.c.l.b16 %v5503_v61  ;;  %v14260_v61 = vld [vmem:[#allocation28_spill] sm:$0xff] }
 0x9d8   : > { %v5105_v39 = vpop.f32.mrf.mxu1 }
 0x9d9   : > { %v5106_v49 = vadd.f32 %v5105_v39, %v14255_v52 }
 0x9db   : > { %v5376_v59 = vmax.f32 %v5106_v49, 0.0  ;;  %5746 = vmatpush.bf16.msrb.mxu0 %v5733_v60 }
 0x9dd   : > { %v5504_v0 = vpack.c.bf16 %v5376_v59, %v5376_v59  ;;  %v4547_v49 = vpop.f32.mrf.mxu2 }
 0x9df   : > { %v5810_v14 = vunpack.c.l.b16 %v5504_v0  ;;  %5747 = vmatpush.bf16.msrb.mxu0 %v5732_v46 }
 0x9e0   : > { %v5108_v9 = vpop.f32.mrf.mxu1 }
 0x9e1   : > { %v11815_v6 = vpack.c.b16 %v5810_v14, %v5809_v22  ;;  %v5109_v63 = vadd.f32 %v5108_v9, %v14256_v24  ;;  %v14262_v14 = vld [vmem:[#allocation29_spill] sm:$0xff] }
 0x9e3   : > { %5147 = vmatmul.bf16.gmra.mxu1 %v4975_v55  ;;  %5748 = vmatpush.bf16.msrb.mxu0 %v11781_v19  ;;  %v5377_v47 = vmax.f32 %v5109_v63, 0.0 }
 0x9e5   : > { %v5505_v15 = vpack.c.bf16 %v5377_v47, %v5377_v47  ;;  %v4549_v46 = vpop.f32.mrf.mxu2 }
 0x9e7   : > { %5749 = vmatpush.bf16.msrb.mxu0 %v11772_v17  ;;  %v5811_v50 = vunpack.c.l.b16 %v5505_v15  ;;  %v4976_v17 = vpack.c.bf16 %v11800_v32, %v11793_v28 }
 0x9e8   : > { %v5110_v36 = vpop.f32.mrf.mxu1 }
 0x9e9   : > { %v5111_v38 = vadd.f32 %v5110_v36, %v14258_v34 }
 0x9eb   : > { %v5378_v39 = vmax.f32 %v5111_v38, 0.0  ;;  %5750 = vmatpush.bf16.msrb.mxu0 %v11765_v13  ;;  %v14261_v13 = vld [vmem:[#allocation149_spill] sm:$0xff]  ;;  %v4977_v38 = vpack.c.bf16 %v4539_v20, %v11808_v51 }
 0x9ec   : > { %4914 = vmatmul.bf16.gmra.mxu2 %v14261_v13 }
 0x9ed   : > { %v5506_v54 = vpack.c.bf16 %v5378_v39, %v5378_v39  ;;  %v4552_v28 = vpop.f32.mrf.mxu2  ;;  %v14263_v39 = vld [vmem:[#allocation140_spill] sm:$0xff] }
 0x9ef   : > { %v5812_v56 = vunpack.c.l.b16 %v5506_v54  ;;  %5751 = vmatpush.bf16.msrb.mxu0 %v11750_v44  ;;  %v14264_v54 = vld [vmem:[#allocation30_spill] sm:$0xff] }
 0x9f0   : > { %v5113_v19 = vpop.f32.mrf.mxu1 }
 0x9f1   : > { %v11826_v60 = vpack.c.b16 %v5812_v56, %v5811_v50  ;;  %v5114_v59 = vadd.f32 %v5113_v19, %v14260_v61  ;;  %v14275_v61 = vld [vmem:[#allocation36_spill] sm:$0xff] }
 0x9f2   : > { %5752 = vmatmul.bf16.vlgmr.msrb.gmra.mxu0 %v14259_v10 }
 0x9f3   : > { %5152 = vmatmul.bf16.gmra.mxu1 %v4976_v17  ;;  %v5379_v0 = vmax.f32 %v5114_v59, 0.0  ;;  %v14265_v17 = vld [vmem:[#allocation151_spill] sm:$0xff] }
 0x9f4   : > { %v14266_v59 = vld [vmem:[#allocation31_spill] sm:$0xff] }
 0x9f5   : > { %v5507_v44 = vpack.c.bf16 %v5379_v0, %v5379_v0  ;;  %v4554_v19 = vpop.f32.mrf.mxu2 }
 0x9f7   : > { %v5813_v47 = vunpack.c.l.b16 %v5507_v44 }
 0x9f8   : > { %v5115_v22 = vpop.f32.mrf.mxu1 }
 0x9f9   : > { %v5116_v9 = vadd.f32 %v5115_v22, %v14262_v14  ;;  %v4979_v14 = vpack.c.bf16 %v4549_v46, %v4547_v49  ;;  %v14274_v49 = vld [vmem:[#allocation34_spill] sm:$0xff] }
 0x9fb   : > { %v5380_v55 = vmax.f32 %v5116_v9, 0.0 }
 0x9fc   : > { %4919 = vmatmul.bf16.gmra.mxu2 %v14265_v17 }
 0x9fd   : > { %v5508_v63 = vpack.c.bf16 %v5380_v55, %v5380_v55  ;;  %v4557_v51 = vpop.f32.mrf.mxu2 }
 0x9ff   : > { %v5814_v36 = vunpack.c.l.b16 %v5508_v63 }
 0xa00   : > { %v5118_v32 = vpop.f32.mrf.mxu1 }
 0xa01   : > { %v11833_v15 = vpack.c.b16 %v5814_v36, %v5813_v47  ;;  %v5119_v50 = vadd.f32 %v5118_v32, %v14264_v54  ;;  %v4978_v47 = vpack.c.bf16 %v4544_v57, %v4542_v31 }
 0xa02   : > { %5757 = vmatmul.bf16.gmra.mxu0 %v14263_v39  ;;  %v14267_v39 = vld [vmem:[#allocation142_spill] sm:$0xff] }
 0xa03   : > { %5157 = vmatmul.bf16.gmra.mxu1 %v4977_v38  ;;  %v5381_v56 = vmax.f32 %v5119_v50, 0.0  ;;  %v14268_v38 = vld [vmem:[#allocation110_spill] sm:$0xff] }
 0xa05   : > { %v5509_v22 = vpack.c.bf16 %v5381_v56, %v5381_v56  ;;  %v4559_v32 = vpop.f32.mrf.mxu2 }
 0xa07   : > { %v5815_v55 = vunpack.c.l.b16 %v5509_v22  ;;  %v4980_v22 = vpack.c.bf16 %v4554_v19, %v4552_v28  ;;  %v14276_v19 = vld [vmem:[#allocation37_spill] sm:$0xff] }
 0xa08   : > { %v5120_v10 = vpop.f32.mrf.mxu1 }
 0xa09   : > { %v5121_v0 = vadd.f32 %v5120_v10, %v14266_v59  ;;  %v14269_v10 = vld [vmem:[#allocation144_spill] sm:$0xff] }
 0xa0b   : > { %v5382_v9 = vmax.f32 %v5121_v0, 0.0 }
 0xa0c   : > { %4924 = vmatmul.bf16.gmra.mxu2 %v14268_v38 }
 0xa0d   : > { %v5510_v44 = vpack.c.bf16 %v5382_v9, %v5382_v9  ;;  %v14270_v9 = vld [vmem:[#allocation145_spill] sm:$0xff] }
 0xa0f   : > { %v5816_v63 = vunpack.c.l.b16 %v5510_v44  ;;  %v4981_v44 = vpack.c.bf16 %v4559_v32, %v4557_v51 }
 0xa10   : > { %v5123_v20 = vpop.f32.mrf.mxu1 }
 0xa11   : > { %v11839_v36 = vpack.c.b16 %v5816_v63, %v5815_v55  ;;  %v14271_v55 = vld [vmem:[#allocation146_spill] sm:$0xff]  ;;  %v14272_v63 = vld [vmem:[#allocation32_spill] sm:$0xff] }
 0xa12   : > { %5762 = vmatmul.bf16.gmra.mxu0 %v14267_v39  ;;  %v14273_v39 = vld [vmem:[#allocation33_spill] sm:$0xff] }
 0xa13   : > { %5162 = vmatmul.bf16.gmra.mxu1 %v4978_v47 }
 0xa18   : > { %v5125_v50 = vpop.f32.mrf.mxu1 }
 0xa20   : > { %v5128_v54 = vpop.f32.mrf.mxu1 }
 0xa22   : > { %5767 = vmatmul.bf16.gmra.mxu0 %v14269_v10 }
 0xa23   : > { %5167 = vmatmul.bf16.gmra.mxu1 %v4979_v14 }
 0xa28   : > { %v5130_v56 = vpop.f32.mrf.mxu1 }
 0xa29   : > { %v5131_v34 = vadd.f32 %v5130_v56, %v14275_v61 }
 0xa30   : > { %v5133_v0 = vpop.f32.mrf.mxu1 }
 0xa31   : > { %v5134_v46 = vadd.f32 %v5133_v0, %v14274_v49 }
 0xa32   : > { %5772 = vmatmul.bf16.gmra.mxu0 %v14270_v9 }
 0xa33   : > { %5172 = vmatmul.bf16.gmra.mxu1 %v4980_v22  ;;  %v14277_v22 = vld [vmem:[#allocation38_spill] sm:$0xff]  ;;  %v5387_v52 = vmax.f32 %v5134_v46, 0.0 }
 0xa34   : > { %v5129_v24 = vadd.f32 %v5128_v54, %v14277_v22  ;;  %v14308_v22 = vld [vmem:[#allocation68_spill] sm:$0xff] }
 0xa36   : > { %v5385_v0 = vmax.f32 %v5129_v24, 0.0 }
 0xa38   : > { %v5135_v31 = vpop.f32.mrf.mxu1 }
 0xa39   : > { %v5136_v59 = vadd.f32 %v5135_v31, %v14273_v39  ;;  %v14279_v31 = vld [vmem:[#allocation41_spill] sm:$0xff] }
 0xa3a   : > { %v5124_v39 = vadd.f32 %v5123_v20, %v14279_v31 }
 0xa3b   : > { %v5388_v28 = vmax.f32 %v5136_v59, 0.0  ;;  %v4982_v59 = vpack.c.bf16 %v11478_v25, %v11474_v48 }
 0xa40   : > { %v5138_v57 = vpop.f32.mrf.mxu1 }
 0xa41   : > { %v5139_v47 = vadd.f32 %v5138_v57, %v14272_v63  ;;  %v5386_v57 = vmax.f32 %v5131_v34, 0.0  ;;  %v5513_v34 = vpack.c.bf16 %v5385_v0, %v5385_v0 }
 0xa42   : > { %5777 = vmatmul.bf16.gmra.mxu0 %v14271_v55  ;;  %v14278_v55 = vld [vmem:[#allocation40_spill] sm:$0xff] }
 0xa43   : > { %5177 = vmatmul.bf16.gmra.mxu1 %v4981_v44  ;;  %v5389_v10 = vmax.f32 %v5139_v47, 0.0  ;;  %v5126_v2 = vadd.f32 %v5125_v50, %v14278_v55  ;;  %v5516_v44 = vpack.c.bf16 %v5388_v28, %v5388_v28  ;;  %v5515_v47 = vpack.c.bf16 %v5387_v52, %v5387_v52 }
 0xa44   : > { %v5514_v54 = vpack.c.bf16 %v5386_v57, %v5386_v57  ;;  %v5383_v50 = vmax.f32 %v5124_v39, 0.0  ;;  %v14282_v57 = vld [vmem:[#allocation44_spill] sm:$0xff] }
 0xa45   : > { %v5517_v51 = vpack.c.bf16 %v5389_v10, %v5389_v10  ;;  %v5822_v46 = vunpack.c.l.b16 %v5516_v44  ;;  %v5821_v28 = vunpack.c.l.b16 %v5515_v47 }
 0xa46   : > { %v5820_v24 = vunpack.c.l.b16 %v5514_v54  ;;  %v14283_v54 = vld [vmem:[#allocation201_spill] sm:$0xff] }
 0xa47   : > { %v5823_v49 = vunpack.c.l.b16 %v5517_v51  ;;  %v5831_v20 = vpack.c.b16 %v5822_v46, %v5821_v28  ;;  %v5819_v51 = vunpack.c.l.b16 %v5513_v34  ;;  %v14284_v46 = vld [vmem:[#allocation202_spill] sm:$0xff]  ;;  %v14286_v34 = vld [vmem:[#allocation48_spill] sm:$0xff] }
 0xa48   : > { %v5140_v14 = vpop.f32.mrf.mxu1 }
 0xa49   : > { %v5141_v9 = vadd.f32 %v5140_v14, %v14276_v19  ;;  %v5384_v14 = vmax.f32 %v5126_v2, 0.0 }
 0xa4b   : > { %v5390_v32 = vmax.f32 %v5141_v9, 0.0  ;;  %v14280_v9 = vld [vmem:[#allocation147_spill] sm:$0xff]  ;;  %v5512_v52 = vpack.c.bf16 %v5384_v14, %v5384_v14 }
 0xa4d   : > { %v5518_v63 = vpack.c.bf16 %v5390_v32, %v5390_v32  ;;  %v14281_v32 = vld [vmem:[#allocation42_spill] sm:$0xff]  ;;  %v5818_v2 = vunpack.c.l.b16 %v5512_v52 }
 0xa4f   : > { %v5824_v4 = vunpack.c.l.b16 %v5518_v63  ;;  %v5511_v63 = vpack.c.bf16 %v5383_v50, %v5383_v50  ;;  %v14285_v50 = vld [vmem:[#allocation148_spill] sm:$0xff] }
 0xa50   : > { %v5143_v56 = vpop.f32.mrf.mxu1 }
 0xa51   : > { %v5832_v10 = vpack.c.b16 %v5824_v4, %v5823_v49  ;;  %v5144_v19 = vadd.f32 %v5143_v56, %v14281_v32  ;;  %v5830_v49 = vpack.c.b16 %v5820_v24, %v5819_v51  ;;  %v5817_v44 = vunpack.c.l.b16 %v5511_v63 }
 0xa52   : > { %5782 = vmatmul.bf16.gmra.mxu0 %v14280_v9  ;;  %v4983_v9 = vpack.c.bf16 %v14284_v46, %v14283_v54 }
 0xa53   : > { %5182 = vmatmul.bf16.gmra.mxu1 %v4982_v59  ;;  %5841 = vmatpush.bf16.msra.mxu2 %v5832_v10  ;;  %v5391_v48 = vmax.f32 %v5144_v19, 0.0  ;;  %v5829_v56 = vpack.c.b16 %v5818_v2, %v5817_v44  ;;  %v14288_v44 = vld [vmem:[#allocation203_spill] sm:$0xff] }
 0xa55   : > { %v5519_v39 = vpack.c.bf16 %v5391_v48, %v5391_v48 }
 0xa57   : > { %5842 = vmatpush.bf16.msra.mxu2 %v5831_v20  ;;  %v5906_v59 = vunpack.c.l.b16 %v5519_v39  ;;  %v14287_v20 = vld [vmem:[#allocation50_spill] sm:$0xff]  ;;  %v14289_v39 = vld [vmem:[#allocation204_spill] sm:$0xff] }
 0xa58   : > { %v5145_v25 = vpop.f32.mrf.mxu1 }
 0xa59   : > { %v5146_v4 = vadd.f32 %v5145_v25, %v14282_v57  ;;  %v14307_v57 = vld [vmem:[#allocation78_spill] sm:$0xff] }
 0xa5b   : > { %v5392_v0 = vmax.f32 %v5146_v4, 0.0  ;;  %5843 = vmatpush.bf16.msra.mxu2 %v5830_v49 }
 0xa5d   : > { %v5520_v47 = vpack.c.bf16 %v5392_v0, %v5392_v0  ;;  %v4984_v0 = vpack.c.bf16 %v14289_v39, %v14288_v44 }
 0xa5f   : > { %v5907_v10 = vunpack.c.l.b16 %v5520_v47  ;;  %5844 = vmatpush.bf16.msra.mxu2 %v5829_v56  ;;  %v14290_v47 = vld [vmem:[#allocation52_spill] sm:$0xff] }
 0xa60   : > { %v5148_v14 = vpop.f32.mrf.mxu1 }
 0xa61   : > { %v11861_v19 = vpack.c.b16 %v5907_v10, %v5906_v59  ;;  %v5149_v28 = vadd.f32 %v5148_v14, %v14286_v34  ;;  %v14291_v10 = vld [vmem:[#allocation54_spill] sm:$0xff] }
 0xa62   : > { %5787 = vmatmul.bf16.gmra.mxu0 %v14285_v50 }
 0xa63   : > { %5187 = vmatmul.bf16.gmra.mxu1 %v4983_v9  ;;  %5845 = vmatpush.bf16.msra.mxu2 %v11839_v36  ;;  %v5393_v52 = vmax.f32 %v5149_v28, 0.0 }
 0xa65   : > { %v5521_v51 = vpack.c.bf16 %v5393_v52, %v5393_v52  ;;  %v14293_v52 = vld [vmem:[#allocation206_spill] sm:$0xff] }
 0xa67   : > { %5846 = vmatpush.bf16.msra.mxu2 %v11833_v15  ;;  %v5908_v2 = vunpack.c.l.b16 %v5521_v51  ;;  %v14294_v51 = vld [vmem:[#allocation56_spill] sm:$0xff] }
 0xa68   : > { %v5150_v24 = vpop.f32.mrf.mxu1 }
 0xa69   : > { %v5151_v63 = vadd.f32 %v5150_v24, %v14287_v20 }
 0xa6b   : > { %v5394_v48 = vmax.f32 %v5151_v63, 0.0  ;;  %5847 = vmatpush.bf16.msra.mxu2 %v11826_v60 }
 0xa6d   : > { %v5522_v25 = vpack.c.bf16 %v5394_v48, %v5394_v48 }
 0xa6f   : > { %v5909_v4 = vunpack.c.l.b16 %v5522_v25  ;;  %5848 = vmatpush.bf16.msra.mxu2 %v11815_v6  ;;  %v14292_v6 = vld [vmem:[#allocation205_spill] sm:$0xff] }
 0xa70   : > { %v5153_v49 = vpop.f32.mrf.mxu1  ;;  %v4985_v24 = vpack.c.bf16 %v14293_v52, %v14292_v6  ;;  %v14298_v6 = vld [vmem:[#allocation209_spill] sm:$0xff]  ;;  %v14299_v52 = vld [vmem:[#allocation210_spill] sm:$0xff] }
 0xa71   : > { %v11872_v36 = vpack.c.b16 %v5909_v4, %v5908_v2  ;;  %v5154_v15 = vadd.f32 %v5153_v49, %v14290_v47  ;;  %v14295_v4 = vld [vmem:[#allocation58_spill] sm:$0xff]  ;;  %v14306_v47 = vld [vmem:[#allocation76_spill] sm:$0xff] }
 0xa73   : > { %5192 = vmatmul.bf16.gmra.mxu1 %v4984_v0  ;;  %v5395_v56 = vmax.f32 %v5154_v15, 0.0 }
 0xa75   : > { %v5523_v54 = vpack.c.bf16 %v5395_v56, %v5395_v56 }
 0xa77   : > { %v5910_v9 = vunpack.c.l.b16 %v5523_v54  ;;  %v14297_v54 = vld [vmem:[#allocation208_spill] sm:$0xff] }
 0xa78   : > { %v5155_v59 = vpop.f32.mrf.mxu1 }
 0xa79   : > { %v5156_v14 = vadd.f32 %v5155_v59, %v14291_v10 }
 0xa7b   : > { %v5396_v60 = vmax.f32 %v5156_v14, 0.0  ;;  %v14296_v14 = vld [vmem:[#allocation207_spill] sm:$0xff] }
 0xa7d   : > { %v5524_v46 = vpack.c.bf16 %v5396_v60, %v5396_v60  ;;  %v4986_v60 = vpack.c.bf16 %v14297_v54, %v14296_v14  ;;  %v14302_v14 = vld [vmem:[#allocation122_spill] sm:$0xff] }
 0xa7f   : > { %v5911_v50 = vunpack.c.l.b16 %v5524_v46 }
 0xa80   : > { %v5158_v28 = vpop.f32.mrf.mxu1 }
 0xa81   : > { %v11878_v63 = vpack.c.b16 %v5911_v50, %v5910_v9  ;;  %v5159_v48 = vadd.f32 %v5158_v28, %v14294_v51  ;;  %v4716_v50 = vpop.f32.mrf.mxu2 }
 0xa83   : > { %5197 = vmatmul.bf16.gmra.mxu1 %v4985_v24  ;;  %v5397_v25 = vmax.f32 %v5159_v48, 0.0  ;;  %v4987_v24 = vpack.c.bf16 %v14299_v52, %v14298_v6  ;;  %v14303_v52 = vld [vmem:[#allocation194_spill] sm:$0xff] }
 0xa85   : > { %v5525_v44 = vpack.c.bf16 %v5397_v25, %v5397_v25  ;;  %v14300_v25 = vld [vmem:[#allocation115_spill] sm:$0xff] }
 0xa87   : > { %v5912_v15 = vunpack.c.l.b16 %v5525_v44  ;;  %v14301_v44 = vld [vmem:[#allocation211_spill] sm:$0xff] }
 0xa88   : > { %v5160_v2 = vpop.f32.mrf.mxu1 }
 0xa89   : > { %v5161_v49 = vadd.f32 %v5160_v2, %v14295_v4  ;;  %v4718_v48 = vpop.f32.mrf.mxu2  ;;  %4929 = vmatmul.bf16.gmra.mxu2 %v14300_v25  ;;  %v14304_v4 = vld [vmem:[#allocation195_spill] sm:$0xff] }
 0xa8a   : > { %v4990_v42 = vpack.c.bf16 %v4718_v48, %v4716_v50  ;;  %v14313_v50 = vld [vmem:[#allocation120_spill] sm:$0xff] }
 0xa8b   : > { %v5398_v39 = vmax.f32 %v5161_v49, 0.0 }
 0xa8d   : > { %v5526_v0 = vpack.c.bf16 %v5398_v39, %v5398_v39  ;;  %v4988_v39 = vpack.c.bf16 %v11602_v3, %v14301_v44  ;;  %v14305_v3 = vld [vmem:[#allocation77_spill] sm:$0xff] }
 0xa8f   : > { %v5913_v56 = vunpack.c.l.b16 %v5526_v0 }
 0xa90   : > { %v5163_v59 = vpop.f32.mrf.mxu1 }
 0xa91   : > { %v11884_v46 = vpack.c.b16 %v5913_v56, %v5912_v15  ;;  %v11891_v0 = vpop.f32.mrf.mxu2 }
 0xa93   : > { %5202 = vmatmul.bf16.gmra.mxu1 %v4986_v60  ;;  %v4989_v60 = vpack.c.bf16 %v11639_v58, %v11634_v12  ;;  %v14309_v12 = vld [vmem:[#allocation74_spill] sm:$0xff] }
 0xa98   : > { %v5165_v9 = vpop.f32.mrf.mxu1 }
 0xa99   : > { %v11893_v56 = vpop.f32.mrf.mxu2  ;;  %4934 = vmatmul.bf16.gmra.mxu2 %v14302_v14 }
 0xaa0   : > { %v5168_v28 = vpop.f32.mrf.mxu1 }
 0xaa1   : > { %v11898_v6 = vpop.f32.mrf.mxu2  ;;  %v5169_v58 = vadd.f32 %v5168_v28, %v14309_v12 }
 0xaa3   : > { %5207 = vmatmul.bf16.gmra.mxu1 %v4987_v24 }
 0xaa8   : > { %v5170_v2 = vpop.f32.mrf.mxu1 }
 0xaa9   : > { %v5171_v20 = vadd.f32 %v5170_v2, %v14306_v47  ;;  %v11905_v61 = vpop.f32.mrf.mxu2  ;;  %4939 = vmatmul.bf16.gmra.mxu2 %v14308_v22  ;;  %v5401_v2 = vmax.f32 %v5169_v58, 0.0 }
 0xab0   : > { %v5173_v49 = vpop.f32.mrf.mxu1 }
 0xab1   : > { %v5174_v44 = vadd.f32 %v5173_v49, %v14305_v3  ;;  %v14311_v3 = vld [vmem:[#allocation81_spill] sm:$0xff] }
 0xab2   : > { %v5164_v31 = vadd.f32 %v5163_v59, %v14311_v3 }
 0xab3   : > { %5212 = vmatmul.bf16.gmra.mxu1 %v4988_v39  ;;  %v5403_v55 = vmax.f32 %v5174_v44, 0.0  ;;  %v11911_v44 = vpop.f32.mrf.mxu2 }
 0xab8   : > { %v5175_v15 = vpop.f32.mrf.mxu1 }
 0xab9   : > { %v5176_v51 = vadd.f32 %v5175_v15, %v14304_v4  ;;  %v5402_v4 = vmax.f32 %v5171_v20, 0.0  ;;  %v14312_v20 = vld [vmem:[#allocation196_spill] sm:$0xff] }
 0xabb   : > { %v5404_v34 = vmax.f32 %v5176_v51, 0.0  ;;  %v5531_v51 = vpack.c.bf16 %v5403_v55, %v5403_v55  ;;  %v5530_v23 = vpack.c.bf16 %v5402_v4, %v5402_v4 }
 0xabd   : > { %v5532_v49 = vpack.c.bf16 %v5404_v34, %v5404_v34  ;;  %v5917_v58 = vunpack.c.l.b16 %v5530_v23 }
 0xabf   : > { %v5919_v62 = vunpack.c.l.b16 %v5532_v49 }
 0xac0   : > { %v5178_v54 = vpop.f32.mrf.mxu1 }
 0xac1   : > { %v5179_v24 = vadd.f32 %v5178_v54, %v14303_v52  ;;  %v14310_v52 = vld [vmem:[#allocation73_spill] sm:$0xff] }
 0xac2   : > { %v5166_v15 = vadd.f32 %v5165_v9, %v14310_v52  ;;  %v5918_v9 = vunpack.c.l.b16 %v5531_v51 }
 0xac3   : > { %5217 = vmatmul.bf16.gmra.mxu1 %v4989_v60  ;;  %v5405_v10 = vmax.f32 %v5179_v24, 0.0 }
 0xac4   : > { %v5928_v55 = vpack.c.b16 %v5919_v62, %v5918_v9  ;;  %v14315_v9 = vld [vmem:[#allocation107_spill] sm:$0xff] }
 0xac5   : > { %v5533_v54 = vpack.c.bf16 %v5405_v10, %v5405_v10  ;;  %v5529_v10 = vpack.c.bf16 %v5401_v2, %v5401_v2 }
 0xac7   : > { %v5920_v47 = vunpack.c.l.b16 %v5533_v54 }
 0xac8   : > { %v5180_v39 = vpop.f32.mrf.mxu1 }
 0xac9   : > { %v5181_v32 = vadd.f32 %v5180_v39, %v14307_v57  ;;  %v5400_v57 = vmax.f32 %v5166_v15, 0.0 }
 0xacb   : > { %v5406_v60 = vmax.f32 %v5181_v32, 0.0  ;;  %v5399_v32 = vmax.f32 %v5164_v31, 0.0  ;;  %v5528_v59 = vpack.c.bf16 %v5400_v57, %v5400_v57  ;;  %v14314_v31 = vld [vmem:[#allocation71_spill] sm:$0xff] }
 0xacd   : > { %v5534_v24 = vpack.c.bf16 %v5406_v60, %v5406_v60  ;;  %v5527_v54 = vpack.c.bf16 %v5399_v32, %v5399_v32  ;;  %v5916_v60 = vunpack.c.l.b16 %v5529_v10  ;;  %v5915_v49 = vunpack.c.l.b16 %v5528_v59 }
 0xacf   : > { %v5921_v39 = vunpack.c.l.b16 %v5534_v24  ;;  %v5927_v48 = vpack.c.b16 %v5917_v58, %v5916_v60  ;;  %v4733_v24 = vpop.f32.mrf.mxu2  ;;  %4944 = vmatmul.bf16.gmra.mxu2 %v14314_v31  ;;  %v5914_v2 = vunpack.c.l.b16 %v5527_v54 }
 0xad0   : > { %v5183_v41 = vpop.f32.mrf.mxu1 }
 0xad1   : > { %v5929_v28 = vpack.c.b16 %v5921_v39, %v5920_v47  ;;  %v5184_v34 = vadd.f32 %v5183_v41, %v14312_v20  ;;  %v5926_v57 = vpack.c.b16 %v5915_v49, %v5914_v2 }
 0xad3   : > { %5222 = vmatmul.bf16.gmra.mxu1 %v4990_v42  ;;  %5938 = vmatpush.bf16.msra.mxu0 %v5929_v28  ;;  %v5407_v15 = vmax.f32 %v5184_v34, 0.0  ;;  %v4991_v28 = vpack.c.bf16 %v11893_v56, %v11891_v0 }
 0xad5   : > { %v5535_v51 = vpack.c.bf16 %v5407_v15, %v5407_v15  ;;  %v14317_v15 = vld [vmem:[#allocation104_spill] sm:$0xff] }
 0xad7   : > { %5939 = vmatpush.bf16.msra.mxu0 %v5928_v55  ;;  %v6003_v23 = vunpack.c.l.b16 %v5535_v51  ;;  %v4736_v32 = vpop.f32.mrf.mxu2  ;;  %v14316_v55 = vld [vmem:[#allocation108_spill] sm:$0xff] }
 0xad8   : > { %v5185_v4 = vpop.f32.mrf.mxu1  ;;  %v14318_v51 = vld [vmem:[#allocation164_spill] sm:$0xff] }
 0xad9   : > { %v5186_v47 = vadd.f32 %v5185_v4, %v14313_v50 }
 0xadb   : > { %v5408_v41 = vmax.f32 %v5186_v47, 0.0  ;;  %5940 = vmatpush.bf16.msra.mxu0 %v5927_v48 }
 0xadd   : > { %v5536_v42 = vpack.c.bf16 %v5408_v41, %v5408_v41  ;;  %v14319_v41 = vld [vmem:[#allocation109_spill] sm:$0xff] }
 0xadf   : > { %v6004_v62 = vunpack.c.l.b16 %v5536_v42  ;;  %5941 = vmatpush.bf16.msra.mxu0 %v5926_v57  ;;  %v4738_v60 = vpop.f32.mrf.mxu2  ;;  %5660 = vmatmul.bf16.vlgmr.msrb.gmra.mxu2 %v14317_v15 }
 0xae0   : > { %v5188_v39 = vpop.f32.mrf.mxu1 }
 0xae1   : > { %v11918_v10 = vpack.c.b16 %v6004_v62, %v6003_v23  ;;  %v5189_v34 = vadd.f32 %v5188_v39, %v14315_v9 }
 0xae3   : > { %5227 = vmatmul.bf16.gmra.mxu1 %v4991_v28  ;;  %5942 = vmatpush.bf16.msra.mxu0 %v11884_v46  ;;  %v5409_v59 = vmax.f32 %v5189_v34, 0.0  ;;  %v4992_v46 = vpack.c.bf16 %v11905_v61, %v11898_v6  ;;  %v14321_v28 = vld [vmem:[#allocation121_spill] sm:$0xff] }
 0xae5   : > { %v5537_v4 = vpack.c.bf16 %v5409_v59, %v5409_v59 }
 0xae7   : > { %5943 = vmatpush.bf16.msra.mxu0 %v11878_v63  ;;  %v6005_v56 = vunpack.c.l.b16 %v5537_v4  ;;  %v4741_v63 = vpop.f32.mrf.mxu2 }
 0xae8   : > { %v5190_v58 = vpop.f32.mrf.mxu1 }
 0xae9   : > { %v5191_v54 = vadd.f32 %v5190_v58, %v14316_v55 }
 0xaeb   : > { %v5410_v49 = vmax.f32 %v5191_v54, 0.0  ;;  %5944 = vmatpush.bf16.msra.mxu0 %v11872_v36  ;;  %v14320_v36 = vld [vmem:[#allocation112_spill] sm:$0xff]  ;;  %v4993_v54 = vpack.c.bf16 %v4733_v24, %v11911_v44 }
 0xaed   : > { %v5538_v0 = vpack.c.bf16 %v5410_v49, %v5410_v49  ;;  %v14322_v49 = vld [vmem:[#allocation165_spill] sm:$0xff] }
 0xaef   : > { %v6006_v47 = vunpack.c.l.b16 %v5538_v0  ;;  %5945 = vmatpush.bf16.msra.mxu0 %v11861_v19  ;;  %v4743_v39 = vpop.f32.mrf.mxu2  ;;  %5665 = vmatmul.bf16.gmra.mxu2 %v14321_v28  ;;  %v14323_v0 = vld [vmem:[#allocation118_spill] sm:$0xff] }
 0xaf0   : > { %v5193_v48 = vpop.f32.mrf.mxu1 }
 0xaf1   : > { %v11929_v2 = vpack.c.b16 %v6006_v47, %v6005_v56  ;;  %v5194_v42 = vadd.f32 %v5193_v48, %v14319_v41  ;;  %v14334_v41 = vld [vmem:[#allocation103_spill] sm:$0xff] }
 0xaf2   : > { %5946 = vmatmul.bf16.vlgmr.msra.gmra.mxu0 %v14318_v51 }
 0xaf3   : > { %5232 = vmatmul.bf16.gmra.mxu1 %v4992_v46  ;;  %v5411_v57 = vmax.f32 %v5194_v42, 0.0  ;;  %v14324_v46 = vld [vmem:[#allocation113_spill] sm:$0xff] }
 0xaf5   : > { %v5539_v19 = vpack.c.bf16 %v5411_v57, %v5411_v57  ;;  %v14325_v57 = vld [vmem:[#allocation130_spill] sm:$0xff] }
 0xaf7   : > { %v6007_v58 = vunpack.c.l.b16 %v5539_v19  ;;  %v4746_v15 = vpop.f32.mrf.mxu2 }
 0xaf8   : > { %v5195_v23 = vpop.f32.mrf.mxu1 }
 0xaf9   : > { %v5196_v62 = vadd.f32 %v5195_v23, %v14320_v36 }
 0xafb   : > { %v5412_v34 = vmax.f32 %v5196_v62, 0.0 }
 0xafd   : > { %v5540_v59 = vpack.c.bf16 %v5412_v34, %v5412_v34  ;;  %v4994_v34 = vpack.c.bf16 %v4738_v60, %v4736_v32 }
 0xaff   : > { %v6008_v61 = vunpack.c.l.b16 %v5540_v59  ;;  %v4748_v42 = vpop.f32.mrf.mxu2  ;;  %5670 = vmatmul.bf16.gmra.mxu2 %v14325_v57  ;;  %v14328_v57 = vld [vmem:[#allocation172_spill] sm:$0xff] }
 0xb00   : > { %v5198_v6 = vpop.f32.mrf.mxu1 }
 0xb01   : > { %v11936_v4 = vpack.c.b16 %v6008_v61, %v6007_v58  ;;  %v5199_v56 = vadd.f32 %v5198_v6, %v14323_v0  ;;  %v14326_v61 = vld [vmem:[#allocation166_spill] sm:$0xff] }
 0xb02   : > { %5951 = vmatmul.bf16.gmra.mxu0 %v14322_v49  ;;  %v14327_v49 = vld [vmem:[#allocation132_spill] sm:$0xff] }
 0xb03   : > { %5237 = vmatmul.bf16.gmra.mxu1 %v4993_v54  ;;  %v5413_v47 = vmax.f32 %v5199_v56, 0.0 }
 0xb05   : > { %v5541_v23 = vpack.c.bf16 %v5413_v47, %v5413_v47 }
 0xb07   : > { %v6009_v19 = vunpack.c.l.b16 %v5541_v23  ;;  %v4751_v59 = vpop.f32.mrf.mxu2  ;;  %v4996_v23 = vpack.c.bf16 %v4748_v42, %v4746_v15 }
 0xb08   : > { %v5200_v48 = vpop.f32.mrf.mxu1 }
 0xb09   : > { %v5201_v51 = vadd.f32 %v5200_v48, %v14324_v46  ;;  %v4995_v48 = vpack.c.bf16 %v4743_v39, %v4741_v63  ;;  %v14332_v63 = vld [vmem:[#allocation155_spill] sm:$0xff] }
 0xb0b   : > { %v5414_v62 = vmax.f32 %v5201_v51, 0.0 }
 0xb0d   : > { %v5542_v28 = vpack.c.bf16 %v5414_v62, %v5414_v62 }
 0xb0f   : > { %v6010_v44 = vunpack.c.l.b16 %v5542_v28  ;;  %v4753_v54 = vpop.f32.mrf.mxu2  ;;  %5675 = vmatmul.bf16.gmra.mxu2 %v14327_v49  ;;  %v14329_v28 = vld [vmem:[#allocation150_spill] sm:$0xff] }
 0xb10   : > { %v5203_v24 = vpop.f32.mrf.mxu1  ;;  %v4997_v62 = vpack.c.bf16 %v4753_v54, %v4751_v59  ;;  %v14335_v59 = vld [vmem:[#allocation105_spill] sm:$0xff] }
 0xb11   : > { %v11942_v58 = vpack.c.b16 %v6010_v44, %v6009_v19  ;;  %v14330_v44 = vld [vmem:[#allocation153_spill] sm:$0xff] }
 0xb12   : > { %5956 = vmatmul.bf16.gmra.mxu0 %v14326_v61  ;;  %v14331_v61 = vld [vmem:[#allocation152_spill] sm:$0xff] }
 0xb13   : > { %5242 = vmatmul.bf16.gmra.mxu1 %v4994_v34 }
 0xb18   : > { %v5205_v6 = vpop.f32.mrf.mxu1 }
 0xb19   : > { %v5206_v54 = vadd.f32 %v5205_v6, %v14335_v59  ;;  %v14338_v6 = vpack.c.bf16 %v11646_v30, %v11641_v43 }
 0xb20   : > { %v5208_v56 = vpop.f32.mrf.mxu1 }
 0xb21   : > { %v5209_v15 = vadd.f32 %v5208_v56, %v14334_v41 }
 0xb22   : > { %5961 = vmatmul.bf16.gmra.mxu0 %v14328_v57 }
 0xb23   : > { %5247 = vmatmul.bf16.gmra.mxu1 %v4995_v48  ;;  %v14333_v48 = vld [vmem:[#allocation154_spill] sm:$0xff] }
 0xb28   : > { %v5210_v47 = vpop.f32.mrf.mxu1 }
 0xb29   : > { %v5211_v39 = vadd.f32 %v5210_v47, %v14332_v63 }
 0xb30   : > { %v5213_v51 = vpop.f32.mrf.mxu1 }
 0xb31   : > { %v5214_v46 = vadd.f32 %v5213_v51, %v14331_v61  ;;  %v5417_v51 = vmax.f32 %v5209_v15, 0.0 }
 0xb33   : > { %5252 = vmatmul.bf16.gmra.mxu1 %v4996_v23  ;;  %v5419_v42 = vmax.f32 %v5214_v46, 0.0  ;;  %v5545_v46 = vpack.c.bf16 %v5417_v51, %v5417_v51  ;;  %v11960_v51 = vpop.f32.mrf.mxu2 }
 0xb38   : > { %v5215_v32 = vpop.f32.mrf.mxu1 }
 0xb39   : > { %v5216_v34 = vadd.f32 %v5215_v32, %v14330_v44  ;;  %v14336_v32 = vld [vmem:[#allocation106_spill] sm:$0xff] }
 0xb3a   : > { %v5204_v44 = vadd.f32 %v5203_v24, %v14336_v32 }
 0xb3b   : > { %v5420_v57 = vmax.f32 %v5216_v34, 0.0  ;;  %v5416_v34 = vmax.f32 %v5206_v54, 0.0 }
 0xb3c   : > { %v5415_v56 = vmax.f32 %v5204_v44, 0.0 }
 0xb40   : > { %v5218_v60 = vpop.f32.mrf.mxu1 }
 0xb41   : > { %v5219_v19 = vadd.f32 %v5218_v60, %v14329_v28  ;;  %v5418_v60 = vmax.f32 %v5211_v39, 0.0 }
 0xb43   : > { %5257 = vmatmul.bf16.gmra.mxu1 %v4997_v62  ;;  %v5421_v49 = vmax.f32 %v5219_v19, 0.0  ;;  %v5548_v62 = vpack.c.bf16 %v5420_v57, %v5420_v57  ;;  %v5547_v19 = vpack.c.bf16 %v5419_v42, %v5419_v42  ;;  %v5546_v63 = vpack.c.bf16 %v5418_v60, %v5418_v60 }
 0xb44   : > { %v5543_v57 = vpack.c.bf16 %v5415_v56, %v5415_v56  ;;  %v11969_v56 = vpop.f32.mrf.mxu2 }
 0xb45   : > { %v5549_v23 = vpack.c.bf16 %v5421_v49, %v5421_v49  ;;  %v6015_v49 = vunpack.c.l.b16 %v5547_v19  ;;  %v6014_v24 = vunpack.c.l.b16 %v5546_v63 }
 0xb46   : > { %v6011_v54 = vunpack.c.l.b16 %v5543_v57 }
 0xb47   : > { %v6017_v61 = vunpack.c.l.b16 %v5549_v23 }
 0xb48   : > { %v5220_v0 = vpop.f32.mrf.mxu1 }
 0xb49   : > { %v5221_v36 = vadd.f32 %v5220_v0, %v14333_v48  ;;  %v6016_v0 = vunpack.c.l.b16 %v5548_v62 }
 0xb4b   : > { %v5422_v55 = vmax.f32 %v5221_v36, 0.0  ;;  %v14337_v36 = vld [vmem:[#allocation111_spill] sm:$0xff]  ;;  %v6025_v39 = vpack.c.b16 %v6016_v0, %v6015_v49  ;;  %v14341_v0 = vpack.c.bf16 %v11655_v7, %v11650_v37 }
 0xb4c   : > { %v11977_v37 = vpop.f32.mrf.mxu2 }
 0xb4d   : > { %v5550_v28 = vpack.c.bf16 %v5422_v55, %v5422_v55  ;;  %v5544_v55 = vpack.c.bf16 %v5416_v34, %v5416_v34 }
 0xb4f   : > { %v6018_v9 = vunpack.c.l.b16 %v5550_v28  ;;  %v6013_v28 = vunpack.c.l.b16 %v5545_v46  ;;  %v6012_v23 = vunpack.c.l.b16 %v5544_v55  ;;  %v14342_v46 = vld [vmem:[#allocation134_spill] sm:$0xff] }
 0xb50   : > { %v5223_v47 = vpop.f32.mrf.mxu1  ;;  %5680 = vmatmul.bf16.gmra.mxu2 %v14342_v46 }
 0xb51   : > { %v6026_v48 = vpack.c.b16 %v6018_v9, %v6017_v61  ;;  %v5224_v41 = vadd.f32 %v5223_v47, %v14337_v36  ;;  %v14339_v9 = vld [vmem:[#allocation114_spill] sm:$0xff]  ;;  %v6024_v61 = vpack.c.b16 %v6014_v24, %v6013_v28  ;;  %v6023_v30 = vpack.c.b16 %v6012_v23, %v6011_v54  ;;  %v14343_v24 = vld [vmem:[#allocation119_spill] sm:$0xff] }
 0xb53   : > { %5262 = vmatmul.bf16.gmra.mxu1 %v14338_v6  ;;  %6035 = vmatpush.bf16.msrb.mxu2 %v6026_v48  ;;  %v5423_v15 = vmax.f32 %v5224_v41, 0.0  ;;  %v14340_v41 = vld [vmem:[#allocation116_spill] sm:$0xff] }
 0xb54   : > { %v11986_v54 = vpop.f32.mrf.mxu2 }
 0xb55   : > { %v5551_v60 = vpack.c.bf16 %v5423_v15, %v5423_v15 }
 0xb57   : > { %6036 = vmatpush.bf16.msrb.mxu2 %v6025_v39  ;;  %v6100_v48 = vunpack.c.l.b16 %v5551_v60  ;;  %v14346_v60 = vld [vmem:[#allocation136_spill] sm:$0xff] }
 0xb58   : > { %v5225_v42 = vpop.f32.mrf.mxu1 }
 0xb59   : > { %v5226_v44 = vadd.f32 %v5225_v42, %v14339_v9  ;;  %v14368_v9 = vld [vmem:[#allocation61_spill] sm:$0xff] }
 0xb5b   : > { %v5424_v62 = vmax.f32 %v5226_v44, 0.0  ;;  %6037 = vmatpush.bf16.msrb.mxu2 %v6024_v61  ;;  %v14345_v61 = vpack.c.bf16 %v11664_v8, %v11659_v27 }
 0xb5d   : > { %v5552_v43 = vpack.c.bf16 %v5424_v62, %v5424_v62  ;;  %v14362_v62 = vld [vmem:[#allocation198_spill] sm:$0xff] }
 0xb5f   : > { %v6101_v63 = vunpack.c.l.b16 %v5552_v43  ;;  %6038 = vmatpush.bf16.msrb.mxu2 %v6023_v30  ;;  %v14347_v30 = vld [vmem:[#allocation64_spill] sm:$0xff] }
 0xb60   : > { %v5228_v19 = vpop.f32.mrf.mxu1  ;;  %5685 = vmatmul.bf16.gmra.mxu2 %v14346_v60 }
 0xb61   : > { %v11962_v47 = vpack.c.b16 %v6101_v63, %v6100_v48  ;;  %v5229_v34 = vadd.f32 %v5228_v19, %v14340_v41  ;;  %v11992_v19 = vpop.f32.mrf.mxu2 }
 0xb63   : > { %5267 = vmatmul.bf16.gmra.mxu1 %v14341_v0  ;;  %6039 = vmatpush.bf16.msrb.mxu2 %v11942_v58  ;;  %v5425_v49 = vmax.f32 %v5229_v34, 0.0 }
 0xb65   : > { %v5553_v57 = vpack.c.bf16 %v5425_v49, %v5425_v49  ;;  %v14348_v49 = vld [vmem:[#allocation69_spill] sm:$0xff] }
 0xb67   : > { %6040 = vmatpush.bf16.msrb.mxu2 %v11936_v4  ;;  %v6102_v58 = vunpack.c.l.b16 %v5553_v57  ;;  %v14344_v4 = vld [vmem:[#allocation63_spill] sm:$0xff] }
 0xb68   : > { %v5230_v55 = vpop.f32.mrf.mxu1 }
 0xb69   : > { %v5231_v39 = vadd.f32 %v5230_v55, %v14343_v24  ;;  %v12000_v57 = vpop.f32.mrf.mxu2  ;;  %v14372_v24 = vld [vmem:[#allocation66_spill] sm:$0xff] }
 0xb6b   : > { %v5426_v28 = vmax.f32 %v5231_v39, 0.0  ;;  %6041 = vmatpush.bf16.msrb.mxu2 %v11929_v2  ;;  %v14349_v39 = vpack.c.bf16 %v11673_v26, %v11668_v35 }
 0xb6d   : > { %v5554_v7 = vpack.c.bf16 %v5426_v28, %v5426_v28  ;;  %v14350_v28 = vld [vmem:[#allocation138_spill] sm:$0xff] }
 0xb6f   : > { %v6103_v15 = vunpack.c.l.b16 %v5554_v7  ;;  %6042 = vmatpush.bf16.msrb.mxu2 %v11918_v10 }
 0xb70   : > { %v5233_v42 = vpop.f32.mrf.mxu1  ;;  %5690 = vmatmul.bf16.gmra.mxu2 %v14350_v28  ;;  %v14354_v28 = vpack.c.bf16 %v11692_v11, %v11686_v53  ;;  %v14359_v53 = vld [vmem:[#allocation85_spill] sm:$0xff] }
 0xb71   : > { %v11980_v23 = vpack.c.b16 %v6103_v15, %v6102_v58  ;;  %v5234_v44 = vadd.f32 %v5233_v42, %v14344_v4  ;;  %v14351_v42 = vld [vmem:[#allocation70_spill] sm:$0xff] }
 0xb73   : > { %5272 = vmatmul.bf16.gmra.mxu1 %v14345_v61  ;;  %v5427_v2 = vmax.f32 %v5234_v44, 0.0 }
 0xb75   : > { %v5555_v48 = vpack.c.bf16 %v5427_v2, %v5427_v2  ;;  %v12006_v2 = vpop.f32.mrf.mxu2 }
 0xb77   : > { %v6104_v0 = vunpack.c.l.b16 %v5555_v48 }
 0xb78   : > { %v5235_v43 = vpop.f32.mrf.mxu1 }
 0xb79   : > { %v5236_v10 = vadd.f32 %v5235_v43, %v14347_v30  ;;  %v14367_v30 = vld [vmem:[#allocation62_spill] sm:$0xff] }
 0xb7b   : > { %v5428_v63 = vmax.f32 %v5236_v10, 0.0 }
 0xb7d   : > { %v5556_v34 = vpack.c.bf16 %v5428_v63, %v5428_v63  ;;  %v14352_v63 = vpack.c.bf16 %v11682_v33, %v11677_v16 }
 0xb7f   : > { %v6105_v46 = vunpack.c.l.b16 %v5556_v34  ;;  %v12013_v34 = vpop.f32.mrf.mxu2 }
 0xb80   : > { %v5238_v27 = vpop.f32.mrf.mxu1 }
 0xb81   : > { %v11994_v8 = vpack.c.b16 %v6105_v46, %v6104_v0  ;;  %v5239_v55 = vadd.f32 %v5238_v27, %v14348_v49  ;;  %v14353_v0 = vld [vmem:[#allocation72_spill] sm:$0xff]  ;;  %v14366_v49 = vld [vmem:[#allocation67_spill] sm:$0xff] }
 0xb82   : > { %5849 = vmatmul.bf16.vlgmr.msra.gmra.mxu2 %v14353_v0 }
 0xb83   : > { %5277 = vmatmul.bf16.gmra.mxu1 %v14349_v39  ;;  %v5429_v7 = vmax.f32 %v5239_v55, 0.0 }
 0xb85   : > { %v5557_v61 = vpack.c.bf16 %v5429_v7, %v5429_v7 }
 0xb87   : > { %v6106_v10 = vunpack.c.l.b16 %v5557_v61  ;;  %v12018_v55 = vpop.f32.mrf.mxu2 }
 0xb88   : > { %v5240_v15 = vpop.f32.mrf.mxu1 }
 0xb89   : > { %v5241_v44 = vadd.f32 %v5240_v15, %v14351_v42  ;;  %v14355_v15 = vld [vmem:[#allocation80_spill] sm:$0xff]  ;;  %v14365_v42 = vld [vmem:[#allocation94_spill] sm:$0xff] }
 0xb8b   : > { %v5430_v60 = vmax.f32 %v5241_v44, 0.0 }
 0xb8d   : > { %v5558_v43 = vpack.c.bf16 %v5430_v60, %v5430_v60  ;;  %v12030_v60 = vpop.f32.mrf.mxu0 }
 0xb8f   : > { %v6107_v48 = vunpack.c.l.b16 %v5558_v43  ;;  %v12023_v7 = vpop.f32.mrf.mxu2  ;;  %v14356_v43 = vld [vmem:[#allocation213_spill] sm:$0xff] }
 0xb90   : > { %v5243_v35 = vpop.f32.mrf.mxu1 }
 0xb91   : > { %v12008_v26 = vpack.c.b16 %v6107_v48, %v6106_v10  ;;  %v14357_v10 = vld [vmem:[#allocation212_spill] sm:$0xff] }
 0xb92   : > { %5854 = vmatmul.bf16.gmra.mxu2 %v14355_v15  ;;  %v14358_v48 = vpack.c.bf16 %v14356_v43, %v14357_v10  ;;  %v14360_v15 = vld [vmem:[#allocation173_spill] sm:$0xff]  ;;  %v14361_v10 = vld [vmem:[#allocation46_spill] sm:$0xff] }
 0xb93   : > { %5282 = vmatmul.bf16.gmra.mxu1 %v14352_v63 }
 0xb97   : > { %v12028_v44 = vpop.f32.mrf.mxu2 }
 0xb98   : > { %v5245_v27 = vpop.f32.mrf.mxu1 }
 0xb99   : > { %v5246_v32 = vadd.f32 %v5245_v27, %v14372_v24  ;;  %v14374_v27 = vld [vmem:[#allocation35_spill] sm:$0xff] }
 0xb9f   : > { %v12035_v63 = vpop.f32.mrf.mxu2 }
 0xba0   : > { %v5248_v39 = vpop.f32.mrf.mxu1 }
 0xba2   : > { %5859 = vmatmul.bf16.gmra.mxu2 %v14359_v53  ;;  %v14363_v53 = vld [vmem:[#allocation214_spill] sm:$0xff] }
 0xba3   : > { %5287 = vmatmul.bf16.gmra.mxu1 %v14354_v28  ;;  %v12040_v28 = vpop.f32.mrf.mxu0  ;;  %5966 = vmatmul.bf16.gmra.mxu0 %v14360_v15  ;;  %v14364_v6 = vpack.c.bf16 %v14362_v62, %v14363_v53 }
 0xba7   : > { %v12045_v46 = vpop.f32.mrf.mxu2 }
 0xba8   : > { %v5250_v33 = vpop.f32.mrf.mxu1 }
 0xba9   : > { %v5251_v36 = vadd.f32 %v5250_v33, %v14368_v9 }
 0xbab   : > { %v12047_v43 = vpop.f32.mrf.mxu0  ;;  %v5434_v33 = vmax.f32 %v5251_v36, 0.0 }
 0xbad   : > { %v5562_v3 = vpack.c.bf16 %v5434_v33, %v5434_v33 }
 0xbaf   : > { %v12053_v11 = vpop.f32.mrf.mxu2 }
 0xbb0   : > { %v5253_v61 = vpop.f32.mrf.mxu1 }
 0xbb1   : > { %v5254_v4 = vadd.f32 %v5253_v61, %v14367_v30 }
 0xbb2   : > { %5864 = vmatmul.bf16.gmra.mxu2 %v14365_v42  ;;  %v5432_v42 = vmax.f32 %v5246_v32, 0.0 }
 0xbb3   : > { %5292 = vmatmul.bf16.gmra.mxu1 %v14358_v48  ;;  %v12062_v62 = vpop.f32.mrf.mxu0  ;;  %v5435_v61 = vmax.f32 %v5254_v4, 0.0 }
 0xbb4   : > { %v5560_v32 = vpack.c.bf16 %v5432_v42, %v5432_v42 }
 0xbb5   : > { %v5563_v20 = vpack.c.bf16 %v5435_v61, %v5435_v61 }
 0xbb7   : > { %v12068_v30 = vpop.f32.mrf.mxu2  ;;  %v6112_v5 = vunpack.c.l.b16 %v5563_v20 }
 0xbb8   : > { %v5255_v0 = vpop.f32.mrf.mxu1 }
 0xbb9   : > { %v5256_v15 = vadd.f32 %v5255_v0, %v14366_v49  ;;  %v14371_v0 = vld [vmem:[#allocation60_spill] sm:$0xff] }
 0xbba   : > { %v5249_v53 = vadd.f32 %v5248_v39, %v14371_v0 }
 0xbbc   : > { %v5433_v50 = vmax.f32 %v5249_v53, 0.0 }
 0xbbe   : > { %v5561_v0 = vpack.c.bf16 %v5433_v50, %v5433_v50  ;;  %v6109_v50 = vunpack.c.l.b16 %v5560_v32 }
 0xbc0   : > { %v5258_v58 = vpop.f32.mrf.mxu1  ;;  %v6110_v61 = vunpack.c.l.b16 %v5561_v0 }
 0xbc1   : > { %v5259_v48 = vadd.f32 %v5258_v58, %v14361_v10  ;;  %v5436_v58 = vmax.f32 %v5256_v15, 0.0  ;;  %v14369_v10 = vld [vmem:[#allocation47_spill] sm:$0xff] }
 0xbc3   : > { %5297 = vmatmul.bf16.gmra.mxu1 %v14364_v6  ;;  %v5437_v16 = vmax.f32 %v5259_v48, 0.0  ;;  %v14370_v6 = vld [vmem:[#allocation174_spill] sm:$0xff]  ;;  %v5564_v15 = vpack.c.bf16 %v5436_v58, %v5436_v58  ;;  %v6111_v58 = vunpack.c.l.b16 %v5562_v3  ;;  %v14394_v3 = vpack.c.bf16 %v12013_v34, %v12006_v2  ;;  %v14396_v2 = vld [vmem:[#allocation55_spill] sm:$0xff] }
 0xbc4   : > { %5971 = vmatmul.bf16.gmra.mxu0 %v14370_v6 }
 0xbc5   : > { %v5565_v48 = vpack.c.bf16 %v5437_v16, %v5437_v16  ;;  %v6113_v39 = vunpack.c.l.b16 %v5564_v15  ;;  %v12072_v16 = vpop.f32.mrf.mxu0  ;;  %v14378_v15 = vld [vmem:[#allocation175_spill] sm:$0xff] }
 0xbc7   : > { %v6114_v6 = vunpack.c.l.b16 %v5565_v48  ;;  %v6122_v53 = vpack.c.b16 %v6113_v39, %v6112_v5 }
 0xbc8   : > { %v5260_v41 = vpop.f32.mrf.mxu1 }
 0xbc9   : > { %v5261_v59 = vadd.f32 %v5260_v41, %v14369_v10  ;;  %v14373_v41 = vld [vmem:[#allocation65_spill] sm:$0xff] }
 0xbca   : > { %v5244_v10 = vadd.f32 %v5243_v35, %v14373_v41  ;;  %v12078_v35 = vpop.f32.mrf.mxu2  ;;  %v14416_v41 = vld [vmem:[#allocation180_spill] sm:$0xff] }
 0xbcb   : > { %v5438_v49 = vmax.f32 %v5261_v59, 0.0 }
 0xbcc   : > { %v5431_v59 = vmax.f32 %v5244_v10, 0.0  ;;  %v14377_v10 = vld [vmem:[#allocation39_spill] sm:$0xff] }
 0xbcd   : > { %v5566_v9 = vpack.c.bf16 %v5438_v49, %v5438_v49  ;;  %v14375_v49 = vpack.c.bf16 %v11969_v56, %v11960_v51  ;;  %v6121_v56 = vpack.c.b16 %v6111_v58, %v6110_v61  ;;  %v12084_v33 = vpop.f32.mrf.mxu0  ;;  %v14380_v58 = vld [vmem:[#allocation43_spill] sm:$0xff] }
 0xbcf   : > { %v6115_v12 = vunpack.c.l.b16 %v5566_v9  ;;  %v14376_v9 = vld [vmem:[#allocation97_spill] sm:$0xff] }
 0xbd0   : > { %v5263_v52 = vpop.f32.mrf.mxu1  ;;  %5869 = vmatmul.bf16.gmra.mxu2 %v14376_v9 }
 0xbd1   : > { %v6123_v4 = vpack.c.b16 %v6115_v12, %v6114_v6  ;;  %v5264_v36 = vadd.f32 %v5263_v52, %v14374_v27  ;;  %v5559_v12 = vpack.c.bf16 %v5431_v59, %v5431_v59 }
 0xbd2   : > { %v12089_v6 = vpop.f32.mrf.mxu2 }
 0xbd3   : > { %5302 = vmatmul.bf16.gmra.mxu1 %v14375_v49  ;;  %6132 = vmatpush.bf16.msrb.mxu0 %v6123_v4  ;;  %v5439_v48 = vmax.f32 %v5264_v36, 0.0  ;;  %v6108_v5 = vunpack.c.l.b16 %v5559_v12  ;;  %v14381_v12 = vpack.c.bf16 %v11986_v54, %v11977_v37 }
 0xbd4   : > { %5976 = vmatmul.bf16.gmra.mxu0 %v14378_v15 }
 0xbd5   : > { %v5567_v42 = vpack.c.bf16 %v5439_v48, %v5439_v48  ;;  %v6120_v4 = vpack.c.b16 %v6109_v50, %v6108_v5  ;;  %v12091_v9 = vpop.f32.mrf.mxu0  ;;  %v14382_v48 = vld [vmem:[#allocation100_spill] sm:$0xff] }
 0xbd6   : > { %14379 = vst [vmem:[#allocation197_spill] sm:$0xff] %v12091_v9 }
 0xbd7   : > { %6133 = vmatpush.bf16.msrb.mxu0 %v6122_v53  ;;  %v6197_v59 = vunpack.c.l.b16 %v5567_v42  ;;  %v14384_v42 = vld [vmem:[#allocation176_spill] sm:$0xff] }
 0xbd8   : > { %v5265_v52 = vpop.f32.mrf.mxu1 }
 0xbd9   : > { %v5266_v51 = vadd.f32 %v5265_v52, %v14377_v10 }
 0xbda   : > { %v12100_v61 = vpop.f32.mrf.mxu2 }
 0xbdb   : > { %v5440_v0 = vmax.f32 %v5266_v51, 0.0  ;;  %6134 = vmatpush.bf16.msrb.mxu0 %v6121_v56  ;;  %v14383_v56 = vld [vmem:[#allocation45_spill] sm:$0xff] }
 0xbdd   : > { %v5568_v39 = vpack.c.bf16 %v5440_v0, %v5440_v0  ;;  %v12107_v5 = vpop.f32.mrf.mxu0 }
 0xbdf   : > { %v6198_v36 = vunpack.c.l.b16 %v5568_v39  ;;  %6135 = vmatpush.bf16.msrb.mxu0 %v6120_v4 }
 0xbe0   : > { %v5268_v49 = vpop.f32.mrf.mxu1  ;;  %5874 = vmatmul.bf16.gmra.mxu2 %v14382_v48 }
 0xbe1   : > { %v12093_v32 = vpack.c.b16 %v6198_v36, %v6197_v59  ;;  %v5269_v53 = vadd.f32 %v5268_v49, %v14380_v58  ;;  %v9117_v36 = vld [vmem:[%s13170_s5 + $0x38] sm:$0xff] }
 0xbe2   : > { %v12113_v0 = vpop.f32.mrf.mxu2 }
 0xbe3   : > { %5307 = vmatmul.bf16.gmra.mxu1 %v14381_v12  ;;  %6136 = vmatpush.bf16.msrb.mxu0 %v12008_v26  ;;  %v5441_v52 = vmax.f32 %v5269_v53, 0.0  ;;  %v14386_v12 = vld [vmem:[#allocation49_spill] sm:$0xff] }
 0xbe4   : > { %5981 = vmatmul.bf16.gmra.mxu0 %v14384_v42 }
 0xbe5   : > { %v5569_v54 = vpack.c.bf16 %v5441_v52, %v5441_v52  ;;  %v12119_v49 = vpop.f32.mrf.mxu0 }
 0xbe6   : > { %14385 = vst [vmem:[#allocation137_spill] sm:$0xff] %v12119_v49 }
 0xbe7   : > { %6137 = vmatpush.bf16.msrb.mxu0 %v11994_v8  ;;  %v6199_v39 = vunpack.c.l.b16 %v5569_v54 }
 0xbe8   : > { %v5270_v51 = vpop.f32.mrf.mxu1 }
 0xbe9   : > { %v5271_v15 = vadd.f32 %v5270_v51, %v14383_v56  ;;  %v14388_v51 = vld [vmem:[#allocation101_spill] sm:$0xff] }
 0xbea   : > { %v12127_v52 = vpop.f32.mrf.mxu2 }
 0xbeb   : > { %v5442_v26 = vmax.f32 %v5271_v15, 0.0  ;;  %6138 = vmatpush.bf16.msrb.mxu0 %v11980_v23  ;;  %v14387_v23 = vpack.c.bf16 %v12000_v57, %v11992_v19  ;;  %v14389_v19 = vld [vmem:[#allocation51_spill] sm:$0xff] }
 0xbed   : > { %v5570_v8 = vpack.c.bf16 %v5442_v26, %v5442_v26  ;;  %v9119_v26 = vld [vmem:[%s13170_s5 + $0x28] sm:$0xff] }
 0xbef   : > { %v6200_v4 = vunpack.c.l.b16 %v5570_v8  ;;  %6139 = vmatpush.bf16.msrb.mxu0 %v11962_v47  ;;  %v9118_v47 = vld [vmem:[%s13170_s5 + $0x30] sm:$0xff]  ;;  %v12139_v8 = vpop.f32.mrf.mxu0 }
 0xbf0   : > { %v5273_v59 = vpop.f32.mrf.mxu1  ;;  %5879 = vmatmul.bf16.gmra.mxu2 %v14388_v51  ;;  %14390 = vst [vmem:[#allocation139_spill] sm:$0xff] %v12139_v8 }
 0xbf1   : > { %v12121_v53 = vpack.c.b16 %v6200_v4, %v6199_v39  ;;  %v5274_v48 = vadd.f32 %v5273_v59, %v14386_v12  ;;  %v14391_v39 = vld [vmem:[#allocation127_spill] sm:$0xff] }
 0xbf3   : > { %6439 = vmatpush.bf16.msra.mxu0 %v9117_v36  ;;  %5312 = vmatmul.bf16.gmra.mxu1 %v14387_v23  ;;  %v5443_v15 = vmax.f32 %v5274_v48, 0.0  ;;  %v12144_v48 = vpop.f32.mrf.mxu2  ;;  %v9120_v23 = vld [vmem:[%s13170_s5 + $0x20] sm:$0xff] }
 0xbf4   : > { %6140 = vmatmul.bf16.vlgmr.msrb.gmra.mxu0 %v14391_v39  ;;  %v9121_v39 = vld [vmem:[%s13170_s5 + $0x18] sm:$0xff] }
 0xbf5   : > { %v5571_v59 = vpack.c.bf16 %v5443_v15, %v5443_v15 }
 0xbf7   : > { %6440 = vmatpush.bf16.msra.mxu0 %v9118_v47  ;;  %v6201_v47 = vunpack.c.l.b16 %v5571_v59  ;;  %v12152_v37 = vpop.f32.mrf.mxu0  ;;  %v14395_v59 = vld [vmem:[#allocation102_spill] sm:$0xff] }
 0xbf8   : > { %v5275_v54 = vpop.f32.mrf.mxu1  ;;  %14392 = vst [vmem:[#allocation199_spill] sm:$0xff] %v12152_v37 }
 0xbf9   : > { %v5276_v57 = vadd.f32 %v5275_v54, %v14389_v19 }
 0xbfb   : > { %6441 = vmatpush.bf16.msra.mxu0 %v9119_v26  ;;  %v5444_v36 = vmax.f32 %v5276_v57, 0.0  ;;  %v14393_v57 = vld [vmem:[#allocation53_spill] sm:$0xff] }
 0xbfd   : > { %v5572_v51 = vpack.c.bf16 %v5444_v36, %v5444_v36  ;;  %v9122_v36 = vld [vmem:[%s13170_s5 + $0x10] sm:$0xff] }
 0xbff   : > { %6442 = vmatpush.bf16.msra.mxu0 %v9120_v23  ;;  %v6202_v26 = vunpack.c.l.b16 %v5572_v51  ;;  %v12160_v23 = vpop.f32.mrf.mxu2 }
 0xc00   : > { %v5278_v54 = vpop.f32.mrf.mxu1  ;;  %5884 = vmatmul.bf16.gmra.mxu2 %v14395_v59 }
 0xc01   : > { %v12154_v15 = vpack.c.b16 %v6202_v26, %v6201_v47  ;;  %v5279_v4 = vadd.f32 %v5278_v54, %v14393_v57  ;;  %v9123_v54 = vld [vmem:[%s13170_s5 + $0x8] sm:$0xff]  ;;  %v9124_v47 = vld [vmem:[%s13170_s5] sm:$0xff] }
 0xc03   : > { %6443 = vmatpush.bf16.msra.mxu0 %v9121_v39  ;;  %5317 = vmatmul.bf16.gmra.mxu1 %v14394_v3  ;;  %v5445_v51 = vmax.f32 %v5279_v4, 0.0  ;;  %v12172_v3 = vpop.f32.mrf.mxu0  ;;  %v14398_v39 = vld [vmem:[#allocation131_spill] sm:$0xff] }
 0xc04   : > { %14397 = vst [vmem:[#allocation200_spill] sm:$0xff] %v12172_v3  ;;  %6145 = vmatmul.bf16.gmra.mxu0 %v14398_v39  ;;  %v14400_v39 = vpack.c.bf16 %v12023_v7, %v12018_v55  ;;  %v14405_v7 = vpack.c.bf16 %v12035_v63, %v12028_v44  ;;  %v14410_v63 = vpack.c.bf16 %v12053_v11, %v12045_v46  ;;  %v14414_v11 = vld [vmem:[#allocation86_spill] sm:$0xff] }
 0xc07   : > { %6444 = vmatpush.bf16.msra.mxu0 %v9122_v36  ;;  %v5573_v36 = vpack.c.bf16 %v5445_v51, %v5445_v51  ;;  %v12177_v42 = vpop.f32.mrf.mxu2 }
 0xc08   : > { %v5280_v26 = vpop.f32.mrf.mxu1 }
 0xc09   : > { %v5281_v34 = vadd.f32 %v5280_v26, %v14396_v2 }
 0xc0b   : > { %6445 = vmatpush.bf16.msra.mxu0 %v9123_v54  ;;  %v5446_v4 = vmax.f32 %v5281_v34, 0.0  ;;  %v6203_v54 = vunpack.c.l.b16 %v5573_v36  ;;  %v12182_v2 = vpop.f32.mrf.mxu0  ;;  %v14401_v34 = vld [vmem:[#allocation177_spill] sm:$0xff] }
 0xc0c   : > { %14399 = vst [vmem:[#allocation141_spill] sm:$0xff] %v12182_v2 }
 0xc0d   : > { %v5574_v50 = vpack.c.bf16 %v5446_v4, %v5446_v4 }
 0xc0f   : > { %6446 = vmatpush.bf16.msra.mxu0 %v9124_v47  ;;  %v6204_v20 = vunpack.c.l.b16 %v5574_v50  ;;  %v12189_v51 = vpop.f32.mrf.mxu2  ;;  %v14403_v50 = vld [vmem:[#allocation133_spill] sm:$0xff] }
 0xc10   : > { %v5283_v26 = vpop.f32.mrf.mxu1  ;;  %6043 = vmatmul.bf16.vlgmr.msrb.gmra.mxu2 %v14401_v34  ;;  %v14406_v34 = vld [vmem:[#allocation178_spill] sm:$0xff] }
 0xc11   : > { %v12184_v57 = vpack.c.b16 %v6204_v20, %v6203_v54  ;;  %v14408_v20 = vld [vmem:[#allocation135_spill] sm:$0xff] }
 0xc13   : > { %5322 = vmatmul.bf16.gmra.mxu1 %v14400_v39  ;;  %v12194_v4 = vpop.f32.mrf.mxu0 }
 0xc14   : > { %14402 = vst [vmem:[#allocation143_spill] sm:$0xff] %v12194_v4  ;;  %6150 = vmatmul.bf16.gmra.mxu0 %v14403_v50  ;;  %v14419_v4 = vld [vmem:[#allocation91_spill] sm:$0xff] }
 0xc17   : > { %v12199_v36 = vpop.f32.mrf.mxu2 }
 0xc18   : > { %v5285_v47 = vpop.f32.mrf.mxu1 }
 0xc1b   : > { %v12201_v55 = vpop.f32.mrf.mxu0 }
 0xc1c   : > { %14404 = vst [vmem:[#allocation192_spill] sm:$0xff] %v12201_v55  ;;  %v14417_v55 = vld [vmem:[#allocation89_spill] sm:$0xff] }
 0xc1f   : > { %v12206_v39 = vpop.f32.mrf.mxu2 }
 0xc20   : > { %v5288_v54 = vpop.f32.mrf.mxu1  ;;  %6048 = vmatmul.bf16.gmra.mxu2 %v14406_v34  ;;  %v14411_v34 = vld [vmem:[#allocation179_spill] sm:$0xff] }
 0xc23   : > { %5327 = vmatmul.bf16.gmra.mxu1 %v14405_v7  ;;  %v12211_v19 = vpop.f32.mrf.mxu0 }
 0xc24   : > { %14407 = vst [vmem:[#allocation117_spill] sm:$0xff] %v12211_v19  ;;  %6155 = vmatmul.bf16.gmra.mxu0 %v14408_v20  ;;  %v14418_v19 = vld [vmem:[#allocation88_spill] sm:$0xff] }
 0xc27   : > { %v12216_v56 = vpop.f32.mrf.mxu2 }
 0xc28   : > { %v5290_v50 = vpop.f32.mrf.mxu1 }
 0xc29   : > { %v5291_v37 = vadd.f32 %v5290_v50, %v14419_v4 }
 0xc2b   : > { %v12218_v44 = vpop.f32.mrf.mxu0  ;;  %v5450_v50 = vmax.f32 %v5291_v37, 0.0 }
 0xc2c   : > { %14409 = vst [vmem:[#allocation149_spill] sm:$0xff] %v12218_v44  ;;  %v14423_v44 = vld [vmem:[#allocation59_spill] sm:$0xff] }
 0xc2f   : > { %v12223_v7 = vpop.f32.mrf.mxu2 }
 0xc30   : > { %v5293_v58 = vpop.f32.mrf.mxu1  ;;  %6053 = vmatmul.bf16.gmra.mxu2 %v14411_v34  ;;  %v14415_v34 = vpack.c.bf16 %v12078_v35, %v12068_v30  ;;  %v14422_v35 = vld [vmem:[#allocation90_spill] sm:$0xff] }
 0xc31   : > { %v5294_v2 = vadd.f32 %v5293_v58, %v14418_v19  ;;  %v5286_v19 = vadd.f32 %v5285_v47, %v14423_v44  ;;  %v14426_v47 = vld [vmem:[#allocation75_spill] sm:$0xff] }
 0xc33   : > { %5332 = vmatmul.bf16.gmra.mxu1 %v14410_v63  ;;  %v12228_v10 = vpop.f32.mrf.mxu0  ;;  %v5451_v58 = vmax.f32 %v5294_v2, 0.0 }
 0xc34   : > { %14412 = vst [vmem:[#allocation140_spill] sm:$0xff] %v12228_v10  ;;  %6160 = vmatmul.bf16.gmra.mxu0 %v14240_v1 }
 0xc35   : > { %v5579_v49 = vpack.c.bf16 %v5451_v58, %v5451_v58 }
 0xc37   : > { %v12233_v27 = vpop.f32.mrf.mxu2 }
 0xc38   : > { %v5295_v20 = vpop.f32.mrf.mxu1 }
 0xc39   : > { %v5296_v1 = vadd.f32 %v5295_v20, %v14417_v55  ;;  %v5289_v20 = vadd.f32 %v5288_v54, %v14422_v35 }
 0xc3b   : > { %v12235_v46 = vpop.f32.mrf.mxu0  ;;  %v5449_v29 = vmax.f32 %v5289_v20, 0.0  ;;  %v14428_v20 = vld [vmem:[#allocation181_spill] sm:$0xff] }
 0xc3c   : > { %14413 = vst [vmem:[#allocation151_spill] sm:$0xff] %v12235_v46  ;;  %v5578_v46 = vpack.c.bf16 %v5450_v50, %v5450_v50 }
 0xc3d   : > { %v5577_v35 = vpack.c.bf16 %v5449_v29, %v5449_v29 }
 0xc3e   : > { %v6208_v58 = vunpack.c.l.b16 %v5578_v46 }
 0xc3f   : > { %v12241_v59 = vpop.f32.mrf.mxu2 }
 0xc40   : > { %v5298_v24 = vpop.f32.mrf.mxu1  ;;  %6058 = vmatmul.bf16.gmra.mxu2 %v14416_v41  ;;  %v5448_v41 = vmax.f32 %v5286_v19, 0.0 }
 0xc41   : > { %v5299_v63 = vadd.f32 %v5298_v24, %v14414_v11  ;;  %v5452_v24 = vmax.f32 %v5296_v1, 0.0  ;;  %v14420_v11 = vld [vmem:[#allocation87_spill] sm:$0xff] }
 0xc43   : > { %5337 = vmatmul.bf16.gmra.mxu1 %v14415_v34  ;;  %v5453_v12 = vmax.f32 %v5299_v63, 0.0  ;;  %v12250_v30 = vpop.f32.mrf.mxu0  ;;  %v5580_v1 = vpack.c.bf16 %v5452_v24, %v5452_v24  ;;  %v14427_v24 = vld [vmem:[#allocation82_spill] sm:$0xff] }
 0xc44   : > { %14421 = vst [vmem:[#allocation142_spill] sm:$0xff] %v12250_v30  ;;  %6165 = vmatmul.bf16.gmra.mxu0 %v14241_v21  ;;  %v6209_v30 = vunpack.c.l.b16 %v5579_v49 }
 0xc45   : > { %v5581_v63 = vpack.c.bf16 %v5453_v12, %v5453_v12  ;;  %v6210_v54 = vunpack.c.l.b16 %v5580_v1 }
 0xc47   : > { %v12256_v55 = vpop.f32.mrf.mxu2  ;;  %v6211_v21 = vunpack.c.l.b16 %v5581_v63  ;;  %v6219_v19 = vpack.c.b16 %v6210_v54, %v6209_v30 }
 0xc48   : > { %v5300_v10 = vpop.f32.mrf.mxu1 }
 0xc49   : > { %v5301_v3 = vadd.f32 %v5300_v10, %v14420_v11  ;;  %v14424_v10 = vld [vmem:[#allocation57_spill] sm:$0xff] }
 0xc4a   : > { %v5284_v11 = vadd.f32 %v5283_v26, %v14424_v10 }
 0xc4b   : > { %v5454_v34 = vmax.f32 %v5301_v3, 0.0  ;;  %v12260_v12 = vpop.f32.mrf.mxu0 }
 0xc4c   : > { %14425 = vst [vmem:[#allocation110_spill] sm:$0xff] %v12260_v12  ;;  %v5447_v3 = vmax.f32 %v5284_v11, 0.0 }
 0xc4d   : > { %v5582_v4 = vpack.c.bf16 %v5454_v34, %v5454_v34  ;;  %v6207_v34 = vunpack.c.l.b16 %v5577_v35 }
 0xc4e   : > { %v5575_v63 = vpack.c.bf16 %v5447_v3, %v5447_v3 }
 0xc4f   : > { %v6212_v8 = vunpack.c.l.b16 %v5582_v4  ;;  %v12264_v26 = vpop.f32.mrf.mxu2  ;;  %v5576_v4 = vpack.c.bf16 %v5448_v41, %v5448_v41  ;;  %v6218_v1 = vpack.c.b16 %v6208_v58, %v6207_v34  ;;  %v14435_v34 = vld [vmem:[#allocation182_spill] sm:$0xff] }
 0xc50   : > { %v5303_v9 = vpop.f32.mrf.mxu1  ;;  %6063 = vmatmul.bf16.gmra.mxu2 %v14428_v20  ;;  %v6205_v30 = vunpack.c.l.b16 %v5575_v63 }
 0xc51   : > { %v6220_v2 = vpack.c.b16 %v6212_v8, %v6211_v21  ;;  %v5304_v37 = vadd.f32 %v5303_v9, %v14426_v47  ;;  %v6206_v11 = vunpack.c.l.b16 %v5576_v4  ;;  %v14429_v9 = vld [vmem:[#allocation79_spill] sm:$0xff] }
 0xc53   : > { %5655 = vmatmul.bf16.vlgmr.msrb.gmra.mxu1 %v14427_v24  ;;  %6229 = vmatpush.bf16.msra.mxu2 %v6220_v2  ;;  %v5455_v8 = vmax.f32 %v5304_v37, 0.0  ;;  %v12270_v21 = vpop.f32.mrf.mxu0  ;;  %v6217_v3 = vpack.c.b16 %v6206_v11, %v6205_v30 }
 0xc54   : > { %14430 = vst [vmem:[#allocation144_spill] sm:$0xff] %v12270_v21  ;;  %6170 = vmatmul.bf16.gmra.mxu0 %v14247_v40  ;;  %v14433_v40 = vld [vmem:[#allocation83_spill] sm:$0xff]  ;;  %v14470_v21 = vld [vmem:[#allocation188_spill] sm:$0xff] }
 0xc55   : > { %v5583_v41 = vpack.c.bf16 %v5455_v8, %v5455_v8 }
 0xc57   : > { %6230 = vmatpush.bf16.msra.mxu2 %v6219_v19  ;;  %v12275_v54 = vpop.f32.mrf.mxu2  ;;  %v6294_v37 = vunpack.c.l.b16 %v5583_v41 }
 0xc58   : > { %v5305_v49 = vpop.f32.mrf.mxu1  ;;  %14431 = vst [vmem:[#allocation145_spill] sm:$0xff] %v12275_v54 }
 0xc59   : > { %v5306_v50 = vadd.f32 %v5305_v49, %v14429_v9 }
 0xc5b   : > { %v5456_v35 = vmax.f32 %v5306_v50, 0.0  ;;  %6231 = vmatpush.bf16.msra.mxu2 %v6218_v1  ;;  %v12277_v4 = vpop.f32.mrf.mxu0  ;;  %v14436_v50 = vld [vmem:[#allocation84_spill] sm:$0xff] }
 0xc5c   : > { %14432 = vst [vmem:[#allocation146_spill] sm:$0xff] %v12277_v4 }
 0xc5d   : > { %v5584_v2 = vpack.c.bf16 %v5456_v35, %v5456_v35 }
 0xc5f   : > { %v6295_v24 = vunpack.c.l.b16 %v5584_v2  ;;  %6232 = vmatpush.bf16.msra.mxu2 %v6217_v3  ;;  %v12283_v63 = vpop.f32.mrf.mxu2 }
 0xc60   : > { %v5308_v20 = vpop.f32.mrf.mxu1  ;;  %14434 = vst [vmem:[#allocation147_spill] sm:$0xff] %v12283_v63  ;;  %6068 = vmatmul.bf16.gmra.mxu2 %v14435_v34 }
 0xc61   : > { %v12279_v58 = vpack.c.b16 %v6295_v24, %v6294_v37  ;;  %v5309_v19 = vadd.f32 %v5308_v20, %v14433_v40  ;;  %v14449_v40 = vld [vmem:[#allocation184_spill] sm:$0xff] }
 0xc63   : > { %6233 = vmatpush.bf16.msra.mxu2 %v12184_v57  ;;  %v5457_v8 = vmax.f32 %v5309_v19, 0.0  ;;  %v12290_v30 = vpop.f32.mrf.mxu0 }
 0xc64   : > { %14437 = vst [vmem:[#allocation201_spill] sm:$0xff] %v12290_v30  ;;  %6175 = vmatmul.bf16.gmra.mxu0 %v14254_v45  ;;  %v14440_v45 = vld [vmem:[#allocation92_spill] sm:$0xff] }
 0xc65   : > { %v5585_v41 = vpack.c.bf16 %v5457_v8, %v5457_v8  ;;  %v14442_v8 = vld [vmem:[#allocation183_spill] sm:$0xff] }
 0xc67   : > { %6234 = vmatpush.bf16.msra.mxu2 %v12154_v15  ;;  %v12296_v2 = vpop.f32.mrf.mxu2  ;;  %v6296_v3 = vunpack.c.l.b16 %v5585_v41  ;;  %v14443_v41 = vld [vmem:[#allocation93_spill] sm:$0xff] }
 0xc68   : > { %v5310_v11 = vpop.f32.mrf.mxu1  ;;  %14438 = vst [vmem:[#allocation202_spill] sm:$0xff] %v12296_v2 }
 0xc69   : > { %v5311_v1 = vadd.f32 %v5310_v11, %v14436_v50 }
 0xc6b   : > { %v5458_v35 = vmax.f32 %v5311_v1, 0.0  ;;  %6235 = vmatpush.bf16.msra.mxu2 %v12121_v53  ;;  %v12299_v20 = vpop.f32.mrf.mxu0 }
 0xc6c   : > { %14439 = vst [vmem:[#allocation148_spill] sm:$0xff] %v12299_v20 }
 0xc6d   : > { %v5586_v15 = vpack.c.bf16 %v5458_v35, %v5458_v35 }
 0xc6f   : > { %v6297_v37 = vunpack.c.l.b16 %v5586_v15  ;;  %6236 = vmatpush.bf16.msra.mxu2 %v12093_v32  ;;  %v12304_v11 = vpop.f32.mrf.mxu2 }
 0xc70   : > { %v5313_v24 = vpop.f32.mrf.mxu1  ;;  %14441 = vst [vmem:[#allocation203_spill] sm:$0xff] %v12304_v11  ;;  %6073 = vmatmul.bf16.gmra.mxu2 %v14442_v8 }
 0xc71   : > { %v12301_v19 = vpack.c.b16 %v6297_v37, %v6296_v3  ;;  %v5314_v34 = vadd.f32 %v5313_v24, %v14440_v45 }
 0xc73   : > { %v5459_v1 = vmax.f32 %v5314_v34, 0.0  ;;  %v12310_v57 = vpop.f32.mrf.mxu0  ;;  %v14447_v34 = vld [vmem:[#allocation95_spill] sm:$0xff] }
 0xc74   : > { %14444 = vst [vmem:[#allocation204_spill] sm:$0xff] %v12310_v57 }
 0xc75   : > { %v5587_v32 = vpack.c.bf16 %v5459_v1, %v5459_v1  ;;  %v14455_v1 = vld [vmem:[#allocation185_spill] sm:$0xff] }
 0xc77   : > { %v12312_v49 = vpop.f32.mrf.mxu2  ;;  %v6298_v37 = vunpack.c.l.b16 %v5587_v32 }
 0xc78   : > { %v5315_v35 = vpop.f32.mrf.mxu1  ;;  %14445 = vst [vmem:[#allocation205_spill] sm:$0xff] %v12312_v49  ;;  %v14474_v49 = vld [vmem:[#allocation124_spill] sm:$0xff] }
 0xc79   : > { %v5316_v15 = vadd.f32 %v5315_v35, %v14443_v41  ;;  %v14450_v41 = vld [vmem:[#allocation96_spill] sm:$0xff] }
 0xc7b   : > { %v5460_v46 = vmax.f32 %v5316_v15, 0.0  ;;  %v12314_v45 = vpop.f32.mrf.mxu0 }
 0xc7c   : > { %14446 = vst [vmem:[#allocation206_spill] sm:$0xff] %v12314_v45  ;;  %v14464_v45 = vld [vmem:[#allocation187_spill] sm:$0xff] }
 0xc7d   : > { %v5588_v3 = vpack.c.bf16 %v5460_v46, %v5460_v46 }
 0xc7f   : > { %v6299_v24 = vunpack.c.l.b16 %v5588_v3  ;;  %v12319_v53 = vpop.f32.mrf.mxu2 }
 0xc80   : > { %v5318_v29 = vpop.f32.mrf.mxu1  ;;  %14448 = vst [vmem:[#allocation207_spill] sm:$0xff] %v12319_v53  ;;  %6078 = vmatmul.bf16.gmra.mxu2 %v14449_v40 }
 0xc81   : > { %v12316_v8 = vpack.c.b16 %v6299_v24, %v6298_v37  ;;  %v5319_v50 = vadd.f32 %v5318_v29, %v14447_v34 }
 0xc83   : > { %v5461_v35 = vmax.f32 %v5319_v50, 0.0  ;;  %v12325_v32 = vpop.f32.mrf.mxu0 }
 0xc84   : > { %14451 = vst [vmem:[#allocation208_spill] sm:$0xff] %v12325_v32 }
 0xc85   : > { %v5589_v3 = vpack.c.bf16 %v5461_v35, %v5461_v35 }
 0xc87   : > { %v12327_v47 = vpop.f32.mrf.mxu2  ;;  %v6300_v24 = vunpack.c.l.b16 %v5589_v3 }
 0xc88   : > { %v5320_v15 = vpop.f32.mrf.mxu1  ;;  %14452 = vst [vmem:[#allocation209_spill] sm:$0xff] %v12327_v47 }
 0xc89   : > { %v5321_v46 = vadd.f32 %v5320_v15, %v14450_v41 }
 0xc8b   : > { %v5462_v9 = vmax.f32 %v5321_v46, 0.0  ;;  %v12331_v40 = vpop.f32.mrf.mxu0 }
 0xc8c   : > { %14453 = vst [vmem:[#allocation210_spill] sm:$0xff] %v12331_v40 }
 0xc8d   : > { %v5590_v37 = vpack.c.bf16 %v5462_v9, %v5462_v9 }
 0xc8f   : > { %v6301_v29 = vunpack.c.l.b16 %v5590_v37  ;;  %v12333_v50 = vpop.f32.mrf.mxu2  ;;  %v14459_v37 = vld [vmem:[#allocation186_spill] sm:$0xff] }
 0xc90   : > { %v5323_v34 = vpop.f32.mrf.mxu1  ;;  %14454 = vst [vmem:[#allocation115_spill] sm:$0xff] %v12333_v50  ;;  %6237 = vmatmul.bf16.vlgmr.msra.gmra.mxu2 %v14455_v1 }
 0xc91   : > { %v12329_v44 = vpack.c.b16 %v6301_v29, %v6300_v24  ;;  %v14467_v29 = vld [vmem:[#allocation123_spill] sm:$0xff] }
 0xc93   : > { %v12340_v46 = vpop.f32.mrf.mxu0 }
 0xc94   : > { %14457 = vst [vmem:[#allocation122_spill] sm:$0xff] %v12340_v46  ;;  %v14471_v46 = vld [vmem:[#allocation126_spill] sm:$0xff] }
 0xc97   : > { %v12338_v35 = vpop.f32.mrf.mxu2 }
 0xc98   : > { %v5325_v41 = vpop.f32.mrf.mxu1  ;;  %14456 = vst [vmem:[#allocation211_spill] sm:$0xff] %v12338_v35 }
 0xc9b   : > { %v12345_v24 = vpop.f32.mrf.mxu0 }
 0xc9c   : > { %14460 = vst [vmem:[#allocation71_spill] sm:$0xff] %v12345_v24 }
 0xc9f   : > { %v12342_v3 = vpop.f32.mrf.mxu2 }
 0xca0   : > { %v5328_v9 = vpop.f32.mrf.mxu1  ;;  %14458 = vst [vmem:[#allocation68_spill] sm:$0xff] %v12342_v3  ;;  %6242 = vmatmul.bf16.gmra.mxu2 %v14459_v37  ;;  %v14473_v3 = vld [vmem:[#allocation129_spill] sm:$0xff] }
 0xca3   : > { %v12351_v15 = vpop.f32.mrf.mxu0 }
 0xca4   : > { %14462 = vst [vmem:[#allocation164_spill] sm:$0xff] %v12351_v15  ;;  %v14476_v15 = vld [vmem:[#allocation99_spill] sm:$0xff] }
 0xca7   : > { %v12349_v1 = vpop.f32.mrf.mxu2 }
 0xca8   : > { %v5330_v10 = vpop.f32.mrf.mxu1  ;;  %14461 = vst [vmem:[#allocation104_spill] sm:$0xff] %v12349_v1 }
 0xca9   : > { %v5331_v47 = vadd.f32 %v5330_v10, %v14473_v3 }
 0xcab   : > { %v12358_v37 = vpop.f32.mrf.mxu0 }
 0xcac   : > { %14465 = vst [vmem:[#allocation165_spill] sm:$0xff] %v12358_v37 }
 0xcaf   : > { %v12353_v32 = vpop.f32.mrf.mxu2 }
 0xcb0   : > { %v5333_v40 = vpop.f32.mrf.mxu1  ;;  %14463 = vst [vmem:[#allocation121_spill] sm:$0xff] %v12353_v32  ;;  %6247 = vmatmul.bf16.gmra.mxu2 %v14464_v45  ;;  %v14472_v45 = vld [vmem:[#allocation125_spill] sm:$0xff] }
 0xcb1   : > { %v5334_v32 = vadd.f32 %v5333_v40, %v14472_v45  ;;  %v14477_v40 = vld [vmem:[#allocation98_spill] sm:$0xff] }
 0xcb3   : > { %v12365_v12 = vpop.f32.mrf.mxu0  ;;  %v5467_v2 = vmax.f32 %v5334_v32, 0.0 }
 0xcb4   : > { %14469 = vst [vmem:[#allocation132_spill] sm:$0xff] %v12365_v12 }
 0xcb7   : > { %v12360_v24 = vpop.f32.mrf.mxu2 }
 0xcb8   : > { %v5335_v57 = vpop.f32.mrf.mxu1  ;;  %14466 = vst [vmem:[#allocation130_spill] sm:$0xff] %v12360_v24  ;;  %v5466_v24 = vmax.f32 %v5331_v47, 0.0 }
 0xcb9   : > { %v5336_v1 = vadd.f32 %v5335_v57, %v14471_v46 }
 0xcba   : > { %v5594_v32 = vpack.c.bf16 %v5466_v24, %v5466_v24 }
 0xcbb   : > { %v5468_v50 = vmax.f32 %v5336_v1, 0.0  ;;  %v12379_v45 = vpop.f32.mrf.mxu0  ;;  %v5595_v1 = vpack.c.bf16 %v5467_v2, %v5467_v2 }
 0xcbc   : > { %v6305_v2 = vunpack.c.l.b16 %v5594_v32 }
 0xcbd   : > { %v5596_v57 = vpack.c.bf16 %v5468_v50, %v5468_v50  ;;  %v6306_v63 = vunpack.c.l.b16 %v5595_v1 }
 0xcbf   : > { %v12363_v30 = vpop.f32.mrf.mxu2 }
 0xcc0   : > { %v5338_v20 = vpop.f32.mrf.mxu1  ;;  %14468 = vst [vmem:[#allocation166_spill] sm:$0xff] %v12363_v30  ;;  %6252 = vmatmul.bf16.gmra.mxu2 %v14470_v21  ;;  %v5326_v21 = vadd.f32 %v5325_v41, %v14476_v15  ;;  %v14478_v41 = vld [vmem:[#allocation189_spill] sm:$0xff] }
 0xcc1   : > { %v5339_v4 = vadd.f32 %v5338_v20, %v14467_v29  ;;  %v14475_v29 = vld [vmem:[#allocation128_spill] sm:$0xff] }
 0xcc2   : > { %v5329_v53 = vadd.f32 %v5328_v9, %v14475_v29  ;;  %v5464_v9 = vmax.f32 %v5326_v21, 0.0 }
 0xcc3   : > { %v5469_v35 = vmax.f32 %v5339_v4, 0.0  ;;  %v5324_v4 = vadd.f32 %v5323_v34, %v14477_v40  ;;  %v12386_v24 = vpop.f32.mrf.mxu0 }
 0xcc4   : > { %v5465_v10 = vmax.f32 %v5329_v53, 0.0  ;;  %v5592_v53 = vpack.c.bf16 %v5464_v9, %v5464_v9 }
 0xcc5   : > { %v5597_v12 = vpack.c.bf16 %v5469_v35, %v5469_v35  ;;  %v6307_v35 = vunpack.c.l.b16 %v5596_v57  ;;  %v5463_v29 = vmax.f32 %v5324_v4, 0.0 }
 0xcc6   : > { %v5593_v30 = vpack.c.bf16 %v5465_v10, %v5465_v10 }
 0xcc7   : > { %v12375_v54 = vpop.f32.mrf.mxu2  ;;  %v6308_v3 = vunpack.c.l.b16 %v5597_v12  ;;  %v6316_v12 = vpack.c.b16 %v6307_v35, %v6306_v63  ;;  %v5591_v34 = vpack.c.bf16 %v5463_v29, %v5463_v29  ;;  %v14479_v29 = vld [vmem:[#allocation190_spill] sm:$0xff] }
 0xcc8   : > { %v5340_v37 = vpop.f32.mrf.mxu1  ;;  %v6304_v50 = vunpack.c.l.b16 %v5593_v30 }
 0xcc9   : > { %v5341_v20 = vadd.f32 %v5340_v37, %v14474_v49  ;;  %v6302_v4 = vunpack.c.l.b16 %v5591_v34 }
 0xcca   : > { %v6315_v57 = vpack.c.b16 %v6305_v2, %v6304_v50  ;;  %v14484_v2 = vpack.c.bf16 %v12160_v23, %v12144_v48  ;;  %v9041_v50 = vld [vmem:[%s13172_s7 + $0x38] sm:$0xff] }
 0xccb   : > { %v5470_v11 = vmax.f32 %v5341_v20, 0.0  ;;  %7028 = vmatpush.bf16.msrb.mxu2 %v9041_v50 }
 0xccd   : > { %v5598_v46 = vpack.c.bf16 %v5470_v11, %v5470_v11 }
 0xccf   : > { %v6309_v37 = vunpack.c.l.b16 %v5598_v46  ;;  %v12381_v47 = vpop.f32.mrf.mxu2 }
 0xcd0   : > { %v5656_v49 = vpop.f32.mrf.mxu1  ;;  %6257 = vmatmul.bf16.gmra.mxu2 %v14478_v41  ;;  %v14483_v41 = vld [vmem:[#allocation193_spill] sm:$0xff] }
 0xcd1   : > { %v6317_v20 = vpack.c.b16 %v6309_v37, %v6308_v3  ;;  %v6303_v3 = vunpack.c.l.b16 %v5592_v53  ;;  %v12390_v37 = vpop.f32.mrf.mxu0 }
 0xcd3   : > { %6326 = vmatpush.bf16.msra.mxu3 %v6317_v20  ;;  %v6314_v1 = vpack.c.b16 %v6303_v3, %v6302_v4  ;;  %v9039_v3 = vld [vmem:[%s13172_s7 + $0x28] sm:$0xff] }
 0xcd7   : > { %6327 = vmatpush.bf16.msra.mxu3 %v6316_v12  ;;  %v12388_v10 = vpop.f32.mrf.mxu2  ;;  %v14485_v12 = vpack.c.bf16 %v12189_v51, %v12177_v42  ;;  %v14486_v42 = vpack.c.bf16 %v12206_v39, %v12199_v36 }
 0xcd8   : > { %v5658_v46 = vpop.f32.mrf.mxu1 }
 0xcd9   : > { %v6375_v21 = vpack.c.bf16 %v5658_v46, %v5656_v49  ;;  %v14480_v49 = vpack.c.bf16 %v12100_v61, %v12089_v6  ;;  %v12405_v32 = vpop.f32.mrf.mxu0  ;;  %v14482_v6 = vpack.c.bf16 %v12127_v52, %v12113_v0  ;;  %v9040_v46 = vld [vmem:[%s13172_s7 + $0x30] sm:$0xff] }
 0xcda   : > { %7029 = vmatpush.bf16.msrb.mxu2 %v9040_v46 }
 0xcdb   : > { %6328 = vmatpush.bf16.msra.mxu3 %v6315_v57  ;;  %6447 = vmatmul.bf16.vlgmr.msra.gmra.mxu0 %v6375_v21  ;;  %v9037_v21 = vld [vmem:[%s13172_s7 + $0x18] sm:$0xff]  ;;  %v14487_v57 = vpack.c.bf16 %v12223_v7, %v12216_v56  ;;  %v9034_v7 = vld [vmem:[%s13172_s7] sm:$0xff] }
 0xcde   : > { %7030 = vmatpush.bf16.msrb.mxu2 %v9039_v3 }
 0xcdf   : > { %6329 = vmatpush.bf16.msra.mxu3 %v6314_v1  ;;  %v12393_v63 = vpop.f32.mrf.mxu2 }
 0xce0   : > { %6262 = vmatmul.bf16.gmra.mxu2 %v14479_v29  ;;  %v9035_v29 = vld [vmem:[%s13172_s7 + $0x8] sm:$0xff] }
 0xce3   : > { %6330 = vmatpush.bf16.msra.mxu3 %v12329_v44 }
 0xce7   : > { %6331 = vmatpush.bf16.msra.mxu3 %v12316_v8  ;;  %v12403_v9 = vpop.f32.mrf.mxu2  ;;  %v14481_v8 = vld [vmem:[#allocation191_spill] sm:$0xff] }
 0xceb   : > { %6332 = vmatpush.bf16.msra.mxu3 %v12301_v19  ;;  %6452 = vmatmul.bf16.gmra.mxu0 %v14480_v49  ;;  %v12414_v19 = vpop.f32.mrf.mxu0 }
 0xcef   : > { %6333 = vmatpush.bf16.msra.mxu3 %v12279_v58  ;;  %v12409_v44 = vpop.f32.mrf.mxu2 }
 0xcf0   : > { %6267 = vmatmul.bf16.gmra.mxu2 %v14481_v8  ;;  %v14488_v8 = vpack.c.bf16 %v12241_v59, %v12233_v27  ;;  %v803_v27 = vld [vmem:[%s12513_s22] sm:$0xff]  ;;  %v9191_v59 = vmov 0  }
 0xcf1   : > { %9100 = vset.pattern.permute.xlu0 %v9191_v59  ;;  %9101 = vset.pattern.permute.xlu1 %v9191_v59 }
 0xcf2   : > { %6334 = vmatmul.bf16.vlgmr.msra.gmra.mxu3 %v14257_v18  ;;  %7487 = vperm.xlu0 %9100, %v803_v27  }
 0xcf3   : > { %v12421_v20 = vpop.f32.mrf.mxu0  ;;  %9052 = vmatpush.bf16.msrb.mxu3 %v9041_v50  ;;  %9102 = vset.pattern.permute.xlu2 %v9191_v59  ;;  %v14490_v50 = vld [vmem:[#allocation156_spill] sm:$0xff] }
 0xcf7   : > { %v12419_v61 = vpop.f32.mrf.mxu2  ;;  %9053 = vmatpush.bf16.msrb.mxu3 %v9040_v46 }
 0xcfb   : > { %6457 = vmatmul.bf16.gmra.mxu0 %v14482_v6  ;;  %v12429_v53 = vpop.f32.mrf.mxu0  ;;  %9054 = vmatpush.bf16.msrb.mxu3 %v9039_v3  ;;  %v14491_v3 = vld [vmem:[#allocation157_spill] sm:$0xff] }
 0xcff   : > { %v12424_v18 = vpop.f32.mrf.mxu2 }
 0xd00   : > { %6272 = vmatmul.bf16.gmra.mxu2 %v14483_v41 }
 0xd02   : > { %6339 = vmatmul.bf16.gmra.mxu3 %v14261_v13 }
 0xd03   : > { %v12439_v13 = vpop.f32.mrf.mxu0 }
 0xd07   : > { %v12434_v0 = vpop.f32.mrf.mxu2 }
 0xd0b   : > { %6462 = vmatmul.bf16.gmra.mxu0 %v14484_v2  ;;  %v12449_v48 = vpop.f32.mrf.mxu0 }
 0xd0f   : > { %v12437_v52 = vpop.f32.mrf.mxu2 }
 0xd12   : > { %6344 = vmatmul.bf16.gmra.mxu3 %v14265_v17 }
 0xd13   : > { %v12454_v23 = vpop.f32.mrf.mxu0 }
 0xd17   : > { %v12444_v34 = vpop.f32.mrf.mxu2 }
 0xd1b   : > { %6467 = vmatmul.bf16.gmra.mxu0 %v14485_v12  ;;  %v12470_v36 = vpop.f32.mrf.mxu0  ;;  %v14489_v12 = vpack.c.bf16 %v12040_v28, %v12030_v60 }
 0xd1f   : > { %v12452_v17 = vpop.f32.mrf.mxu2 }
 0xd22   : > { %6349 = vmatmul.bf16.gmra.mxu3 %v14268_v38  ;;  %v9038_v38 = vld [vmem:[%s13172_s7 + $0x20] sm:$0xff] }
 0xd23   : > { %7031 = vmatpush.bf16.msrb.mxu2 %v9038_v38  ;;  %9055 = vmatpush.bf16.msrb.mxu3 %v9038_v38  ;;  %v12486_v1 = vpop.f32.mrf.mxu0 }
 0xd27   : > { %v12459_v51 = vpop.f32.mrf.mxu2  ;;  %7032 = vmatpush.bf16.msrb.mxu2 %v9037_v21  ;;  %9056 = vmatpush.bf16.msrb.mxu3 %v9037_v21  ;;  %v804_v21 = vld [vmem:[%s12513_s22 + $0x8] sm:$0xff] }
 0xd28   : > { %7492 = vperm.xlu0 %9100, %v804_v21  }
 0xd2b   : > { %6472 = vmatmul.bf16.gmra.mxu0 %v14486_v42  ;;  %v12497_v49 = vpop.f32.mrf.mxu0 }
 0xd2f   : > { %v12473_v39 = vpop.f32.mrf.mxu2 }
 0xd32   : > { %6354 = vmatmul.bf16.gmra.mxu3 %v14300_v25  ;;  %v9036_v25 = vld [vmem:[%s13172_s7 + $0x10] sm:$0xff] }
 0xd33   : > { %7033 = vmatpush.bf16.msrb.mxu2 %v9036_v25  ;;  %9057 = vmatpush.bf16.msrb.mxu3 %v9036_v25  ;;  %v12504_v41 = vpop.f32.mrf.mxu0 }
 0xd37   : > { %v12481_v4 = vpop.f32.mrf.mxu2  ;;  %7034 = vmatpush.bf16.msrb.mxu2 %v9035_v29  ;;  %9058 = vmatpush.bf16.msrb.mxu3 %v9035_v29 }
 0xd3b   : > { %6477 = vmatmul.bf16.gmra.mxu0 %v14487_v57  ;;  %7035 = vmatpush.bf16.msrb.mxu2 %v9034_v7 }
 0xd3c   : > { %9059 = vmatpush.bf16.msrb.mxu3 %v9034_v7  ;;  %v14492_v7 = vpack.c.bf16 %v12062_v62, %v12047_v43  ;;  %v14495_v43 = vpack.c.bf16 %v12084_v33, %v12072_v16  ;;  %v809_v33 = vld [vmem:[%s12513_s22 + $0x30] sm:$0xff] }
 0xd3d   : > { %7517 = vperm.xlu0 %9100, %v809_v33  }
 0xd3f   : > { %v12492_v56 = vpop.f32.mrf.mxu2 }
 0xd42   : > { %6359 = vmatmul.bf16.gmra.mxu3 %v14302_v14 }
 0xd47   : > { %v12502_v6 = vpop.f32.mrf.mxu2 }
 0xd4b   : > { %6482 = vmatmul.bf16.gmra.mxu0 %v14488_v8  ;;  %v805_v8 = vld [vmem:[%s12513_s22 + $0x10] sm:$0xff] }
 0xd4c   : > { %7497 = vperm.xlu1 %9101, %v805_v8  }
 0xd4f   : > { %v12507_v14 = vpop.f32.mrf.mxu2 }
 0xd52   : > { %6364 = vmatmul.bf16.gmra.mxu3 %v14308_v22 }
 0xd57   : > { %v12519_v22 = vpop.f32.mrf.mxu2 }
 0xd58   : > { %v6448_v2 = vpop.f32.mrf.mxu0 }
 0xd59   : > { %v6449_v42 = vadd.f32 %v6448_v2, %v14490_v50  ;;  %v14493_v2 = vld [vmem:[#allocation158_spill] sm:$0xff] }
 0xd5b   : > { %6487 = vmatmul.bf16.gmra.mxu0 %v14489_v12  ;;  %v6768_v60 = vmax.f32 %v6449_v42, 0.0 }
 0xd5f   : > { %v12525_v29 = vpop.f32.mrf.mxu2 }
 0xd60   : > { %v6450_v46 = vpop.f32.mrf.mxu0 }
 0xd61   : > { %v6451_v38 = vadd.f32 %v6450_v46, %v14491_v3  ;;  %v806_v3 = vld [vmem:[%s12513_s22 + $0x18] sm:$0xff] }
 0xd62   : > { %6369 = vmatmul.bf16.gmra.mxu3 %v14314_v31  ;;  %v14494_v31 = vld [vmem:[#allocation159_spill] sm:$0xff]  ;;  %7502 = vperm.xlu1 %9101, %v806_v3  }
 0xd63   : > { %v6769_v28 = vmax.f32 %v6451_v38, 0.0 }
 0xd65   : > { %v6896_v57 = vpack.c.bf16 %v6769_v28, %v6768_v60  ;;  %v14496_v28 = vld [vmem:[#allocation160_spill] sm:$0xff] }
 0xd67   : > { %7036 = vmatmul.bf16.vlgmr.msrb.gmra.mxu2 %v6896_v57  ;;  %v12533_v50 = vpop.f32.mrf.mxu2 }
 0xd68   : > { %v6453_v25 = vpop.f32.mrf.mxu0 }
 0xd69   : > { %v6454_v12 = vadd.f32 %v6453_v25, %v14493_v2  ;;  %v14497_v25 = vld [vmem:[#allocation161_spill] sm:$0xff] }
 0xd6b   : > { %6492 = vmatmul.bf16.gmra.mxu0 %v14492_v7  ;;  %v6770_v42 = vmax.f32 %v6454_v12, 0.0 }
 0xd6f   : > { %v12539_v62 = vpop.f32.mrf.mxu2 }
 0xd70   : > { %v6455_v27 = vpop.f32.mrf.mxu0 }
 0xd71   : > { %v6456_v59 = vadd.f32 %v6455_v27, %v14494_v31 }
 0xd73   : > { %v6771_v46 = vmax.f32 %v6456_v59, 0.0  ;;  %v14498_v59 = vld [vmem:[#allocation197_spill] sm:$0xff] }
 0xd74   : > { %v14499_v16 = vpack.c.bf16 %v12107_v5, %v14498_v59  ;;  %v808_v59 = vld [vmem:[%s12513_s22 + $0x28] sm:$0xff] }
 0xd75   : > { %v6897_v38 = vpack.c.bf16 %v6771_v46, %v6770_v42  ;;  %v14500_v42 = vld [vmem:[#allocation162_spill] sm:$0xff] }
 0xd77   : > { %7041 = vmatmul.bf16.gmra.mxu2 %v6897_v38  ;;  %v12543_v27 = vpop.f32.mrf.mxu2 }
 0xd78   : > { %v6458_v60 = vpop.f32.mrf.mxu0 }
 0xd79   : > { %v6459_v21 = vadd.f32 %v6458_v60, %v14496_v28  ;;  %v14501_v60 = vld [vmem:[#allocation163_spill] sm:$0xff] }
 0xd7b   : > { %6497 = vmatmul.bf16.gmra.mxu0 %v14495_v43  ;;  %v6772_v8 = vmax.f32 %v6459_v21, 0.0 }
 0xd7f   : > { %v12550_v38 = vpop.f32.mrf.mxu2 }
 0xd80   : > { %v6460_v57 = vpop.f32.mrf.mxu0 }
 0xd81   : > { %v6461_v7 = vadd.f32 %v6460_v57, %v14497_v25  ;;  %v807_v57 = vld [vmem:[%s12513_s22 + $0x20] sm:$0xff]  ;;  %v810_v25 = vld [vmem:[%s12513_s22 + $0x38] sm:$0xff] }
 0xd82   : > { %7507 = vperm.xlu2 %9102, %v807_v57   ;;  %7522 = vperm.xlu1 %9101, %v810_v25  }
 0xd83   : > { %v6773_v2 = vmax.f32 %v6461_v7, 0.0 }
 0xd85   : > { %v6898_v12 = vpack.c.bf16 %v6773_v2, %v6772_v8  ;;  %v14502_v2 = vld [vmem:[#allocation139_spill] sm:$0xff] }
 0xd87   : > { %7046 = vmatmul.bf16.gmra.mxu2 %v6898_v12  ;;  %v12555_v8 = vpop.f32.mrf.mxu2  ;;  %v14503_v12 = vld [vmem:[#allocation137_spill] sm:$0xff] }
 0xd88   : > { %v6463_v31 = vpop.f32.mrf.mxu0 }
 0xd89   : > { %v6464_v46 = vadd.f32 %v6463_v31, %v14500_v42  ;;  %v14504_v31 = vpack.c.bf16 %v14502_v2, %v14503_v12  ;;  %v14508_v2 = vld [vmem:[#allocation199_spill] sm:$0xff] }
 0xd8a   : > { %7512 = vperm.xlu2 %9102, %v808_v59   ;;  %v14510_v59 = vld [vmem:[#allocation5_spill] sm:$0xff] }
 0xd8b   : > { %6502 = vmatmul.bf16.gmra.mxu0 %v14499_v16  ;;  %v6774_v28 = vmax.f32 %v6464_v46, 0.0  ;;  %v14505_v16 = vld [vmem:[#allocation7_spill] sm:$0xff]  ;;  %v14506_v46 = vld [vmem:[#allocation6_spill] sm:$0xff] }
 0xd90   : > { %v6465_v3 = vpop.f32.mrf.mxu0 }
 0xd91   : > { %v6466_v43 = vadd.f32 %v6465_v3, %v14501_v60 }
 0xd93   : > { %v6775_v21 = vmax.f32 %v6466_v43, 0.0 }
 0xd95   : > { %v6899_v7 = vpack.c.bf16 %v6775_v21, %v6774_v28  ;;  %v812_v28 = vld [vmem:[%s12513_s22 + $0x48] sm:$0xff]  ;;  %v12564_v21 = vpop.f32.mrf.mxu2 }
 0xd96   : > { %7532 = vperm.xlu0 %9100, %v812_v28  }
 0xd97   : > { %7051 = vmatmul.bf16.gmra.mxu2 %v6899_v7  ;;  %v14507_v7 = vld [vmem:[#allocation200_spill] sm:$0xff] }
 0xd98   : > { %v6468_v5 = vpop.f32.mrf.mxu0  ;;  %v14509_v12 = vpack.c.bf16 %v14507_v7, %v14508_v2  ;;  %v14513_v7 = vld [vmem:[#allocation143_spill] sm:$0xff]  ;;  %v14514_v2 = vld [vmem:[#allocation141_spill] sm:$0xff] }
 0xd99   : > { %v6469_v33 = vadd.f32 %v6468_v5, %v14505_v16 }
 0xd9b   : > { %6507 = vmatmul.bf16.gmra.mxu0 %v14504_v31  ;;  %v6776_v60 = vmax.f32 %v6469_v33, 0.0  ;;  %v813_v31 = vld [vmem:[%s12513_s22 + $0x50] sm:$0xff] }
 0xd9c   : > { %7537 = vperm.xlu1 %9101, %v813_v31   ;;  %v815_v31 = vld [vmem:[%s12513_s22 + $0x60] sm:$0xff] }
 0xd9d   : > { %v12570_v5 = vpop.f32.mrf.mxu2 }
 0xd9e   : > { %7547 = vperm.xlu0 %9100, %v815_v31  }
 0xda0   : > { %v6470_v42 = vpop.f32.mrf.mxu0 }
 0xda1   : > { %v6471_v3 = vadd.f32 %v6470_v42, %v14506_v46  ;;  %v14511_v42 = vld [vmem:[#allocation170_spill] sm:$0xff] }
 0xda3   : > { %v6777_v43 = vmax.f32 %v6471_v3, 0.0 }
 0xda5   : > { %v6900_v57 = vpack.c.bf16 %v6777_v43, %v6776_v60  ;;  %v811_v60 = vld [vmem:[%s12513_s22 + $0x40] sm:$0xff] }
 0xda6   : > { %7527 = vperm.xlu2 %9102, %v811_v60  }
 0xda7   : > { %7056 = vmatmul.bf16.gmra.mxu2 %v6900_v57  ;;  %v12575_v57 = vpop.f32.mrf.mxu2 }
 0xda8   : > { %v6473_v25 = vpop.f32.mrf.mxu0  ;;  %14512 = vst [vmem:[#allocation172_spill] sm:$0xff] %v12575_v57  ;;  %v824_v57 = vld [vmem:[%s12513_s22 + $0xa8] sm:$0xff] }
 0xda9   : > { %v6474_v16 = vadd.f32 %v6473_v25, %v14510_v59  ;;  %v14516_v25 = vld [vmem:[#allocation169_spill] sm:$0xff] }
 0xdab   : > { %6512 = vmatmul.bf16.gmra.mxu0 %v14509_v12  ;;  %v6778_v3 = vmax.f32 %v6474_v16, 0.0  ;;  %v14515_v12 = vpack.c.bf16 %v14513_v7, %v14514_v2  ;;  %v14517_v16 = vld [vmem:[#allocation168_spill] sm:$0xff]  ;;  %v14519_v7 = vld [vmem:[#allocation117_spill] sm:$0xff] }
 0xdac   : > { %v14520_v2 = vld [vmem:[#allocation192_spill] sm:$0xff] }
 0xdb0   : > { %v6475_v33 = vpop.f32.mrf.mxu0 }
 0xdb1   : > { %v6476_v46 = vadd.f32 %v6475_v33, %v14511_v42 }
 0xdb3   : > { %v6779_v58 = vmax.f32 %v6476_v46, 0.0  ;;  %v12583_v46 = vpop.f32.mrf.mxu2 }
 0xdb4   : > { %14518 = vst [vmem:[#allocation134_spill] sm:$0xff] %v12583_v46 }
 0xdb5   : > { %v6901_v43 = vpack.c.bf16 %v6779_v58, %v6778_v3  ;;  %v816_v3 = vld [vmem:[%s12513_s22 + $0x68] sm:$0xff] }
 0xdb6   : > { %7552 = vperm.xlu1 %9101, %v816_v3  }
 0xdb7   : > { %7061 = vmatmul.bf16.gmra.mxu2 %v6901_v43 }
 0xdb8   : > { %v6478_v28 = vpop.f32.mrf.mxu0 }
 0xdb9   : > { %v6479_v59 = vadd.f32 %v6478_v28, %v14516_v25  ;;  %v814_v28 = vld [vmem:[%s12513_s22 + $0x58] sm:$0xff]  ;;  %v14523_v25 = vld [vmem:[#allocation167_spill] sm:$0xff] }
 0xdba   : > { %7542 = vperm.xlu2 %9102, %v814_v28  }
 0xdbb   : > { %6517 = vmatmul.bf16.gmra.mxu0 %v14515_v12  ;;  %v6780_v60 = vmax.f32 %v6479_v59, 0.0  ;;  %v14521_v12 = vpack.c.bf16 %v14519_v7, %v14520_v2  ;;  %v12589_v31 = vpop.f32.mrf.mxu2  ;;  %v14524_v59 = vld [vmem:[#allocation171_spill] sm:$0xff]  ;;  %v14526_v7 = vpack.c.bf16 %v12264_v26, %v12256_v55 }
 0xdbc   : > { %14522 = vst [vmem:[#allocation136_spill] sm:$0xff] %v12589_v31  ;;  %v819_v2 = vld [vmem:[%s12513_s22 + $0x80] sm:$0xff]  ;;  %v822_v31 = vld [vmem:[%s12513_s22 + $0x98] sm:$0xff] }
 0xdbd   : > { %v12609_v55 = vld [vmem:[%s13173_s8] ss:$0 sm:$0xff] }
 0xdbe   : > { %7567 = vperm.xlu1 %9101, %v819_v2   ;;  %v14531_v2 = vld [vmem:[#allocation145_spill] sm:$0xff] }
 0xdc0   : > { %v6480_v33 = vpop.f32.mrf.mxu0 }
 0xdc1   : > { %v6481_v42 = vadd.f32 %v6480_v33, %v14517_v16 }
 0xdc3   : > { %v6781_v58 = vmax.f32 %v6481_v42, 0.0  ;;  %v12595_v3 = vpop.f32.mrf.mxu2 }
 0xdc4   : > { %14525 = vst [vmem:[#allocation138_spill] sm:$0xff] %v12595_v3 }
 0xdc5   : > { %v6902_v43 = vpack.c.bf16 %v6781_v58, %v6780_v60  ;;  %v818_v60 = vld [vmem:[%s12513_s22 + $0x78] sm:$0xff] }
 0xdc6   : > { %7562 = vperm.xlu0 %9100, %v818_v60   ;;  %7582 = vperm.xlu1 %9101, %v822_v31  }
 0xdc7   : > { %7066 = vmatmul.bf16.gmra.mxu2 %v6902_v43 }
 0xdc8   : > { %v6483_v35 = vpop.f32.mrf.mxu0 }
 0xdc9   : > { %v6484_v33 = vadd.f32 %v6483_v35, %v14523_v25  ;;  %v14527_v35 = vld [vmem:[#allocation8_spill] sm:$0xff] }
 0xdcb   : > { %6522 = vmatmul.bf16.gmra.mxu0 %v14521_v12  ;;  %v6782_v42 = vmax.f32 %v6484_v33, 0.0  ;;  %v12602_v25 = vpop.f32.mrf.mxu2 }
 0xdcc   : > { %14528 = vst [vmem:[#allocation72_spill] sm:$0xff] %v12602_v25 }
 0xdd0   : > { %v6485_v16 = vpop.f32.mrf.mxu0 }
 0xdd1   : > { %v6486_v30 = vadd.f32 %v6485_v16, %v14524_v59  ;;  %v817_v59 = vld [vmem:[%s12513_s22 + $0x70] sm:$0xff] }
 0xdd2   : > { %7557 = vperm.xlu2 %9102, %v817_v59   ;;  %v14534_v59 = vld [vmem:[#allocation11_spill] sm:$0xff] }
 0xdd3   : > { %v6783_v11 = vmax.f32 %v6486_v30, 0.0  ;;  %v14529_v30 = vld [vmem:[#allocation9_spill] sm:$0xff] }
 0xdd5   : > { %v6903_v58 = vpack.c.bf16 %v6783_v11, %v6782_v42 }
 0xdd7   : > { %7071 = vmatmul.bf16.gmra.mxu2 %v6903_v58  ;;  %v7488_v58 = vpop.permute.xlu0 %7487 }
 0xdd8   : > { %v6488_v43 = vpop.f32.mrf.mxu0 }
 0xdd9   : > { %v6489_v12 = vadd.f32 %v6488_v43, %v14527_v35 }
 0xddb   : > { %6527 = vmatmul.bf16.gmra.mxu0 %v14526_v7  ;;  %v6784_v11 = vmax.f32 %v6489_v12, 0.0  ;;  %v14530_v7 = vld [vmem:[#allocation147_spill] sm:$0xff]  ;;  %v821_v12 = vld [vmem:[%s12513_s22 + $0x90] sm:$0xff] }
 0xddc   : > { %v14532_v35 = vpack.c.bf16 %v14530_v7, %v14531_v2  ;;  %7577 = vperm.xlu0 %9100, %v821_v12  }
 0xde0   : > { %v6490_v28 = vpop.f32.mrf.mxu0 }
 0xde1   : > { %v6491_v33 = vadd.f32 %v6490_v28, %v14529_v30  ;;  %v14533_v30 = vld [vmem:[#allocation10_spill] sm:$0xff] }
 0xde3   : > { %v6785_v16 = vmax.f32 %v6491_v33, 0.0 }
 0xde4   : > { %7592 = vperm.xlu0 %9100, %v824_v57  }
 0xde5   : > { %v6904_v42 = vpack.c.bf16 %v6785_v16, %v6784_v11 }
 0xde7   : > { %7076 = vmatmul.bf16.gmra.mxu2 %v6904_v42 }
 0xde8   : > { %v6493_v26 = vpop.f32.mrf.mxu0 }
 0xde9   : > { %v6494_v33 = vadd.f32 %v6493_v26, %v14533_v30  ;;  %v14536_v30 = vld [vmem:[#allocation202_spill] sm:$0xff] }
 0xdea   : > { %v7037_v60 = vpop.f32.mrf.mxu2 }
 0xdeb   : > { %v7038_v43 = vadd.f32 %v12609_v55, %v7037_v60  ;;  %6532 = vmatmul.bf16.gmra.mxu0 %v14532_v35  ;;  %v6786_v40 = vmax.f32 %v6494_v33, 0.0  ;;  %v7493_v60 = vpop.permute.xlu0 %7492 }
 0xded   : > { %v7357_v28 = vmax.f32 %v7038_v43, 0.0 }
 0xdef   : > { %v8125_v11 = vmul.f32 %v7488_v58, %v7357_v28  ;;  %v7498_v58 = vpop.permute.xlu1 %7497  ;;  %v14535_v28 = vld [vmem:[#allocation203_spill] sm:$0xff] }
 0xdf0   : > { %v6495_v16 = vpop.f32.mrf.mxu0  ;;  %v14537_v33 = vpack.c.bf16 %v14535_v28, %v14536_v30 }
 0xdf1   : > { %v6496_v42 = vadd.f32 %v6495_v16, %v14534_v59  ;;  %v820_v16 = vld [vmem:[%s12513_s22 + $0x88] sm:$0xff] }
 0xdf2   : > { %v7039_v15 = vpop.f32.mrf.mxu2  ;;  %7572 = vperm.xlu2 %9102, %v820_v16   ;;  %v14538_v59 = vld [vmem:[#allocation12_spill] sm:$0xff]  ;;  %v7508_v16 = vpop.permute.xlu2 %7507 }
 0xdf3   : > { %v6787_v25 = vmax.f32 %v6496_v42, 0.0  ;;  %v7040_v3 = vadd.f32 %v12609_v55, %v7039_v15 }
 0xdf5   : > { %v7358_v46 = vmax.f32 %v7040_v3, 0.0  ;;  %v6905_v7 = vpack.c.bf16 %v6787_v25, %v6786_v40  ;;  %v14539_v25 = vld [vmem:[#allocation13_spill] sm:$0xff] }
 0xdf7   : > { %v8126_v2 = vmul.f32 %v7493_v60, %v7358_v46  ;;  %7081 = vmatmul.bf16.gmra.mxu2 %v6905_v7 }
 0xdf8   : > { %v6498_v43 = vpop.f32.mrf.mxu0 }
 0xdf9   : > { %v8253_v35 = vadd.f32 %v8126_v2, %v8125_v11  ;;  %v6499_v3 = vadd.f32 %v6498_v43, %v14538_v59  ;;  %v14541_v59 = vld [vmem:[#allocation205_spill] sm:$0xff] }
 0xdfa   : > { %v7042_v26 = vpop.f32.mrf.mxu2 }
 0xdfb   : > { %v7043_v12 = vadd.f32 %v12609_v55, %v7042_v26  ;;  %6537 = vmatmul.bf16.gmra.mxu0 %v14537_v33  ;;  %v6788_v60 = vmax.f32 %v6499_v3, 0.0  ;;  %v7503_v26 = vpop.permute.xlu1 %7502 }
 0xdfd   : > { %v7359_v15 = vmax.f32 %v7043_v12, 0.0 }
 0xdff   : > { %v8127_v40 = vmul.f32 %v7498_v58, %v7359_v15  ;;  %v14540_v15 = vld [vmem:[#allocation207_spill] sm:$0xff] }
 0xe00   : > { %v6500_v31 = vpop.f32.mrf.mxu0  ;;  %v14542_v3 = vpack.c.bf16 %v14540_v15, %v14541_v59 }
 0xe01   : > { %v8254_v46 = vadd.f32 %v8253_v35, %v8127_v40  ;;  %v6501_v42 = vadd.f32 %v6500_v31, %v14539_v25  ;;  %v825_v40 = vld [vmem:[%s12513_s22 + $0xb0] sm:$0xff]  ;;  %v14543_v25 = vld [vmem:[#allocation14_spill] sm:$0xff] }
 0xe02   : > { %v7044_v11 = vpop.f32.mrf.mxu2  ;;  %7597 = vperm.xlu1 %9101, %v825_v40   ;;  %v14545_v40 = vld [vmem:[#allocation115_spill] sm:$0xff] }
 0xe03   : > { %v6789_v7 = vmax.f32 %v6501_v42, 0.0  ;;  %v7045_v2 = vadd.f32 %v12609_v55, %v7044_v11 }
 0xe05   : > { %v7360_v28 = vmax.f32 %v7045_v2, 0.0  ;;  %v6906_v30 = vpack.c.bf16 %v6789_v7, %v6788_v60  ;;  %v14544_v7 = vld [vmem:[#allocation15_spill] sm:$0xff] }
 0xe07   : > { %v8128_v12 = vmul.f32 %v7503_v26, %v7360_v28  ;;  %7086 = vmatmul.bf16.gmra.mxu2 %v6906_v30 }
 0xe08   : > { %v6503_v33 = vpop.f32.mrf.mxu0 }
 0xe09   : > { %v8255_v43 = vadd.f32 %v8254_v46, %v8128_v12  ;;  %v6504_v42 = vadd.f32 %v6503_v33, %v14543_v25  ;;  %v7513_v12 = vpop.permute.xlu2 %7512 }
 0xe0a   : > { %v7047_v58 = vpop.f32.mrf.mxu2 }
 0xe0b   : > { %v7048_v35 = vadd.f32 %v12609_v55, %v7047_v58  ;;  %6542 = vmatmul.bf16.gmra.mxu0 %v14542_v3  ;;  %v6790_v26 = vmax.f32 %v6504_v42, 0.0  ;;  %v823_v58 = vld [vmem:[%s12513_s22 + $0xa0] sm:$0xff]  ;;  %v7518_v42 = vpop.permute.xlu0 %7517 }
 0xe0c   : > { %7587 = vperm.xlu2 %9102, %v823_v58  }
 0xe0d   : > { %v7361_v31 = vmax.f32 %v7048_v35, 0.0 }
 0xe0f   : > { %v8129_v11 = vmul.f32 %v7508_v16, %v7361_v31  ;;  %v14546_v31 = vld [vmem:[#allocation209_spill] sm:$0xff] }
 0xe10   : > { %v6505_v57 = vpop.f32.mrf.mxu0  ;;  %v14547_v25 = vpack.c.bf16 %v14545_v40, %v14546_v31 }
 0xe11   : > { %v8256_v60 = vadd.f32 %v8255_v43, %v8129_v11  ;;  %v6506_v2 = vadd.f32 %v6505_v57, %v14544_v7  ;;  %v827_v11 = vld [vmem:[%s12513_s22 + $0xc0] sm:$0xff] }
 0xe12   : > { %v7049_v46 = vpop.f32.mrf.mxu2  ;;  %7607 = vperm.xlu0 %9100, %v827_v11   ;;  %v14548_v7 = vld [vmem:[#allocation23_spill] sm:$0xff]  ;;  %v14550_v11 = vld [vmem:[#allocation68_spill] sm:$0xff] }
 0xe13   : > { %v6791_v28 = vmax.f32 %v6506_v2, 0.0  ;;  %v7050_v30 = vadd.f32 %v12609_v55, %v7049_v46 }
 0xe15   : > { %v7362_v15 = vmax.f32 %v7050_v30, 0.0  ;;  %v6907_v59 = vpack.c.bf16 %v6791_v28, %v6790_v26  ;;  %v14549_v30 = vld [vmem:[#allocation22_spill] sm:$0xff] }
 0xe17   : > { %v8130_v35 = vmul.f32 %v7513_v12, %v7362_v15  ;;  %7091 = vmatmul.bf16.gmra.mxu2 %v6907_v59 }
 0xe18   : > { %v6508_v3 = vpop.f32.mrf.mxu0 }
 0xe19   : > { %v8257_v33 = vadd.f32 %v8256_v60, %v8130_v35  ;;  %v6509_v2 = vadd.f32 %v6508_v3, %v14548_v7  ;;  %v7523_v35 = vpop.permute.xlu1 %7522 }
 0xe1a   : > { %v7052_v16 = vpop.f32.mrf.mxu2 }
 0xe1b   : > { %v7053_v43 = vadd.f32 %v12609_v55, %v7052_v16  ;;  %6547 = vmatmul.bf16.gmra.mxu0 %v14547_v25  ;;  %v6792_v58 = vmax.f32 %v6509_v2, 0.0  ;;  %v828_v16 = vld [vmem:[%s12513_s22 + $0xc8] sm:$0xff]  ;;  %v7528_v2 = vpop.permute.xlu2 %7527 }
 0xe1c   : > { %7612 = vperm.xlu1 %9101, %v828_v16  }
 0xe1d   : > { %v7363_v57 = vmax.f32 %v7053_v43, 0.0 }
 0xe1f   : > { %v8131_v46 = vmul.f32 %v7518_v42, %v7363_v57  ;;  %v14551_v57 = vld [vmem:[#allocation211_spill] sm:$0xff] }
 0xe20   : > { %v6510_v26 = vpop.f32.mrf.mxu0  ;;  %v14552_v7 = vpack.c.bf16 %v14550_v11, %v14551_v57 }
 0xe21   : > { %v8258_v28 = vadd.f32 %v8257_v33, %v8131_v46  ;;  %v6511_v12 = vadd.f32 %v6510_v26, %v14549_v30  ;;  %v826_v46 = vld [vmem:[%s12513_s22 + $0xb8] sm:$0xff]  ;;  %v14553_v30 = vld [vmem:[#allocation21_spill] sm:$0xff] }
 0xe22   : > { %v7054_v60 = vpop.f32.mrf.mxu2  ;;  %7602 = vperm.xlu2 %9102, %v826_v46   ;;  %v14555_v46 = vld [vmem:[#allocation121_spill] sm:$0xff] }
 0xe23   : > { %v6793_v15 = vmax.f32 %v6511_v12, 0.0  ;;  %v7055_v59 = vadd.f32 %v12609_v55, %v7054_v60 }
 0xe25   : > { %v7364_v40 = vmax.f32 %v7055_v59, 0.0  ;;  %v6908_v31 = vpack.c.bf16 %v6793_v15, %v6792_v58  ;;  %v14554_v59 = vld [vmem:[#allocation19_spill] sm:$0xff] }
 0xe27   : > { %v8132_v43 = vmul.f32 %v7523_v35, %v7364_v40  ;;  %7096 = vmatmul.bf16.gmra.mxu2 %v6908_v31 }
 0xe28   : > { %v6513_v25 = vpop.f32.mrf.mxu0 }
 0xe29   : > { %v8259_v3 = vadd.f32 %v8258_v28, %v8132_v43  ;;  %v6514_v12 = vadd.f32 %v6513_v25, %v14553_v30  ;;  %v7533_v43 = vpop.permute.xlu0 %7532 }
 0xe2a   : > { %v7057_v42 = vpop.f32.mrf.mxu2 }
 0xe2b   : > { %v7058_v33 = vadd.f32 %v12609_v55, %v7057_v42  ;;  %6552 = vmatmul.bf16.gmra.mxu0 %v14552_v7  ;;  %v6794_v16 = vmax.f32 %v6514_v12, 0.0  ;;  %v830_v42 = vld [vmem:[%s12513_s22 + $0xd8] sm:$0xff]  ;;  %v7538_v12 = vpop.permute.xlu1 %7537 }
 0xe2c   : > { %7622 = vperm.xlu0 %9100, %v830_v42  }
 0xe2d   : > { %v7365_v26 = vmax.f32 %v7058_v33, 0.0 }
 0xe2f   : > { %v8133_v60 = vmul.f32 %v7528_v2, %v7365_v26  ;;  %v14556_v26 = vld [vmem:[#allocation104_spill] sm:$0xff] }
 0xe30   : > { %v6515_v58 = vpop.f32.mrf.mxu0  ;;  %v14557_v30 = vpack.c.bf16 %v14555_v46, %v14556_v26 }
 0xe31   : > { %v8260_v15 = vadd.f32 %v8259_v3, %v8133_v60  ;;  %v6516_v35 = vadd.f32 %v6515_v58, %v14554_v59  ;;  %v831_v60 = vld [vmem:[%s12513_s22 + $0xe0] sm:$0xff]  ;;  %v14558_v59 = vld [vmem:[#allocation18_spill] sm:$0xff] }
 0xe32   : > { %v7059_v28 = vpop.f32.mrf.mxu2  ;;  %7627 = vperm.xlu1 %9101, %v831_v60   ;;  %v14560_v60 = vld [vmem:[#allocation166_spill] sm:$0xff] }
 0xe33   : > { %v6795_v40 = vmax.f32 %v6516_v35, 0.0  ;;  %v7060_v31 = vadd.f32 %v12609_v55, %v7059_v28 }
 0xe35   : > { %v7366_v11 = vmax.f32 %v7060_v31, 0.0  ;;  %v6909_v57 = vpack.c.bf16 %v6795_v40, %v6794_v16  ;;  %v14559_v31 = vld [vmem:[#allocation17_spill] sm:$0xff] }
 0xe37   : > { %v8134_v33 = vmul.f32 %v7533_v43, %v7366_v11  ;;  %7101 = vmatmul.bf16.gmra.mxu2 %v6909_v57 }
 0xe38   : > { %v6518_v7 = vpop.f32.mrf.mxu0 }
 0xe39   : > { %v8261_v25 = vadd.f32 %v8260_v15, %v8134_v33  ;;  %v6519_v35 = vadd.f32 %v6518_v7, %v14558_v59  ;;  %v7543_v33 = vpop.permute.xlu2 %7542 }
 0xe3a   : > { %v7062_v2 = vpop.f32.mrf.mxu2 }
 0xe3b   : > { %v7063_v3 = vadd.f32 %v12609_v55, %v7062_v2  ;;  %6557 = vmatmul.bf16.gmra.mxu0 %v14557_v30  ;;  %v6796_v42 = vmax.f32 %v6519_v35, 0.0  ;;  %v829_v2 = vld [vmem:[%s12513_s22 + $0xd0] sm:$0xff]  ;;  %v7548_v35 = vpop.permute.xlu0 %7547 }
 0xe3c   : > { %7617 = vperm.xlu2 %9102, %v829_v2  }
 0xe3d   : > { %v7367_v58 = vmax.f32 %v7063_v3, 0.0 }
 0xe3f   : > { %v8135_v28 = vmul.f32 %v7538_v12, %v7367_v58  ;;  %v14561_v58 = vld [vmem:[#allocation130_spill] sm:$0xff] }
 0xe40   : > { %v6520_v16 = vpop.f32.mrf.mxu0  ;;  %v14562_v59 = vpack.c.bf16 %v14560_v60, %v14561_v58 }
 0xe41   : > { %v8262_v40 = vadd.f32 %v8261_v25, %v8135_v28  ;;  %v6521_v43 = vadd.f32 %v6520_v16, %v14559_v31  ;;  %v833_v28 = vld [vmem:[%s12513_s22 + $0xf0] sm:$0xff]  ;;  %v14563_v31 = vld [vmem:[#allocation16_spill] sm:$0xff] }
 0xe42   : > { %v7064_v15 = vpop.f32.mrf.mxu2  ;;  %7637 = vperm.xlu0 %9100, %v833_v28   ;;  %v14565_v28 = vld [vmem:[#allocation140_spill] sm:$0xff] }
 0xe43   : > { %v6797_v11 = vmax.f32 %v6521_v43, 0.0  ;;  %v7065_v57 = vadd.f32 %v12609_v55, %v7064_v15 }
 0xe45   : > { %v7368_v46 = vmax.f32 %v7065_v57, 0.0  ;;  %v6910_v26 = vpack.c.bf16 %v6797_v11, %v6796_v42  ;;  %v14564_v57 = vld [vmem:[#allocation20_spill] sm:$0xff] }
 0xe47   : > { %v8136_v3 = vmul.f32 %v7543_v33, %v7368_v46  ;;  %7106 = vmatmul.bf16.gmra.mxu2 %v6910_v26 }
 0xe48   : > { %v6523_v30 = vpop.f32.mrf.mxu0 }
 0xe49   : > { %v8263_v7 = vadd.f32 %v8262_v40, %v8136_v3  ;;  %v6524_v43 = vadd.f32 %v6523_v30, %v14563_v31  ;;  %v7553_v3 = vpop.permute.xlu1 %7552 }
 0xe4a   : > { %v7067_v12 = vpop.f32.mrf.mxu2 }
 0xe4b   : > { %v7068_v25 = vadd.f32 %v12609_v55, %v7067_v12  ;;  %6562 = vmatmul.bf16.gmra.mxu0 %v14562_v59  ;;  %v6798_v2 = vmax.f32 %v6524_v43, 0.0  ;;  %v834_v12 = vld [vmem:[%s12513_s22 + $0xf8] sm:$0xff]  ;;  %v7558_v43 = vpop.permute.xlu2 %7557 }
 0xe4c   : > { %7642 = vperm.xlu1 %9101, %v834_v12  }
 0xe4d   : > { %v7369_v16 = vmax.f32 %v7068_v25, 0.0 }
 0xe4f   : > { %v8137_v15 = vmul.f32 %v7548_v35, %v7369_v16  ;;  %v14566_v16 = vld [vmem:[#allocation149_spill] sm:$0xff] }
 0xe50   : > { %v6525_v42 = vpop.f32.mrf.mxu0  ;;  %v14567_v31 = vpack.c.bf16 %v14565_v28, %v14566_v16 }
 0xe51   : > { %v8264_v11 = vadd.f32 %v8263_v7, %v8137_v15  ;;  %v6526_v33 = vadd.f32 %v6525_v42, %v14564_v57  ;;  %v832_v15 = vld [vmem:[%s12513_s22 + $0xe8] sm:$0xff] }
 0xe52   : > { %v7069_v40 = vpop.f32.mrf.mxu2  ;;  %7632 = vperm.xlu2 %9102, %v832_v15   ;;  %v14568_v57 = vld [vmem:[#allocation24_spill] sm:$0xff]  ;;  %v14570_v15 = vld [vmem:[#allocation142_spill] sm:$0xff] }
 0xe53   : > { %v6799_v46 = vmax.f32 %v6526_v33, 0.0  ;;  %v7070_v26 = vadd.f32 %v12609_v55, %v7069_v40 }
 0xe55   : > { %v7370_v60 = vmax.f32 %v7070_v26, 0.0  ;;  %v6911_v58 = vpack.c.bf16 %v6799_v46, %v6798_v2  ;;  %v14569_v26 = vld [vmem:[#allocation25_spill] sm:$0xff] }
 0xe57   : > { %v8138_v25 = vmul.f32 %v7553_v3, %v7370_v60  ;;  %7111 = vmatmul.bf16.gmra.mxu2 %v6911_v58 }
 0xe58   : > { %v6528_v59 = vpop.f32.mrf.mxu0 }
 0xe59   : > { %v8265_v30 = vadd.f32 %v8264_v11, %v8138_v25  ;;  %v6529_v33 = vadd.f32 %v6528_v59, %v14568_v57  ;;  %v7563_v25 = vpop.permute.xlu0 %7562 }
 0xe5a   : > { %v7072_v35 = vpop.f32.mrf.mxu2 }
 0xe5b   : > { %v7073_v7 = vadd.f32 %v12609_v55, %v7072_v35  ;;  %6567 = vmatmul.bf16.gmra.mxu0 %v14567_v31  ;;  %v6800_v12 = vmax.f32 %v6529_v33, 0.0  ;;  %v836_v35 = vld [vmem:[%s12513_s22 + $0x108] sm:$0xff]  ;;  %v7568_v33 = vpop.permute.xlu1 %7567 }
 0xe5c   : > { %7652 = vperm.xlu0 %9100, %v836_v35  }
 0xe5d   : > { %v7371_v42 = vmax.f32 %v7073_v7, 0.0 }
 0xe5f   : > { %v8139_v40 = vmul.f32 %v7558_v43, %v7371_v42  ;;  %v14571_v42 = vld [vmem:[#allocation151_spill] sm:$0xff] }
 0xe60   : > { %v6530_v2 = vpop.f32.mrf.mxu0  ;;  %v14572_v57 = vpack.c.bf16 %v14570_v15, %v14571_v42 }
 0xe61   : > { %v8266_v46 = vadd.f32 %v8265_v30, %v8139_v40  ;;  %v6531_v3 = vadd.f32 %v6530_v2, %v14569_v26  ;;  %v837_v40 = vld [vmem:[%s12513_s22 + $0x110] sm:$0xff]  ;;  %v14573_v26 = vld [vmem:[#allocation26_spill] sm:$0xff] }
 0xe62   : > { %v7074_v11 = vpop.f32.mrf.mxu2  ;;  %7657 = vperm.xlu1 %9101, %v837_v40   ;;  %v14575_v40 = vld [vmem:[#allocation144_spill] sm:$0xff] }
 0xe63   : > { %v6801_v60 = vmax.f32 %v6531_v3, 0.0  ;;  %v7075_v58 = vadd.f32 %v12609_v55, %v7074_v11 }
 0xe65   : > { %v7372_v28 = vmax.f32 %v7075_v58, 0.0  ;;  %v6912_v16 = vpack.c.bf16 %v6801_v60, %v6800_v12  ;;  %v14574_v60 = vld [vmem:[#allocation27_spill] sm:$0xff] }
 0xe67   : > { %v8140_v7 = vmul.f32 %v7563_v25, %v7372_v28  ;;  %7116 = vmatmul.bf16.gmra.mxu2 %v6912_v16  ;;  %v7573_v16 = vpop.permute.xlu2 %7572 }
 0xe68   : > { %v6533_v31 = vpop.f32.mrf.mxu0 }
 0xe69   : > { %v12683_v59 = vadd.f32 %v8266_v46, %v8140_v7  ;;  %v6534_v3 = vadd.f32 %v6533_v31, %v14573_v26  ;;  %v835_v7 = vld [vmem:[%s12513_s22 + $0x100] sm:$0xff] }
 0xe6a   : > { %v7077_v43 = vpop.f32.mrf.mxu2  ;;  %7647 = vperm.xlu2 %9102, %v835_v7  }
 0xe6b   : > { %v7078_v30 = vadd.f32 %v12609_v55, %v7077_v43  ;;  %6572 = vmatmul.bf16.gmra.mxu0 %v14572_v57  ;;  %v6802_v25 = vmax.f32 %v6534_v3, 0.0  ;;  %v7578_v3 = vpop.permute.xlu0 %7577 }
 0xe6d   : > { %v7373_v2 = vmax.f32 %v7078_v30, 0.0 }
 0xe6f   : > { %v8141_v11 = vmul.f32 %v7568_v33, %v7373_v2  ;;  %v14576_v2 = vld [vmem:[#allocation110_spill] sm:$0xff] }
 0xe70   : > { %v6535_v12 = vpop.f32.mrf.mxu0  ;;  %v14577_v26 = vpack.c.bf16 %v14575_v40, %v14576_v2  ;;  %v840_v40 = vld [vmem:[%s12513_s22 + $0x128] sm:$0xff] }
 0xe71   : > { %v6536_v58 = vadd.f32 %v6535_v12, %v14574_v60  ;;  %v839_v12 = vld [vmem:[%s12513_s22 + $0x120] sm:$0xff]  ;;  %7672 = vperm.xlu1 %9101, %v840_v40  }
 0xe72   : > { %v7079_v46 = vpop.f32.mrf.mxu2  ;;  %7667 = vperm.xlu0 %9100, %v839_v12  }
 0xe73   : > { %v6803_v35 = vmax.f32 %v6536_v58, 0.0  ;;  %v7080_v28 = vadd.f32 %v12609_v55, %v7079_v46  ;;  %v14578_v58 = vld [vmem:[#allocation28_spill] sm:$0xff] }
 0xe75   : > { %v7374_v43 = vmax.f32 %v7080_v28, 0.0  ;;  %v6913_v15 = vpack.c.bf16 %v6803_v35, %v6802_v25 }
 0xe77   : > { %v8142_v42 = vmul.f32 %v7573_v16, %v7374_v43  ;;  %7121 = vmatmul.bf16.gmra.mxu2 %v6913_v15  ;;  %v14579_v16 = vld [vmem:[#allocation29_spill] sm:$0xff] }
 0xe78   : > { %v6538_v30 = vpop.f32.mrf.mxu0 }
 0xe79   : > { %v8274_v57 = vadd.f32 %v8142_v42, %v8141_v11  ;;  %v6539_v46 = vadd.f32 %v6538_v30, %v14578_v58  ;;  %v14581_v58 = vld [vmem:[#allocation146_spill] sm:$0xff] }
 0xe7a   : > { %v7082_v31 = vpop.f32.mrf.mxu2 }
 0xe7b   : > { %v7083_v33 = vadd.f32 %v12609_v55, %v7082_v31  ;;  %6577 = vmatmul.bf16.gmra.mxu0 %v14577_v26  ;;  %v6804_v43 = vmax.f32 %v6539_v46, 0.0  ;;  %v7583_v31 = vpop.permute.xlu1 %7582  ;;  %v7588_v46 = vpop.permute.xlu2 %7587 }
 0xe7d   : > { %v7375_v60 = vmax.f32 %v7083_v33, 0.0 }
 0xe7f   : > { %v8143_v25 = vmul.f32 %v7578_v3, %v7375_v60  ;;  %v14580_v60 = vld [vmem:[#allocation201_spill] sm:$0xff] }
 0xe80   : > { %v6540_v35 = vpop.f32.mrf.mxu0 }
 0xe81   : > { %v8275_v28 = vadd.f32 %v8274_v57, %v8143_v25  ;;  %v6541_v7 = vadd.f32 %v6540_v35, %v14579_v16  ;;  %v14582_v25 = vpack.c.bf16 %v14580_v60, %v14581_v58  ;;  %v838_v35 = vld [vmem:[%s12513_s22 + $0x118] sm:$0xff] }
 0xe82   : > { %v7084_v11 = vpop.f32.mrf.mxu2  ;;  %7662 = vperm.xlu2 %9102, %v838_v35   ;;  %v842_v60 = vld [vmem:[%s12513_s22 + $0x138] sm:$0xff] }
 0xe83   : > { %v6805_v15 = vmax.f32 %v6541_v7, 0.0  ;;  %v7085_v42 = vadd.f32 %v12609_v55, %v7084_v11  ;;  %v14583_v7 = vld [vmem:[#allocation30_spill] sm:$0xff]  ;;  %7682 = vperm.xlu0 %9100, %v842_v60  }
 0xe85   : > { %v7376_v2 = vmax.f32 %v7085_v42, 0.0  ;;  %v6914_v26 = vpack.c.bf16 %v6805_v15, %v6804_v43 }
 0xe87   : > { %v8144_v33 = vmul.f32 %v7583_v31, %v7376_v2  ;;  %7126 = vmatmul.bf16.gmra.mxu2 %v6914_v26  ;;  %v14584_v31 = vld [vmem:[#allocation31_spill] sm:$0xff] }
 0xe88   : > { %v6543_v12 = vpop.f32.mrf.mxu0 }
 0xe89   : > { %v8276_v30 = vadd.f32 %v8275_v28, %v8144_v33  ;;  %v6544_v11 = vadd.f32 %v6543_v12, %v14583_v7  ;;  %v14585_v12 = vld [vmem:[#allocation148_spill] sm:$0xff] }
 0xe8a   : > { %v7087_v3 = vpop.f32.mrf.mxu2 }
 0xe8b   : > { %v7088_v57 = vadd.f32 %v12609_v55, %v7087_v3  ;;  %6582 = vmatmul.bf16.gmra.mxu0 %v14582_v25  ;;  %v6806_v2 = vmax.f32 %v6544_v11, 0.0  ;;  %v7593_v3 = vpop.permute.xlu0 %7592  ;;  %v7598_v11 = vpop.permute.xlu1 %7597 }
 0xe8d   : > { %v7377_v16 = vmax.f32 %v7088_v57, 0.0 }
 0xe8f   : > { %v8145_v43 = vmul.f32 %v7588_v46, %v7377_v16  ;;  %v14586_v46 = vld [vmem:[#allocation204_spill] sm:$0xff] }
 0xe90   : > { %v6545_v15 = vpop.f32.mrf.mxu0  ;;  %v6403_v16 = vpack.c.bf16 %v14586_v46, %v14585_v12  ;;  %v841_v46 = vld [vmem:[%s12513_s22 + $0x130] sm:$0xff] }
 0xe91   : > { %v8277_v42 = vadd.f32 %v8276_v30, %v8145_v43  ;;  %v6546_v40 = vadd.f32 %v6545_v15, %v14584_v31  ;;  %v843_v15 = vld [vmem:[%s12513_s22 + $0x140] sm:$0xff]  ;;  %7677 = vperm.xlu2 %9102, %v841_v46  }
 0xe92   : > { %v7089_v28 = vpop.f32.mrf.mxu2  ;;  %7687 = vperm.xlu1 %9101, %v843_v15  }
 0xe93   : > { %v6807_v26 = vmax.f32 %v6546_v40, 0.0  ;;  %v7090_v33 = vadd.f32 %v12609_v55, %v7089_v28  ;;  %v14587_v40 = vld [vmem:[#allocation41_spill] sm:$0xff] }
 0xe95   : > { %v7378_v58 = vmax.f32 %v7090_v33, 0.0  ;;  %v6915_v25 = vpack.c.bf16 %v6807_v26, %v6806_v2 }
 0xe97   : > { %v8146_v57 = vmul.f32 %v7593_v3, %v7378_v58  ;;  %7131 = vmatmul.bf16.gmra.mxu2 %v6915_v25  ;;  %v14588_v3 = vld [vmem:[#allocation40_spill] sm:$0xff] }
 0xe98   : > { %v6548_v35 = vpop.f32.mrf.mxu0 }
 0xe99   : > { %v8278_v30 = vadd.f32 %v8277_v42, %v8146_v57  ;;  %v6549_v28 = vadd.f32 %v6548_v35, %v14587_v40  ;;  %v7603_v57 = vpop.permute.xlu2 %7602  ;;  %v14589_v35 = vld [vmem:[#allocation206_spill] sm:$0xff] }
 0xe9a   : > { %v7092_v7 = vpop.f32.mrf.mxu2 }
 0xe9b   : > { %v7093_v43 = vadd.f32 %v12609_v55, %v7092_v7  ;;  %6587 = vmatmul.bf16.gmra.mxu0 %v6403_v16  ;;  %v6808_v25 = vmax.f32 %v6549_v28, 0.0  ;;  %v7608_v28 = vpop.permute.xlu0 %7607 }
 0xe9d   : > { %v7379_v31 = vmax.f32 %v7093_v43, 0.0 }
 0xe9f   : > { %v8147_v2 = vmul.f32 %v7598_v11, %v7379_v31  ;;  %v14590_v11 = vld [vmem:[#allocation208_spill] sm:$0xff] }
 0xea0   : > { %v6550_v26 = vpop.f32.mrf.mxu0  ;;  %v6404_v31 = vpack.c.bf16 %v14590_v11, %v14589_v35  ;;  %v846_v11 = vld [vmem:[%s12513_s22 + $0x158] sm:$0xff] }
 0xea1   : > { %v8279_v33 = vadd.f32 %v8278_v30, %v8147_v2  ;;  %v6551_v60 = vadd.f32 %v6550_v26, %v14588_v3  ;;  %v845_v26 = vld [vmem:[%s12513_s22 + $0x150] sm:$0xff]  ;;  %7702 = vperm.xlu1 %9101, %v846_v11  }
 0xea2   : > { %v7094_v58 = vpop.f32.mrf.mxu2  ;;  %7697 = vperm.xlu0 %9100, %v845_v26  }
 0xea3   : > { %v6809_v12 = vmax.f32 %v6551_v60, 0.0  ;;  %v7095_v42 = vadd.f32 %v12609_v55, %v7094_v58  ;;  %v14591_v60 = vld [vmem:[#allocation38_spill] sm:$0xff] }
 0xea5   : > { %v7380_v16 = vmax.f32 %v7095_v42, 0.0  ;;  %v6916_v7 = vpack.c.bf16 %v6809_v12, %v6808_v25 }
 0xea7   : > { %v8148_v43 = vmul.f32 %v7603_v57, %v7380_v16  ;;  %7136 = vmatmul.bf16.gmra.mxu2 %v6916_v7  ;;  %v14592_v57 = vld [vmem:[#allocation36_spill] sm:$0xff] }
 0xea8   : > { %v6553_v15 = vpop.f32.mrf.mxu0 }
 0xea9   : > { %v8280_v30 = vadd.f32 %v8279_v33, %v8148_v43  ;;  %v6554_v58 = vadd.f32 %v6553_v15, %v14591_v60  ;;  %v7613_v43 = vpop.permute.xlu1 %7612  ;;  %v14593_v15 = vld [vmem:[#allocation210_spill] sm:$0xff] }
 0xeaa   : > { %v7097_v40 = vpop.f32.mrf.mxu2 }
 0xeab   : > { %v7098_v2 = vadd.f32 %v12609_v55, %v7097_v40  ;;  %6592 = vmatmul.bf16.gmra.mxu0 %v6404_v31  ;;  %v6810_v7 = vmax.f32 %v6554_v58, 0.0  ;;  %v7618_v58 = vpop.permute.xlu2 %7617 }
 0xead   : > { %v7381_v3 = vmax.f32 %v7098_v2, 0.0 }
 0xeaf   : > { %v8149_v25 = vmul.f32 %v7608_v28, %v7381_v3  ;;  %v14594_v28 = vld [vmem:[#allocation122_spill] sm:$0xff] }
 0xeb0   : > { %v6555_v12 = vpop.f32.mrf.mxu0  ;;  %v6405_v3 = vpack.c.bf16 %v14594_v28, %v14593_v15  ;;  %v848_v28 = vld [vmem:[%s12513_s22 + $0x168] sm:$0xff] }
 0xeb1   : > { %v8281_v42 = vadd.f32 %v8280_v30, %v8149_v25  ;;  %v6556_v46 = vadd.f32 %v6555_v12, %v14592_v57  ;;  %v844_v12 = vld [vmem:[%s12513_s22 + $0x148] sm:$0xff]  ;;  %7712 = vperm.xlu0 %9100, %v848_v28  }
 0xeb2   : > { %v7099_v16 = vpop.f32.mrf.mxu2  ;;  %7692 = vperm.xlu2 %9102, %v844_v12  }
 0xeb3   : > { %v6811_v35 = vmax.f32 %v6556_v46, 0.0  ;;  %v7100_v33 = vadd.f32 %v12609_v55, %v7099_v16  ;;  %v14595_v46 = vld [vmem:[#allocation34_spill] sm:$0xff] }
 0xeb5   : > { %v7382_v31 = vmax.f32 %v7100_v33, 0.0  ;;  %v6917_v40 = vpack.c.bf16 %v6811_v35, %v6810_v7 }
 0xeb7   : > { %v8150_v2 = vmul.f32 %v7613_v43, %v7382_v31  ;;  %7141 = vmatmul.bf16.gmra.mxu2 %v6917_v40  ;;  %v14596_v43 = vld [vmem:[#allocation33_spill] sm:$0xff] }
 0xeb8   : > { %v6558_v26 = vpop.f32.mrf.mxu0 }
 0xeb9   : > { %v8282_v30 = vadd.f32 %v8281_v42, %v8150_v2  ;;  %v6559_v16 = vadd.f32 %v6558_v26, %v14595_v46  ;;  %v7623_v2 = vpop.permute.xlu0 %7622  ;;  %v14597_v26 = vld [vmem:[#allocation71_spill] sm:$0xff] }
 0xeba   : > { %v7102_v60 = vpop.f32.mrf.mxu2 }
 0xebb   : > { %v7103_v25 = vadd.f32 %v12609_v55, %v7102_v60  ;;  %6597 = vmatmul.bf16.gmra.mxu0 %v6405_v3  ;;  %v6812_v40 = vmax.f32 %v6559_v16, 0.0  ;;  %v7628_v16 = vpop.permute.xlu1 %7627 }
 0xebd   : > { %v7383_v57 = vmax.f32 %v7103_v25, 0.0 }
 0xebf   : > { %v8151_v7 = vmul.f32 %v7618_v58, %v7383_v57  ;;  %v14598_v58 = vld [vmem:[#allocation164_spill] sm:$0xff] }
 0xec0   : > { %v6560_v35 = vpop.f32.mrf.mxu0  ;;  %v6406_v57 = vpack.c.bf16 %v14598_v58, %v14597_v26  ;;  %v7633_v26 = vpop.permute.xlu2 %7632  ;;  %v847_v58 = vld [vmem:[%s12513_s22 + $0x160] sm:$0xff] }
 0xec1   : > { %v8283_v33 = vadd.f32 %v8282_v30, %v8151_v7  ;;  %v6561_v11 = vadd.f32 %v6560_v35, %v14596_v43  ;;  %v849_v35 = vld [vmem:[%s12513_s22 + $0x170] sm:$0xff]  ;;  %7707 = vperm.xlu2 %9102, %v847_v58  }
 0xec2   : > { %v7104_v31 = vpop.f32.mrf.mxu2  ;;  %7717 = vperm.xlu1 %9101, %v849_v35  }
 0xec3   : > { %v6813_v15 = vmax.f32 %v6561_v11, 0.0  ;;  %v7105_v42 = vadd.f32 %v12609_v55, %v7104_v31  ;;  %v14599_v11 = vld [vmem:[#allocation32_spill] sm:$0xff] }
 0xec5   : > { %v7384_v3 = vmax.f32 %v7105_v42, 0.0  ;;  %v6918_v60 = vpack.c.bf16 %v6813_v15, %v6812_v40 }
 0xec7   : > { %v8152_v25 = vmul.f32 %v7623_v2, %v7384_v3  ;;  %7146 = vmatmul.bf16.gmra.mxu2 %v6918_v60  ;;  %v14600_v2 = vld [vmem:[#allocation37_spill] sm:$0xff] }
 0xec8   : > { %v6563_v12 = vpop.f32.mrf.mxu0 }
 0xec9   : > { %v8284_v30 = vadd.f32 %v8283_v33, %v8152_v25  ;;  %v6564_v31 = vadd.f32 %v6563_v12, %v14599_v11  ;;  %v7638_v11 = vpop.permute.xlu0 %7637 }
 0xeca   : > { %v7107_v46 = vpop.f32.mrf.mxu2 }
 0xecb   : > { %v7108_v7 = vadd.f32 %v12609_v55, %v7107_v46  ;;  %6602 = vmatmul.bf16.gmra.mxu0 %v6406_v57  ;;  %v6814_v60 = vmax.f32 %v6564_v31, 0.0  ;;  %v851_v31 = vld [vmem:[%s12513_s22 + $0x180] sm:$0xff] }
 0xecc   : > { %7727 = vperm.xlu0 %9100, %v851_v31  }
 0xecd   : > { %v7385_v43 = vmax.f32 %v7108_v7, 0.0 }
 0xecf   : > { %v8153_v40 = vmul.f32 %v7628_v16, %v7385_v43  ;;  %v14601_v43 = vpack.c.bf16 %v12381_v47, %v12375_v54 }
 0xed0   : > { %v6565_v15 = vpop.f32.mrf.mxu0 }
 0xed1   : > { %v8285_v42 = vadd.f32 %v8284_v30, %v8153_v40  ;;  %v6566_v28 = vadd.f32 %v6565_v15, %v14600_v2  ;;  %v8268_v15 = vrot.slane %v12683_v59, 4  ;;  %v14602_v2 = vld [vmem:[#allocation42_spill] sm:$0xff] }
 0xed2   : > { %v7109_v3 = vpop.f32.mrf.mxu2 }
 0xed3   : > { %v6815_v33 = vmax.f32 %v6566_v28, 0.0  ;;  %v7110_v25 = vadd.f32 %v12609_v55, %v7109_v3 }
 0xed5   : > { %v7386_v57 = vmax.f32 %v7110_v25, 0.0  ;;  %v6919_v46 = vpack.c.bf16 %v6815_v33, %v6814_v60 }
 0xed7   : > { %v8154_v7 = vmul.f32 %v7633_v26, %v7386_v57  ;;  %7151 = vmatmul.bf16.gmra.mxu2 %v6919_v46  ;;  %v8269_v26 = vadd.f32 %v8268_v15, %v12683_v59  ;;  %v7643_v46 = vpop.permute.xlu1 %7642  ;;  %v14604_v15 = vpack.c.bf16 %v12393_v63, %v12388_v10 }
 0xed8   : > { %v6568_v35 = vpop.f32.mrf.mxu0 }
 0xed9   : > { %v8286_v12 = vadd.f32 %v8285_v42, %v8154_v7  ;;  %v6569_v28 = vadd.f32 %v6568_v35, %v14602_v2  ;;  %v14603_v42 = vld [vmem:[#allocation44_spill] sm:$0xff] }
 0xeda   : > { %v7112_v16 = vpop.f32.mrf.mxu2  ;;  %v852_v7 = vld [vmem:[%s12513_s22 + $0x188] sm:$0xff] }
 0xedb   : > { %v7113_v30 = vadd.f32 %v12609_v55, %v7112_v16  ;;  %6607 = vmatmul.bf16.gmra.mxu0 %v14601_v43  ;;  %v6816_v57 = vmax.f32 %v6569_v28, 0.0  ;;  %7732 = vperm.xlu1 %9101, %v852_v7   ;;  %v8270_v43 = vrot.slane %v8269_v26, 2  ;;  %v7648_v28 = vpop.permute.xlu2 %7647 }
 0xedd   : > { %v7387_v40 = vmax.f32 %v7113_v30, 0.0  ;;  %v8271_v31 = vadd.f32 %v8270_v43, %v8269_v26 }
 0xedf   : > { %v8155_v3 = vmul.f32 %v7638_v11, %v7387_v40 }
 0xee0   : > { %v6570_v60 = vpop.f32.mrf.mxu0 }
 0xee1   : > { %v8287_v33 = vadd.f32 %v8286_v12, %v8155_v3  ;;  %v6571_v25 = vadd.f32 %v6570_v60, %v14603_v42  ;;  %v850_v3 = vld [vmem:[%s12513_s22 + $0x178] sm:$0xff] }
 0xee2   : > { %v7114_v58 = vpop.f32.mrf.mxu2  ;;  %7722 = vperm.xlu2 %9102, %v850_v3  }
 0xee3   : > { %v6817_v54 = vmax.f32 %v6571_v25, 0.0  ;;  %v7115_v47 = vadd.f32 %v12609_v55, %v7114_v58  ;;  %v8272_v25 = vrot.slane %v8271_v31, 1 }
 0xee5   : > { %v7388_v16 = vmax.f32 %v7115_v47, 0.0  ;;  %v6920_v30 = vpack.c.bf16 %v6817_v54, %v6816_v57  ;;  %v14605_v57 = vld [vmem:[#allocation48_spill] sm:$0xff] }
 0xee7   : > { %v8156_v35 = vmul.f32 %v7643_v46, %v7388_v16  ;;  %7156 = vmatmul.bf16.gmra.mxu2 %v6920_v30  ;;  %v14606_v46 = vld [vmem:[#allocation50_spill] sm:$0xff]  ;;  %v8273_v16 = vadd.f32 %v8272_v25, %v8271_v31 }
 0xee8   : > { %v6573_v11 = vpop.f32.mrf.mxu0 }
 0xee9   : > { %v8288_v12 = vadd.f32 %v8287_v33, %v8156_v35  ;;  %v6574_v54 = vadd.f32 %v6573_v11, %v14605_v57  ;;  %v8421_v11 = vmax.f32 %v8273_v16, 0.0  ;;  %v14607_v57 = vpack.c.bf16 %v12409_v44, %v12403_v9  ;;  %v7663_v9 = vpop.permute.xlu2 %7662  ;;  %v853_v44 = vld [vmem:[%s12513_s22 + $0x190] sm:$0xff] }
 0xeea   : > { %v7117_v40 = vpop.f32.mrf.mxu2  ;;  %7737 = vperm.xlu2 %9102, %v853_v44   ;;  %v6411_v44 = vpack.c.bf16 %v12437_v52, %v12434_v0 }
 0xeeb   : > { %v8289_v2 = vrot.slane %v8288_v12, 4  ;;  %v7118_v59 = vadd.f32 %v12609_v55, %v7117_v40  ;;  %6612 = vmatmul.bf16.gmra.mxu0 %v14604_v15  ;;  %v6818_v10 = vmax.f32 %v6574_v54, 0.0  ;;  %v854_v40 = vld [vmem:[%s12513_s22 + $0x198] sm:$0xff]  ;;  %v7658_v54 = vpop.permute.xlu1 %7657 }
 0xeec   : > { %7742 = vperm.xlu0 %9100, %v854_v40  }
 0xeed   : > { %v8290_v60 = vadd.f32 %v8289_v2, %v8288_v12  ;;  %v7389_v42 = vmax.f32 %v7118_v59, 0.0  ;;  %v7653_v12 = vpop.permute.xlu0 %7652 }
 0xeef   : > { %v8291_v58 = vrot.slane %v8290_v60, 2  ;;  %v8157_v33 = vmul.f32 %v7648_v28, %v7389_v42 }
 0xef0   : > { %v6575_v26 = vpop.f32.mrf.mxu0 }
 0xef1   : > { %v8292_v47 = vadd.f32 %v8291_v58, %v8290_v60  ;;  %v6576_v7 = vadd.f32 %v6575_v26, %v14606_v46  ;;  %v855_v26 = vld [vmem:[%s12513_s22 + $0x1a0] sm:$0xff]  ;;  %v14608_v46 = vld [vmem:[#allocation52_spill] sm:$0xff] }
 0xef2   : > { %v7119_v30 = vpop.f32.mrf.mxu2  ;;  %7747 = vperm.xlu1 %9101, %v855_v26  }
 0xef3   : > { %v8293_v43 = vrot.slane %v8292_v47, 1  ;;  %v6819_v63 = vmax.f32 %v6576_v7, 0.0  ;;  %v7120_v35 = vadd.f32 %v12609_v55, %v7119_v30 }
 0xef5   : > { %v8294_v2 = vadd.f32 %v8293_v43, %v8292_v47  ;;  %v7390_v59 = vmax.f32 %v7120_v35, 0.0  ;;  %v6921_v15 = vpack.c.bf16 %v6819_v63, %v6818_v10  ;;  %v14609_v10 = vld [vmem:[#allocation54_spill] sm:$0xff] }
 0xef7   : > { %v8422_v28 = vmax.f32 %v8294_v2, 0.0  ;;  %v8158_v3 = vmul.f32 %v7653_v12, %v7390_v59  ;;  %7161 = vmatmul.bf16.gmra.mxu2 %v6921_v15 }
 0xef8   : > { %v6578_v60 = vpop.f32.mrf.mxu0 }
 0xef9   : > { %v12764_v31 = vsel %vm8437_vm1, %v8422_v28, %v8421_v11  ;;  %v8295_v42 = vadd.f32 %v8158_v3, %v8157_v33  ;;  %v6579_v7 = vadd.f32 %v6578_v60, %v14608_v46 }
 0xefa   : > { %v7122_v25 = vpop.f32.mrf.mxu2 }
 0xefb   : > { %v7123_v58 = vadd.f32 %v12609_v55, %v7122_v25  ;;  %6617 = vmatmul.bf16.gmra.mxu0 %v14607_v57  ;;  %v6820_v35 = vmax.f32 %v6579_v7, 0.0  ;;  %v7668_v25 = vpop.permute.xlu0 %7667 }
 0xefd   : > { %v7391_v47 = vmax.f32 %v7123_v58, 0.0  ;;  %v857_v58 = vld [vmem:[%s12513_s22 + $0x1b0] sm:$0xff] }
 0xefe   : > { %7757 = vperm.xlu0 %9100, %v857_v58  }
 0xeff   : > { %v8159_v16 = vmul.f32 %v7658_v54, %v7391_v47  ;;  %v14611_v54 = vld [vmem:[#allocation56_spill] sm:$0xff] }
 0xf00   : > { %v6580_v30 = vpop.f32.mrf.mxu0 }
 0xf01   : > { %v8296_v43 = vadd.f32 %v8295_v42, %v8159_v16  ;;  %v6581_v63 = vadd.f32 %v6580_v30, %v14609_v10  ;;  %v14610_v42 = vpack.c.bf16 %v12424_v18, %v12419_v61  ;;  %v14612_v16 = vld [vmem:[#allocation58_spill] sm:$0xff]  ;;  %v7673_v61 = vpop.permute.xlu1 %7672 }
 0xf02   : > { %v7124_v33 = vpop.f32.mrf.mxu2  ;;  %v858_v18 = vld [vmem:[%s12513_s22 + $0x1b8] sm:$0xff] }
 0xf03   : > { %v6821_v12 = vmax.f32 %v6581_v63, 0.0  ;;  %v7125_v40 = vadd.f32 %v12609_v55, %v7124_v33  ;;  %7762 = vperm.xlu1 %9101, %v858_v18  }
 0xf05   : > { %v7392_v2 = vmax.f32 %v7125_v40, 0.0  ;;  %v6922_v59 = vpack.c.bf16 %v6821_v12, %v6820_v35 }
 0xf07   : > { %v8160_v15 = vmul.f32 %v7663_v9, %v7392_v2  ;;  %7166 = vmatmul.bf16.gmra.mxu2 %v6922_v59 }
 0xf08   : > { %v6583_v11 = vpop.f32.mrf.mxu0 }
 0xf09   : > { %v8297_v28 = vadd.f32 %v8296_v43, %v8160_v15  ;;  %v6584_v26 = vadd.f32 %v6583_v11, %v14611_v54  ;;  %v7678_v11 = vpop.permute.xlu2 %7677  ;;  %v14614_v54 = vld [vmem:[#allocation73_spill] sm:$0xff] }
 0xf0a   : > { %v7127_v3 = vpop.f32.mrf.mxu2 }
 0xf0b   : > { %v7128_v60 = vadd.f32 %v12609_v55, %v7127_v3  ;;  %6622 = vmatmul.bf16.gmra.mxu0 %v14610_v42  ;;  %v6822_v10 = vmax.f32 %v6584_v26, 0.0 }
 0xf0d   : > { %v7393_v57 = vmax.f32 %v7128_v60, 0.0  ;;  %v14613_v60 = vld [vmem:[#allocation81_spill] sm:$0xff] }
 0xf0f   : > { %v8161_v47 = vmul.f32 %v7668_v25, %v7393_v57 }
 0xf10   : > { %v6585_v46 = vpop.f32.mrf.mxu0 }
 0xf11   : > { %v8298_v7 = vadd.f32 %v8297_v28, %v8161_v47  ;;  %v6586_v30 = vadd.f32 %v6585_v46, %v14612_v16  ;;  %v856_v28 = vld [vmem:[%s12513_s22 + $0x1a8] sm:$0xff] }
 0xf12   : > { %v7129_v43 = vpop.f32.mrf.mxu2  ;;  %7752 = vperm.xlu2 %9102, %v856_v28   ;;  %v860_v16 = vld [vmem:[%s12513_s22 + $0x1c8] sm:$0xff] }
 0xf13   : > { %v6823_v63 = vmax.f32 %v6586_v30, 0.0  ;;  %v7130_v33 = vadd.f32 %v12609_v55, %v7129_v43  ;;  %7772 = vperm.xlu0 %9100, %v860_v16  }
 0xf15   : > { %v7394_v35 = vmax.f32 %v7130_v33, 0.0  ;;  %v6923_v12 = vpack.c.bf16 %v6823_v63, %v6822_v10  ;;  %v6412_v33 = vpack.c.bf16 %v12452_v17, %v12444_v34  ;;  %v14616_v17 = vld [vmem:[#allocation76_spill] sm:$0xff] }
 0xf17   : > { %v8162_v40 = vmul.f32 %v7673_v61, %v7394_v35  ;;  %7171 = vmatmul.bf16.gmra.mxu2 %v6923_v12  ;;  %v12797_v35 = vld [vmem:[%s13173_s8] ss:$0 sm:$0xff]  ;;  %v7688_v12 = vpop.permute.xlu1 %7687 }
 0xf18   : > { %v6588_v9 = vpop.f32.mrf.mxu0 }
 0xf19   : > { %v8299_v2 = vadd.f32 %v8298_v7, %v8162_v40  ;;  %v6589_v42 = vadd.f32 %v6588_v9, %v14613_v60  ;;  %v7683_v7 = vpop.permute.xlu0 %7682  ;;  %v861_v40 = vld [vmem:[%s12513_s22 + $0x1d0] sm:$0xff] }
 0xf1a   : > { %v7132_v59 = vpop.f32.mrf.mxu2  ;;  %7777 = vperm.xlu1 %9101, %v861_v40  }
 0xf1b   : > { %v7133_v15 = vadd.f32 %v12609_v55, %v7132_v59  ;;  %6627 = vmatmul.bf16.gmra.mxu0 %v6411_v44  ;;  %v6824_v46 = vmax.f32 %v6589_v42, 0.0  ;;  %v14615_v44 = vld [vmem:[#allocation74_spill] sm:$0xff] }
 0xf1d   : > { %v7395_v3 = vmax.f32 %v7133_v15, 0.0 }
 0xf1f   : > { %v8163_v25 = vmul.f32 %v7678_v11, %v7395_v3 }
 0xf20   : > { %v6590_v58 = vpop.f32.mrf.mxu0 }
 0xf21   : > { %v8300_v57 = vadd.f32 %v8299_v2, %v8163_v25  ;;  %v6591_v26 = vadd.f32 %v6590_v58, %v14614_v54  ;;  %v7693_v25 = vpop.permute.xlu2 %7692  ;;  %v859_v58 = vld [vmem:[%s12513_s22 + $0x1c0] sm:$0xff]  ;;  %v7698_v16 = vpop.permute.xlu0 %7697 }
 0xf22   : > { %v7134_v47 = vpop.f32.mrf.mxu2  ;;  %7767 = vperm.xlu2 %9102, %v859_v58  }
 0xf23   : > { %v6825_v0 = vmax.f32 %v6591_v26, 0.0  ;;  %v7135_v52 = vadd.f32 %v12609_v55, %v7134_v47 }
 0xf25   : > { %v7396_v30 = vmax.f32 %v7135_v52, 0.0  ;;  %v6924_v43 = vpack.c.bf16 %v6825_v0, %v6824_v46  ;;  %v6413_v46 = vpack.c.bf16 %v12473_v39, %v12459_v51 }
 0xf27   : > { %v8164_v10 = vmul.f32 %v7683_v7, %v7396_v30  ;;  %7176 = vmatmul.bf16.gmra.mxu2 %v6924_v43  ;;  %v863_v30 = vld [vmem:[%s12513_s22 + $0x1e0] sm:$0xff] }
 0xf28   : > { %v6593_v63 = vpop.f32.mrf.mxu0  ;;  %7787 = vperm.xlu0 %9100, %v863_v30  }
 0xf29   : > { %v8301_v61 = vadd.f32 %v8300_v57, %v8164_v10  ;;  %v6594_v2 = vadd.f32 %v6593_v63, %v14615_v44  ;;  %v14617_v10 = vld [vmem:[#allocation77_spill] sm:$0xff]  ;;  %v7703_v44 = vpop.permute.xlu1 %7702  ;;  %v7713_v30 = vpop.permute.xlu0 %7712 }
 0xf2a   : > { %v7137_v18 = vpop.f32.mrf.mxu2 }
 0xf2b   : > { %v7138_v55 = vadd.f32 %v12797_v35, %v7137_v18  ;;  %6632 = vmatmul.bf16.gmra.mxu0 %v6412_v33  ;;  %v6826_v3 = vmax.f32 %v6594_v2, 0.0  ;;  %v864_v2 = vld [vmem:[%s12513_s22 + $0x1e8] sm:$0xff] }
 0xf2c   : > { %7792 = vperm.xlu1 %9101, %v864_v2  }
 0xf2d   : > { %v7397_v9 = vmax.f32 %v7138_v55, 0.0  ;;  %v14618_v55 = vld [vmem:[#allocation195_spill] sm:$0xff] }
 0xf2f   : > { %v8165_v59 = vmul.f32 %v7688_v12, %v7397_v9 }
 0xf30   : > { %v6595_v15 = vpop.f32.mrf.mxu0 }
 0xf31   : > { %v8302_v34 = vadd.f32 %v8301_v61, %v8165_v59  ;;  %v6596_v11 = vadd.f32 %v6595_v15, %v14616_v17 }
 0xf32   : > { %v7139_v28 = vpop.f32.mrf.mxu2 }
 0xf33   : > { %v6827_v60 = vmax.f32 %v6596_v11, 0.0  ;;  %v7140_v42 = vadd.f32 %v12797_v35, %v7139_v28  ;;  %v6414_v11 = vpack.c.bf16 %v12492_v56, %v12481_v4 }
 0xf35   : > { %v7398_v57 = vmax.f32 %v7140_v42, 0.0  ;;  %v6925_v54 = vpack.c.bf16 %v6827_v60, %v6826_v3  ;;  %v7708_v42 = vpop.permute.xlu2 %7707 }
 0xf37   : > { %v8166_v26 = vmul.f32 %v7693_v25, %v7398_v57  ;;  %7181 = vmatmul.bf16.gmra.mxu2 %v6925_v54  ;;  %v862_v25 = vld [vmem:[%s12513_s22 + $0x1d8] sm:$0xff] }
 0xf38   : > { %v6598_v47 = vpop.f32.mrf.mxu0  ;;  %7782 = vperm.xlu2 %9102, %v862_v25   ;;  %v14619_v57 = vld [vmem:[#allocation194_spill] sm:$0xff] }
 0xf39   : > { %v8303_v0 = vadd.f32 %v8302_v34, %v8166_v26  ;;  %v6599_v63 = vadd.f32 %v6598_v47, %v14617_v10 }
 0xf3a   : > { %v7142_v52 = vpop.f32.mrf.mxu2 }
 0xf3b   : > { %v7143_v7 = vadd.f32 %v12797_v35, %v7142_v52  ;;  %6637 = vmatmul.bf16.gmra.mxu0 %v6413_v46  ;;  %v6828_v9 = vmax.f32 %v6599_v63, 0.0 }
 0xf3d   : > { %v7399_v43 = vmax.f32 %v7143_v7, 0.0 }
 0xf3f   : > { %v8167_v33 = vmul.f32 %v7698_v16, %v7399_v43  ;;  %v866_v43 = vld [vmem:[%s12513_s22 + $0x1f8] sm:$0xff] }
 0xf40   : > { %v6600_v61 = vpop.f32.mrf.mxu0  ;;  %7802 = vperm.xlu0 %9100, %v866_v43  }
 0xf41   : > { %v8304_v18 = vadd.f32 %v8303_v0, %v8167_v33  ;;  %v6601_v12 = vadd.f32 %v6600_v61, %v14618_v55  ;;  %v14620_v0 = vld [vmem:[#allocation78_spill] sm:$0xff]  ;;  %v14622_v55 = vld [vmem:[#allocation132_spill] sm:$0xff] }
 0xf42   : > { %v7144_v40 = vpop.f32.mrf.mxu2 }
 0xf43   : > { %v6829_v51 = vmax.f32 %v6601_v12, 0.0  ;;  %v7145_v39 = vadd.f32 %v12797_v35, %v7144_v40 }
 0xf45   : > { %v7400_v59 = vmax.f32 %v7145_v39, 0.0  ;;  %v6926_v15 = vpack.c.bf16 %v6829_v51, %v6828_v9  ;;  %v7718_v39 = vpop.permute.xlu1 %7717 }
 0xf47   : > { %v8168_v34 = vmul.f32 %v7703_v44, %v7400_v59  ;;  %7186 = vmatmul.bf16.gmra.mxu2 %v6926_v15  ;;  %v867_v44 = vld [vmem:[%s12513_s22 + $0x200] sm:$0xff]  ;;  %v14623_v59 = vld [vmem:[#allocation196_spill] sm:$0xff] }
 0xf48   : > { %v6603_v17 = vpop.f32.mrf.mxu0  ;;  %7807 = vperm.xlu1 %9101, %v867_v44  }
 0xf49   : > { %v8305_v28 = vadd.f32 %v8304_v18, %v8168_v34  ;;  %v6604_v54 = vadd.f32 %v6603_v17, %v14619_v57  ;;  %v14621_v18 = vld [vmem:[#allocation165_spill] sm:$0xff] }
 0xf4a   : > { %v7147_v3 = vpop.f32.mrf.mxu2  ;;  %v6415_v12 = vpack.c.bf16 %v14622_v55, %v14621_v18 }
 0xf4b   : > { %v7148_v60 = vadd.f32 %v12797_v35, %v7147_v3  ;;  %6642 = vmatmul.bf16.gmra.mxu0 %v6414_v11  ;;  %v6830_v16 = vmax.f32 %v6604_v54, 0.0  ;;  %v7723_v54 = vpop.permute.xlu2 %7722 }
 0xf4d   : > { %v7401_v58 = vmax.f32 %v7148_v60, 0.0 }
 0xf4f   : > { %v8169_v26 = vmul.f32 %v7708_v42, %v7401_v58  ;;  %v869_v42 = vld [vmem:[%s12513_s22 + $0x210] sm:$0xff] }
 0xf50   : > { %v6605_v47 = vpop.f32.mrf.mxu0  ;;  %7817 = vperm.xlu0 %9100, %v869_v42  }
 0xf51   : > { %v8306_v46 = vadd.f32 %v8305_v28, %v8169_v26  ;;  %v6606_v52 = vadd.f32 %v6605_v47, %v14620_v0  ;;  %v14624_v28 = vld [vmem:[#allocation120_spill] sm:$0xff]  ;;  %v865_v26 = vld [vmem:[%s12513_s22 + $0x1f0] sm:$0xff]  ;;  %v870_v47 = vld [vmem:[%s12513_s22 + $0x218] sm:$0xff] }
 0xf52   : > { %v7149_v7 = vpop.f32.mrf.mxu2  ;;  %7797 = vperm.xlu2 %9102, %v865_v26   ;;  %7822 = vperm.xlu1 %9101, %v870_v47  }
 0xf53   : > { %v6831_v4 = vmax.f32 %v6606_v52, 0.0  ;;  %v7150_v56 = vadd.f32 %v12797_v35, %v7149_v7 }
 0xf55   : > { %v7402_v10 = vmax.f32 %v7150_v56, 0.0  ;;  %v6927_v63 = vpack.c.bf16 %v6831_v4, %v6830_v16  ;;  %v6416_v16 = vpack.c.bf16 %v12386_v24, %v12379_v45 }
 0xf57   : > { %v8170_v33 = vmul.f32 %v7713_v30, %v7402_v10  ;;  %7191 = vmatmul.bf16.gmra.mxu2 %v6927_v63  ;;  %v872_v30 = vld [vmem:[%s12513_s22 + $0x228] sm:$0xff]  ;;  %v7728_v63 = vpop.permute.xlu0 %7727 }
 0xf58   : > { %v6608_v61 = vpop.f32.mrf.mxu0  ;;  %7832 = vperm.xlu0 %9100, %v872_v30   ;;  %v14627_v30 = vld [vmem:[#allocation109_spill] sm:$0xff] }
 0xf59   : > { %v8307_v40 = vadd.f32 %v8306_v46, %v8170_v33  ;;  %v6609_v15 = vadd.f32 %v6608_v61, %v14623_v59  ;;  %v873_v33 = vld [vmem:[%s12513_s22 + $0x230] sm:$0xff] }
 0xf5a   : > { %v7152_v9 = vpop.f32.mrf.mxu2  ;;  %7837 = vperm.xlu1 %9101, %v873_v33  }
 0xf5b   : > { %v7153_v51 = vadd.f32 %v12797_v35, %v7152_v9  ;;  %6647 = vmatmul.bf16.gmra.mxu0 %v6415_v12  ;;  %v6832_v25 = vmax.f32 %v6609_v15, 0.0  ;;  %v14625_v12 = vld [vmem:[#allocation107_spill] sm:$0xff] }
 0xf5d   : > { %v7403_v2 = vmax.f32 %v7153_v51, 0.0  ;;  %v14626_v51 = vld [vmem:[#allocation108_spill] sm:$0xff] }
 0xf5f   : > { %v8171_v34 = vmul.f32 %v7718_v39, %v7403_v2  ;;  %v875_v2 = vld [vmem:[%s12513_s22 + $0x240] sm:$0xff] }
 0xf60   : > { %v6610_v17 = vpop.f32.mrf.mxu0  ;;  %7847 = vperm.xlu0 %9100, %v875_v2   ;;  %v6418_v2 = vpack.c.bf16 %v12421_v20, %v12414_v19  ;;  %v14630_v20 = vld [vmem:[#allocation113_spill] sm:$0xff] }
 0xf61   : > { %v8308_v11 = vadd.f32 %v8307_v40, %v8171_v34  ;;  %v6611_v3 = vadd.f32 %v6610_v17, %v14624_v28  ;;  %v876_v28 = vld [vmem:[%s12513_s22 + $0x248] sm:$0xff] }
 0xf62   : > { %v7154_v60 = vpop.f32.mrf.mxu2  ;;  %7852 = vperm.xlu1 %9101, %v876_v28   ;;  %v885_v28 = vld [vmem:[%s12513_s22 + $0x290] sm:$0xff] }
 0xf63   : > { %v6833_v58 = vmax.f32 %v6611_v3, 0.0  ;;  %v7155_v57 = vadd.f32 %v12797_v35, %v7154_v60 }
 0xf65   : > { %v7404_v46 = vmax.f32 %v7155_v57, 0.0  ;;  %v6928_v0 = vpack.c.bf16 %v6833_v58, %v6832_v25 }
 0xf67   : > { %v8172_v52 = vmul.f32 %v7723_v54, %v7404_v46  ;;  %7196 = vmatmul.bf16.gmra.mxu2 %v6928_v0  ;;  %v6417_v54 = vpack.c.bf16 %v12405_v32, %v12390_v37  ;;  %v878_v0 = vld [vmem:[%s12513_s22 + $0x258] sm:$0xff] }
 0xf68   : > { %v6613_v7 = vpop.f32.mrf.mxu0  ;;  %7862 = vperm.xlu0 %9100, %v878_v0  }
 0xf69   : > { %v8309_v4 = vadd.f32 %v8308_v11, %v8172_v52  ;;  %v6614_v40 = vadd.f32 %v6613_v7, %v14625_v12  ;;  %v7733_v11 = vpop.permute.xlu1 %7732  ;;  %v7738_v7 = vpop.permute.xlu2 %7737 }
 0xf6a   : > { %v7157_v56 = vpop.f32.mrf.mxu2 }
 0xf6b   : > { %v8310_v43 = vrot.slane %v8309_v4, 4  ;;  %v7158_v10 = vadd.f32 %v12797_v35, %v7157_v56  ;;  %6652 = vmatmul.bf16.gmra.mxu0 %v6416_v16  ;;  %v6834_v15 = vmax.f32 %v6614_v40, 0.0  ;;  %v868_v16 = vld [vmem:[%s12513_s22 + $0x208] sm:$0xff]  ;;  %v7743_v40 = vpop.permute.xlu0 %7742 }
 0xf6c   : > { %7812 = vperm.xlu2 %9102, %v868_v16  }
 0xf6d   : > { %v8311_v61 = vadd.f32 %v8310_v43, %v8309_v4  ;;  %v7405_v18 = vmax.f32 %v7158_v10, 0.0  ;;  %v879_v4 = vld [vmem:[%s12513_s22 + $0x260] sm:$0xff]  ;;  %v14628_v10 = vld [vmem:[#allocation112_spill] sm:$0xff] }
 0xf6e   : > { %7867 = vperm.xlu1 %9101, %v879_v4   ;;  %v888_v4 = vld [vmem:[%s12513_s22 + $0x2a8] sm:$0xff] }
 0xf6f   : > { %v8312_v55 = vrot.slane %v8311_v61, 2  ;;  %v8173_v9 = vmul.f32 %v7728_v63, %v7405_v18 }
 0xf70   : > { %v6615_v45 = vpop.f32.mrf.mxu0 }
 0xf71   : > { %v8313_v24 = vadd.f32 %v8312_v55, %v8311_v61  ;;  %v6616_v39 = vadd.f32 %v6615_v45, %v14626_v51  ;;  %v881_v61 = vld [vmem:[%s12513_s22 + $0x270] sm:$0xff]  ;;  %v7753_v16 = vpop.permute.xlu2 %7752 }
 0xf72   : > { %v7159_v44 = vpop.f32.mrf.mxu2  ;;  %7877 = vperm.xlu0 %9100, %v881_v61  }
 0xf73   : > { %v8314_v59 = vrot.slane %v8313_v24, 1  ;;  %v6835_v34 = vmax.f32 %v6616_v39, 0.0  ;;  %v7160_v17 = vadd.f32 %v12797_v35, %v7159_v44  ;;  %v871_v44 = vld [vmem:[%s12513_s22 + $0x220] sm:$0xff] }
 0xf74   : > { %7827 = vperm.xlu2 %9102, %v871_v44  }
 0xf75   : > { %v8315_v3 = vadd.f32 %v8314_v59, %v8313_v24  ;;  %v7406_v60 = vmax.f32 %v7160_v17, 0.0  ;;  %v6929_v42 = vpack.c.bf16 %v6835_v34, %v6834_v15  ;;  %v884_v34 = vld [vmem:[%s12513_s22 + $0x288] sm:$0xff] }
 0xf77   : > { %v8423_v25 = vmax.f32 %v8315_v3, 0.0  ;;  %v8174_v58 = vmul.f32 %v7733_v11, %v7406_v60  ;;  %7201 = vmatmul.bf16.gmra.mxu2 %v6929_v42  ;;  %v7748_v11 = vpop.permute.xlu1 %7747  ;;  %v14629_v60 = vld [vmem:[#allocation118_spill] sm:$0xff] }
 0xf78   : > { %v6618_v57 = vpop.f32.mrf.mxu0 }
 0xf79   : > { %v12844_v26 = vsel %vm8439_vm2, %v8423_v25, %v12764_v31  ;;  %v8316_v47 = vadd.f32 %v8174_v58, %v8173_v9  ;;  %v6619_v37 = vadd.f32 %v6618_v57, %v14627_v30  ;;  %v882_v9 = vld [vmem:[%s12513_s22 + $0x278] sm:$0xff] }
 0xf7a   : > { %v7162_v46 = vpop.f32.mrf.mxu2  ;;  %7882 = vperm.xlu1 %9101, %v882_v9   ;;  %7892 = vperm.xlu0 %9100, %v884_v34   ;;  %v874_v57 = vld [vmem:[%s12513_s22 + $0x238] sm:$0xff] }
 0xf7b   : > { %v7163_v52 = vadd.f32 %v12797_v35, %v7162_v46  ;;  %6657 = vmatmul.bf16.gmra.mxu0 %v6417_v54  ;;  %v6836_v18 = vmax.f32 %v6619_v37, 0.0  ;;  %v887_v46 = vld [vmem:[%s12513_s22 + $0x2a0] sm:$0xff] }
 0xf7c   : > { %7842 = vperm.xlu2 %9102, %v874_v57  }
 0xf7d   : > { %v7407_v56 = vmax.f32 %v7163_v52, 0.0 }
 0xf7f   : > { %v8175_v32 = vmul.f32 %v7738_v7, %v7407_v56 }
 0xf80   : > { %v6620_v31 = vpop.f32.mrf.mxu0 }
 0xf81   : > { %v8317_v43 = vadd.f32 %v8316_v47, %v8175_v32  ;;  %v6621_v63 = vadd.f32 %v6620_v31, %v14628_v10  ;;  %v877_v31 = vld [vmem:[%s12513_s22 + $0x250] sm:$0xff] }
 0xf82   : > { %v7164_v33 = vpop.f32.mrf.mxu2  ;;  %7897 = vperm.xlu1 %9101, %v885_v28   ;;  %7907 = vperm.xlu0 %9100, %v887_v46   ;;  %v897_v46 = vld [vmem:[%s12513_s22 + $0x2f0] sm:$0xff] }
 0xf83   : > { %v6837_v55 = vmax.f32 %v6621_v63, 0.0  ;;  %v7165_v12 = vadd.f32 %v12797_v35, %v7164_v33  ;;  %v890_v33 = vld [vmem:[%s12513_s22 + $0x2b8] sm:$0xff] }
 0xf84   : > { %7857 = vperm.xlu2 %9102, %v877_v31  }
 0xf85   : > { %v7408_v45 = vmax.f32 %v7165_v12, 0.0  ;;  %v6930_v24 = vpack.c.bf16 %v6837_v55, %v6836_v18  ;;  %v7758_v18 = vpop.permute.xlu0 %7757  ;;  %v891_v55 = vld [vmem:[%s12513_s22 + $0x2c0] sm:$0xff] }
 0xf87   : > { %v8176_v51 = vmul.f32 %v7743_v40, %v7408_v45  ;;  %7206 = vmatmul.bf16.gmra.mxu2 %v6930_v24  ;;  %v14631_v40 = vld [vmem:[#allocation106_spill] sm:$0xff] }
 0xf88   : > { %v6623_v39 = vpop.f32.mrf.mxu0 }
 0xf89   : > { %v8318_v59 = vadd.f32 %v8317_v43, %v8176_v51  ;;  %v6624_v42 = vadd.f32 %v6623_v39, %v14629_v60  ;;  %v6419_v43 = vpack.c.bf16 %v12439_v13, %v12429_v53  ;;  %v880_v51 = vld [vmem:[%s12513_s22 + $0x268] sm:$0xff]  ;;  %v14632_v13 = vld [vmem:[#allocation105_spill] sm:$0xff] }
 0xf8a   : > { %v7167_v15 = vpop.f32.mrf.mxu2  ;;  %7912 = vperm.xlu1 %9101, %v888_v4   ;;  %7922 = vperm.xlu0 %9100, %v890_v33   ;;  %v900_v33 = vld [vmem:[%s12513_s22 + $0x308] sm:$0xff] }
 0xf8b   : > { %v7168_v17 = vadd.f32 %v12797_v35, %v7167_v15  ;;  %6662 = vmatmul.bf16.gmra.mxu0 %v6418_v2  ;;  %v6838_v0 = vmax.f32 %v6624_v42, 0.0  ;;  %v893_v2 = vld [vmem:[%s12513_s22 + $0x2d0] sm:$0xff] }
 0xf8c   : > { %7872 = vperm.xlu2 %9102, %v880_v51   ;;  %v902_v51 = vld [vmem:[%s12513_s22 + $0x318] sm:$0xff] }
 0xf8d   : > { %v7409_v3 = vmax.f32 %v7168_v17, 0.0  ;;  %v7763_v17 = vpop.permute.xlu1 %7762 }
 0xf8f   : > { %v8177_v25 = vmul.f32 %v7748_v11, %v7409_v3  ;;  %v894_v11 = vld [vmem:[%s12513_s22 + $0x2d8] sm:$0xff] }
 0xf90   : > { %v6625_v58 = vpop.f32.mrf.mxu0 }
 0xf91   : > { %v8319_v19 = vadd.f32 %v8318_v59, %v8177_v25  ;;  %v6626_v54 = vadd.f32 %v6625_v58, %v14630_v20  ;;  %v883_v25 = vld [vmem:[%s12513_s22 + $0x280] sm:$0xff]  ;;  %v6420_v58 = vpack.c.bf16 %v12454_v23, %v12449_v48  ;;  %v896_v20 = vld [vmem:[%s12513_s22 + $0x2e8] sm:$0xff] }
 0xf92   : > { %v7169_v47 = vpop.f32.mrf.mxu2  ;;  %7927 = vperm.xlu1 %9101, %v891_v55   ;;  %7937 = vperm.xlu0 %9100, %v893_v2   ;;  %v14634_v23 = vld [vmem:[#allocation155_spill] sm:$0xff]  ;;  %v14635_v2 = vld [vmem:[#allocation152_spill] sm:$0xff] }
 0xf93   : > { %v6839_v52 = vmax.f32 %v6626_v54, 0.0  ;;  %v7170_v7 = vadd.f32 %v12797_v35, %v7169_v47  ;;  %v7768_v47 = vpop.permute.xlu2 %7767 }
 0xf94   : > { %7887 = vperm.xlu2 %9102, %v883_v25  }
 0xf95   : > { %v7410_v56 = vmax.f32 %v7170_v7, 0.0  ;;  %v6931_v30 = vpack.c.bf16 %v6839_v52, %v6838_v0  ;;  %v14633_v52 = vld [vmem:[#allocation103_spill] sm:$0xff] }
 0xf97   : > { %v8178_v37 = vmul.f32 %v7753_v16, %v7410_v56  ;;  %7211 = vmatmul.bf16.gmra.mxu2 %v6931_v30  ;;  %v886_v56 = vld [vmem:[%s12513_s22 + $0x298] sm:$0xff] }
 0xf98   : > { %v6628_v32 = vpop.f32.mrf.mxu0 }
 0xf99   : > { %v8320_v10 = vadd.f32 %v8319_v19, %v8178_v37  ;;  %v6629_v9 = vadd.f32 %v6628_v32, %v14631_v40  ;;  %v899_v32 = vld [vmem:[%s12513_s22 + $0x300] sm:$0xff]  ;;  %v889_v40 = vld [vmem:[%s12513_s22 + $0x2b0] sm:$0xff] }
 0xf9a   : > { %v7172_v63 = vpop.f32.mrf.mxu2  ;;  %7942 = vperm.xlu1 %9101, %v894_v11   ;;  %7952 = vperm.xlu0 %9100, %v896_v20  }
 0xf9b   : > { %v7173_v61 = vadd.f32 %v12797_v35, %v7172_v63  ;;  %6667 = vmatmul.bf16.gmra.mxu0 %v6419_v43  ;;  %v6840_v59 = vmax.f32 %v6629_v9, 0.0  ;;  %v7773_v63 = vpop.permute.xlu0 %7772  ;;  %v6421_v9 = vpack.c.bf16 %v12486_v1, %v12470_v36  ;;  %v14636_v1 = vld [vmem:[#allocation153_spill] sm:$0xff] }
 0xf9c   : > { %7902 = vperm.xlu2 %9102, %v886_v56  }
 0xf9d   : > { %v7411_v12 = vmax.f32 %v7173_v61, 0.0 }
 0xf9f   : > { %v8179_v45 = vmul.f32 %v7758_v18, %v7411_v12 }
 0xfa0   : > { %v6630_v24 = vpop.f32.mrf.mxu0 }
 0xfa1   : > { %v8321_v53 = vadd.f32 %v8320_v10, %v8179_v45  ;;  %v6631_v39 = vadd.f32 %v6630_v24, %v14632_v13  ;;  %v7778_v13 = vpop.permute.xlu1 %7777 }
 0xfa2   : > { %v7174_v44 = vpop.f32.mrf.mxu2  ;;  %7957 = vperm.xlu1 %9101, %v897_v46   ;;  %7967 = vperm.xlu0 %9100, %v899_v32   ;;  %v895_v46 = vld [vmem:[%s12513_s22 + $0x2e0] sm:$0xff] }
 0xfa3   : > { %v6841_v15 = vmax.f32 %v6631_v39, 0.0  ;;  %v7175_v34 = vadd.f32 %v12797_v35, %v7174_v44  ;;  %v903_v39 = vld [vmem:[%s12513_s22 + $0x320] sm:$0xff]  ;;  %v7788_v56 = vpop.permute.xlu0 %7787 }
 0xfa4   : > { %7917 = vperm.xlu2 %9102, %v889_v40  }
 0xfa5   : > { %v7412_v28 = vmax.f32 %v7175_v34, 0.0  ;;  %v6932_v3 = vpack.c.bf16 %v6841_v15, %v6840_v59 }
 0xfa7   : > { %v8180_v60 = vmul.f32 %v7763_v17, %v7412_v28  ;;  %7216 = vmatmul.bf16.gmra.mxu2 %v6932_v3  ;;  %v892_v17 = vld [vmem:[%s12513_s22 + $0x2c8] sm:$0xff]  ;;  %v905_v3 = vld [vmem:[%s12513_s22 + $0x330] sm:$0xff] }
 0xfa8   : > { %v6633_v42 = vpop.f32.mrf.mxu0 }
 0xfa9   : > { %v8322_v57 = vadd.f32 %v8321_v53, %v8180_v60  ;;  %v6634_v7 = vadd.f32 %v6633_v42, %v14633_v52  ;;  %v7793_v40 = vpop.permute.xlu1 %7792 }
 0xfaa   : > { %v7177_v19 = vpop.f32.mrf.mxu2  ;;  %7972 = vperm.xlu1 %9101, %v900_v33   ;;  %7982 = vperm.xlu0 %9100, %v902_v51  }
 0xfab   : > { %v7178_v54 = vadd.f32 %v12797_v35, %v7177_v19  ;;  %6672 = vmatmul.bf16.gmra.mxu0 %v6420_v58  ;;  %v6842_v31 = vmax.f32 %v6634_v7, 0.0  ;;  %v7783_v58 = vpop.permute.xlu2 %7782 }
 0xfac   : > { %7932 = vperm.xlu2 %9102, %v892_v17  }
 0xfad   : > { %v7413_v0 = vmax.f32 %v7178_v54, 0.0 }
 0xfaf   : > { %v8181_v16 = vmul.f32 %v7768_v47, %v7413_v0  ;;  %v6422_v0 = vpack.c.bf16 %v12504_v41, %v12497_v49 }
 0xfb0   : > { %v6635_v4 = vpop.f32.mrf.mxu0 }
 0xfb1   : > { %v8323_v48 = vadd.f32 %v8322_v57, %v8181_v16  ;;  %v6636_v30 = vadd.f32 %v6635_v4, %v14634_v23  ;;  %v906_v57 = vld [vmem:[%s12513_s22 + $0x338] sm:$0xff]  ;;  %v908_v16 = vld [vmem:[%s12513_s22 + $0x348] sm:$0xff]  ;;  %v909_v23 = vld [vmem:[%s12513_s22 + $0x350] sm:$0xff] }
 0xfb2   : > { %v7179_v37 = vpop.f32.mrf.mxu2  ;;  %7987 = vperm.xlu1 %9101, %v903_v39   ;;  %7997 = vperm.xlu0 %9100, %v905_v3   ;;  %v901_v39 = vld [vmem:[%s12513_s22 + $0x310] sm:$0xff] }
 0xfb3   : > { %v6843_v43 = vmax.f32 %v6636_v30, 0.0  ;;  %v7180_v10 = vadd.f32 %v12797_v35, %v7179_v37  ;;  %v14637_v37 = vld [vmem:[#allocation150_spill] sm:$0xff]  ;;  %v7798_v17 = vpop.permute.xlu2 %7797 }
 0xfb4   : > { %7947 = vperm.xlu2 %9102, %v895_v46   ;;  %v7803_v46 = vpop.permute.xlu0 %7802 }
 0xfb5   : > { %v7414_v61 = vmax.f32 %v7180_v10, 0.0  ;;  %v6933_v18 = vpack.c.bf16 %v6843_v43, %v6842_v31  ;;  %v898_v31 = vld [vmem:[%s12513_s22 + $0x2f8] sm:$0xff] }
 0xfb6   : > { %v14638_v10 = vld [vmem:[#allocation154_spill] sm:$0xff] }
 0xfb7   : > { %v8182_v55 = vmul.f32 %v7773_v63, %v7414_v61  ;;  %7221 = vmatmul.bf16.gmra.mxu2 %v6933_v18  ;;  %v911_v61 = vld [vmem:[%s12513_s22 + $0x360] sm:$0xff] }
 0xfb8   : > { %v6638_v12 = vpop.f32.mrf.mxu0 }
 0xfb9   : > { %v8324_v45 = vadd.f32 %v8323_v48, %v8182_v55  ;;  %v6639_v59 = vadd.f32 %v6638_v12, %v14635_v2  ;;  %v12908_v48 = vpop.f32.mrf.mxu3 }
 0xfba   : > { %v7182_v24 = vpop.f32.mrf.mxu2  ;;  %8002 = vperm.xlu1 %9101, %v906_v57   ;;  %8012 = vperm.xlu0 %9100, %v908_v16  }
 0xfbb   : > { %v7183_v53 = vadd.f32 %v12797_v35, %v7182_v24  ;;  %6677 = vmatmul.bf16.gmra.mxu0 %v6421_v9  ;;  %v6844_v60 = vmax.f32 %v6639_v59, 0.0  ;;  %v912_v9 = vld [vmem:[%s12513_s22 + $0x368] sm:$0xff] }
 0xfbc   : > { %7962 = vperm.xlu2 %9102, %v898_v31  }
 0xfbd   : > { %v7415_v44 = vmax.f32 %v7183_v53, 0.0 }
 0xfbf   : > { %v8183_v15 = vmul.f32 %v7778_v13, %v7415_v44  ;;  %v6423_v44 = vpack.c.bf16 %v12507_v14, %v12502_v6  ;;  %v904_v14 = vld [vmem:[%s12513_s22 + $0x328] sm:$0xff] }
 0xfc0   : > { %v6640_v34 = vpop.f32.mrf.mxu0 }
 0xfc1   : > { %v8325_v36 = vadd.f32 %v8324_v45, %v8183_v15  ;;  %v6641_v11 = vadd.f32 %v6640_v34, %v14636_v1  ;;  %v12917_v51 = vpop.f32.mrf.mxu3  ;;  %v914_v15 = vld [vmem:[%s12513_s22 + $0x378] sm:$0xff] }
 0xfc2   : > { %v7184_v28 = vpop.f32.mrf.mxu2  ;;  %8017 = vperm.xlu1 %9101, %v909_v23   ;;  %8027 = vperm.xlu0 %9100, %v911_v61   ;;  %v6424_v23 = vpack.c.bf16 %v12525_v29, %v12519_v22  ;;  %v14641_v22 = vld [vmem:[#allocation116_spill] sm:$0xff] }
 0xfc3   : > { %v6845_v42 = vmax.f32 %v6641_v11, 0.0  ;;  %v7185_v25 = vadd.f32 %v12797_v35, %v7184_v28  ;;  %v14639_v11 = vld [vmem:[#allocation111_spill] sm:$0xff] }
 0xfc4   : > { %7977 = vperm.xlu2 %9102, %v901_v39  }
 0xfc5   : > { %v7416_v19 = vmax.f32 %v7185_v25, 0.0  ;;  %v6934_v20 = vpack.c.bf16 %v6845_v42, %v6844_v60  ;;  %v14640_v25 = vld [vmem:[#allocation114_spill] sm:$0xff] }
 0xfc7   : > { %v8184_v54 = vmul.f32 %v7783_v58, %v7416_v19  ;;  %7226 = vmatmul.bf16.gmra.mxu2 %v6934_v20  ;;  %v917_v19 = vld [vmem:[%s12513_s22 + $0x390] sm:$0xff] }
 0xfc8   : > { %v6643_v47 = vpop.f32.mrf.mxu0 }
 0xfc9   : > { %v8326_v52 = vadd.f32 %v8325_v36, %v8184_v54  ;;  %v6644_v32 = vadd.f32 %v6643_v47, %v14637_v37  ;;  %v915_v36 = vld [vmem:[%s12513_s22 + $0x380] sm:$0xff]  ;;  %v12926_v6 = vpop.f32.mrf.mxu3 }
 0xfca   : > { %v7187_v7 = vpop.f32.mrf.mxu2  ;;  %8032 = vperm.xlu1 %9101, %v912_v9   ;;  %8042 = vperm.xlu0 %9100, %v914_v15   ;;  %v14642_v9 = vld [vmem:[#allocation119_spill] sm:$0xff] }
 0xfcb   : > { %v7188_v4 = vadd.f32 %v12797_v35, %v7187_v7  ;;  %6682 = vmatmul.bf16.gmra.mxu0 %v6422_v0  ;;  %v6846_v18 = vmax.f32 %v6644_v32, 0.0  ;;  %v918_v0 = vld [vmem:[%s12513_s22 + $0x398] sm:$0xff] }
 0xfcc   : > { %7992 = vperm.xlu2 %9102, %v904_v14   ;;  %v6425_v14 = vpack.c.bf16 %v12539_v62, %v12533_v50  ;;  %v14643_v50 = vld [vmem:[#allocation63_spill] sm:$0xff] }
 0xfcd   : > { %v7417_v30 = vmax.f32 %v7188_v4, 0.0 }
 0xfcf   : > { %v8185_v49 = vmul.f32 %v7788_v56, %v7417_v30  ;;  %v907_v56 = vld [vmem:[%s12513_s22 + $0x340] sm:$0xff] }
 0xfd0   : > { %v6645_v41 = vpop.f32.mrf.mxu0 }
 0xfd1   : > { %v8327_v43 = vadd.f32 %v8326_v52, %v8185_v49  ;;  %v6646_v63 = vadd.f32 %v6645_v41, %v14638_v10  ;;  %v12936_v32 = vpop.f32.mrf.mxu3  ;;  %v920_v49 = vld [vmem:[%s12513_s22 + $0x3a8] sm:$0xff]  ;;  %v921_v10 = vld [vmem:[%s12513_s22 + $0x3b0] sm:$0xff] }
 0xfd2   : > { %v7189_v33 = vpop.f32.mrf.mxu2  ;;  %8047 = vperm.xlu1 %9101, %v915_v36   ;;  %8057 = vperm.xlu0 %9100, %v917_v19  }
 0xfd3   : > { %v6847_v55 = vmax.f32 %v6646_v63, 0.0  ;;  %v7190_v12 = vadd.f32 %v12797_v35, %v7189_v33 }
 0xfd4   : > { %8007 = vperm.xlu2 %9102, %v907_v56  }
 0xfd5   : > { %v7418_v45 = vmax.f32 %v7190_v12, 0.0  ;;  %v6935_v24 = vpack.c.bf16 %v6847_v55, %v6846_v18  ;;  %v910_v12 = vld [vmem:[%s12513_s22 + $0x358] sm:$0xff] }
 0xfd7   : > { %v8186_v53 = vmul.f32 %v7793_v40, %v7418_v45  ;;  %7231 = vmatmul.bf16.gmra.mxu2 %v6935_v24 }
 0xfd8   : > { %v6648_v13 = vpop.f32.mrf.mxu0 }
 0xfd9   : > { %v8328_v2 = vadd.f32 %v8327_v43, %v8186_v53  ;;  %v6649_v28 = vadd.f32 %v6648_v13, %v14639_v11  ;;  %v7808_v43 = vpop.permute.xlu1 %7807  ;;  %v923_v53 = vld [vmem:[%s12513_s22 + $0x3c0] sm:$0xff]  ;;  %v12946_v15 = vpop.f32.mrf.mxu3 }
 0xfda   : > { %v7192_v59 = vpop.f32.mrf.mxu2  ;;  %8062 = vperm.xlu1 %9101, %v918_v0   ;;  %8072 = vperm.xlu0 %9100, %v920_v49  }
 0xfdb   : > { %v7193_v34 = vadd.f32 %v12797_v35, %v7192_v59  ;;  %6687 = vmatmul.bf16.gmra.mxu0 %v6423_v44  ;;  %v6848_v20 = vmax.f32 %v6649_v28, 0.0  ;;  %v7813_v59 = vpop.permute.xlu2 %7812 }
 0xfdc   : > { %8022 = vperm.xlu2 %9102, %v910_v12  }
 0xfdd   : > { %v7419_v1 = vmax.f32 %v7193_v34, 0.0  ;;  %v924_v34 = vld [vmem:[%s12513_s22 + $0x3c8] sm:$0xff] }
 0xfdf   : > { %v8187_v3 = vmul.f32 %v7798_v17, %v7419_v1 }
 0xfe0   : > { %v6650_v60 = vpop.f32.mrf.mxu0 }
 0xfe1   : > { %v8329_v42 = vadd.f32 %v8328_v2, %v8187_v3  ;;  %v6651_v58 = vadd.f32 %v6650_v60, %v14640_v25  ;;  %v913_v60 = vld [vmem:[%s12513_s22 + $0x370] sm:$0xff] }
 0xfe2   : > { %v7194_v57 = vpop.f32.mrf.mxu2  ;;  %8077 = vperm.xlu1 %9101, %v921_v10   ;;  %8087 = vperm.xlu0 %9100, %v923_v53   ;;  %v7823_v10 = vpop.permute.xlu1 %7822 }
 0xfe3   : > { %v6849_v54 = vmax.f32 %v6651_v58, 0.0  ;;  %v7195_v47 = vadd.f32 %v12797_v35, %v7194_v57  ;;  %v926_v57 = vld [vmem:[%s12513_s22 + $0x3d8] sm:$0xff] }
 0xfe4   : > { %8037 = vperm.xlu2 %9102, %v913_v60  }
 0xfe5   : > { %v6936_v52 = vpack.c.bf16 %v6849_v54, %v6848_v20  ;;  %v7420_v7 = vmax.f32 %v7195_v47, 0.0  ;;  %v927_v20 = vld [vmem:[%s12513_s22 + $0x3e0] sm:$0xff]  ;;  %v7818_v47 = vpop.permute.xlu0 %7817 }
 0xfe7   : > { %v8188_v16 = vmul.f32 %v7803_v46, %v7420_v7  ;;  %7236 = vmatmul.bf16.vlgmr.msrb.gmra.mxu3 %v6936_v52  ;;  %v12958_v46 = vpop.f32.mrf.mxu3 }
 0xfe8   : > { %v6653_v4 = vpop.f32.mrf.mxu0 }
 0xfe9   : > { %v8330_v30 = vadd.f32 %v8329_v42, %v8188_v16  ;;  %v6654_v29 = vadd.f32 %v6653_v4, %v14641_v22  ;;  %v14644_v16 = vld [vmem:[#allocation64_spill] sm:$0xff]  ;;  %v919_v22 = vld [vmem:[%s12513_s22 + $0x3a0] sm:$0xff] }
 0xfea   : > { %v7197_v37 = vpop.f32.mrf.mxu2  ;;  %8092 = vperm.xlu1 %9101, %v924_v34   ;;  %8102 = vperm.xlu0 %9100, %v926_v57  }
 0xfeb   : > { %v8331_v41 = vrot.slane %v8330_v30, 4  ;;  %v7198_v31 = vadd.f32 %v12797_v35, %v7197_v37  ;;  %6692 = vmatmul.bf16.gmra.mxu0 %v6424_v23  ;;  %v6850_v39 = vmax.f32 %v6654_v29, 0.0  ;;  %v929_v23 = vld [vmem:[%s12513_s22 + $0x3f0] sm:$0xff]  ;;  %v6426_v29 = vpack.c.bf16 %v12550_v38, %v12543_v27 }
 0xfed   : > { %v8332_v63 = vadd.f32 %v8331_v41, %v8330_v30  ;;  %v7421_v33 = vmax.f32 %v7198_v31, 0.0  ;;  %v930_v41 = vld [vmem:[%s12513_s22 + $0x3f8] sm:$0xff] }
 0xfef   : > { %v8333_v61 = vrot.slane %v8332_v63, 2  ;;  %v8189_v18 = vmul.f32 %v7808_v43, %v7421_v33 }
 0xff0   : > { %v6655_v55 = vpop.f32.mrf.mxu0 }
 0xff1   : > { %v8334_v40 = vadd.f32 %v8333_v61, %v8332_v63  ;;  %v6656_v45 = vadd.f32 %v6655_v55, %v14642_v9  ;;  %v12966_v61 = vpop.f32.mrf.mxu3  ;;  %v7828_v9 = vpop.permute.xlu2 %7827 }
 0xff2   : > { %v7199_v24 = vpop.f32.mrf.mxu2  ;;  %8107 = vperm.xlu1 %9101, %v927_v20   ;;  %8117 = vperm.xlu0 %9100, %v929_v23  }
 0xff3   : > { %v8335_v13 = vrot.slane %v8334_v40, 1  ;;  %v6851_v44 = vmax.f32 %v6656_v45, 0.0  ;;  %v7200_v2 = vadd.f32 %v12797_v35, %v7199_v24  ;;  %v14645_v45 = vld [vmem:[#allocation69_spill] sm:$0xff] }
 0xff5   : > { %v8336_v17 = vadd.f32 %v8335_v13, %v8334_v40  ;;  %v7422_v36 = vmax.f32 %v7200_v2, 0.0  ;;  %v6937_v1 = vpack.c.bf16 %v6851_v44, %v6850_v39  ;;  %v922_v39 = vld [vmem:[%s12513_s22 + $0x3b8] sm:$0xff] }
 0xff6   : > { %v14646_v2 = vld [vmem:[#allocation70_spill] sm:$0xff] }
 0xff7   : > { %v8424_v11 = vmax.f32 %v8336_v17, 0.0  ;;  %v8190_v28 = vmul.f32 %v7813_v59, %v7422_v36  ;;  %7241 = vmatmul.bf16.gmra.mxu3 %v6937_v1 }
 0xff8   : > { %v6658_v3 = vpop.f32.mrf.mxu0 }
 0xff9   : > { %v8337_v42 = vadd.f32 %v8190_v28, %v8189_v18  ;;  %v12953_v25 = vsel %vm8441_vm3, %v8424_v11, %v12844_v26  ;;  %v6659_v62 = vadd.f32 %v6658_v3, %v14643_v50  ;;  %v916_v26 = vld [vmem:[%s12513_s22 + $0x388] sm:$0xff]  ;;  %v12975_v27 = vpop.f32.mrf.mxu3  ;;  %v7833_v28 = vpop.permute.xlu0 %7832  ;;  %v14647_v50 = vld [vmem:[#allocation65_spill] sm:$0xff] }
 0xffa   : > { %v7202_v58 = vpop.f32.mrf.mxu2  ;;  %8052 = vperm.xlu2 %9102, %v916_v26   ;;  %8122 = vperm.xlu1 %9101, %v930_v41   ;;  %v928_v26 = vld [vmem:[%s12513_s22 + $0x3e8] sm:$0xff] }
 0xffb   : > { %v7203_v19 = vadd.f32 %v12797_v35, %v7202_v58  ;;  %6697 = vmatmul.bf16.gmra.mxu0 %v6425_v14  ;;  %v6852_v30 = vmax.f32 %v6659_v62, 0.0  ;;  %v925_v14 = vld [vmem:[%s12513_s22 + $0x3d0] sm:$0xff]  ;;  %s364_s22 = scalar_lea.vmem [#allocation2], %s8556_s13  ;;  %s9147_s13 = scalar_lea.hbm %s13174_s9, 16 }
 0xffc   : > { %s8466_s24 = sshll.u32 %s364_s22, 4  ;;  %p9149_p1 = scmp.lt.s32.totalorder %s9147_s13, %s9143_s21  ;;  %s8467_s24 = int_to_ptr.vmem [resolvable:$true] %s8466_s24 }
 0xffd   : > { %v7423_v54 = vmax.f32 %v7203_v19, 0.0 }
 0xffe   : > { %p9150_p2 = por %p9149_p1, %p9148_p0 }
 0xfff   : > { %v8191_v0 = vmul.f32 %v7818_v47, %v7423_v54  ;;  %v7838_v47 = vpop.permute.xlu1 %7837 }
0x1000   : > { %v6660_v52 = vpop.f32.mrf.mxu0  ;;  %p9151_p3 = pnand %p9150_p2, %p9146_p13 }
0x1001   : > { %v8338_v7 = vadd.f32 %v8337_v42, %v8191_v0  ;;  %v6661_v4 = vadd.f32 %v6660_v52, %v14644_v16  ;;  %v6427_v42 = vpack.c.bf16 %v12564_v21, %v12555_v8  ;;  %v12982_v20 = vpop.f32.mrf.mxu3  ;;  %v14648_v16 = vld [vmem:[#allocation66_spill] sm:$0xff] }
0x1002   : > { %v7204_v56 = vpop.f32.mrf.mxu2  ;;  %8067 = vperm.xlu2 %9102, %v919_v22  }
0x1003   : > { %v6853_v37 = vmax.f32 %v6661_v4, 0.0  ;;  %v7205_v49 = vadd.f32 %v12797_v35, %v7204_v56 }
0x1005   : > { %v7424_v31 = vmax.f32 %v7205_v49, 0.0  ;;  %v6938_v43 = vpack.c.bf16 %v6853_v37, %v6852_v30  ;;  %v7843_v49 = vpop.permute.xlu2 %7842 }
0x1007   : > { %v8192_v63 = vmul.f32 %v7823_v10, %v7424_v31  ;;  %7246 = vmatmul.bf16.gmra.mxu3 %v6938_v43  ;;  %v14649_v10 = vld [vmem:[#allocation172_spill] sm:$0xff] }
0x1008   : > { %v6663_v33 = vpop.f32.mrf.mxu0 }
0x1009   : > { %v8339_v18 = vadd.f32 %v8338_v7, %v8192_v63  ;;  %v6664_v24 = vadd.f32 %v6663_v33, %v14645_v45  ;;  %v12988_v41 = vpop.f32.mrf.mxu3  ;;  %v6428_v63 = vpack.c.bf16 %v14649_v10, %v12570_v5 }
0x100a   : > { %v7207_v55 = vpop.f32.mrf.mxu2  ;;  %8082 = vperm.xlu2 %9102, %v922_v39   ;;  %v14652_v39 = vld [vmem:[#allocation134_spill] sm:$0xff] }
0x100b   : > { %v7208_v12 = vadd.f32 %v12797_v35, %v7207_v55  ;;  %6702 = vmatmul.bf16.gmra.mxu0 %v6426_v29  ;;  %v6854_v38 = vmax.f32 %v6664_v24, 0.0  ;;  %v14650_v29 = vld [vmem:[#allocation60_spill] sm:$0xff] }
0x100d   : > { %v7425_v40 = vmax.f32 %v7208_v12, 0.0 }
0x100f   : > { %v8193_v53 = vmul.f32 %v7828_v9, %v7425_v40 }
0x1010   : > { %v6665_v13 = vpop.f32.mrf.mxu0 }
0x1011   : > { %v8340_v44 = vadd.f32 %v8339_v18, %v8193_v53  ;;  %v6666_v59 = vadd.f32 %v6665_v13, %v14646_v2  ;;  %v12993_v12 = vpop.f32.mrf.mxu3 }
0x1012   : > { %v7209_v34 = vpop.f32.mrf.mxu2  ;;  %8097 = vperm.xlu2 %9102, %v925_v14  }
0x1013   : > { %v6855_v17 = vmax.f32 %v6666_v59, 0.0  ;;  %v7210_v36 = vadd.f32 %v12797_v35, %v7209_v34  ;;  %v14654_v34 = vld [vmem:[#allocation62_spill] sm:$0xff] }
0x1015   : > { %v7426_v1 = vmax.f32 %v7210_v36, 0.0  ;;  %v6939_v11 = vpack.c.bf16 %v6855_v17, %v6854_v38  ;;  %v14655_v36 = vld [vmem:[#allocation67_spill] sm:$0xff] }
0x1017   : > { %v8194_v3 = vmul.f32 %v7833_v28, %v7426_v1  ;;  %7251 = vmatmul.bf16.gmra.mxu3 %v6939_v11 }
0x1018   : > { %v6668_v60 = vpop.f32.mrf.mxu0 }
0x1019   : > { %v8341_v58 = vadd.f32 %v8340_v44, %v8194_v3  ;;  %v6669_v62 = vadd.f32 %v6668_v60, %v14647_v50  ;;  %v14653_v44 = vld [vmem:[#allocation136_spill] sm:$0xff]  ;;  %v12998_v59 = vpop.f32.mrf.mxu3  ;;  %v13009_v50 = vld [vmem:[%s13173_s8] ss:$0 sm:$0xff] }
0x101a   : > { %v7212_v57 = vpop.f32.mrf.mxu2  ;;  %8112 = vperm.xlu2 %9102, %v928_v26   ;;  %v6429_v2 = vpack.c.bf16 %v14653_v44, %v14652_v39 }
0x101b   : > { %v7213_v19 = vadd.f32 %v12797_v35, %v7212_v57  ;;  %6707 = vmatmul.bf16.gmra.mxu0 %v6427_v42  ;;  %v6856_v21 = vmax.f32 %v6669_v62, 0.0  ;;  %v14657_v57 = vld [vmem:[#allocation72_spill] sm:$0xff] }
0x101d   : > { %v7427_v54 = vmax.f32 %v7213_v19, 0.0 }
0x101f   : > { %v8195_v0 = vmul.f32 %v7838_v47, %v7427_v54  ;;  %v7848_v47 = vpop.permute.xlu0 %7847 }
0x1020   : > { %v6670_v52 = vpop.f32.mrf.mxu0 }
0x1021   : > { %v8342_v7 = vadd.f32 %v8341_v58, %v8195_v0  ;;  %v6671_v4 = vadd.f32 %v6670_v52, %v14648_v16  ;;  %v13002_v60 = vpop.f32.mrf.mxu3  ;;  %v14656_v58 = vld [vmem:[#allocation138_spill] sm:$0xff] }
0x1022   : > { %v7214_v8 = vpop.f32.mrf.mxu2  ;;  %v6430_v19 = vpack.c.bf16 %v14657_v57, %v14656_v58  ;;  %v14658_v52 = vld [vmem:[#allocation46_spill] sm:$0xff]  ;;  %v14661_v57 = vld [vmem:[#allocation39_spill] sm:$0xff] }
0x1023   : > { %v6857_v56 = vmax.f32 %v6671_v4, 0.0  ;;  %v7215_v23 = vadd.f32 %v12797_v35, %v7214_v8  ;;  %v14651_v35 = vld [vmem:[#allocation61_spill] sm:$0xff]  ;;  %v14659_v4 = vld [vmem:[#allocation47_spill] sm:$0xff] }
0x1025   : > { %v7428_v30 = vmax.f32 %v7215_v23, 0.0  ;;  %v6940_v37 = vpack.c.bf16 %v6857_v56, %v6856_v21  ;;  %v7853_v56 = vpop.permute.xlu1 %7852 }
0x1027   : > { %v8196_v31 = vmul.f32 %v7843_v49, %v7428_v30  ;;  %7256 = vmatmul.bf16.gmra.mxu3 %v6940_v37 }
0x1028   : > { %v6673_v43 = vpop.f32.mrf.mxu0 }
0x1029   : > { %v8343_v33 = vadd.f32 %v8342_v7, %v8196_v31  ;;  %v6674_v18 = vadd.f32 %v6673_v43, %v14650_v29  ;;  %v13012_v0 = vpop.f32.mrf.mxu3  ;;  %v7858_v29 = vpop.permute.xlu2 %7857 }
0x102a   : > { %v7217_v22 = vpop.f32.mrf.mxu2 }
0x102b   : > { %6712 = vmatmul.bf16.gmra.mxu0 %v6428_v63  ;;  %v6858_v45 = vmax.f32 %v6674_v18, 0.0  ;;  %v7218_v62 = vadd.f32 %v13009_v50, %v7217_v22 }
0x102d   : > { %v7429_v21 = vmax.f32 %v7218_v62, 0.0 }
0x102f   : > { %v8197_v63 = vmul.f32 %v7848_v47, %v7429_v21 }
0x1030   : > { %v6675_v55 = vpop.f32.mrf.mxu0 }
0x1031   : > { %v6676_v40 = vadd.f32 %v6675_v55, %v14651_v35  ;;  %v7863_v55 = vpop.permute.xlu0 %7862 }
0x1032   : > { %v7219_v9 = vpop.f32.mrf.mxu2 }
0x1033   : > { %v6859_v24 = vmax.f32 %v6676_v40, 0.0  ;;  %v7220_v7 = vadd.f32 %v13009_v50, %v7219_v9 }
0x1035   : > { %v6941_v53 = vpack.c.bf16 %v6859_v24, %v6858_v45  ;;  %v7430_v31 = vmax.f32 %v7220_v7, 0.0  ;;  %v13020_v45 = vpop.f32.mrf.mxu3  ;;  %v6431_v24 = vpack.c.bf16 %v12917_v51, %v12908_v48  ;;  %v7873_v48 = vpop.permute.xlu2 %7872 }
0x1037   : > { %7261 = vmatmul.bf16.gmra.mxu3 %v6941_v53  ;;  %v8198_v35 = vmul.f32 %v7853_v56, %v7430_v31 }
0x1038   : > { %v6678_v13 = vpop.f32.mrf.mxu0 }
0x1039   : > { %v6679_v38 = vadd.f32 %v6678_v13, %v14654_v34  ;;  %v8344_v13 = vadd.f32 %v8343_v33, %v8197_v63  ;;  %v7878_v33 = vpop.permute.xlu0 %7877 }
0x103a   : > { %v7222_v5 = vpop.f32.mrf.mxu2 }
0x103b   : > { %6717 = vmatmul.bf16.gmra.mxu0 %v6429_v2  ;;  %v6860_v28 = vmax.f32 %v6679_v38, 0.0  ;;  %v7223_v23 = vadd.f32 %v13009_v50, %v7222_v5  ;;  %v8345_v34 = vadd.f32 %v8344_v13, %v8198_v35 }
0x103d   : > { %v7431_v22 = vmax.f32 %v7223_v23, 0.0  ;;  %v13028_v47 = vpop.f32.mrf.mxu3 }
0x103f   : > { %v8199_v39 = vmul.f32 %v7858_v29, %v7431_v22  ;;  %v14662_v22 = vld [vmem:[#allocation43_spill] sm:$0xff] }
0x1040   : > { %v6680_v17 = vpop.f32.mrf.mxu0 }
0x1041   : > { %v6681_v1 = vadd.f32 %v6680_v17, %v14655_v36  ;;  %v7868_v17 = vpop.permute.xlu1 %7867 }
0x1042   : > { %v7224_v11 = vpop.f32.mrf.mxu2 }
0x1043   : > { %v6861_v3 = vmax.f32 %v6681_v1, 0.0  ;;  %v7225_v43 = vadd.f32 %v13009_v50, %v7224_v11  ;;  %v8346_v1 = vadd.f32 %v8345_v34, %v8199_v39 }
0x1045   : > { %v6942_v14 = vpack.c.bf16 %v6861_v3, %v6860_v28  ;;  %v7432_v40 = vmax.f32 %v7225_v43, 0.0  ;;  %v14660_v28 = vld [vmem:[#allocation35_spill] sm:$0xff] }
0x1047   : > { %7266 = vmatmul.bf16.gmra.mxu3 %v6942_v14  ;;  %v8200_v38 = vmul.f32 %v7863_v55, %v7432_v40 }
0x1048   : > { %v6683_v42 = vpop.f32.mrf.mxu0 }
0x1049   : > { %v6684_v26 = vadd.f32 %v6683_v42, %v14658_v52  ;;  %v8347_v42 = vadd.f32 %v8346_v1, %v8200_v38  ;;  %v7883_v56 = vpop.permute.xlu1 %7882  ;;  %v7888_v38 = vpop.permute.xlu2 %7887 }
0x104a   : > { %v7227_v54 = vpop.f32.mrf.mxu2 }
0x104b   : > { %6722 = vmatmul.bf16.gmra.mxu0 %v6430_v19  ;;  %v6862_v37 = vmax.f32 %v6684_v26, 0.0  ;;  %v7228_v18 = vadd.f32 %v13009_v50, %v7227_v54 }
0x104d   : > { %v7433_v44 = vmax.f32 %v7228_v18, 0.0 }
0x104f   : > { %v8201_v11 = vmul.f32 %v7868_v17, %v7433_v44  ;;  %v7893_v17 = vpop.permute.xlu0 %7892 }
0x1050   : > { %v6685_v16 = vpop.f32.mrf.mxu0 }
0x1051   : > { %v6686_v8 = vadd.f32 %v6685_v16, %v14659_v4  ;;  %v8348_v54 = vadd.f32 %v8347_v42, %v8201_v11 }
0x1052   : > { %v7229_v30 = vpop.f32.mrf.mxu2 }
0x1053   : > { %v6863_v49 = vmax.f32 %v6686_v8, 0.0  ;;  %v7230_v53 = vadd.f32 %v13009_v50, %v7229_v30 }
0x1055   : > { %v6943_v10 = vpack.c.bf16 %v6863_v49, %v6862_v37  ;;  %v7434_v36 = vmax.f32 %v7230_v53, 0.0  ;;  %v6432_v49 = vpack.c.bf16 %v12936_v32, %v12926_v6 }
0x1057   : > { %7271 = vmatmul.bf16.gmra.mxu3 %v6943_v10  ;;  %v8202_v58 = vmul.f32 %v7873_v48, %v7434_v36 }
0x1058   : > { %v6688_v9 = vpop.f32.mrf.mxu0 }
0x1059   : > { %v6689_v3 = vadd.f32 %v6688_v9, %v14660_v28  ;;  %v8349_v4 = vadd.f32 %v8348_v54, %v8202_v58  ;;  %v14663_v9 = vld [vmem:[#allocation45_spill] sm:$0xff] }
0x105a   : > { %v7232_v2 = vpop.f32.mrf.mxu2 }
0x105b   : > { %v7233_v5 = vadd.f32 %v13009_v50, %v7232_v2  ;;  %6727 = vmatmul.bf16.gmra.mxu0 %v6431_v24  ;;  %v6864_v52 = vmax.f32 %v6689_v3, 0.0  ;;  %v6433_v3 = vpack.c.bf16 %v12958_v46, %v12946_v15 }
0x105d   : > { %v7435_v14 = vmax.f32 %v7233_v5, 0.0 }
0x105f   : > { %v8203_v26 = vmul.f32 %v7878_v33, %v7435_v14  ;;  %v7898_v33 = vpop.permute.xlu1 %7897 }
0x1060   : > { %v6690_v51 = vpop.f32.mrf.mxu0 }
0x1061   : > { %v6691_v19 = vadd.f32 %v6690_v51, %v14661_v57  ;;  %v8350_v23 = vadd.f32 %v8349_v4, %v8203_v26  ;;  %v14664_v57 = vld [vmem:[#allocation49_spill] sm:$0xff]  ;;  %v14665_v26 = vld [vmem:[#allocation51_spill] sm:$0xff] }
0x1062   : > { %v7234_v62 = vpop.f32.mrf.mxu2 }
0x1063   : > { %v6865_v7 = vmax.f32 %v6691_v19, 0.0  ;;  %v7235_v16 = vadd.f32 %v13009_v50, %v7234_v62 }
0x1065   : > { %v7436_v8 = vmax.f32 %v7235_v16, 0.0  ;;  %v6944_v21 = vpack.c.bf16 %v6865_v7, %v6864_v52 }
0x1067   : > { %v8204_v30 = vmul.f32 %v7883_v56, %v7436_v8  ;;  %7276 = vmatmul.bf16.gmra.mxu3 %v6944_v21  ;;  %v7903_v21 = vpop.permute.xlu2 %7902 }
0x1068   : > { %v6693_v37 = vpop.f32.mrf.mxu0 }
0x1069   : > { %v8351_v31 = vadd.f32 %v8350_v23, %v8204_v30  ;;  %v6694_v29 = vadd.f32 %v6693_v37, %v14662_v22  ;;  %v6434_v30 = vpack.c.bf16 %v12975_v27, %v12966_v61 }
0x106a   : > { %v7237_v43 = vpop.f32.mrf.mxu3 }
0x106b   : > { %v8352_v10 = vrot.slane %v8351_v31, 4  ;;  %6732 = vmatmul.bf16.gmra.mxu0 %v6432_v49  ;;  %v7238_v55 = vadd.f32 %v13009_v50, %v7237_v43  ;;  %v6866_v53 = vmax.f32 %v6694_v29, 0.0 }
0x106d   : > { %v8353_v63 = vadd.f32 %v8352_v10, %v8351_v31  ;;  %v7437_v44 = vmax.f32 %v7238_v55, 0.0  ;;  %v7908_v10 = vpop.permute.xlu0 %7907 }
0x106f   : > { %v8354_v18 = vrot.slane %v8353_v63, 2  ;;  %v8205_v1 = vmul.f32 %v7888_v38, %v7437_v44 }
0x1070   : > { %v6695_v35 = vpop.f32.mrf.mxu0 }
0x1071   : > { %v8355_v40 = vadd.f32 %v8354_v18, %v8353_v63  ;;  %v6696_v24 = vadd.f32 %v6695_v35, %v14663_v9  ;;  %v14666_v63 = vld [vmem:[#allocation53_spill] sm:$0xff]  ;;  %v14667_v35 = vld [vmem:[#allocation55_spill] sm:$0xff] }
0x1072   : > { %v7239_v13 = vpop.f32.mrf.mxu3 }
0x1073   : > { %v8356_v39 = vrot.slane %v8355_v40, 1  ;;  %v6867_v2 = vmax.f32 %v6696_v24, 0.0  ;;  %v7240_v6 = vadd.f32 %v13009_v50, %v7239_v13 }
0x1075   : > { %v8357_v32 = vadd.f32 %v8356_v39, %v8355_v40  ;;  %v7438_v5 = vmax.f32 %v7240_v6, 0.0  ;;  %v6945_v34 = vpack.c.bf16 %v6867_v2, %v6866_v53  ;;  %v7913_v39 = vpop.permute.xlu1 %7912  ;;  %v6435_v6 = vpack.c.bf16 %v12988_v41, %v12982_v20 }
0x1077   : > { %v8425_v36 = vmax.f32 %v8357_v32, 0.0  ;;  %v8206_v11 = vmul.f32 %v7893_v17, %v7438_v5  ;;  %7281 = vmatmul.bf16.gmra.mxu3 %v6945_v34  ;;  %v7918_v17 = vpop.permute.xlu2 %7917 }
0x1078   : > { %v6698_v28 = vpop.f32.mrf.mxu0 }
0x1079   : > { %v8358_v14 = vadd.f32 %v8206_v11, %v8205_v1  ;;  %v13040_v42 = vsel %vm8443_vm4, %v8425_v36, %v12953_v25  ;;  %v6699_v19 = vadd.f32 %v6698_v28, %v14664_v57  ;;  %v14668_v36 = vld [vmem:[#allocation57_spill] sm:$0xff] }
0x107a   : > { %v7242_v48 = vpop.f32.mrf.mxu3 }
0x107b   : > { %v7243_v51 = vadd.f32 %v13009_v50, %v7242_v48  ;;  %6737 = vmatmul.bf16.gmra.mxu0 %v6433_v3  ;;  %v6868_v4 = vmax.f32 %v6699_v19, 0.0  ;;  %v7923_v19 = vpop.permute.xlu0 %7922 }
0x107d   : > { %v7439_v58 = vmax.f32 %v7243_v51, 0.0 }
0x107f   : > { %v8207_v54 = vmul.f32 %v7898_v33, %v7439_v58 }
0x1080   : > { %v6700_v62 = vpop.f32.mrf.mxu0 }
0x1081   : > { %v8359_v52 = vadd.f32 %v8358_v14, %v8207_v54  ;;  %v6701_v7 = vadd.f32 %v6700_v62, %v14665_v26  ;;  %v14669_v14 = vld [vmem:[#allocation59_spill] sm:$0xff] }
0x1082   : > { %v7244_v16 = vpop.f32.mrf.mxu3 }
0x1083   : > { %v6869_v15 = vmax.f32 %v6701_v7, 0.0  ;;  %v7245_v46 = vadd.f32 %v13009_v50, %v7244_v16 }
0x1085   : > { %v7440_v25 = vmax.f32 %v7245_v46, 0.0  ;;  %v6946_v8 = vpack.c.bf16 %v6869_v15, %v6868_v4  ;;  %v7928_v15 = vpop.permute.xlu1 %7927  ;;  %v14670_v46 = vld [vmem:[#allocation90_spill] sm:$0xff] }
0x1087   : > { %v8208_v56 = vmul.f32 %v7903_v21, %v7440_v25  ;;  %7286 = vmatmul.bf16.gmra.mxu3 %v6946_v8 }
0x1088   : > { %v6703_v23 = vpop.f32.mrf.mxu0 }
0x1089   : > { %v8360_v37 = vadd.f32 %v8359_v52, %v8208_v56  ;;  %v6704_v22 = vadd.f32 %v6703_v23, %v14666_v63  ;;  %v6436_v52 = vpack.c.bf16 %v12998_v59, %v12993_v12  ;;  %v14671_v23 = vld [vmem:[#allocation91_spill] sm:$0xff] }
0x108a   : > { %v7247_v49 = vpop.f32.mrf.mxu3 }
0x108b   : > { %v7248_v31 = vadd.f32 %v13009_v50, %v7247_v49  ;;  %6742 = vmatmul.bf16.gmra.mxu0 %v6434_v30  ;;  %v6870_v24 = vmax.f32 %v6704_v22, 0.0 }
0x108d   : > { %v7441_v43 = vmax.f32 %v7248_v31, 0.0 }
0x108f   : > { %v8209_v29 = vmul.f32 %v7908_v10, %v7441_v43  ;;  %v7933_v10 = vpop.permute.xlu2 %7932 }
0x1090   : > { %v6705_v18 = vpop.f32.mrf.mxu0 }
0x1091   : > { %v8361_v55 = vadd.f32 %v8360_v37, %v8209_v29  ;;  %v6706_v40 = vadd.f32 %v6705_v18, %v14667_v35  ;;  %v6437_v29 = vpack.c.bf16 %v13012_v0, %v13002_v60 }
0x1092   : > { %v7249_v9 = vpop.f32.mrf.mxu3 }
0x1093   : > { %v6871_v53 = vmax.f32 %v6706_v40, 0.0  ;;  %v7250_v13 = vadd.f32 %v13009_v50, %v7249_v9  ;;  %v7938_v9 = vpop.permute.xlu0 %7937 }
0x1095   : > { %v7442_v61 = vmax.f32 %v7250_v13, 0.0  ;;  %v6947_v27 = vpack.c.bf16 %v6871_v53, %v6870_v24  ;;  %v14672_v24 = vld [vmem:[#allocation88_spill] sm:$0xff] }
0x1097   : > { %v8210_v44 = vmul.f32 %v7913_v39, %v7442_v61  ;;  %7291 = vmatmul.bf16.gmra.mxu3 %v6947_v27  ;;  %v14673_v39 = vld [vmem:[#allocation89_spill] sm:$0xff] }
0x1098   : > { %v6708_v2 = vpop.f32.mrf.mxu0 }
0x1099   : > { %v8362_v32 = vadd.f32 %v8361_v55, %v8210_v44  ;;  %v6709_v1 = vadd.f32 %v6708_v2, %v14668_v36  ;;  %v6438_v36 = vpack.c.bf16 %v13028_v47, %v13020_v45 }
0x109a   : > { %v7252_v5 = vpop.f32.mrf.mxu3 }
0x109b   : > { %v7253_v34 = vadd.f32 %v13009_v50, %v7252_v5  ;;  %6747 = vmatmul.bf16.gmra.mxu0 %v6435_v6  ;;  %v6872_v58 = vmax.f32 %v6709_v1, 0.0 }
0x109d   : > { %v7443_v38 = vmax.f32 %v7253_v34, 0.0  ;;  %v7943_v34 = vpop.permute.xlu1 %7942 }
0x109f   : > { %v8211_v11 = vmul.f32 %v7918_v17, %v7443_v38 }
0x10a0   : > { %v6710_v28 = vpop.f32.mrf.mxu0 }
0x10a1   : > { %v8363_v3 = vadd.f32 %v8362_v32, %v8211_v11  ;;  %v6711_v48 = vadd.f32 %v6710_v28, %v14669_v14  ;;  %v7948_v14 = vpop.permute.xlu2 %7947 }
0x10a2   : > { %v7254_v51 = vpop.f32.mrf.mxu3 }
0x10a3   : > { %v6873_v33 = vmax.f32 %v6711_v48, 0.0  ;;  %v7255_v57 = vadd.f32 %v13009_v50, %v7254_v51  ;;  %v14674_v48 = vld [vmem:[#allocation86_spill] sm:$0xff] }
0x10a5   : > { %v6948_v20 = vpack.c.bf16 %v6873_v33, %v6872_v58  ;;  %v7444_v41 = vmax.f32 %v7255_v57, 0.0 }
0x10a7   : > { %v8212_v54 = vmul.f32 %v7923_v19, %v7444_v41  ;;  %7296 = vmatmul.bf16.gmra.mxu3 %v6948_v20  ;;  %v14675_v20 = vld [vmem:[#allocation87_spill] sm:$0xff] }
0x10a8   : > { %v6713_v62 = vpop.f32.mrf.mxu0 }
0x10a9   : > { %v8364_v26 = vadd.f32 %v8363_v3, %v8212_v54  ;;  %v6714_v25 = vadd.f32 %v6713_v62, %v14670_v46 }
0x10aa   : > { %v7257_v7 = vpop.f32.mrf.mxu3 }
0x10ab   : > { %v7258_v16 = vadd.f32 %v13009_v50, %v7257_v7  ;;  %6752 = vmatmul.bf16.gmra.mxu0 %v6436_v52  ;;  %v6874_v49 = vmax.f32 %v6714_v25, 0.0 }
0x10ad   : > { %v7445_v4 = vmax.f32 %v7258_v16, 0.0 }
0x10af   : > { %v8213_v8 = vmul.f32 %v7928_v15, %v7445_v4 }
0x10b0   : > { %v6715_v21 = vpop.f32.mrf.mxu0 }
0x10b1   : > { %v8365_v56 = vadd.f32 %v8364_v26, %v8213_v8  ;;  %v6716_v30 = vadd.f32 %v6715_v21, %v14671_v23  ;;  %v7953_v26 = vpop.permute.xlu0 %7952  ;;  %v7958_v8 = vpop.permute.xlu1 %7957  ;;  %v14676_v21 = vld [vmem:[#allocation75_spill] sm:$0xff] }
0x10b2   : > { %v7259_v37 = vpop.f32.mrf.mxu3 }
0x10b3   : > { %v6875_v31 = vmax.f32 %v6716_v30, 0.0  ;;  %v7260_v43 = vadd.f32 %v13009_v50, %v7259_v37 }
0x10b5   : > { %v6949_v12 = vpack.c.bf16 %v6875_v31, %v6874_v49  ;;  %v7446_v59 = vmax.f32 %v7260_v43, 0.0  ;;  %v14677_v49 = vld [vmem:[#allocation79_spill] sm:$0xff] }
0x10b7   : > { %v8214_v63 = vmul.f32 %v7933_v10, %v7446_v59  ;;  %7301 = vmatmul.bf16.gmra.mxu3 %v6949_v12 }
0x10b8   : > { %v6718_v22 = vpop.f32.mrf.mxu0 }
0x10b9   : > { %v8366_v18 = vadd.f32 %v8365_v56, %v8214_v63  ;;  %v6719_v53 = vadd.f32 %v6718_v22, %v14672_v24 }
0x10ba   : > { %v7262_v55 = vpop.f32.mrf.mxu3 }
0x10bb   : > { %v7263_v35 = vadd.f32 %v13009_v50, %v7262_v55  ;;  %6757 = vmatmul.bf16.gmra.mxu0 %v6437_v29  ;;  %v6876_v6 = vmax.f32 %v6719_v53, 0.0  ;;  %v7963_v29 = vpop.permute.xlu2 %7962  ;;  %v14678_v53 = vld [vmem:[#allocation83_spill] sm:$0xff] }
0x10bd   : > { %v7447_v40 = vmax.f32 %v7263_v35, 0.0 }
0x10bf   : > { %v8215_v13 = vmul.f32 %v7938_v9, %v7447_v40 }
0x10c0   : > { %v6720_v61 = vpop.f32.mrf.mxu0 }
0x10c1   : > { %v8367_v27 = vadd.f32 %v8366_v18, %v8215_v13  ;;  %v6721_v44 = vadd.f32 %v6720_v61, %v14673_v39 }
0x10c2   : > { %v7264_v2 = vpop.f32.mrf.mxu3 }
0x10c3   : > { %v6877_v32 = vmax.f32 %v6721_v44, 0.0  ;;  %v7265_v5 = vadd.f32 %v13009_v50, %v7264_v2  ;;  %v14679_v2 = vld [vmem:[#allocation84_spill] sm:$0xff] }
0x10c5   : > { %v6950_v60 = vpack.c.bf16 %v6877_v32, %v6876_v6  ;;  %v7448_v0 = vmax.f32 %v7265_v5, 0.0 }
0x10c7   : > { %v8216_v38 = vmul.f32 %v7943_v34, %v7448_v0  ;;  %7306 = vmatmul.bf16.gmra.mxu3 %v6950_v60 }
0x10c8   : > { %v6723_v17 = vpop.f32.mrf.mxu0 }
0x10c9   : > { %v8368_v1 = vadd.f32 %v8367_v27, %v8216_v38  ;;  %v6724_v51 = vadd.f32 %v6723_v17, %v14674_v48 }
0x10ca   : > { %v7267_v11 = vpop.f32.mrf.mxu3 }
0x10cb   : > { %v7268_v28 = vadd.f32 %v13009_v50, %v7267_v11  ;;  %6762 = vmatmul.bf16.gmra.mxu0 %v6438_v36  ;;  %v6878_v54 = vmax.f32 %v6724_v51, 0.0  ;;  %v7968_v11 = vpop.permute.xlu0 %7967 }
0x10cd   : > { %v7449_v3 = vmax.f32 %v7268_v28, 0.0  ;;  %v7973_v28 = vpop.permute.xlu1 %7972 }
0x10cf   : > { %v8217_v58 = vmul.f32 %v7948_v14, %v7449_v3 }
0x10d0   : > { %v6725_v33 = vpop.f32.mrf.mxu0 }
0x10d1   : > { %v8369_v57 = vadd.f32 %v8368_v1, %v8217_v58  ;;  %v6726_v41 = vadd.f32 %v6725_v33, %v14675_v20 }
0x10d2   : > { %v7269_v19 = vpop.f32.mrf.mxu3 }
0x10d3   : > { %v6879_v62 = vmax.f32 %v6726_v41, 0.0  ;;  %v7270_v52 = vadd.f32 %v13009_v50, %v7269_v19  ;;  %v7978_v19 = vpop.permute.xlu2 %7977 }
0x10d5   : > { %v6951_v45 = vpack.c.bf16 %v6879_v62, %v6878_v54  ;;  %v7450_v47 = vmax.f32 %v7270_v52, 0.0  ;;  %v14680_v54 = vld [vmem:[#allocation92_spill] sm:$0xff] }
0x10d7   : > { %v8218_v7 = vmul.f32 %v7953_v26, %v7450_v47  ;;  %7311 = vmatmul.bf16.gmra.mxu3 %v6951_v45  ;;  %v14681_v26 = vld [vmem:[#allocation93_spill] sm:$0xff] }
0x10d8   : > { %v6728_v16 = vpop.f32.mrf.mxu0 }
0x10d9   : > { %v8370_v4 = vadd.f32 %v8369_v57, %v8218_v7  ;;  %v6729_v56 = vadd.f32 %v6728_v16, %v14676_v21 }
0x10da   : > { %v7272_v15 = vpop.f32.mrf.mxu3 }
0x10db   : > { %v7273_v46 = vadd.f32 %v13009_v50, %v7272_v15  ;;  %v6880_v12 = vmax.f32 %v6729_v56, 0.0 }
0x10dd   : > { %v7451_v25 = vmax.f32 %v7273_v46, 0.0 }
0x10df   : > { %v8219_v23 = vmul.f32 %v7958_v8, %v7451_v25  ;;  %v7983_v8 = vpop.permute.xlu0 %7982 }
0x10e0   : > { %v6730_v30 = vpop.f32.mrf.mxu0 }
0x10e1   : > { %v8371_v37 = vadd.f32 %v8370_v4, %v8219_v23  ;;  %v6731_v31 = vadd.f32 %v6730_v30, %v14677_v49 }
0x10e2   : > { %v7274_v43 = vpop.f32.mrf.mxu3 }
0x10e3   : > { %v6881_v59 = vmax.f32 %v6731_v31, 0.0  ;;  %v7275_v10 = vadd.f32 %v13009_v50, %v7274_v43  ;;  %v7988_v31 = vpop.permute.xlu1 %7987  ;;  %v14682_v43 = vld [vmem:[#allocation95_spill] sm:$0xff] }
0x10e5   : > { %v6952_v63 = vpack.c.bf16 %v6881_v59, %v6880_v12  ;;  %v7452_v22 = vmax.f32 %v7275_v10, 0.0 }
0x10e7   : > { %v8220_v18 = vmul.f32 %v7963_v29, %v7452_v22  ;;  %7316 = vmatmul.bf16.gmra.mxu3 %v6952_v63  ;;  %v14683_v22 = vld [vmem:[#allocation96_spill] sm:$0xff] }
0x10e8   : > { %v6733_v55 = vpop.f32.mrf.mxu0 }
0x10e9   : > { %v8372_v35 = vadd.f32 %v8371_v37, %v8220_v18  ;;  %v6734_v13 = vadd.f32 %v6733_v55, %v14678_v53  ;;  %v7993_v53 = vpop.permute.xlu2 %7992 }
0x10ea   : > { %v7277_v40 = vpop.f32.mrf.mxu3 }
0x10eb   : > { %v8373_v9 = vrot.slane %v8372_v35, 4  ;;  %v7278_v27 = vadd.f32 %v13009_v50, %v7277_v40  ;;  %v6882_v32 = vmax.f32 %v6734_v13, 0.0 }
0x10ed   : > { %v8374_v24 = vadd.f32 %v8373_v9, %v8372_v35  ;;  %v7453_v0 = vmax.f32 %v7278_v27, 0.0 }
0x10ef   : > { %v8375_v61 = vrot.slane %v8374_v24, 2  ;;  %v8221_v14 = vmul.f32 %v7968_v11, %v7453_v0 }
0x10f0   : > { %v6735_v39 = vpop.f32.mrf.mxu0 }
0x10f1   : > { %v8376_v44 = vadd.f32 %v8375_v61, %v8374_v24  ;;  %v6736_v6 = vadd.f32 %v6735_v39, %v14679_v2 }
0x10f2   : > { %v7279_v5 = vpop.f32.mrf.mxu3 }
0x10f3   : > { %v8377_v60 = vrot.slane %v8376_v44, 1  ;;  %v6883_v34 = vmax.f32 %v6736_v6, 0.0  ;;  %v7280_v38 = vadd.f32 %v13009_v50, %v7279_v5  ;;  %v7998_v6 = vpop.permute.xlu0 %7997 }
0x10f5   : > { %v8378_v17 = vadd.f32 %v8377_v60, %v8376_v44  ;;  %v6953_v36 = vpack.c.bf16 %v6883_v34, %v6882_v32  ;;  %v7454_v1 = vmax.f32 %v7280_v38, 0.0  ;;  %v14684_v32 = vld [vmem:[#allocation98_spill] sm:$0xff]  ;;  %v14685_v38 = vld [vmem:[#allocation99_spill] sm:$0xff] }
0x10f7   : > { %v8426_v3 = vmax.f32 %v8378_v17, 0.0  ;;  %v8222_v48 = vmul.f32 %v7973_v28, %v7454_v1  ;;  %7321 = vmatmul.bf16.gmra.mxu3 %v6953_v36 }
0x10f8   : > { %v6738_v51 = vpop.f32.mrf.mxu0 }
0x10f9   : > { %v8379_v58 = vadd.f32 %v8222_v48, %v8221_v14  ;;  %v13085_v33 = vsel %vm8445_vm5, %v8426_v3, %v13040_v42  ;;  %v6739_v62 = vadd.f32 %v6738_v51, %v14680_v54  ;;  %v8003_v48 = vpop.permute.xlu1 %8002  ;;  %v8008_v54 = vpop.permute.xlu2 %8007 }
0x10fa   : > { %v7282_v57 = vpop.f32.mrf.mxu3 }
0x10fb   : > { %v7283_v20 = vadd.f32 %v13009_v50, %v7282_v57  ;;  %v6884_v4 = vmax.f32 %v6739_v62, 0.0  ;;  %v14686_v62 = vld [vmem:[#allocation128_spill] sm:$0xff] }
0x10fd   : > { %v7455_v41 = vmax.f32 %v7283_v20, 0.0 }
0x10ff   : > { %v8223_v52 = vmul.f32 %v7978_v19, %v7455_v41 }
0x1100   : > { %v6740_v45 = vpop.f32.mrf.mxu0 }
0x1101   : > { %v8380_v47 = vadd.f32 %v8379_v58, %v8223_v52  ;;  %v6741_v7 = vadd.f32 %v6740_v45, %v14681_v26 }
0x1102   : > { %v7284_v16 = vpop.f32.mrf.mxu3 }
0x1103   : > { %v6885_v15 = vmax.f32 %v6741_v7, 0.0  ;;  %v7285_v46 = vadd.f32 %v13009_v50, %v7284_v16  ;;  %v14687_v7 = vld [vmem:[#allocation129_spill] sm:$0xff] }
0x1105   : > { %v6954_v25 = vpack.c.bf16 %v6885_v15, %v6884_v4  ;;  %v7456_v42 = vmax.f32 %v7285_v46, 0.0 }
0x1107   : > { %v8224_v21 = vmul.f32 %v7983_v8, %v7456_v42  ;;  %7326 = vmatmul.bf16.gmra.mxu3 %v6954_v25 }
0x1108   : > { %v6743_v56 = vpop.f32.mrf.mxu0 }
0x1109   : > { %v8381_v23 = vadd.f32 %v8380_v47, %v8224_v21  ;;  %v6744_v12 = vadd.f32 %v6743_v56, %v14682_v43  ;;  %v8013_v21 = vpop.permute.xlu0 %8012  ;;  %v8018_v43 = vpop.permute.xlu1 %8017 }
0x110a   : > { %v7287_v30 = vpop.f32.mrf.mxu3 }
0x110b   : > { %v7288_v37 = vadd.f32 %v13009_v50, %v7287_v30  ;;  %v6886_v55 = vmax.f32 %v6744_v12, 0.0  ;;  %v14688_v12 = vld [vmem:[#allocation125_spill] sm:$0xff] }
0x110d   : > { %v7457_v49 = vmax.f32 %v7288_v37, 0.0 }
0x110f   : > { %v8225_v59 = vmul.f32 %v7988_v31, %v7457_v49 }
0x1110   : > { %v6745_v10 = vpop.f32.mrf.mxu0 }
0x1111   : > { %v8382_v63 = vadd.f32 %v8381_v23, %v8225_v59  ;;  %v6746_v29 = vadd.f32 %v6745_v10, %v14683_v22 }
0x1112   : > { %v7289_v18 = vpop.f32.mrf.mxu3 }
0x1113   : > { %v6887_v35 = vmax.f32 %v6746_v29, 0.0  ;;  %v7290_v40 = vadd.f32 %v13009_v50, %v7289_v18  ;;  %v14689_v29 = vld [vmem:[#allocation126_spill] sm:$0xff] }
0x1115   : > { %v6955_v9 = vpack.c.bf16 %v6887_v35, %v6886_v55  ;;  %v7458_v24 = vmax.f32 %v7290_v40, 0.0 }
0x1117   : > { %v8226_v13 = vmul.f32 %v7993_v53, %v7458_v24  ;;  %7331 = vmatmul.bf16.gmra.mxu3 %v6955_v9 }
0x1118   : > { %v6748_v61 = vpop.f32.mrf.mxu0 }
0x1119   : > { %v8383_v27 = vadd.f32 %v8382_v63, %v8226_v13  ;;  %v6749_v5 = vadd.f32 %v6748_v61, %v14684_v32  ;;  %v8023_v13 = vpop.permute.xlu2 %8022  ;;  %v8028_v32 = vpop.permute.xlu0 %8027 }
0x111a   : > { %v7292_v39 = vpop.f32.mrf.mxu3 }
0x111b   : > { %v7293_v44 = vadd.f32 %v13009_v50, %v7292_v39  ;;  %v6888_v1 = vmax.f32 %v6749_v5, 0.0  ;;  %v14690_v5 = vld [vmem:[#allocation123_spill] sm:$0xff] }
0x111d   : > { %v7459_v2 = vmax.f32 %v7293_v44, 0.0 }
0x111f   : > { %v8227_v60 = vmul.f32 %v7998_v6, %v7459_v2 }
0x1120   : > { %v6750_v0 = vpop.f32.mrf.mxu0 }
0x1121   : > { %v8384_v34 = vadd.f32 %v8383_v27, %v8227_v60  ;;  %v6751_v17 = vadd.f32 %v6750_v0, %v14685_v38 }
0x1122   : > { %v7294_v36 = vpop.f32.mrf.mxu3 }
0x1123   : > { %v6889_v11 = vmax.f32 %v6751_v17, 0.0  ;;  %v7295_v28 = vadd.f32 %v13009_v50, %v7294_v36  ;;  %v14691_v17 = vld [vmem:[#allocation124_spill] sm:$0xff] }
0x1125   : > { %v6956_v3 = vpack.c.bf16 %v6889_v11, %v6888_v1  ;;  %v7460_v14 = vmax.f32 %v7295_v28, 0.0 }
0x1127   : > { %v8228_v51 = vmul.f32 %v8003_v48, %v7460_v14  ;;  %7336 = vmatmul.bf16.gmra.mxu3 %v6956_v3 }
0x1128   : > { %v6753_v58 = vpop.f32.mrf.mxu0 }
0x1129   : > { %v8385_v57 = vadd.f32 %v8384_v34, %v8228_v51  ;;  %v6754_v52 = vadd.f32 %v6753_v58, %v14686_v62  ;;  %v8033_v51 = vpop.permute.xlu1 %8032 }
0x112a   : > { %v7297_v20 = vpop.f32.mrf.mxu3 }
0x112b   : > { %v7298_v41 = vadd.f32 %v13009_v50, %v7297_v20  ;;  %v6890_v15 = vmax.f32 %v6754_v52, 0.0 }
0x112d   : > { %v7461_v19 = vmax.f32 %v7298_v41, 0.0 }
0x112f   : > { %v8229_v45 = vmul.f32 %v8008_v54, %v7461_v19  ;;  %v8038_v54 = vpop.permute.xlu2 %8037 }
0x1130   : > { %v6755_v47 = vpop.f32.mrf.mxu0 }
0x1131   : > { %v8386_v26 = vadd.f32 %v8385_v57, %v8229_v45  ;;  %v6756_v16 = vadd.f32 %v6755_v47, %v14687_v7  ;;  %v8043_v7 = vpop.permute.xlu0 %8042 }
0x1132   : > { %v7299_v4 = vpop.f32.mrf.mxu3 }
0x1133   : > { %v6891_v46 = vmax.f32 %v6756_v16, 0.0  ;;  %v7300_v25 = vadd.f32 %v13009_v50, %v7299_v4 }
0x1135   : > { %v6957_v42 = vpack.c.bf16 %v6891_v46, %v6890_v15  ;;  %v7462_v8 = vmax.f32 %v7300_v25, 0.0 }
0x1137   : > { %v8230_v56 = vmul.f32 %v8013_v21, %v7462_v8  ;;  %7341 = vmatmul.bf16.gmra.mxu3 %v6957_v42 }
0x1138   : > { %v6758_v23 = vpop.f32.mrf.mxu0 }
0x1139   : > { %v8387_v30 = vadd.f32 %v8386_v26, %v8230_v56  ;;  %v6759_v59 = vadd.f32 %v6758_v23, %v14688_v12  ;;  %v8053_v12 = vpop.permute.xlu2 %8052 }
0x113a   : > { %v7302_v37 = vpop.f32.mrf.mxu3 }
0x113b   : > { %v7303_v49 = vadd.f32 %v13009_v50, %v7302_v37  ;;  %v6892_v35 = vmax.f32 %v6759_v59, 0.0 }
0x113d   : > { %v7463_v31 = vmax.f32 %v7303_v49, 0.0 }
0x113f   : > { %v8231_v10 = vmul.f32 %v8018_v43, %v7463_v31  ;;  %v8048_v43 = vpop.permute.xlu1 %8047 }
0x1140   : > { %v6760_v63 = vpop.f32.mrf.mxu0 }
0x1141   : > { %v8388_v22 = vadd.f32 %v8387_v30, %v8231_v10  ;;  %v6761_v18 = vadd.f32 %v6760_v63, %v14689_v29 }
0x1142   : > { %v7304_v55 = vpop.f32.mrf.mxu3 }
0x1143   : > { %v6893_v40 = vmax.f32 %v6761_v18, 0.0  ;;  %v7305_v9 = vadd.f32 %v13009_v50, %v7304_v55 }
0x1145   : > { %v6958_v24 = vpack.c.bf16 %v6893_v40, %v6892_v35  ;;  %v7464_v53 = vmax.f32 %v7305_v9, 0.0  ;;  %v8058_v40 = vpop.permute.xlu0 %8057 }
0x1147   : > { %v8232_v61 = vmul.f32 %v8023_v13, %v7464_v53  ;;  %7346 = vmatmul.bf16.gmra.mxu3 %v6958_v24 }
0x1148   : > { %v6763_v27 = vpop.f32.mrf.mxu0 }
0x1149   : > { %v8389_v39 = vadd.f32 %v8388_v22, %v8232_v61  ;;  %v6764_v60 = vadd.f32 %v6763_v27, %v14690_v5  ;;  %v8063_v27 = vpop.permute.xlu1 %8062 }
0x114a   : > { %v7307_v44 = vpop.f32.mrf.mxu3 }
0x114b   : > { %v7308_v2 = vadd.f32 %v13009_v50, %v7307_v44  ;;  %v6894_v11 = vmax.f32 %v6764_v60, 0.0 }
0x114d   : > { %v7465_v6 = vmax.f32 %v7308_v2, 0.0 }
0x114f   : > { %v8233_v0 = vmul.f32 %v8028_v32, %v7465_v6 }
0x1150   : > { %v6765_v34 = vpop.f32.mrf.mxu0 }
0x1151   : > { %v8390_v38 = vadd.f32 %v8389_v39, %v8233_v0  ;;  %v6766_v36 = vadd.f32 %v6765_v34, %v14691_v17 }
0x1152   : > { %v7309_v1 = vpop.f32.mrf.mxu3 }
0x1153   : > { %v6895_v28 = vmax.f32 %v6766_v36, 0.0  ;;  %v7310_v3 = vadd.f32 %v13009_v50, %v7309_v1 }
0x1155   : > { %v6959_v14 = vpack.c.bf16 %v6895_v28, %v6894_v11  ;;  %v7466_v48 = vmax.f32 %v7310_v3, 0.0  ;;  %v8073_v28 = vpop.permute.xlu0 %8072  ;;  %v8078_v3 = vpop.permute.xlu1 %8077 }
0x1157   : > { %v8234_v58 = vmul.f32 %v8033_v51, %v7466_v48  ;;  %7351 = vmatmul.bf16.gmra.mxu3 %v6959_v14 }
0x1159   : > { %v8391_v57 = vadd.f32 %v8390_v38, %v8234_v58 }
0x115a   : > { %v7312_v20 = vpop.f32.mrf.mxu3 }
0x115b   : > { %v7313_v41 = vadd.f32 %v13009_v50, %v7312_v20 }
0x115d   : > { %v7467_v19 = vmax.f32 %v7313_v41, 0.0  ;;  %v8088_v41 = vpop.permute.xlu0 %8087 }
0x115f   : > { %v8235_v62 = vmul.f32 %v8038_v54, %v7467_v19 }
0x1161   : > { %v8392_v52 = vadd.f32 %v8391_v57, %v8235_v62 }
0x1162   : > { %v7314_v45 = vpop.f32.mrf.mxu3 }
0x1163   : > { %v7315_v47 = vadd.f32 %v13009_v50, %v7314_v45 }
0x1165   : > { %v7468_v26 = vmax.f32 %v7315_v47, 0.0  ;;  %v8093_v47 = vpop.permute.xlu1 %8092 }
0x1167   : > { %v8236_v16 = vmul.f32 %v8043_v7, %v7468_v26 }
0x1169   : > { %v8393_v4 = vadd.f32 %v8392_v52, %v8236_v16 }
0x116a   : > { %v7317_v15 = vpop.f32.mrf.mxu3 }
0x116b   : > { %v8394_v46 = vrot.slane %v8393_v4, 4  ;;  %v7318_v8 = vadd.f32 %v13009_v50, %v7317_v15 }
0x116d   : > { %v8395_v25 = vadd.f32 %v8394_v46, %v8393_v4  ;;  %v7469_v30 = vmax.f32 %v7318_v8, 0.0 }
0x116f   : > { %v8396_v42 = vrot.slane %v8395_v25, 2  ;;  %v8237_v10 = vmul.f32 %v8048_v43, %v7469_v30 }
0x1171   : > { %v8397_v21 = vadd.f32 %v8396_v42, %v8395_v25 }
0x1172   : > { %v7319_v56 = vpop.f32.mrf.mxu3 }
0x1173   : > { %v8398_v23 = vrot.slane %v8397_v21, 1  ;;  %v7320_v37 = vadd.f32 %v13009_v50, %v7319_v56 }
0x1175   : > { %v8399_v49 = vadd.f32 %v8398_v23, %v8397_v21  ;;  %v7470_v31 = vmax.f32 %v7320_v37, 0.0  ;;  %v8103_v37 = vpop.permute.xlu0 %8102 }
0x1177   : > { %v8427_v59 = vmax.f32 %v8399_v49, 0.0  ;;  %v8238_v63 = vmul.f32 %v8053_v12, %v7470_v31 }
0x1179   : > { %v8400_v22 = vadd.f32 %v8238_v63, %v8237_v10  ;;  %v13116_v29 = vsel %vm8447_vm6, %v8427_v59, %v13085_v33  ;;  %v8068_v33 = vpop.permute.xlu2 %8067 }
0x117a   : > { %v7322_v18 = vpop.f32.mrf.mxu3 }
0x117b   : > { %v7323_v55 = vadd.f32 %v13009_v50, %v7322_v18 }
0x117d   : > { %v7471_v35 = vmax.f32 %v7323_v55, 0.0  ;;  %v8108_v55 = vpop.permute.xlu1 %8107 }
0x117f   : > { %v8239_v9 = vmul.f32 %v8058_v40, %v7471_v35 }
0x1181   : > { %v8401_v24 = vadd.f32 %v8400_v22, %v8239_v9  ;;  %v8083_v58 = vpop.permute.xlu2 %8082 }
0x1182   : > { %v7324_v53 = vpop.f32.mrf.mxu3 }
0x1183   : > { %v7325_v13 = vadd.f32 %v13009_v50, %v7324_v53 }
0x1185   : > { %v7472_v61 = vmax.f32 %v7325_v13, 0.0 }
0x1187   : > { %v8240_v39 = vmul.f32 %v8063_v27, %v7472_v61 }
0x1189   : > { %v8402_v44 = vadd.f32 %v8401_v24, %v8240_v39  ;;  %v8098_v8 = vpop.permute.xlu2 %8097 }
0x118a   : > { %v7327_v2 = vpop.f32.mrf.mxu3 }
0x118b   : > { %v7328_v6 = vadd.f32 %v13009_v50, %v7327_v2 }
0x118d   : > { %v7473_v32 = vmax.f32 %v7328_v6, 0.0 }
0x118f   : > { %v8241_v5 = vmul.f32 %v8068_v33, %v7473_v32 }
0x1191   : > { %v8403_v60 = vadd.f32 %v8402_v44, %v8241_v5  ;;  %v8113_v61 = vpop.permute.xlu2 %8112  ;;  %v8118_v44 = vpop.permute.xlu0 %8117 }
0x1192   : > { %v7329_v0 = vpop.f32.mrf.mxu3 }
0x1193   : > { %v7330_v14 = vadd.f32 %v13009_v50, %v7329_v0  ;;  %v8123_v0 = vpop.permute.xlu1 %8122 }
0x1195   : > { %v7474_v57 = vmax.f32 %v7330_v14, 0.0 }
0x1197   : > { %v8242_v62 = vmul.f32 %v8073_v28, %v7474_v57 }
0x1199   : > { %v8404_v15 = vadd.f32 %v8403_v60, %v8242_v62 }
0x119a   : > { %v7332_v34 = vpop.f32.mrf.mxu3 }
0x119b   : > { %v7333_v51 = vadd.f32 %v13009_v50, %v7332_v34 }
0x119d   : > { %v7475_v19 = vmax.f32 %v7333_v51, 0.0 }
0x119f   : > { %v8243_v7 = vmul.f32 %v8078_v3, %v7475_v19 }
0x11a1   : > { %v8405_v21 = vadd.f32 %v8404_v15, %v8243_v7 }
0x11a2   : > { %v7334_v38 = vpop.f32.mrf.mxu3 }
0x11a3   : > { %v7335_v20 = vadd.f32 %v13009_v50, %v7334_v38 }
0x11a5   : > { %v7476_v52 = vmax.f32 %v7335_v20, 0.0 }
0x11a7   : > { %v8244_v46 = vmul.f32 %v8083_v58, %v7476_v52 }
0x11a9   : > { %v8406_v49 = vadd.f32 %v8405_v21, %v8244_v46 }
0x11aa   : > { %v7337_v17 = vpop.f32.mrf.mxu3 }
0x11ab   : > { %v7338_v54 = vadd.f32 %v13009_v50, %v7337_v17 }
0x11ad   : > { %v7477_v16 = vmax.f32 %v7338_v54, 0.0 }
0x11af   : > { %v8245_v56 = vmul.f32 %v8088_v41, %v7477_v16 }
0x11b1   : > { %v8407_v10 = vadd.f32 %v8406_v49, %v8245_v56 }
0x11b2   : > { %v7339_v36 = vpop.f32.mrf.mxu3 }
0x11b3   : > { %v7340_v45 = vadd.f32 %v13009_v50, %v7339_v36 }
0x11b5   : > { %v7478_v25 = vmax.f32 %v7340_v45, 0.0 }
0x11b7   : > { %v8246_v31 = vmul.f32 %v8093_v47, %v7478_v25 }
0x11b9   : > { %v8408_v35 = vadd.f32 %v8407_v10, %v8246_v31 }
0x11ba   : > { %v7342_v1 = vpop.f32.mrf.mxu3 }
0x11bb   : > { %v7343_v4 = vadd.f32 %v13009_v50, %v7342_v1 }
0x11bd   : > { %v7479_v23 = vmax.f32 %v7343_v4, 0.0 }
0x11bf   : > { %v8247_v63 = vmul.f32 %v8098_v8, %v7479_v23 }
0x11c1   : > { %v8409_v24 = vadd.f32 %v8408_v35, %v8247_v63 }
0x11c2   : > { %v7344_v11 = vpop.f32.mrf.mxu3 }
0x11c3   : > { %v7345_v42 = vadd.f32 %v13009_v50, %v7344_v11 }
0x11c5   : > { %v7480_v43 = vmax.f32 %v7345_v42, 0.0 }
0x11c7   : > { %v8248_v40 = vmul.f32 %v8103_v37, %v7480_v43 }
0x11c9   : > { %v8410_v27 = vadd.f32 %v8409_v24, %v8248_v40 }
0x11ca   : > { %v7347_v48 = vpop.f32.mrf.mxu3 }
0x11cb   : > { %v7348_v30 = vadd.f32 %v13009_v50, %v7347_v48 }
0x11cd   : > { %v7481_v22 = vmax.f32 %v7348_v30, 0.0 }
0x11cf   : > { %v8249_v53 = vmul.f32 %v8108_v55, %v7481_v22 }
0x11d1   : > { %v8411_v6 = vadd.f32 %v8410_v27, %v8249_v53 }
0x11d2   : > { %v7349_v26 = vpop.f32.mrf.mxu3 }
0x11d3   : > { %v7350_v12 = vadd.f32 %v13009_v50, %v7349_v26 }
0x11d5   : > { %v7482_v9 = vmax.f32 %v7350_v12, 0.0 }
0x11d7   : > { %v8250_v39 = vmul.f32 %v8113_v61, %v7482_v9 }
0x11d9   : > { %v8412_v5 = vadd.f32 %v8411_v6, %v8250_v39 }
0x11da   : > { %v7352_v59 = vpop.f32.mrf.mxu3 }
0x11db   : > { %v7353_v18 = vadd.f32 %v13009_v50, %v7352_v59 }
0x11dd   : > { %v7483_v13 = vmax.f32 %v7353_v18, 0.0 }
0x11df   : > { %v8251_v32 = vmul.f32 %v8118_v44, %v7483_v13 }
0x11e1   : > { %v8413_v34 = vadd.f32 %v8412_v5, %v8251_v32 }
0x11e2   : > { %v7354_v2 = vpop.f32.mrf.mxu3 }
0x11e3   : > { %v7355_v33 = vadd.f32 %v13009_v50, %v7354_v2 }
0x11e5   : > { %v7484_v60 = vmax.f32 %v7355_v33, 0.0 }
0x11e7   : > { %v8252_v38 = vmul.f32 %v8123_v0, %v7484_v60 }
0x11e9   : > { %v8414_v17 = vadd.f32 %v8413_v34, %v8252_v38 }
0x11eb   : > { %v8415_v36 = vrot.slane %v8414_v17, 4 }
0x11ed   : > { %v8416_v1 = vadd.f32 %v8415_v36, %v8414_v17 }
0x11ef   : > { %v8417_v11 = vrot.slane %v8416_v1, 2 }
0x11f1   : > { %v8418_v28 = vadd.f32 %v8417_v11, %v8416_v1 }
0x11f3   : > { %v8419_v3 = vrot.slane %v8418_v28, 1 }
0x11f5   : > { %v8420_v14 = vadd.f32 %v8419_v3, %v8418_v28 }
0x11f7   : > { %v8428_v50 = vmax.f32 %v8420_v14, 0.0 }
0x11f9   : > { %v8450_v48 = vsel %vm8449_vm7, %v8428_v50, %v13116_v29 }
0x11fa   : > { %8452 = vst [vmem:[%s364_s22] sm:$0xff] %v8450_v48 }
0x11fb   : > { %9154 = shalt.err (!%p9151_p3)
}
0x11fc   : > { %9060 = dma.vmem_to_hbm [thread:$0]  (%p9277_p5), %s8467_s24, 128, %s8469_s25, %s8454_s26  }
0x11fd PF: > { %p9066_p4 = scmp.ge.s32.totalorder %s9189_s12, 2  ;;  %s8480_s29 = sand.u32 1, %s9177_s30  }
0x11fe   : > { %s8481_s17 = scalar_lea.sflag [#allocation3], %s8480_s29 }
0x11ff   : > { %p9063_p7 = pnand %p9066_p4, %p9281_p6 }
0x1201   : > { %p9064_p8 = pneg %p9063_p7 }
0x1203   : > { %9172 = dma.done.wait (%p9064_p8), %s8481_s17, 128  }
0x1204   : > { %9174 = vsyncadd (%p9064_p8), %s8481_s17, 4294967168  ;;  %p19_p9 = scmp.ge.s32.totalorder %s9265_s15, 4   ;;  %s14692_s30 = smov %s9181_s10 }
0x1205   : > { %s14693_s10 = smov %s9185_s11  ;;  %s14694_s11 = smov %s9275_s18 }
0x1206   : > { %s14695_s12 = smov %s9265_s15  ;;  %21 = sbr.rel (!%p19_p9) target bundleno = 3 (0x3), region = 97 }
0x120b   :  { %8487 = vsyncpa [#allocation3], 1 }
0x120c   :  { %8489 = vsyncpa [#allocation3 + $0x1], 1 }

</bundles_post_ra>
